<compile_context>
chip_gen: v6e
topology: v6e:2x2x1
jax: 0.10.0
libtpu: 0.0.40
codegen_flags: <defaults>
</compile_context>

<pallas_src>
import functools

import jax
import jax.numpy as jnp
from jax.experimental import pallas as pl
from jax.experimental.pallas import tpu as pltpu

LANE = 128


def _round_up(x, m):
    return (x + m - 1) // m * m


def _pad_c(c):
    return _round_up(c, LANE)


# ----------------------------------------------------------------------------
# Pallas kernels
# ----------------------------------------------------------------------------
def _matmul_bias_act_kernel(x_ref, w_ref, b_ref, o_ref, *, relu):
    # bf16 x bf16 -> f32 accumulate on the MXU; f32 epilogue (bias + ReLU).
    acc = jnp.dot(x_ref[...], w_ref[...], preferred_element_type=jnp.float32)
    y = acc + b_ref[...]
    if relu:
        y = jnp.maximum(y, 0.0)
    o_ref[...] = y.astype(o_ref.dtype)


def _matmul_bias_res_act_kernel(x_ref, w_ref, b_ref, r_ref, o_ref, *, relu):
    acc = jnp.dot(x_ref[...], w_ref[...], preferred_element_type=jnp.float32)
    y = acc + b_ref[...] + r_ref[...].astype(jnp.float32)
    if relu:
        y = jnp.maximum(y, 0.0)
    o_ref[...] = y.astype(o_ref.dtype)


def _max9_kernel(x_ref, o_ref):
    # x_ref: [9, M, C] (the 9 shifted pooling windows), reduce-max over taps in f32.
    m = x_ref[0].astype(jnp.float32)
    for i in range(1, 9):
        m = jnp.maximum(m, x_ref[i].astype(jnp.float32))
    o_ref[...] = m.astype(o_ref.dtype)


# ----------------------------------------------------------------------------
# Pallas call wrappers
# ----------------------------------------------------------------------------
def fused_matmul_bias(patches, w, b, residual=None, relu=True):
    """out[m, c] = act( patches[m, :] @ w[:, c] + b[c] (+ residual[m, c]) )"""
    M, K = patches.shape
    CP = w.shape[1]
    # Single full-M block for the tiny layers; 256-row blocks (parallel grid) when
    # there is enough work to split across cores (stem).
    TM = 256 if (M % 256 == 0 and M // 256 >= 2) else M
    grid = (M // TM,)

    in_specs = [
        pl.BlockSpec((TM, K), lambda i: (i, 0)),
        pl.BlockSpec((K, CP), lambda i: (0, 0)),
        pl.BlockSpec((1, CP), lambda i: (0, 0)),
    ]
    args = [patches, w, b]
    if residual is not None:
        in_specs.append(pl.BlockSpec((TM, CP), lambda i: (i, 0)))
        args.append(residual)
        kernel = functools.partial(_matmul_bias_res_act_kernel, relu=relu)
    else:
        kernel = functools.partial(_matmul_bias_act_kernel, relu=relu)

    return pl.pallas_call(
        kernel,
        out_shape=jax.ShapeDtypeStruct((M, CP), jnp.bfloat16),
        grid=grid,
        in_specs=in_specs,
        out_specs=pl.BlockSpec((TM, CP), lambda i: (i, 0)),
        compiler_params=pltpu.CompilerParams(dimension_semantics=("parallel",)),
    )(*args)


def maxpool_3x3_s2_p1(x):
    """nn.MaxPool2d(kernel_size=3, stride=2, padding=1) on NHWC input (post-ReLU)."""
    N, H, W, C = x.shape
    Ho = (H + 2 - 3) // 2 + 1
    Wo = (W + 2 - 3) // 2 + 1
    # Zero padding is equivalent to -inf padding here: the input is post-ReLU (>= 0)
    # and every 3x3 window contains at least one non-padded element.
    xp = jnp.pad(x, ((0, 0), (1, 1), (1, 1), (0, 0)))
    wins = []
    for dy in range(3):
        for dx in range(3):
            win = jax.lax.slice(
                xp,
                (0, dy, dx, 0),
                (N, dy + 2 * (Ho - 1) + 1, dx + 2 * (Wo - 1) + 1, C),
                (1, 2, 2, 1),
            )
            wins.append(win.reshape(N * Ho * Wo, C))
    M = N * Ho * Wo
    stacked = jnp.stack(wins, axis=0)  # [9, M, C] -> one DMA stream into the kernel

    out = pl.pallas_call(
        _max9_kernel,
        out_shape=jax.ShapeDtypeStruct((M, C), x.dtype),
        grid=(1,),
        in_specs=[pl.BlockSpec((9, M, C), lambda i: (0, 0, 0))],
        out_specs=pl.BlockSpec((M, C), lambda i: (0, 0)),
        compiler_params=pltpu.CompilerParams(dimension_semantics=("arbitrary",)),
    )(stacked)
    return out.reshape(N, Ho, Wo, C)


# ----------------------------------------------------------------------------
# Conv (im2col glue, bf16) + fused Pallas matmul/BN/ReLU/residual
# ----------------------------------------------------------------------------
def _im2col(x, k, stride, pad, dilation):
    # x: [N, H, W, C] -> patches: [N*Ho*Wo, k*k*C]  ((ky, kx, c) ordering)
    N, H, W, C = x.shape
    Ho = (H + 2 * pad - dilation * (k - 1) - 1) // stride + 1
    Wo = (W + 2 * pad - dilation * (k - 1) - 1) // stride + 1
    xp = jnp.pad(x, ((0, 0), (pad, pad), (pad, pad), (0, 0))) if pad > 0 else x
    cols = []
    for ky in range(k):
        for kx in range(k):
            ys, xs = ky * dilation, kx * dilation
            patch = jax.lax.slice(
                xp,
                (0, ys, xs, 0),
                (N, ys + stride * (Ho - 1) + 1, xs + stride * (Wo - 1) + 1, C),
                (1, stride, stride, 1),
            )
            cols.append(patch)
    patches = cols[0] if k == 1 else jnp.concatenate(cols, axis=-1)
    return patches.reshape(N * Ho * Wo, k * k * C), (N, Ho, Wo)


def conv_block(x, p, k, stride, pad, dilation=1, relu=True, residual=None):
    patches, (N, Ho, Wo) = _im2col(x, k, stride, pad, dilation)
    CP = p["w"].shape[1]
    res = residual.reshape(N * Ho * Wo, CP) if residual is not None else None
    out = fused_matmul_bias(patches, p["w"], p["b"], residual=res, relu=relu)
    return out.reshape(N, Ho, Wo, CP)


# ----------------------------------------------------------------------------
# Parameter construction (deterministic, synthetic; BN folded, channels padded)
# ----------------------------------------------------------------------------
def _init_conv_bn(key, k, cin, cout, cin_pad=None, cout_pad=None):
    cin_pad = _pad_c(cin) if cin_pad is None else cin_pad
    cout_pad = _pad_c(cout) if cout_pad is None else cout_pad
    kw, kg, kb, km, kv = jax.random.split(key, 5)
    fan = k * k * cin
    w = jax.random.normal(kw, (k, k, cin, cout), jnp.float32) * (2.0 / fan) ** 0.5
    gamma = 1.0 + 0.1 * jax.random.normal(kg, (cout,), jnp.float32)
    beta = 0.1 * jax.random.normal(kb, (cout,), jnp.float32)
    mean = 0.1 * jax.random.normal(km, (cout,), jnp.float32)
    var = jnp.abs(jax.random.normal(kv, (cout,), jnp.float32)) + 0.5
    eps = 1e-5
    scale = gamma / jnp.sqrt(var + eps)
    bias = beta - mean * scale
    # Fold BN scale into the weights; zero-pad channels once (padded outputs stay 0).
    w_folded = w * scale  # broadcast over cout
    w_full = jnp.zeros((k, k, cin_pad, cout_pad), jnp.float32)
    w_full = w_full.at[:, :, :cin, :cout].set(w_folded)
    b_full = jnp.zeros((cout_pad,), jnp.float32).at[:cout].set(bias)
    return {
        "w": w_full.reshape(k * k * cin_pad, cout_pad).astype(jnp.bfloat16),
        "b": b_full.reshape(1, cout_pad),  # f32 epilogue bias
    }


def build_resnet_params(key, depth=18, in_channels=3, base_channels=64,
                        num_stages=4, strides=(1, 2, 2, 2), dilations=(1, 1, 1, 1)):
    assert depth in (18, 34), "BasicBlock variants implemented here"
    # TODO(synk): Bottleneck (depth 50/101/152) path not instantiated in this script.
    stage_blocks = {18: (2, 2, 2, 2), 34: (3, 4, 6, 3)}[depth][:num_stages]
    keys = iter(jax.random.split(key, 256))
    params = {
        "stem": _init_conv_bn(next(keys), 7, in_channels, base_channels,
                              cin_pad=in_channels),  # stem input keeps 3 channels
    }
    layers = []
    inplanes = base_channels
    for i, nb in enumerate(stage_blocks):
        planes = base_channels * (2 ** i)
        blocks = []
        for b in range(nb):
            s = strides[i] if b == 0 else 1
            blk = {
                "conv1": _init_conv_bn(next(keys), 3, inplanes, planes),
                "conv2": _init_conv_bn(next(keys), 3, planes, planes),
            }
            if s != 1 or inplanes != planes:  # BasicBlock.expansion == 1
                blk["downsample"] = _init_conv_bn(next(keys), 1, inplanes, planes)
            blocks.append(blk)
            inplanes = planes
        layers.append(blocks)
    params["layers"] = layers
    return params


# ----------------------------------------------------------------------------
# Forward pass (mirrors ResNet.forward with BasicBlock, norm_eval=True)
# ----------------------------------------------------------------------------
def basic_block_forward(x, blk, stride, dilation):
    out = conv_block(x, blk["conv1"], k=3, stride=stride, pad=dilation,
                     dilation=dilation, relu=True)
    if "downsample" in blk:
        identity = conv_block(x, blk["downsample"], k=1, stride=stride, pad=0,
                              relu=False)
    else:
        identity = x
    # conv2 + BN2 + residual add + ReLU fused in a single Pallas call
    out = conv_block(out, blk["conv2"], k=3, stride=1, pad=1,
                     relu=True, residual=identity)
    return out


def resnet_forward(x_nchw, params, *, base_channels=64, strides=(1, 2, 2, 2),
                   dilations=(1, 1, 1, 1), out_indices=(0, 1, 2, 3)):
    # NCHW -> NHWC (channels on lanes), bf16 inter-layer activations.
    x = jnp.transpose(x_nchw, (0, 2, 3, 1)).astype(jnp.bfloat16)
    # stem: conv7x7/s2 + BN + ReLU (fused), then maxpool 3x3/s2
    x = conv_block(x, params["stem"], k=7, stride=2, pad=3, relu=True)
    x = maxpool_3x3_s2_p1(x)
    outs = []
    for i, blocks in enumerate(params["layers"]):
        for bi, blk in enumerate(blocks):
            s = strides[i] if bi == 0 else 1
            x = basic_block_forward(x, blk, stride=s, dilation=dilations[i])
        if i in out_indices:
            c_true = base_channels * (2 ** i)
            outs.append(jnp.transpose(x[..., :c_true], (0, 3, 1, 2))
                        .astype(jnp.float32))  # back to NCHW, true channel count
    return tuple(outs)


# ----------------------------------------------------------------------------
if __name__ == "__main__":
    key = jax.random.PRNGKey(0)
    k_params, k_x = jax.random.split(key)

    # Small shapes: batch=2, in_channels=3, spatial=32, base_channels=8
    x = jax.random.normal(k_x, (2, 3, 32, 32), jnp.float32)
    params = build_resnet_params(k_params, depth=18, in_channels=3, base_channels=8)

    fwd = jax.jit(functools.partial(
        resnet_forward, base_channels=8, strides=(1, 2, 2, 2),
        dilations=(1, 1, 1, 1), out_indices=(0, 1, 2, 3)))
    outs = jax.block_until_ready(fwd(x, params))

    # Expected NCHW shapes: (2,8,8,8), (2,16,4,4), (2,32,2,2), (2,64,1,1)
    expected = [(2, 8, 8, 8), (2, 16, 4, 4), (2, 32, 2, 2), (2, 64, 1, 1)]
    assert [tuple(o.shape) for o in outs] == expected, [o.shape for o in outs]
    assert all(bool(jnp.all(jnp.isfinite(o))) for o in outs)
    print("KERNEL_OK")
</pallas_src>

<mosaic_0001>
module attributes {stable_mosaic.version = 11 : i64} {
  func.func @_matmul_bias_act_kernel(%arg0: i32, %arg1: memref<256x147xbf16, #tpu.memory_space<vmem>>, %arg2: memref<147x128xbf16, #tpu.memory_space<vmem>>, %arg3: memref<1x128xf32, #tpu.memory_space<vmem>>, %arg4: memref<256x128xbf16, #tpu.memory_space<vmem>>) attributes {dimension_semantics = [#tpu.dimension_semantics<parallel>], iteration_bounds = array<i64: 2>, scalar_prefetch = 0 : i64, scratch_operands = 0 : i64, tpu.core_type = #tpu.core_type<tc>, window_params = [{transform_indices = @transform_0, window_bounds = array<i64: 256, 147>}, {pipeline_mode = #tpu.pipeline_mode<synchronous>, transform_indices = @transform_1, window_bounds = array<i64: 147, 128>}, {pipeline_mode = #tpu.pipeline_mode<synchronous>, transform_indices = @transform_2, window_bounds = array<i64: 1, 128>}, {transform_indices = @transform_3, window_bounds = array<i64: 256, 128>}]} {
    %c0 = arith.constant 0 : index
    %c0_0 = arith.constant 0 : index
    %0 = vector.load %arg1[%c0, %c0_0] : memref<256x147xbf16, #tpu.memory_space<vmem>>, vector<256x147xbf16>
    %c0_1 = arith.constant 0 : index
    %c0_2 = arith.constant 0 : index
    %1 = vector.load %arg2[%c0_1, %c0_2] : memref<147x128xbf16, #tpu.memory_space<vmem>>, vector<147x128xbf16>
    %cst = arith.constant dense<0.000000e+00> : vector<256x128xf32>
    %2 = tpu.matmul %0, %1, %cst {dimension_numbers = #tpu.dot_dimension_numbers<[1], [0], [0], [1], [0, 0, 1, 1], [], []>} : vector<256x147xbf16>, vector<147x128xbf16>, vector<256x128xf32> -> vector<256x128xf32>
    %c0_3 = arith.constant 0 : index
    %c0_4 = arith.constant 0 : index
    %3 = vector.load %arg3[%c0_3, %c0_4] : memref<1x128xf32, #tpu.memory_space<vmem>>, vector<1x128xf32>
    %4 = vector.broadcast %3 : vector<1x128xf32> to vector<256x128xf32>
    %5 = arith.addf %2, %4 : vector<256x128xf32>
    %cst_5 = arith.constant 0.000000e+00 : f32
    %6 = vector.broadcast %cst_5 : f32 to vector<256x128xf32>
    %7 = arith.maximumf %5, %6 : vector<256x128xf32>
    %8 = arith.truncf %7 : vector<256x128xf32> to vector<256x128xbf16>
    %c0_6 = arith.constant 0 : index
    %c0_7 = arith.constant 0 : index
    %9 = vector.load %arg4[%c0_6, %c0_7] : memref<256x128xbf16, #tpu.memory_space<vmem>>, vector<256x128xbf16>
    tpu.vector_store %arg4[%c0_6, %c0_7], %8 {strides = array<i32>} : memref<256x128xbf16, #tpu.memory_space<vmem>>, vector<256x128xbf16>,
    return
  }
  func.func @transform_0(%arg0: i32) -> (i32, i32) {
    %c0_i32 = arith.constant 0 : i32
    %c0_i32_0 = arith.constant 0 : i32
    return %arg0, %c0_i32 : i32, i32
  }
  func.func @transform_1(%arg0: i32) -> (i32, i32) {
    %c0_i32 = arith.constant 0 : i32
    %c0_i32_0 = arith.constant 0 : i32
    %c0_i32_1 = arith.constant 0 : i32
    return %c0_i32, %c0_i32_0 : i32, i32
  }
  func.func @transform_2(%arg0: i32) -> (i32, i32) {
    %c0_i32 = arith.constant 0 : i32
    %c0_i32_0 = arith.constant 0 : i32
    %c0_i32_1 = arith.constant 0 : i32
    return %c0_i32, %c0_i32_0 : i32, i32
  }
  func.func @transform_3(%arg0: i32) -> (i32, i32) {
    %c0_i32 = arith.constant 0 : i32
    %c0_i32_0 = arith.constant 0 : i32
    return %arg0, %c0_i32 : i32, i32
  }
}

module attributes {stable_mosaic.version = 11 : i64} {
  func.func @_max9_kernel(%arg0: i32, %arg1: memref<9x128x128xbf16, #tpu.memory_space<vmem>>, %arg2: memref<128x128xbf16, #tpu.memory_space<vmem>>) attributes {dimension_semantics = [#tpu.dimension_semantics<arbitrary>], iteration_bounds = array<i64: 1>, scalar_prefetch = 0 : i64, scratch_operands = 0 : i64, tpu.core_type = #tpu.core_type<tc>, window_params = [{pipeline_mode = #tpu.pipeline_mode<synchronous>, transform_indices = @transform_0, window_bounds = array<i64: 9, 128, 128>}, {pipeline_mode = #tpu.pipeline_mode<synchronous>, transform_indices = @transform_1, window_bounds = array<i64: 128, 128>}]} {
    %c0 = arith.constant 0 : index
    %c0_0 = arith.constant 0 : index
    %c0_1 = arith.constant 0 : index
    %0 = vector.load %arg1[%c0, %c0_0, %c0_1] : memref<9x128x128xbf16, #tpu.memory_space<vmem>>, vector<1x128x128xbf16>
    %1 = vector.shape_cast %0 : vector<1x128x128xbf16> to vector<128x128xbf16>
    %2 = arith.extf %1 : vector<128x128xbf16> to vector<128x128xf32>
    %c1 = arith.constant 1 : index
    %c0_2 = arith.constant 0 : index
    %c0_3 = arith.constant 0 : index
    %3 = vector.load %arg1[%c1, %c0_2, %c0_3] : memref<9x128x128xbf16, #tpu.memory_space<vmem>>, vector<1x128x128xbf16>
    %4 = vector.shape_cast %3 : vector<1x128x128xbf16> to vector<128x128xbf16>
    %5 = arith.extf %4 : vector<128x128xbf16> to vector<128x128xf32>
    %6 = arith.maximumf %2, %5 : vector<128x128xf32>
    %c2 = arith.constant 2 : index
    %c0_4 = arith.constant 0 : index
    %c0_5 = arith.constant 0 : index
    %7 = vector.load %arg1[%c2, %c0_4, %c0_5] : memref<9x128x128xbf16, #tpu.memory_space<vmem>>, vector<1x128x128xbf16>
    %8 = vector.shape_cast %7 : vector<1x128x128xbf16> to vector<128x128xbf16>
    %9 = arith.extf %8 : vector<128x128xbf16> to vector<128x128xf32>
    %10 = arith.maximumf %6, %9 : vector<128x128xf32>
    %c3 = arith.constant 3 : index
    %c0_6 = arith.constant 0 : index
    %c0_7 = arith.constant 0 : index
    %11 = vector.load %arg1[%c3, %c0_6, %c0_7] : memref<9x128x128xbf16, #tpu.memory_space<vmem>>, vector<1x128x128xbf16>
    %12 = vector.shape_cast %11 : vector<1x128x128xbf16> to vector<128x128xbf16>
    %13 = arith.extf %12 : vector<128x128xbf16> to vector<128x128xf32>
    %14 = arith.maximumf %10, %13 : vector<128x128xf32>
    %c4 = arith.constant 4 : index
    %c0_8 = arith.constant 0 : index
    %c0_9 = arith.constant 0 : index
    %15 = vector.load %arg1[%c4, %c0_8, %c0_9] : memref<9x128x128xbf16, #tpu.memory_space<vmem>>, vector<1x128x128xbf16>
    %16 = vector.shape_cast %15 : vector<1x128x128xbf16> to vector<128x128xbf16>
    %17 = arith.extf %16 : vector<128x128xbf16> to vector<128x128xf32>
    %18 = arith.maximumf %14, %17 : vector<128x128xf32>
    %c5 = arith.constant 5 : index
    %c0_10 = arith.constant 0 : index
    %c0_11 = arith.constant 0 : index
    %19 = vector.load %arg1[%c5, %c0_10, %c0_11] : memref<9x128x128xbf16, #tpu.memory_space<vmem>>, vector<1x128x128xbf16>
    %20 = vector.shape_cast %19 : vector<1x128x128xbf16> to vector<128x128xbf16>
    %21 = arith.extf %20 : vector<128x128xbf16> to vector<128x128xf32>
    %22 = arith.maximumf %18, %21 : vector<128x128xf32>
    %c6 = arith.constant 6 : index
    %c0_12 = arith.constant 0 : index
    %c0_13 = arith.constant 0 : index
    %23 = vector.load %arg1[%c6, %c0_12, %c0_13] : memref<9x128x128xbf16, #tpu.memory_space<vmem>>, vector<1x128x128xbf16>
    %24 = vector.shape_cast %23 : vector<1x128x128xbf16> to vector<128x128xbf16>
    %25 = arith.extf %24 : vector<128x128xbf16> to vector<128x128xf32>
    %26 = arith.maximumf %22, %25 : vector<128x128xf32>
    %c7 = arith.constant 7 : index
    %c0_14 = arith.constant 0 : index
    %c0_15 = arith.constant 0 : index
    %27 = vector.load %arg1[%c7, %c0_14, %c0_15] : memref<9x128x128xbf16, #tpu.memory_space<vmem>>, vector<1x128x128xbf16>
    %28 = vector.shape_cast %27 : vector<1x128x128xbf16> to vector<128x128xbf16>
    %29 = arith.extf %28 : vector<128x128xbf16> to vector<128x128xf32>
    %30 = arith.maximumf %26, %29 : vector<128x128xf32>
    %c8 = arith.constant 8 : index
    %c0_16 = arith.constant 0 : index
    %c0_17 = arith.constant 0 : index
    %31 = vector.load %arg1[%c8, %c0_16, %c0_17] : memref<9x128x128xbf16, #tpu.memory_space<vmem>>, vector<1x128x128xbf16>
    %32 = vector.shape_cast %31 : vector<1x128x128xbf16> to vector<128x128xbf16>
    %33 = arith.extf %32 : vector<128x128xbf16> to vector<128x128xf32>
    %34 = arith.maximumf %30, %33 : vector<128x128xf32>
    %35 = arith.truncf %34 : vector<128x128xf32> to vector<128x128xbf16>
    %c0_18 = arith.constant 0 : index
    %c0_19 = arith.constant 0 : index
    %36 = vector.load %arg2[%c0_18, %c0_19] : memref<128x128xbf16, #tpu.memory_space<vmem>>, vector<128x128xbf16>
    tpu.vector_store %arg2[%c0_18, %c0_19], %35 {strides = array<i32>} : memref<128x128xbf16, #tpu.memory_space<vmem>>, vector<128x128xbf16>,
    return
  }
  func.func @transform_0(%arg0: i32) -> (i32, i32, i32) {
    %c0_i32 = arith.constant 0 : i32
    %c0_i32_0 = arith.constant 0 : i32
    %c0_i32_1 = arith.constant 0 : i32
    %c0_i32_2 = arith.constant 0 : i32
    return %c0_i32, %c0_i32_0, %c0_i32_1 : i32, i32, i32
  }
  func.func @transform_1(%arg0: i32) -> (i32, i32) {
    %c0_i32 = arith.constant 0 : i32
    %c0_i32_0 = arith.constant 0 : i32
    %c0_i32_1 = arith.constant 0 : i32
    return %c0_i32, %c0_i32_0 : i32, i32
  }
}

module attributes {stable_mosaic.version = 11 : i64} {
  func.func @_matmul_bias_res_act_kernel(%arg0: i32, %arg1: memref<128x1152xbf16, #tpu.memory_space<vmem>>, %arg2: memref<1152x128xbf16, #tpu.memory_space<vmem>>, %arg3: memref<1x128xf32, #tpu.memory_space<vmem>>, %arg4: memref<128x128xbf16, #tpu.memory_space<vmem>>, %arg5: memref<128x128xbf16, #tpu.memory_space<vmem>>) attributes {dimension_semantics = [#tpu.dimension_semantics<parallel>], iteration_bounds = array<i64: 1>, scalar_prefetch = 0 : i64, scratch_operands = 0 : i64, tpu.core_type = #tpu.core_type<tc>, window_params = [{transform_indices = @transform_0, window_bounds = array<i64: 128, 1152>}, {pipeline_mode = #tpu.pipeline_mode<synchronous>, transform_indices = @transform_1, window_bounds = array<i64: 1152, 128>}, {pipeline_mode = #tpu.pipeline_mode<synchronous>, transform_indices = @transform_2, window_bounds = array<i64: 1, 128>}, {transform_indices = @transform_3, window_bounds = array<i64: 128, 128>}, {transform_indices = @transform_4, window_bounds = array<i64: 128, 128>}]} {
    %c0 = arith.constant 0 : index
    %c0_0 = arith.constant 0 : index
    %0 = vector.load %arg1[%c0, %c0_0] : memref<128x1152xbf16, #tpu.memory_space<vmem>>, vector<128x1152xbf16>
    %c0_1 = arith.constant 0 : index
    %c0_2 = arith.constant 0 : index
    %1 = vector.load %arg2[%c0_1, %c0_2] : memref<1152x128xbf16, #tpu.memory_space<vmem>>, vector<1152x128xbf16>
    %cst = arith.constant dense<0.000000e+00> : vector<128x128xf32>
    %2 = tpu.matmul %0, %1, %cst {dimension_numbers = #tpu.dot_dimension_numbers<[1], [0], [0], [1], [0, 0, 1, 1], [], []>} : vector<128x1152xbf16>, vector<1152x128xbf16>, vector<128x128xf32> -> vector<128x128xf32>
    %c0_3 = arith.constant 0 : index
    %c0_4 = arith.constant 0 : index
    %3 = vector.load %arg3[%c0_3, %c0_4] : memref<1x128xf32, #tpu.memory_space<vmem>>, vector<1x128xf32>
    %4 = vector.broadcast %3 : vector<1x128xf32> to vector<128x128xf32>
    %5 = arith.addf %2, %4 : vector<128x128xf32>
    %c0_5 = arith.constant 0 : index
    %c0_6 = arith.constant 0 : index
    %6 = vector.load %arg4[%c0_5, %c0_6] : memref<128x128xbf16, #tpu.memory_space<vmem>>, vector<128x128xbf16>
    %7 = arith.extf %6 : vector<128x128xbf16> to vector<128x128xf32>
    %8 = arith.addf %5, %7 : vector<128x128xf32>
    %cst_7 = arith.constant 0.000000e+00 : f32
    %9 = vector.broadcast %cst_7 : f32 to vector<128x128xf32>
    %10 = arith.maximumf %8, %9 : vector<128x128xf32>
    %11 = arith.truncf %10 : vector<128x128xf32> to vector<128x128xbf16>
    %c0_8 = arith.constant 0 : index
    %c0_9 = arith.constant 0 : index
    %12 = vector.load %arg5[%c0_8, %c0_9] : memref<128x128xbf16, #tpu.memory_space<vmem>>, vector<128x128xbf16>
    tpu.vector_store %arg5[%c0_8, %c0_9], %11 {strides = array<i32>} : memref<128x128xbf16, #tpu.memory_space<vmem>>, vector<128x128xbf16>,
    return
  }
  func.func @transform_0(%arg0: i32) -> (i32, i32) {
    %c0_i32 = arith.constant 0 : i32
    %c0_i32_0 = arith.constant 0 : i32
    return %arg0, %c0_i32 : i32, i32
  }
  func.func @transform_1(%arg0: i32) -> (i32, i32) {
    %c0_i32 = arith.constant 0 : i32
    %c0_i32_0 = arith.constant 0 : i32
    %c0_i32_1 = arith.constant 0 : i32
    return %c0_i32, %c0_i32_0 : i32, i32
  }
  func.func @transform_2(%arg0: i32) -> (i32, i32) {
    %c0_i32 = arith.constant 0 : i32
    %c0_i32_0 = arith.constant 0 : i32
    %c0_i32_1 = arith.constant 0 : i32
    return %c0_i32, %c0_i32_0 : i32, i32
  }
  func.func @transform_3(%arg0: i32) -> (i32, i32) {
    %c0_i32 = arith.constant 0 : i32
    %c0_i32_0 = arith.constant 0 : i32
    return %arg0, %c0_i32 : i32, i32
  }
  func.func @transform_4(%arg0: i32) -> (i32, i32) {
    %c0_i32 = arith.constant 0 : i32
    %c0_i32_0 = arith.constant 0 : i32
    return %arg0, %c0_i32 : i32, i32
  }
}

module attributes {stable_mosaic.version = 11 : i64} {
  func.func @_matmul_bias_act_kernel(%arg0: i32, %arg1: memref<128x1152xbf16, #tpu.memory_space<vmem>>, %arg2: memref<1152x128xbf16, #tpu.memory_space<vmem>>, %arg3: memref<1x128xf32, #tpu.memory_space<vmem>>, %arg4: memref<128x128xbf16, #tpu.memory_space<vmem>>) attributes {dimension_semantics = [#tpu.dimension_semantics<parallel>], iteration_bounds = array<i64: 1>, scalar_prefetch = 0 : i64, scratch_operands = 0 : i64, tpu.core_type = #tpu.core_type<tc>, window_params = [{transform_indices = @transform_0, window_bounds = array<i64: 128, 1152>}, {pipeline_mode = #tpu.pipeline_mode<synchronous>, transform_indices = @transform_1, window_bounds = array<i64: 1152, 128>}, {pipeline_mode = #tpu.pipeline_mode<synchronous>, transform_indices = @transform_2, window_bounds = array<i64: 1, 128>}, {transform_indices = @transform_3, window_bounds = array<i64: 128, 128>}]} {
    %c0 = arith.constant 0 : index
    %c0_0 = arith.constant 0 : index
    %0 = vector.load %arg1[%c0, %c0_0] : memref<128x1152xbf16, #tpu.memory_space<vmem>>, vector<128x1152xbf16>
    %c0_1 = arith.constant 0 : index
    %c0_2 = arith.constant 0 : index
    %1 = vector.load %arg2[%c0_1, %c0_2] : memref<1152x128xbf16, #tpu.memory_space<vmem>>, vector<1152x128xbf16>
    %cst = arith.constant dense<0.000000e+00> : vector<128x128xf32>
    %2 = tpu.matmul %0, %1, %cst {dimension_numbers = #tpu.dot_dimension_numbers<[1], [0], [0], [1], [0, 0, 1, 1], [], []>} : vector<128x1152xbf16>, vector<1152x128xbf16>, vector<128x128xf32> -> vector<128x128xf32>
    %c0_3 = arith.constant 0 : index
    %c0_4 = arith.constant 0 : index
    %3 = vector.load %arg3[%c0_3, %c0_4] : memref<1x128xf32, #tpu.memory_space<vmem>>, vector<1x128xf32>
    %4 = vector.broadcast %3 : vector<1x128xf32> to vector<128x128xf32>
    %5 = arith.addf %2, %4 : vector<128x128xf32>
    %cst_5 = arith.constant 0.000000e+00 : f32
    %6 = vector.broadcast %cst_5 : f32 to vector<128x128xf32>
    %7 = arith.maximumf %5, %6 : vector<128x128xf32>
    %8 = arith.truncf %7 : vector<128x128xf32> to vector<128x128xbf16>
    %c0_6 = arith.constant 0 : index
    %c0_7 = arith.constant 0 : index
    %9 = vector.load %arg4[%c0_6, %c0_7] : memref<128x128xbf16, #tpu.memory_space<vmem>>, vector<128x128xbf16>
    tpu.vector_store %arg4[%c0_6, %c0_7], %8 {strides = array<i32>} : memref<128x128xbf16, #tpu.memory_space<vmem>>, vector<128x128xbf16>,
    return
  }
  func.func @transform_0(%arg0: i32) -> (i32, i32) {
    %c0_i32 = arith.constant 0 : i32
    %c0_i32_0 = arith.constant 0 : i32
    return %arg0, %c0_i32 : i32, i32
  }
  func.func @transform_1(%arg0: i32) -> (i32, i32) {
    %c0_i32 = arith.constant 0 : i32
    %c0_i32_0 = arith.constant 0 : i32
    %c0_i32_1 = arith.constant 0 : i32
    return %c0_i32, %c0_i32_0 : i32, i32
  }
  func.func @transform_2(%arg0: i32) -> (i32, i32) {
    %c0_i32 = arith.constant 0 : i32
    %c0_i32_0 = arith.constant 0 : i32
    %c0_i32_1 = arith.constant 0 : i32
    return %c0_i32, %c0_i32_0 : i32, i32
  }
  func.func @transform_3(%arg0: i32) -> (i32, i32) {
    %c0_i32 = arith.constant 0 : i32
    %c0_i32_0 = arith.constant 0 : i32
    return %arg0, %c0_i32 : i32, i32
  }
}

module attributes {stable_mosaic.version = 11 : i64} {
  func.func @_matmul_bias_act_kernel(%arg0: i32, %arg1: memref<32x1152xbf16, #tpu.memory_space<vmem>>, %arg2: memref<1152x128xbf16, #tpu.memory_space<vmem>>, %arg3: memref<1x128xf32, #tpu.memory_space<vmem>>, %arg4: memref<32x128xbf16, #tpu.memory_space<vmem>>) attributes {dimension_semantics = [#tpu.dimension_semantics<parallel>], iteration_bounds = array<i64: 1>, scalar_prefetch = 0 : i64, scratch_operands = 0 : i64, tpu.core_type = #tpu.core_type<tc>, window_params = [{transform_indices = @transform_0, window_bounds = array<i64: 32, 1152>}, {pipeline_mode = #tpu.pipeline_mode<synchronous>, transform_indices = @transform_1, window_bounds = array<i64: 1152, 128>}, {pipeline_mode = #tpu.pipeline_mode<synchronous>, transform_indices = @transform_2, window_bounds = array<i64: 1, 128>}, {transform_indices = @transform_3, window_bounds = array<i64: 32, 128>}]} {
    %c0 = arith.constant 0 : index
    %c0_0 = arith.constant 0 : index
    %0 = vector.load %arg1[%c0, %c0_0] : memref<32x1152xbf16, #tpu.memory_space<vmem>>, vector<32x1152xbf16>
    %c0_1 = arith.constant 0 : index
    %c0_2 = arith.constant 0 : index
    %1 = vector.load %arg2[%c0_1, %c0_2] : memref<1152x128xbf16, #tpu.memory_space<vmem>>, vector<1152x128xbf16>
    %cst = arith.constant dense<0.000000e+00> : vector<32x128xf32>
    %2 = tpu.matmul %0, %1, %cst {dimension_numbers = #tpu.dot_dimension_numbers<[1], [0], [0], [1], [0, 0, 1, 1], [], []>} : vector<32x1152xbf16>, vector<1152x128xbf16>, vector<32x128xf32> -> vector<32x128xf32>
    %c0_3 = arith.constant 0 : index
    %c0_4 = arith.constant 0 : index
    %3 = vector.load %arg3[%c0_3, %c0_4] : memref<1x128xf32, #tpu.memory_space<vmem>>, vector<1x128xf32>
    %4 = vector.broadcast %3 : vector<1x128xf32> to vector<32x128xf32>
    %5 = arith.addf %2, %4 : vector<32x128xf32>
    %cst_5 = arith.constant 0.000000e+00 : f32
    %6 = vector.broadcast %cst_5 : f32 to vector<32x128xf32>
    %7 = arith.maximumf %5, %6 : vector<32x128xf32>
    %8 = arith.truncf %7 : vector<32x128xf32> to vector<32x128xbf16>
    %c0_6 = arith.constant 0 : index
    %c0_7 = arith.constant 0 : index
    %9 = vector.load %arg4[%c0_6, %c0_7] : memref<32x128xbf16, #tpu.memory_space<vmem>>, vector<32x128xbf16>
    tpu.vector_store %arg4[%c0_6, %c0_7], %8 {strides = array<i32>} : memref<32x128xbf16, #tpu.memory_space<vmem>>, vector<32x128xbf16>,
    return
  }
  func.func @transform_0(%arg0: i32) -> (i32, i32) {
    %c0_i32 = arith.constant 0 : i32
    %c0_i32_0 = arith.constant 0 : i32
    return %arg0, %c0_i32 : i32, i32
  }
  func.func @transform_1(%arg0: i32) -> (i32, i32) {
    %c0_i32 = arith.constant 0 : i32
    %c0_i32_0 = arith.constant 0 : i32
    %c0_i32_1 = arith.constant 0 : i32
    return %c0_i32, %c0_i32_0 : i32, i32
  }
  func.func @transform_2(%arg0: i32) -> (i32, i32) {
    %c0_i32 = arith.constant 0 : i32
    %c0_i32_0 = arith.constant 0 : i32
    %c0_i32_1 = arith.constant 0 : i32
    return %c0_i32, %c0_i32_0 : i32, i32
  }
  func.func @transform_3(%arg0: i32) -> (i32, i32) {
    %c0_i32 = arith.constant 0 : i32
    %c0_i32_0 = arith.constant 0 : i32
    return %arg0, %c0_i32 : i32, i32
  }
}

module attributes {stable_mosaic.version = 11 : i64} {
  func.func @_matmul_bias_act_kernel(%arg0: i32, %arg1: memref<32x128xbf16, #tpu.memory_space<vmem>>, %arg2: memref<128x128xbf16, #tpu.memory_space<vmem>>, %arg3: memref<1x128xf32, #tpu.memory_space<vmem>>, %arg4: memref<32x128xbf16, #tpu.memory_space<vmem>>) attributes {dimension_semantics = [#tpu.dimension_semantics<parallel>], iteration_bounds = array<i64: 1>, scalar_prefetch = 0 : i64, scratch_operands = 0 : i64, tpu.core_type = #tpu.core_type<tc>, window_params = [{transform_indices = @transform_0, window_bounds = array<i64: 32, 128>}, {pipeline_mode = #tpu.pipeline_mode<synchronous>, transform_indices = @transform_1, window_bounds = array<i64: 128, 128>}, {pipeline_mode = #tpu.pipeline_mode<synchronous>, transform_indices = @transform_2, window_bounds = array<i64: 1, 128>}, {transform_indices = @transform_3, window_bounds = array<i64: 32, 128>}]} {
    %c0 = arith.constant 0 : index
    %c0_0 = arith.constant 0 : index
    %0 = vector.load %arg1[%c0, %c0_0] : memref<32x128xbf16, #tpu.memory_space<vmem>>, vector<32x128xbf16>
    %c0_1 = arith.constant 0 : index
    %c0_2 = arith.constant 0 : index
    %1 = vector.load %arg2[%c0_1, %c0_2] : memref<128x128xbf16, #tpu.memory_space<vmem>>, vector<128x128xbf16>
    %cst = arith.constant dense<0.000000e+00> : vector<32x128xf32>
    %2 = tpu.matmul %0, %1, %cst {dimension_numbers = #tpu.dot_dimension_numbers<[1], [0], [0], [1], [0, 0, 1, 1], [], []>} : vector<32x128xbf16>, vector<128x128xbf16>, vector<32x128xf32> -> vector<32x128xf32>
    %c0_3 = arith.constant 0 : index
    %c0_4 = arith.constant 0 : index
    %3 = vector.load %arg3[%c0_3, %c0_4] : memref<1x128xf32, #tpu.memory_space<vmem>>, vector<1x128xf32>
    %4 = vector.broadcast %3 : vector<1x128xf32> to vector<32x128xf32>
    %5 = arith.addf %2, %4 : vector<32x128xf32>
    %6 = arith.truncf %5 : vector<32x128xf32> to vector<32x128xbf16>
    %c0_5 = arith.constant 0 : index
    %c0_6 = arith.constant 0 : index
    %7 = vector.load %arg4[%c0_5, %c0_6] : memref<32x128xbf16, #tpu.memory_space<vmem>>, vector<32x128xbf16>
    tpu.vector_store %arg4[%c0_5, %c0_6], %6 {strides = array<i32>} : memref<32x128xbf16, #tpu.memory_space<vmem>>, vector<32x128xbf16>,
    return
  }
  func.func @transform_0(%arg0: i32) -> (i32, i32) {
    %c0_i32 = arith.constant 0 : i32
    %c0_i32_0 = arith.constant 0 : i32
    return %arg0, %c0_i32 : i32, i32
  }
  func.func @transform_1(%arg0: i32) -> (i32, i32) {
    %c0_i32 = arith.constant 0 : i32
    %c0_i32_0 = arith.constant 0 : i32
    %c0_i32_1 = arith.constant 0 : i32
    return %c0_i32, %c0_i32_0 : i32, i32
  }
  func.func @transform_2(%arg0: i32) -> (i32, i32) {
    %c0_i32 = arith.constant 0 : i32
    %c0_i32_0 = arith.constant 0 : i32
    %c0_i32_1 = arith.constant 0 : i32
    return %c0_i32, %c0_i32_0 : i32, i32
  }
  func.func @transform_3(%arg0: i32) -> (i32, i32) {
    %c0_i32 = arith.constant 0 : i32
    %c0_i32_0 = arith.constant 0 : i32
    return %arg0, %c0_i32 : i32, i32
  }
}

module attributes {stable_mosaic.version = 11 : i64} {
  func.func @_matmul_bias_res_act_kernel(%arg0: i32, %arg1: memref<32x1152xbf16, #tpu.memory_space<vmem>>, %arg2: memref<1152x128xbf16, #tpu.memory_space<vmem>>, %arg3: memref<1x128xf32, #tpu.memory_space<vmem>>, %arg4: memref<32x128xbf16, #tpu.memory_space<vmem>>, %arg5: memref<32x128xbf16, #tpu.memory_space<vmem>>) attributes {dimension_semantics = [#tpu.dimension_semantics<parallel>], iteration_bounds = array<i64: 1>, scalar_prefetch = 0 : i64, scratch_operands = 0 : i64, tpu.core_type = #tpu.core_type<tc>, window_params = [{transform_indices = @transform_0, window_bounds = array<i64: 32, 1152>}, {pipeline_mode = #tpu.pipeline_mode<synchronous>, transform_indices = @transform_1, window_bounds = array<i64: 1152, 128>}, {pipeline_mode = #tpu.pipeline_mode<synchronous>, transform_indices = @transform_2, window_bounds = array<i64: 1, 128>}, {transform_indices = @transform_3, window_bounds = array<i64: 32, 128>}, {transform_indices = @transform_4, window_bounds = array<i64: 32, 128>}]} {
    %c0 = arith.constant 0 : index
    %c0_0 = arith.constant 0 : index
    %0 = vector.load %arg1[%c0, %c0_0] : memref<32x1152xbf16, #tpu.memory_space<vmem>>, vector<32x1152xbf16>
    %c0_1 = arith.constant 0 : index
    %c0_2 = arith.constant 0 : index
    %1 = vector.load %arg2[%c0_1, %c0_2] : memref<1152x128xbf16, #tpu.memory_space<vmem>>, vector<1152x128xbf16>
    %cst = arith.constant dense<0.000000e+00> : vector<32x128xf32>
    %2 = tpu.matmul %0, %1, %cst {dimension_numbers = #tpu.dot_dimension_numbers<[1], [0], [0], [1], [0, 0, 1, 1], [], []>} : vector<32x1152xbf16>, vector<1152x128xbf16>, vector<32x128xf32> -> vector<32x128xf32>
    %c0_3 = arith.constant 0 : index
    %c0_4 = arith.constant 0 : index
    %3 = vector.load %arg3[%c0_3, %c0_4] : memref<1x128xf32, #tpu.memory_space<vmem>>, vector<1x128xf32>
    %4 = vector.broadcast %3 : vector<1x128xf32> to vector<32x128xf32>
    %5 = arith.addf %2, %4 : vector<32x128xf32>
    %c0_5 = arith.constant 0 : index
    %c0_6 = arith.constant 0 : index
    %6 = vector.load %arg4[%c0_5, %c0_6] : memref<32x128xbf16, #tpu.memory_space<vmem>>, vector<32x128xbf16>
    %7 = arith.extf %6 : vector<32x128xbf16> to vector<32x128xf32>
    %8 = arith.addf %5, %7 : vector<32x128xf32>
    %cst_7 = arith.constant 0.000000e+00 : f32
    %9 = vector.broadcast %cst_7 : f32 to vector<32x128xf32>
    %10 = arith.maximumf %8, %9 : vector<32x128xf32>
    %11 = arith.truncf %10 : vector<32x128xf32> to vector<32x128xbf16>
    %c0_8 = arith.constant 0 : index
    %c0_9 = arith.constant 0 : index
    %12 = vector.load %arg5[%c0_8, %c0_9] : memref<32x128xbf16, #tpu.memory_space<vmem>>, vector<32x128xbf16>
    tpu.vector_store %arg5[%c0_8, %c0_9], %11 {strides = array<i32>} : memref<32x128xbf16, #tpu.memory_space<vmem>>, vector<32x128xbf16>,
    return
  }
  func.func @transform_0(%arg0: i32) -> (i32, i32) {
    %c0_i32 = arith.constant 0 : i32
    %c0_i32_0 = arith.constant 0 : i32
    return %arg0, %c0_i32 : i32, i32
  }
  func.func @transform_1(%arg0: i32) -> (i32, i32) {
    %c0_i32 = arith.constant 0 : i32
    %c0_i32_0 = arith.constant 0 : i32
    %c0_i32_1 = arith.constant 0 : i32
    return %c0_i32, %c0_i32_0 : i32, i32
  }
  func.func @transform_2(%arg0: i32) -> (i32, i32) {
    %c0_i32 = arith.constant 0 : i32
    %c0_i32_0 = arith.constant 0 : i32
    %c0_i32_1 = arith.constant 0 : i32
    return %c0_i32, %c0_i32_0 : i32, i32
  }
  func.func @transform_3(%arg0: i32) -> (i32, i32) {
    %c0_i32 = arith.constant 0 : i32
    %c0_i32_0 = arith.constant 0 : i32
    return %arg0, %c0_i32 : i32, i32
  }
  func.func @transform_4(%arg0: i32) -> (i32, i32) {
    %c0_i32 = arith.constant 0 : i32
    %c0_i32_0 = arith.constant 0 : i32
    return %arg0, %c0_i32 : i32, i32
  }
}

module attributes {stable_mosaic.version = 11 : i64} {
  func.func @_matmul_bias_act_kernel(%arg0: i32, %arg1: memref<8x1152xbf16, #tpu.memory_space<vmem>>, %arg2: memref<1152x128xbf16, #tpu.memory_space<vmem>>, %arg3: memref<1x128xf32, #tpu.memory_space<vmem>>, %arg4: memref<8x128xbf16, #tpu.memory_space<vmem>>) attributes {dimension_semantics = [#tpu.dimension_semantics<parallel>], iteration_bounds = array<i64: 1>, scalar_prefetch = 0 : i64, scratch_operands = 0 : i64, tpu.core_type = #tpu.core_type<tc>, window_params = [{transform_indices = @transform_0, window_bounds = array<i64: 8, 1152>}, {pipeline_mode = #tpu.pipeline_mode<synchronous>, transform_indices = @transform_1, window_bounds = array<i64: 1152, 128>}, {pipeline_mode = #tpu.pipeline_mode<synchronous>, transform_indices = @transform_2, window_bounds = array<i64: 1, 128>}, {transform_indices = @transform_3, window_bounds = array<i64: 8, 128>}]} {
    %c0 = arith.constant 0 : index
    %c0_0 = arith.constant 0 : index
    %0 = vector.load %arg1[%c0, %c0_0] : memref<8x1152xbf16, #tpu.memory_space<vmem>>, vector<8x1152xbf16>
    %c0_1 = arith.constant 0 : index
    %c0_2 = arith.constant 0 : index
    %1 = vector.load %arg2[%c0_1, %c0_2] : memref<1152x128xbf16, #tpu.memory_space<vmem>>, vector<1152x128xbf16>
    %cst = arith.constant dense<0.000000e+00> : vector<8x128xf32>
    %2 = tpu.matmul %0, %1, %cst {dimension_numbers = #tpu.dot_dimension_numbers<[1], [0], [0], [1], [0, 0, 1, 1], [], []>} : vector<8x1152xbf16>, vector<1152x128xbf16>, vector<8x128xf32> -> vector<8x128xf32>
    %c0_3 = arith.constant 0 : index
    %c0_4 = arith.constant 0 : index
    %3 = vector.load %arg3[%c0_3, %c0_4] : memref<1x128xf32, #tpu.memory_space<vmem>>, vector<1x128xf32>
    %4 = vector.broadcast %3 : vector<1x128xf32> to vector<8x128xf32>
    %5 = arith.addf %2, %4 : vector<8x128xf32>
    %cst_5 = arith.constant 0.000000e+00 : f32
    %6 = vector.broadcast %cst_5 : f32 to vector<8x128xf32>
    %7 = arith.maximumf %5, %6 : vector<8x128xf32>
    %8 = arith.truncf %7 : vector<8x128xf32> to vector<8x128xbf16>
    %c0_6 = arith.constant 0 : index
    %c0_7 = arith.constant 0 : index
    %9 = vector.load %arg4[%c0_6, %c0_7] : memref<8x128xbf16, #tpu.memory_space<vmem>>, vector<8x128xbf16>
    tpu.vector_store %arg4[%c0_6, %c0_7], %8 {strides = array<i32>} : memref<8x128xbf16, #tpu.memory_space<vmem>>, vector<8x128xbf16>,
    return
  }
  func.func @transform_0(%arg0: i32) -> (i32, i32) {
    %c0_i32 = arith.constant 0 : i32
    %c0_i32_0 = arith.constant 0 : i32
    return %arg0, %c0_i32 : i32, i32
  }
  func.func @transform_1(%arg0: i32) -> (i32, i32) {
    %c0_i32 = arith.constant 0 : i32
    %c0_i32_0 = arith.constant 0 : i32
    %c0_i32_1 = arith.constant 0 : i32
    return %c0_i32, %c0_i32_0 : i32, i32
  }
  func.func @transform_2(%arg0: i32) -> (i32, i32) {
    %c0_i32 = arith.constant 0 : i32
    %c0_i32_0 = arith.constant 0 : i32
    %c0_i32_1 = arith.constant 0 : i32
    return %c0_i32, %c0_i32_0 : i32, i32
  }
  func.func @transform_3(%arg0: i32) -> (i32, i32) {
    %c0_i32 = arith.constant 0 : i32
    %c0_i32_0 = arith.constant 0 : i32
    return %arg0, %c0_i32 : i32, i32
  }
}

module attributes {stable_mosaic.version = 11 : i64} {
  func.func @_matmul_bias_act_kernel(%arg0: i32, %arg1: memref<8x128xbf16, #tpu.memory_space<vmem>>, %arg2: memref<128x128xbf16, #tpu.memory_space<vmem>>, %arg3: memref<1x128xf32, #tpu.memory_space<vmem>>, %arg4: memref<8x128xbf16, #tpu.memory_space<vmem>>) attributes {dimension_semantics = [#tpu.dimension_semantics<parallel>], iteration_bounds = array<i64: 1>, scalar_prefetch = 0 : i64, scratch_operands = 0 : i64, tpu.core_type = #tpu.core_type<tc>, window_params = [{transform_indices = @transform_0, window_bounds = array<i64: 8, 128>}, {pipeline_mode = #tpu.pipeline_mode<synchronous>, transform_indices = @transform_1, window_bounds = array<i64: 128, 128>}, {pipeline_mode = #tpu.pipeline_mode<synchronous>, transform_indices = @transform_2, window_bounds = array<i64: 1, 128>}, {transform_indices = @transform_3, window_bounds = array<i64: 8, 128>}]} {
    %c0 = arith.constant 0 : index
    %c0_0 = arith.constant 0 : index
    %0 = vector.load %arg1[%c0, %c0_0] : memref<8x128xbf16, #tpu.memory_space<vmem>>, vector<8x128xbf16>
    %c0_1 = arith.constant 0 : index
    %c0_2 = arith.constant 0 : index
    %1 = vector.load %arg2[%c0_1, %c0_2] : memref<128x128xbf16, #tpu.memory_space<vmem>>, vector<128x128xbf16>
    %cst = arith.constant dense<0.000000e+00> : vector<8x128xf32>
    %2 = tpu.matmul %0, %1, %cst {dimension_numbers = #tpu.dot_dimension_numbers<[1], [0], [0], [1], [0, 0, 1, 1], [], []>} : vector<8x128xbf16>, vector<128x128xbf16>, vector<8x128xf32> -> vector<8x128xf32>
    %c0_3 = arith.constant 0 : index
    %c0_4 = arith.constant 0 : index
    %3 = vector.load %arg3[%c0_3, %c0_4] : memref<1x128xf32, #tpu.memory_space<vmem>>, vector<1x128xf32>
    %4 = vector.broadcast %3 : vector<1x128xf32> to vector<8x128xf32>
    %5 = arith.addf %2, %4 : vector<8x128xf32>
    %6 = arith.truncf %5 : vector<8x128xf32> to vector<8x128xbf16>
    %c0_5 = arith.constant 0 : index
    %c0_6 = arith.constant 0 : index
    %7 = vector.load %arg4[%c0_5, %c0_6] : memref<8x128xbf16, #tpu.memory_space<vmem>>, vector<8x128xbf16>
    tpu.vector_store %arg4[%c0_5, %c0_6], %6 {strides = array<i32>} : memref<8x128xbf16, #tpu.memory_space<vmem>>, vector<8x128xbf16>,
    return
  }
  func.func @transform_0(%arg0: i32) -> (i32, i32) {
    %c0_i32 = arith.constant 0 : i32
    %c0_i32_0 = arith.constant 0 : i32
    return %arg0, %c0_i32 : i32, i32
  }
  func.func @transform_1(%arg0: i32) -> (i32, i32) {
    %c0_i32 = arith.constant 0 : i32
    %c0_i32_0 = arith.constant 0 : i32
    %c0_i32_1 = arith.constant 0 : i32
    return %c0_i32, %c0_i32_0 : i32, i32
  }
  func.func @transform_2(%arg0: i32) -> (i32, i32) {
    %c0_i32 = arith.constant 0 : i32
    %c0_i32_0 = arith.constant 0 : i32
    %c0_i32_1 = arith.constant 0 : i32
    return %c0_i32, %c0_i32_0 : i32, i32
  }
  func.func @transform_3(%arg0: i32) -> (i32, i32) {
    %c0_i32 = arith.constant 0 : i32
    %c0_i32_0 = arith.constant 0 : i32
    return %arg0, %c0_i32 : i32, i32
  }
}

module attributes {stable_mosaic.version = 11 : i64} {
  func.func @_matmul_bias_res_act_kernel(%arg0: i32, %arg1: memref<8x1152xbf16, #tpu.memory_space<vmem>>, %arg2: memref<1152x128xbf16, #tpu.memory_space<vmem>>, %arg3: memref<1x128xf32, #tpu.memory_space<vmem>>, %arg4: memref<8x128xbf16, #tpu.memory_space<vmem>>, %arg5: memref<8x128xbf16, #tpu.memory_space<vmem>>) attributes {dimension_semantics = [#tpu.dimension_semantics<parallel>], iteration_bounds = array<i64: 1>, scalar_prefetch = 0 : i64, scratch_operands = 0 : i64, tpu.core_type = #tpu.core_type<tc>, window_params = [{transform_indices = @transform_0, window_bounds = array<i64: 8, 1152>}, {pipeline_mode = #tpu.pipeline_mode<synchronous>, transform_indices = @transform_1, window_bounds = array<i64: 1152, 128>}, {pipeline_mode = #tpu.pipeline_mode<synchronous>, transform_indices = @transform_2, window_bounds = array<i64: 1, 128>}, {transform_indices = @transform_3, window_bounds = array<i64: 8, 128>}, {transform_indices = @transform_4, window_bounds = array<i64: 8, 128>}]} {
    %c0 = arith.constant 0 : index
    %c0_0 = arith.constant 0 : index
    %0 = vector.load %arg1[%c0, %c0_0] : memref<8x1152xbf16, #tpu.memory_space<vmem>>, vector<8x1152xbf16>
    %c0_1 = arith.constant 0 : index
    %c0_2 = arith.constant 0 : index
    %1 = vector.load %arg2[%c0_1, %c0_2] : memref<1152x128xbf16, #tpu.memory_space<vmem>>, vector<1152x128xbf16>
    %cst = arith.constant dense<0.000000e+00> : vector<8x128xf32>
    %2 = tpu.matmul %0, %1, %cst {dimension_numbers = #tpu.dot_dimension_numbers<[1], [0], [0], [1], [0, 0, 1, 1], [], []>} : vector<8x1152xbf16>, vector<1152x128xbf16>, vector<8x128xf32> -> vector<8x128xf32>
    %c0_3 = arith.constant 0 : index
    %c0_4 = arith.constant 0 : index
    %3 = vector.load %arg3[%c0_3, %c0_4] : memref<1x128xf32, #tpu.memory_space<vmem>>, vector<1x128xf32>
    %4 = vector.broadcast %3 : vector<1x128xf32> to vector<8x128xf32>
    %5 = arith.addf %2, %4 : vector<8x128xf32>
    %c0_5 = arith.constant 0 : index
    %c0_6 = arith.constant 0 : index
    %6 = vector.load %arg4[%c0_5, %c0_6] : memref<8x128xbf16, #tpu.memory_space<vmem>>, vector<8x128xbf16>
    %7 = arith.extf %6 : vector<8x128xbf16> to vector<8x128xf32>
    %8 = arith.addf %5, %7 : vector<8x128xf32>
    %cst_7 = arith.constant 0.000000e+00 : f32
    %9 = vector.broadcast %cst_7 : f32 to vector<8x128xf32>
    %10 = arith.maximumf %8, %9 : vector<8x128xf32>
    %11 = arith.truncf %10 : vector<8x128xf32> to vector<8x128xbf16>
    %c0_8 = arith.constant 0 : index
    %c0_9 = arith.constant 0 : index
    %12 = vector.load %arg5[%c0_8, %c0_9] : memref<8x128xbf16, #tpu.memory_space<vmem>>, vector<8x128xbf16>
    tpu.vector_store %arg5[%c0_8, %c0_9], %11 {strides = array<i32>} : memref<8x128xbf16, #tpu.memory_space<vmem>>, vector<8x128xbf16>,
    return
  }
  func.func @transform_0(%arg0: i32) -> (i32, i32) {
    %c0_i32 = arith.constant 0 : i32
    %c0_i32_0 = arith.constant 0 : i32
    return %arg0, %c0_i32 : i32, i32
  }
  func.func @transform_1(%arg0: i32) -> (i32, i32) {
    %c0_i32 = arith.constant 0 : i32
    %c0_i32_0 = arith.constant 0 : i32
    %c0_i32_1 = arith.constant 0 : i32
    return %c0_i32, %c0_i32_0 : i32, i32
  }
  func.func @transform_2(%arg0: i32) -> (i32, i32) {
    %c0_i32 = arith.constant 0 : i32
    %c0_i32_0 = arith.constant 0 : i32
    %c0_i32_1 = arith.constant 0 : i32
    return %c0_i32, %c0_i32_0 : i32, i32
  }
  func.func @transform_3(%arg0: i32) -> (i32, i32) {
    %c0_i32 = arith.constant 0 : i32
    %c0_i32_0 = arith.constant 0 : i32
    return %arg0, %c0_i32 : i32, i32
  }
  func.func @transform_4(%arg0: i32) -> (i32, i32) {
    %c0_i32 = arith.constant 0 : i32
    %c0_i32_0 = arith.constant 0 : i32
    return %arg0, %c0_i32 : i32, i32
  }
}

module attributes {stable_mosaic.version = 11 : i64} {
  func.func @_matmul_bias_act_kernel(%arg0: i32, %arg1: memref<2x1152xbf16, #tpu.memory_space<vmem>>, %arg2: memref<1152x128xbf16, #tpu.memory_space<vmem>>, %arg3: memref<1x128xf32, #tpu.memory_space<vmem>>, %arg4: memref<2x128xbf16, #tpu.memory_space<vmem>>) attributes {dimension_semantics = [#tpu.dimension_semantics<parallel>], iteration_bounds = array<i64: 1>, scalar_prefetch = 0 : i64, scratch_operands = 0 : i64, tpu.core_type = #tpu.core_type<tc>, window_params = [{transform_indices = @transform_0, window_bounds = array<i64: 2, 1152>}, {pipeline_mode = #tpu.pipeline_mode<synchronous>, transform_indices = @transform_1, window_bounds = array<i64: 1152, 128>}, {pipeline_mode = #tpu.pipeline_mode<synchronous>, transform_indices = @transform_2, window_bounds = array<i64: 1, 128>}, {transform_indices = @transform_3, window_bounds = array<i64: 2, 128>}]} {
    %c0 = arith.constant 0 : index
    %c0_0 = arith.constant 0 : index
    %0 = vector.load %arg1[%c0, %c0_0] : memref<2x1152xbf16, #tpu.memory_space<vmem>>, vector<2x1152xbf16>
    %c0_1 = arith.constant 0 : index
    %c0_2 = arith.constant 0 : index
    %1 = vector.load %arg2[%c0_1, %c0_2] : memref<1152x128xbf16, #tpu.memory_space<vmem>>, vector<1152x128xbf16>
    %cst = arith.constant dense<0.000000e+00> : vector<2x128xf32>
    %2 = tpu.matmul %0, %1, %cst {dimension_numbers = #tpu.dot_dimension_numbers<[1], [0], [0], [1], [0, 0, 1, 1], [], []>} : vector<2x1152xbf16>, vector<1152x128xbf16>, vector<2x128xf32> -> vector<2x128xf32>
    %c0_3 = arith.constant 0 : index
    %c0_4 = arith.constant 0 : index
    %3 = vector.load %arg3[%c0_3, %c0_4] : memref<1x128xf32, #tpu.memory_space<vmem>>, vector<1x128xf32>
    %4 = vector.broadcast %3 : vector<1x128xf32> to vector<2x128xf32>
    %5 = arith.addf %2, %4 : vector<2x128xf32>
    %cst_5 = arith.constant 0.000000e+00 : f32
    %6 = vector.broadcast %cst_5 : f32 to vector<2x128xf32>
    %7 = arith.maximumf %5, %6 : vector<2x128xf32>
    %8 = arith.truncf %7 : vector<2x128xf32> to vector<2x128xbf16>
    %c0_6 = arith.constant 0 : index
    %c0_7 = arith.constant 0 : index
    %9 = vector.load %arg4[%c0_6, %c0_7] : memref<2x128xbf16, #tpu.memory_space<vmem>>, vector<2x128xbf16>
    tpu.vector_store %arg4[%c0_6, %c0_7], %8 {strides = array<i32>} : memref<2x128xbf16, #tpu.memory_space<vmem>>, vector<2x128xbf16>,
    return
  }
  func.func @transform_0(%arg0: i32) -> (i32, i32) {
    %c0_i32 = arith.constant 0 : i32
    %c0_i32_0 = arith.constant 0 : i32
    return %arg0, %c0_i32 : i32, i32
  }
  func.func @transform_1(%arg0: i32) -> (i32, i32) {
    %c0_i32 = arith.constant 0 : i32
    %c0_i32_0 = arith.constant 0 : i32
    %c0_i32_1 = arith.constant 0 : i32
    return %c0_i32, %c0_i32_0 : i32, i32
  }
  func.func @transform_2(%arg0: i32) -> (i32, i32) {
    %c0_i32 = arith.constant 0 : i32
    %c0_i32_0 = arith.constant 0 : i32
    %c0_i32_1 = arith.constant 0 : i32
    return %c0_i32, %c0_i32_0 : i32, i32
  }
  func.func @transform_3(%arg0: i32) -> (i32, i32) {
    %c0_i32 = arith.constant 0 : i32
    %c0_i32_0 = arith.constant 0 : i32
    return %arg0, %c0_i32 : i32, i32
  }
}

module attributes {stable_mosaic.version = 11 : i64} {
  func.func @_matmul_bias_act_kernel(%arg0: i32, %arg1: memref<2x128xbf16, #tpu.memory_space<vmem>>, %arg2: memref<128x128xbf16, #tpu.memory_space<vmem>>, %arg3: memref<1x128xf32, #tpu.memory_space<vmem>>, %arg4: memref<2x128xbf16, #tpu.memory_space<vmem>>) attributes {dimension_semantics = [#tpu.dimension_semantics<parallel>], iteration_bounds = array<i64: 1>, scalar_prefetch = 0 : i64, scratch_operands = 0 : i64, tpu.core_type = #tpu.core_type<tc>, window_params = [{transform_indices = @transform_0, window_bounds = array<i64: 2, 128>}, {pipeline_mode = #tpu.pipeline_mode<synchronous>, transform_indices = @transform_1, window_bounds = array<i64: 128, 128>}, {pipeline_mode = #tpu.pipeline_mode<synchronous>, transform_indices = @transform_2, window_bounds = array<i64: 1, 128>}, {transform_indices = @transform_3, window_bounds = array<i64: 2, 128>}]} {
    %c0 = arith.constant 0 : index
    %c0_0 = arith.constant 0 : index
    %0 = vector.load %arg1[%c0, %c0_0] : memref<2x128xbf16, #tpu.memory_space<vmem>>, vector<2x128xbf16>
    %c0_1 = arith.constant 0 : index
    %c0_2 = arith.constant 0 : index
    %1 = vector.load %arg2[%c0_1, %c0_2] : memref<128x128xbf16, #tpu.memory_space<vmem>>, vector<128x128xbf16>
    %cst = arith.constant dense<0.000000e+00> : vector<2x128xf32>
    %2 = tpu.matmul %0, %1, %cst {dimension_numbers = #tpu.dot_dimension_numbers<[1], [0], [0], [1], [0, 0, 1, 1], [], []>} : vector<2x128xbf16>, vector<128x128xbf16>, vector<2x128xf32> -> vector<2x128xf32>
    %c0_3 = arith.constant 0 : index
    %c0_4 = arith.constant 0 : index
    %3 = vector.load %arg3[%c0_3, %c0_4] : memref<1x128xf32, #tpu.memory_space<vmem>>, vector<1x128xf32>
    %4 = vector.broadcast %3 : vector<1x128xf32> to vector<2x128xf32>
    %5 = arith.addf %2, %4 : vector<2x128xf32>
    %6 = arith.truncf %5 : vector<2x128xf32> to vector<2x128xbf16>
    %c0_5 = arith.constant 0 : index
    %c0_6 = arith.constant 0 : index
    %7 = vector.load %arg4[%c0_5, %c0_6] : memref<2x128xbf16, #tpu.memory_space<vmem>>, vector<2x128xbf16>
    tpu.vector_store %arg4[%c0_5, %c0_6], %6 {strides = array<i32>} : memref<2x128xbf16, #tpu.memory_space<vmem>>, vector<2x128xbf16>,
    return
  }
  func.func @transform_0(%arg0: i32) -> (i32, i32) {
    %c0_i32 = arith.constant 0 : i32
    %c0_i32_0 = arith.constant 0 : i32
    return %arg0, %c0_i32 : i32, i32
  }
  func.func @transform_1(%arg0: i32) -> (i32, i32) {
    %c0_i32 = arith.constant 0 : i32
    %c0_i32_0 = arith.constant 0 : i32
    %c0_i32_1 = arith.constant 0 : i32
    return %c0_i32, %c0_i32_0 : i32, i32
  }
  func.func @transform_2(%arg0: i32) -> (i32, i32) {
    %c0_i32 = arith.constant 0 : i32
    %c0_i32_0 = arith.constant 0 : i32
    %c0_i32_1 = arith.constant 0 : i32
    return %c0_i32, %c0_i32_0 : i32, i32
  }
  func.func @transform_3(%arg0: i32) -> (i32, i32) {
    %c0_i32 = arith.constant 0 : i32
    %c0_i32_0 = arith.constant 0 : i32
    return %arg0, %c0_i32 : i32, i32
  }
}

module attributes {stable_mosaic.version = 11 : i64} {
  func.func @_matmul_bias_res_act_kernel(%arg0: i32, %arg1: memref<2x1152xbf16, #tpu.memory_space<vmem>>, %arg2: memref<1152x128xbf16, #tpu.memory_space<vmem>>, %arg3: memref<1x128xf32, #tpu.memory_space<vmem>>, %arg4: memref<2x128xbf16, #tpu.memory_space<vmem>>, %arg5: memref<2x128xbf16, #tpu.memory_space<vmem>>) attributes {dimension_semantics = [#tpu.dimension_semantics<parallel>], iteration_bounds = array<i64: 1>, scalar_prefetch = 0 : i64, scratch_operands = 0 : i64, tpu.core_type = #tpu.core_type<tc>, window_params = [{transform_indices = @transform_0, window_bounds = array<i64: 2, 1152>}, {pipeline_mode = #tpu.pipeline_mode<synchronous>, transform_indices = @transform_1, window_bounds = array<i64: 1152, 128>}, {pipeline_mode = #tpu.pipeline_mode<synchronous>, transform_indices = @transform_2, window_bounds = array<i64: 1, 128>}, {transform_indices = @transform_3, window_bounds = array<i64: 2, 128>}, {transform_indices = @transform_4, window_bounds = array<i64: 2, 128>}]} {
    %c0 = arith.constant 0 : index
    %c0_0 = arith.constant 0 : index
    %0 = vector.load %arg1[%c0, %c0_0] : memref<2x1152xbf16, #tpu.memory_space<vmem>>, vector<2x1152xbf16>
    %c0_1 = arith.constant 0 : index
    %c0_2 = arith.constant 0 : index
    %1 = vector.load %arg2[%c0_1, %c0_2] : memref<1152x128xbf16, #tpu.memory_space<vmem>>, vector<1152x128xbf16>
    %cst = arith.constant dense<0.000000e+00> : vector<2x128xf32>
    %2 = tpu.matmul %0, %1, %cst {dimension_numbers = #tpu.dot_dimension_numbers<[1], [0], [0], [1], [0, 0, 1, 1], [], []>} : vector<2x1152xbf16>, vector<1152x128xbf16>, vector<2x128xf32> -> vector<2x128xf32>
    %c0_3 = arith.constant 0 : index
    %c0_4 = arith.constant 0 : index
    %3 = vector.load %arg3[%c0_3, %c0_4] : memref<1x128xf32, #tpu.memory_space<vmem>>, vector<1x128xf32>
    %4 = vector.broadcast %3 : vector<1x128xf32> to vector<2x128xf32>
    %5 = arith.addf %2, %4 : vector<2x128xf32>
    %c0_5 = arith.constant 0 : index
    %c0_6 = arith.constant 0 : index
    %6 = vector.load %arg4[%c0_5, %c0_6] : memref<2x128xbf16, #tpu.memory_space<vmem>>, vector<2x128xbf16>
    %7 = arith.extf %6 : vector<2x128xbf16> to vector<2x128xf32>
    %8 = arith.addf %5, %7 : vector<2x128xf32>
    %cst_7 = arith.constant 0.000000e+00 : f32
    %9 = vector.broadcast %cst_7 : f32 to vector<2x128xf32>
    %10 = arith.maximumf %8, %9 : vector<2x128xf32>
    %11 = arith.truncf %10 : vector<2x128xf32> to vector<2x128xbf16>
    %c0_8 = arith.constant 0 : index
    %c0_9 = arith.constant 0 : index
    %12 = vector.load %arg5[%c0_8, %c0_9] : memref<2x128xbf16, #tpu.memory_space<vmem>>, vector<2x128xbf16>
    tpu.vector_store %arg5[%c0_8, %c0_9], %11 {strides = array<i32>} : memref<2x128xbf16, #tpu.memory_space<vmem>>, vector<2x128xbf16>,
    return
  }
  func.func @transform_0(%arg0: i32) -> (i32, i32) {
    %c0_i32 = arith.constant 0 : i32
    %c0_i32_0 = arith.constant 0 : i32
    return %arg0, %c0_i32 : i32, i32
  }
  func.func @transform_1(%arg0: i32) -> (i32, i32) {
    %c0_i32 = arith.constant 0 : i32
    %c0_i32_0 = arith.constant 0 : i32
    %c0_i32_1 = arith.constant 0 : i32
    return %c0_i32, %c0_i32_0 : i32, i32
  }
  func.func @transform_2(%arg0: i32) -> (i32, i32) {
    %c0_i32 = arith.constant 0 : i32
    %c0_i32_0 = arith.constant 0 : i32
    %c0_i32_1 = arith.constant 0 : i32
    return %c0_i32, %c0_i32_0 : i32, i32
  }
  func.func @transform_3(%arg0: i32) -> (i32, i32) {
    %c0_i32 = arith.constant 0 : i32
    %c0_i32_0 = arith.constant 0 : i32
    return %arg0, %c0_i32 : i32, i32
  }
  func.func @transform_4(%arg0: i32) -> (i32, i32) {
    %c0_i32 = arith.constant 0 : i32
    %c0_i32_0 = arith.constant 0 : i32
    return %arg0, %c0_i32 : i32, i32
  }
}

</mosaic_0001>

<bundles_post_ra>
// kernel: resnet_forward.21
= control target key start
LH: loop header
LB: loop body
LE: loop exit
PB: predicated region body
PF: predicated region fallthrough
CT: control target
= control target key end

     0   :  { %s1251_s12 = smov 0   ;;  %s1407_s0 = inlined_call_operand.vmem [shape: bf16[512,147], index: 0, kind: input, shape index: {}]   ;;  %s1408_s1 = inlined_call_operand.vmem [shape: bf16[147,128], index: 1, kind: input, shape index: {}]   ;;  %s1409_s2 = inlined_call_operand.vmem [shape: f32[1,128], index: 2, kind: input, shape index: {}]   ;;  %s1410_s3 = inlined_call_operand.vmem [shape: bf16[512,128], index: 3, kind: output, shape index: {}]  }
   0x1 LB: > { %s902_s13 = sadd.s32 4294967295, %s1227_s12   ;;  %p906_p0 = scmp.ge.s32.totalorder %s1227_s12, 1  ;;  %s1227_s12 = sphi %s1251_s12, %s13_s12  }
   0x2   : > { %p139_p1 = scmp.lt.s32.totalorder %s1227_s12, 3 }
   0x4   : > { %p140_p2 = pnand %p906_p0, %p139_p1 }
   0x5   : > { %s907_s20 = sshll.u32 (!%p140_p2), %s902_s13, 5 }
   0x6   : > { %143 = sbr.rel (%p140_p2) target bundleno = 312 (0x138), region = 32  ;;  %p165_p3 = scmp.lt.s32.totalorder (!%p140_p2), %s907_s20, 63 }
   0xb   : > { %v1163_v0 = vld [vmem:[%s1408_s1 + $0x38] sm:$0xff]   ;;  %v1229_v1 = vmov 0   ;;  %v1164_v2 = vld [vmem:[%s1408_s1 + $0x30] sm:$0xff]   ;;  %v1165_v3 = vld [vmem:[%s1408_s1 + $0x28] sm:$0xff]   ;;  %s1412_s20 = smov (!%p165_p3, %s907_s20), 63  ;;  %vm437_vm0 = vcmask 154624  }
   0xc   : > { %493 = vmatprep.subr.bf16.mxu0 %v1229_v1  ;;  %1133 = vmatprep.subr.bf16.mxu1 %v1229_v1  ;;  %v1166_v4 = vld [vmem:[%s1408_s1 + $0x20] sm:$0xff]   ;;  %s1005_s23 = sshll.u32 %s1412_s20, 3  ;;  %v1167_v5 = vld [vmem:[%s1408_s1 + $0x18] sm:$0xff]   ;;  %v1168_v8 = vld [vmem:[%s1408_s1 + $0x10] sm:$0xff]   ;;  %vm486_vm1 = vcmask 1040384   ;;  %vm487_vm2 = vcmask 1041408  }
   0xd   : > { %494 = vmatpush1.bf16.msra.mxu0 %v1163_v0  ;;  %1143 = vmatpush1.bf16.msra.mxu1 %v1163_v0  ;;  %s1277_s26 = scalar_lea.vmem %s1407_s0, %s1005_s23  ;;  %v1169_v9 = vld [vmem:[%s1408_s1 + $0x8] sm:$0xff]   ;;  %v1230_v10 = vmov 65535   ;;  %v1170_v12 = vld [vmem:[%s1408_s1] sm:$0xff]   ;;  %s911_s15 = sshll.u32 %s1412_s20, 2 }
   0xe   : > { %495 = vmatprep.subr.bf16.mxu0 %v1229_v1  ;;  %1134 = vmatprep.subr.bf16.mxu1 %v1229_v1  ;;  %v1175_v6 = vld [vmem:[%s1277_s26 + $0x4] ss:$8 sps:$4 sm:$0xff]   ;;  %v488_v11 = vsel %vm486_vm1, 4294967295, %v1230_v10  ;;  %v1171_v13 = vld [vmem:[%s1408_s1 + $0x48] ss:$0 sps:$4 sm:$0x33]   ;;  %s1358_s18 = scalar_lea.vmem %s1410_s3, %s911_s15 }
   0xf   : > { %v1178_v7 = vld [vmem:[%s1277_s26 + $0x84] ss:$8 sps:$4 sm:$0xff]   ;;  %955 = vmatprep.mubr.msk.bf16.mxu0 %vm437_vm0, %v1175_v6  ;;  %v489_v14 = vsel %vm487_vm2, %v488_v11, 0  ;;  %v1173_v17 = vld [vmem:[%s1277_s26] ss:$8 sps:$4 sm:$0xff]  }
  0x10   : > { %963 = vmatprep.mubr.msk.bf16.mxu1 %vm437_vm0, %v1178_v7  ;;  %v491_v15 = vand.u32 %v1171_v13, %v489_v14  ;;  %v1172_v16 = vld [vmem:[%s1408_s1 + $0x40] sm:$0xff]   ;;  %v1179_v19 = vld [vmem:[%s1277_s26 + $0x14] ss:$8 sps:$4 sm:$0xff]   ;;  %v1183_v21 = vld [vmem:[%s1277_s26 + $0x10] ss:$8 sps:$4 sm:$0xff]  }
  0x11   : > { %496 = vmatpush1.bf16.msra.mxu0 %v1164_v2  ;;  %1144 = vmatpush1.bf16.msra.mxu1 %v1164_v2  ;;  %v1176_v18 = vld [vmem:[%s1277_s26 + $0x80] ss:$8 sps:$4 sm:$0xff]   ;;  %v1181_v20 = vld [vmem:[%s1277_s26 + $0x94] ss:$8 sps:$4 sm:$0xff]   ;;  %v1184_v22 = vld [vmem:[%s1277_s26 + $0x90] ss:$8 sps:$4 sm:$0xff]  }
  0x12   : > { %497 = vmatprep.subr.bf16.mxu0 %v1229_v1  ;;  %1135 = vmatprep.subr.bf16.mxu1 %v1229_v1  ;;  %v1185_v23 = vld [vmem:[%s1277_s26 + $0x24] ss:$8 sps:$4 sm:$0xff]   ;;  %v1189_v25 = vld [vmem:[%s1277_s26 + $0x20] ss:$8 sps:$4 sm:$0xff]   ;;  %v1191_v27 = vld [vmem:[%s1277_s26 + $0x34] ss:$8 sps:$4 sm:$0xff]  }
  0x13   : > { %v1187_v24 = vld [vmem:[%s1277_s26 + $0xa4] ss:$8 sps:$4 sm:$0xff]   ;;  %v1190_v26 = vld [vmem:[%s1277_s26 + $0xa0] ss:$8 sps:$4 sm:$0xff]   ;;  %v1193_v28 = vld [vmem:[%s1277_s26 + $0xb4] ss:$8 sps:$4 sm:$0xff]  }
  0x14   : > { %v1195_v29 = vld [vmem:[%s1277_s26 + $0x30] ss:$8 sps:$4 sm:$0xff]   ;;  %v1197_v31 = vld [vmem:[%s1277_s26 + $0x44] ss:$8 sps:$4 sm:$0xff]   ;;  %v1201_v33 = vld [vmem:[%s1277_s26 + $0x40] ss:$8 sps:$4 sm:$0xff]  }
  0x15   : > { %498 = vmatpush1.bf16.msra.mxu0 %v1165_v3  ;;  %1145 = vmatpush1.bf16.msra.mxu1 %v1165_v3  ;;  %v1196_v30 = vld [vmem:[%s1277_s26 + $0xb0] ss:$8 sps:$4 sm:$0xff]   ;;  %v1199_v32 = vld [vmem:[%s1277_s26 + $0xc4] ss:$8 sps:$4 sm:$0xff]   ;;  %v1202_v34 = vld [vmem:[%s1277_s26 + $0xc0] ss:$8 sps:$4 sm:$0xff]  }
  0x16   : > { %499 = vmatprep.subr.bf16.mxu0 %v1229_v1  ;;  %1136 = vmatprep.subr.bf16.mxu1 %v1229_v1  ;;  %v1203_v35 = vld [vmem:[%s1277_s26 + $0x54] ss:$8 sps:$4 sm:$0xff]   ;;  %v1207_v37 = vld [vmem:[%s1277_s26 + $0x50] ss:$8 sps:$4 sm:$0xff]   ;;  %v1209_v39 = vld [vmem:[%s1277_s26 + $0x64] ss:$8 sps:$4 sm:$0xff]  }
  0x17   : > { %v1205_v36 = vld [vmem:[%s1277_s26 + $0xd4] ss:$8 sps:$4 sm:$0xff]   ;;  %v1208_v38 = vld [vmem:[%s1277_s26 + $0xd0] ss:$8 sps:$4 sm:$0xff]   ;;  %v1211_v40 = vld [vmem:[%s1277_s26 + $0xe4] ss:$8 sps:$4 sm:$0xff]  }
  0x18   : > { %v1213_v41 = vld [vmem:[%s1277_s26 + $0x60] ss:$8 sps:$4 sm:$0xff]   ;;  %v1215_v43 = vld [vmem:[%s1277_s26 + $0x74] ss:$8 sps:$4 sm:$0xff]   ;;  %v1219_v45 = vld [vmem:[%s1277_s26 + $0x70] ss:$8 sps:$4 sm:$0xff]  }
  0x19   : > { %500 = vmatpush1.bf16.msra.mxu0 %v1166_v4  ;;  %1146 = vmatpush1.bf16.msra.mxu1 %v1166_v4  ;;  %v1214_v42 = vld [vmem:[%s1277_s26 + $0xe0] ss:$8 sps:$4 sm:$0xff]   ;;  %v1217_v44 = vld [vmem:[%s1277_s26 + $0xf4] ss:$8 sps:$4 sm:$0xff]   ;;  %v1220_v46 = vld [vmem:[%s1277_s26 + $0xf0] ss:$8 sps:$4 sm:$0xff]  }
  0x1a   : > { %501 = vmatprep.subr.bf16.mxu0 %v1229_v1  ;;  %1137 = vmatprep.subr.bf16.mxu1 %v1229_v1  ;;  %v1348_v47 = vld [vmem:[%s1409_s2] ss:$0 sm:$0xff] }
  0x1d   : > { %502 = vmatpush1.bf16.msra.mxu0 %v1167_v5  ;;  %1147 = vmatpush1.bf16.msra.mxu1 %v1167_v5 }
  0x1e   : > { %503 = vmatprep.subr.bf16.mxu0 %v1229_v1  ;;  %1138 = vmatprep.subr.bf16.mxu1 %v1229_v1 }
  0x21   : > { %504 = vmatpush1.bf16.msra.mxu0 %v1168_v8  ;;  %1148 = vmatpush1.bf16.msra.mxu1 %v1168_v8 }
  0x22   : > { %505 = vmatprep.subr.bf16.mxu0 %v1229_v1  ;;  %1139 = vmatprep.subr.bf16.mxu1 %v1229_v1 }
  0x25   : > { %506 = vmatpush1.bf16.msra.mxu0 %v1169_v9  ;;  %1149 = vmatpush1.bf16.msra.mxu1 %v1169_v9 }
  0x26   : > { %507 = vmatprep.subr.bf16.mxu0 %v1229_v1  ;;  %1140 = vmatprep.subr.bf16.mxu1 %v1229_v1 }
  0x29   : > { %508 = vmatpush1.bf16.msra.mxu0 %v1170_v12  ;;  %1150 = vmatpush1.bf16.msra.mxu1 %v1170_v12 }
  0x2a   : > { %521 = vmatprep.subr.bf16.mxu0 %v1229_v1  ;;  %1141 = vmatprep.subr.bf16.mxu1 %v1229_v1 }
  0x2d   : > { %522 = vmatpush2.bf16.msra.mxu0 %v491_v15  ;;  %1151 = vmatpush2.bf16.msra.mxu1 %v491_v15 }
  0x2e   : > { %523 = vmatprep.subr.bf16.mxu0 %v1229_v1  ;;  %1142 = vmatprep.subr.bf16.mxu1 %v1229_v1 }
  0x31   : > { %524 = vmatpush2.bf16.msra.mxu0 %v1172_v16  ;;  %1152 = vmatpush2.bf16.msra.mxu1 %v1172_v16 }
  0x34   : > { %526 = vmatmul.mubr.bf16.vlgmr.msra.gmra.mxu0 %v1173_v17  ;;  %590 = vmatmul.mubr.bf16.vlgmr.msra.gmra.mxu1 %v1176_v18 }
  0x35   : > { %956 = vmatprep.mubr.msk.bf16.mxu0 %vm437_vm0, %v1179_v19  ;;  %964 = vmatprep.mubr.msk.bf16.mxu1 %vm437_vm0, %v1181_v20 }
  0x3c   : > { %534 = vmatmul.mubr.bf16.gmra.mxu0 %v1183_v21  ;;  %598 = vmatmul.mubr.bf16.gmra.mxu1 %v1184_v22 }
  0x3d   : > { %957 = vmatprep.mubr.msk.bf16.mxu0 %vm437_vm0, %v1185_v23  ;;  %965 = vmatprep.mubr.msk.bf16.mxu1 %vm437_vm0, %v1187_v24 }
  0x44   : > { %542 = vmatmul.mubr.bf16.gmra.mxu0 %v1189_v25  ;;  %606 = vmatmul.mubr.bf16.gmra.mxu1 %v1190_v26 }
  0x45   : > { %958 = vmatprep.mubr.msk.bf16.mxu0 %vm437_vm0, %v1191_v27  ;;  %966 = vmatprep.mubr.msk.bf16.mxu1 %vm437_vm0, %v1193_v28 }
  0x4c   : > { %550 = vmatmul.mubr.bf16.gmra.mxu0 %v1195_v29  ;;  %614 = vmatmul.mubr.bf16.gmra.mxu1 %v1196_v30 }
  0x4d   : > { %959 = vmatprep.mubr.msk.bf16.mxu0 %vm437_vm0, %v1197_v31  ;;  %967 = vmatprep.mubr.msk.bf16.mxu1 %vm437_vm0, %v1199_v32 }
  0x54   : > { %558 = vmatmul.mubr.bf16.gmra.mxu0 %v1201_v33  ;;  %622 = vmatmul.mubr.bf16.gmra.mxu1 %v1202_v34 }
  0x55   : > { %960 = vmatprep.mubr.msk.bf16.mxu0 %vm437_vm0, %v1203_v35  ;;  %968 = vmatprep.mubr.msk.bf16.mxu1 %vm437_vm0, %v1205_v36 }
  0x5c   : > { %566 = vmatmul.mubr.bf16.gmra.mxu0 %v1207_v37  ;;  %630 = vmatmul.mubr.bf16.gmra.mxu1 %v1208_v38 }
  0x5d   : > { %961 = vmatprep.mubr.msk.bf16.mxu0 %vm437_vm0, %v1209_v39  ;;  %969 = vmatprep.mubr.msk.bf16.mxu1 %vm437_vm0, %v1211_v40 }
  0x64   : > { %574 = vmatmul.mubr.bf16.gmra.mxu0 %v1213_v41  ;;  %638 = vmatmul.mubr.bf16.gmra.mxu1 %v1214_v42 }
  0x65   : > { %962 = vmatprep.mubr.msk.bf16.mxu0 %vm437_vm0, %v1215_v43  ;;  %970 = vmatprep.mubr.msk.bf16.mxu1 %vm437_vm0, %v1217_v44 }
  0x6c   : > { %582 = vmatmul.mubr.bf16.gmra.mxu0 %v1219_v45  ;;  %646 = vmatmul.mubr.bf16.gmra.mxu1 %v1220_v46 }
  0xf4   : > { %v527_v48 = vpop.f32.mrf.mxu0  ;;  %v591_v49 = vpop.f32.mrf.mxu1 }
  0xf5   : > { %v528_v52 = vadd.f32 %v1348_v47, %v527_v48  ;;  %v592_v53 = vadd.f32 %v1348_v47, %v591_v49 }
  0xf6   : > { %v529_v50 = vpop.f32.mrf.mxu0  ;;  %v593_v51 = vpop.f32.mrf.mxu1 }
  0xf7   : > { %v654_v60 = vmax.f32 %v528_v52, 0.0  ;;  %v670_v61 = vmax.f32 %v592_v53, 0.0 }
  0xf8   : > { %v530_v54 = vpop.f32.mrf.mxu0  ;;  %v594_v55 = vpop.f32.mrf.mxu1 }
  0xf9   : > { %v531_v56 = vadd.f32 %v1348_v47, %v530_v54  ;;  %v595_v57 = vadd.f32 %v1348_v47, %v594_v55 }
  0xfa   : > { %v532_v58 = vpop.f32.mrf.mxu0  ;;  %v596_v59 = vpop.f32.mrf.mxu1 }
  0xfb   : > { %v655_v62 = vmax.f32 %v531_v56, 0.0  ;;  %v671_v63 = vmax.f32 %v595_v57, 0.0 }
  0xfc   : > { %v535_v0 = vpop.f32.mrf.mxu0  ;;  %v599_v1 = vpop.f32.mrf.mxu1 }
  0xfd   : > { %v1041_v2 = vpack.c.bf16 %v655_v62, %v654_v60  ;;  %v1081_v3 = vpack.c.bf16 %v671_v63, %v670_v61  ;;  %v536_v6 = vadd.f32 %v1348_v47, %v535_v0  ;;  %v600_v7 = vadd.f32 %v1348_v47, %v599_v1 }
  0xfe   : > { %v537_v4 = vpop.f32.mrf.mxu0  ;;  %v601_v5 = vpop.f32.mrf.mxu1 }
  0xff   : > { %1042 = vst [vmem:[%s1358_s18] sm:$0xff] %v1041_v2   ;;  %1125 = vst [vmem:[%s1358_s18 + $0x40] sm:$0xff] %v1081_v3   ;;  %v656_v14 = vmax.f32 %v536_v6, 0.0  ;;  %v672_v15 = vmax.f32 %v600_v7, 0.0 }
 0x100   : > { %v538_v8 = vpop.f32.mrf.mxu0  ;;  %v602_v9 = vpop.f32.mrf.mxu1 }
 0x101   : > { %v539_v10 = vadd.f32 %v1348_v47, %v538_v8  ;;  %v603_v11 = vadd.f32 %v1348_v47, %v602_v9 }
 0x102   : > { %v540_v12 = vpop.f32.mrf.mxu0  ;;  %v604_v13 = vpop.f32.mrf.mxu1 }
 0x103   : > { %v657_v16 = vmax.f32 %v539_v10, 0.0  ;;  %v673_v17 = vmax.f32 %v603_v11, 0.0 }
 0x104   : > { %v543_v18 = vpop.f32.mrf.mxu0  ;;  %v607_v19 = vpop.f32.mrf.mxu1 }
 0x105   : > { %v1046_v20 = vpack.c.bf16 %v657_v16, %v656_v14  ;;  %v1086_v21 = vpack.c.bf16 %v673_v17, %v672_v15  ;;  %v544_v24 = vadd.f32 %v1348_v47, %v543_v18  ;;  %v608_v25 = vadd.f32 %v1348_v47, %v607_v19 }
 0x106   : > { %v545_v22 = vpop.f32.mrf.mxu0  ;;  %v609_v23 = vpop.f32.mrf.mxu1 }
 0x107   : > { %1118 = vst [vmem:[%s1358_s18 + $0x8] sm:$0xff] %v1046_v20   ;;  %1126 = vst [vmem:[%s1358_s18 + $0x48] sm:$0xff] %v1086_v21   ;;  %v658_v32 = vmax.f32 %v544_v24, 0.0  ;;  %v674_v33 = vmax.f32 %v608_v25, 0.0 }
 0x108   : > { %v546_v26 = vpop.f32.mrf.mxu0  ;;  %v610_v27 = vpop.f32.mrf.mxu1 }
 0x109   : > { %v547_v28 = vadd.f32 %v1348_v47, %v546_v26  ;;  %v611_v29 = vadd.f32 %v1348_v47, %v610_v27 }
 0x10a   : > { %v548_v30 = vpop.f32.mrf.mxu0  ;;  %v612_v31 = vpop.f32.mrf.mxu1 }
 0x10b   : > { %v659_v34 = vmax.f32 %v547_v28, 0.0  ;;  %v675_v35 = vmax.f32 %v611_v29, 0.0 }
 0x10c   : > { %v551_v36 = vpop.f32.mrf.mxu0  ;;  %v615_v37 = vpop.f32.mrf.mxu1 }
 0x10d   : > { %v1051_v38 = vpack.c.bf16 %v659_v34, %v658_v32  ;;  %v1091_v39 = vpack.c.bf16 %v675_v35, %v674_v33  ;;  %v552_v42 = vadd.f32 %v1348_v47, %v551_v36  ;;  %v616_v43 = vadd.f32 %v1348_v47, %v615_v37 }
 0x10e   : > { %v553_v40 = vpop.f32.mrf.mxu0  ;;  %v617_v41 = vpop.f32.mrf.mxu1 }
 0x10f   : > { %1119 = vst [vmem:[%s1358_s18 + $0x10] sm:$0xff] %v1051_v38   ;;  %1127 = vst [vmem:[%s1358_s18 + $0x50] sm:$0xff] %v1091_v39   ;;  %v660_v51 = vmax.f32 %v552_v42, 0.0  ;;  %v676_v52 = vmax.f32 %v616_v43, 0.0 }
 0x110   : > { %v554_v44 = vpop.f32.mrf.mxu0  ;;  %v618_v45 = vpop.f32.mrf.mxu1 }
 0x111   : > { %v555_v46 = vadd.f32 %v1348_v47, %v554_v44  ;;  %v619_v48 = vadd.f32 %v1348_v47, %v618_v45 }
 0x112   : > { %v556_v49 = vpop.f32.mrf.mxu0  ;;  %v620_v50 = vpop.f32.mrf.mxu1 }
 0x113   : > { %v661_v53 = vmax.f32 %v555_v46, 0.0  ;;  %v677_v54 = vmax.f32 %v619_v48, 0.0 }
 0x114   : > { %v559_v55 = vpop.f32.mrf.mxu0  ;;  %v623_v56 = vpop.f32.mrf.mxu1 }
 0x115   : > { %v1056_v57 = vpack.c.bf16 %v661_v53, %v660_v51  ;;  %v1096_v58 = vpack.c.bf16 %v677_v54, %v676_v52  ;;  %v560_v61 = vadd.f32 %v1348_v47, %v559_v55  ;;  %v624_v62 = vadd.f32 %v1348_v47, %v623_v56 }
 0x116   : > { %v561_v59 = vpop.f32.mrf.mxu0  ;;  %v625_v60 = vpop.f32.mrf.mxu1 }
 0x117   : > { %1120 = vst [vmem:[%s1358_s18 + $0x18] sm:$0xff] %v1056_v57   ;;  %1128 = vst [vmem:[%s1358_s18 + $0x58] sm:$0xff] %v1096_v58   ;;  %v662_v5 = vmax.f32 %v560_v61, 0.0  ;;  %v678_v6 = vmax.f32 %v624_v62, 0.0 }
 0x118   : > { %v562_v63 = vpop.f32.mrf.mxu0  ;;  %v626_v0 = vpop.f32.mrf.mxu1 }
 0x119   : > { %v563_v1 = vadd.f32 %v1348_v47, %v562_v63  ;;  %v627_v2 = vadd.f32 %v1348_v47, %v626_v0 }
 0x11a   : > { %v564_v3 = vpop.f32.mrf.mxu0  ;;  %v628_v4 = vpop.f32.mrf.mxu1 }
 0x11b   : > { %v663_v7 = vmax.f32 %v563_v1, 0.0  ;;  %v679_v8 = vmax.f32 %v627_v2, 0.0 }
 0x11c   : > { %v567_v9 = vpop.f32.mrf.mxu0  ;;  %v631_v10 = vpop.f32.mrf.mxu1 }
 0x11d   : > { %v1061_v11 = vpack.c.bf16 %v663_v7, %v662_v5  ;;  %v1101_v12 = vpack.c.bf16 %v679_v8, %v678_v6  ;;  %v568_v15 = vadd.f32 %v1348_v47, %v567_v9  ;;  %v632_v16 = vadd.f32 %v1348_v47, %v631_v10 }
 0x11e   : > { %v569_v13 = vpop.f32.mrf.mxu0  ;;  %v633_v14 = vpop.f32.mrf.mxu1 }
 0x11f   : > { %1121 = vst [vmem:[%s1358_s18 + $0x20] sm:$0xff] %v1061_v11   ;;  %1129 = vst [vmem:[%s1358_s18 + $0x60] sm:$0xff] %v1101_v12   ;;  %v664_v23 = vmax.f32 %v568_v15, 0.0  ;;  %v680_v24 = vmax.f32 %v632_v16, 0.0 }
 0x120   : > { %v570_v17 = vpop.f32.mrf.mxu0  ;;  %v634_v18 = vpop.f32.mrf.mxu1 }
 0x121   : > { %v571_v19 = vadd.f32 %v1348_v47, %v570_v17  ;;  %v635_v20 = vadd.f32 %v1348_v47, %v634_v18 }
 0x122   : > { %v572_v21 = vpop.f32.mrf.mxu0  ;;  %v636_v22 = vpop.f32.mrf.mxu1 }
 0x123   : > { %v665_v25 = vmax.f32 %v571_v19, 0.0  ;;  %v681_v26 = vmax.f32 %v635_v20, 0.0 }
 0x124   : > { %v575_v27 = vpop.f32.mrf.mxu0  ;;  %v639_v28 = vpop.f32.mrf.mxu1 }
 0x125   : > { %v1066_v29 = vpack.c.bf16 %v665_v25, %v664_v23  ;;  %v1106_v30 = vpack.c.bf16 %v681_v26, %v680_v24  ;;  %v576_v33 = vadd.f32 %v1348_v47, %v575_v27  ;;  %v640_v34 = vadd.f32 %v1348_v47, %v639_v28 }
 0x126   : > { %v577_v31 = vpop.f32.mrf.mxu0  ;;  %v641_v32 = vpop.f32.mrf.mxu1 }
 0x127   : > { %1122 = vst [vmem:[%s1358_s18 + $0x28] sm:$0xff] %v1066_v29   ;;  %1130 = vst [vmem:[%s1358_s18 + $0x68] sm:$0xff] %v1106_v30   ;;  %v666_v41 = vmax.f32 %v576_v33, 0.0  ;;  %v682_v42 = vmax.f32 %v640_v34, 0.0 }
 0x128   : > { %v578_v35 = vpop.f32.mrf.mxu0  ;;  %v642_v36 = vpop.f32.mrf.mxu1 }
 0x129   : > { %v579_v37 = vadd.f32 %v1348_v47, %v578_v35  ;;  %v643_v38 = vadd.f32 %v1348_v47, %v642_v36 }
 0x12a   : > { %v580_v39 = vpop.f32.mrf.mxu0  ;;  %v644_v40 = vpop.f32.mrf.mxu1 }
 0x12b   : > { %v667_v43 = vmax.f32 %v579_v37, 0.0  ;;  %v683_v44 = vmax.f32 %v643_v38, 0.0 }
 0x12c   : > { %v583_v45 = vpop.f32.mrf.mxu0  ;;  %v647_v46 = vpop.f32.mrf.mxu1 }
 0x12d   : > { %v1071_v48 = vpack.c.bf16 %v667_v43, %v666_v41  ;;  %v1111_v49 = vpack.c.bf16 %v683_v44, %v682_v42  ;;  %v584_v52 = vadd.f32 %v1348_v47, %v583_v45  ;;  %v648_v53 = vadd.f32 %v1348_v47, %v647_v46 }
 0x12e   : > { %v585_v50 = vpop.f32.mrf.mxu0  ;;  %v649_v51 = vpop.f32.mrf.mxu1 }
 0x12f   : > { %1123 = vst [vmem:[%s1358_s18 + $0x30] sm:$0xff] %v1071_v48   ;;  %1131 = vst [vmem:[%s1358_s18 + $0x70] sm:$0xff] %v1111_v49   ;;  %v668_v60 = vmax.f32 %v584_v52, 0.0  ;;  %v684_v61 = vmax.f32 %v648_v53, 0.0 }
 0x130   : > { %v586_v54 = vpop.f32.mrf.mxu0  ;;  %v650_v55 = vpop.f32.mrf.mxu1 }
 0x131   : > { %v587_v56 = vadd.f32 %v1348_v47, %v586_v54  ;;  %v651_v57 = vadd.f32 %v1348_v47, %v650_v55 }
 0x132   : > { %v588_v58 = vpop.f32.mrf.mxu0  ;;  %v652_v59 = vpop.f32.mrf.mxu1 }
 0x133   : > { %v669_v62 = vmax.f32 %v587_v56, 0.0  ;;  %v685_v63 = vmax.f32 %v651_v57, 0.0 }
 0x135   : > { %v1076_v0 = vpack.c.bf16 %v669_v62, %v668_v60  ;;  %v1116_v1 = vpack.c.bf16 %v685_v63, %v684_v61 }
 0x137   : > { %1124 = vst [vmem:[%s1358_s18 + $0x38] sm:$0xff] %v1076_v0   ;;  %1132 = vst [vmem:[%s1358_s18 + $0x78] sm:$0xff] %v1116_v1  }
 0x138 PF: > { %s13_s12 = sadd.s32 1, %s1227_s12  }
 0x139   : > { %p10_p4 = scmp.ge.s32.totalorder %s13_s12, 4  }
 0x13b   :  { %12 = sbr.rel (!%p10_p4) target bundleno = 1 (0x1), region = 62 }

// kernel: resnet_forward.22
= control target key start
LH: loop header
LB: loop body
LE: loop exit
PB: predicated region body
PF: predicated region fallthrough
CT: control target
= control target key end

     0   :  { %s1340_s0 = inlined_call_operand.vmem [shape: bf16[9,128,128], index: 0, kind: input, shape index: {}]   ;;  %s1341_s1 = inlined_call_operand.vmem [shape: bf16[128,128], index: 1, kind: output, shape index: {}]  }
   0x1   :  { %v677_v0 = vld [vmem:[%s1340_s0] sm:$0xff]   ;;  %v1004_v20 = vld [vmem:[%s1340_s0 + $0x8] sm:$0xff]   ;;  %v1005_v61 = vld [vmem:[%s1340_s0 + $0x10] sm:$0xff]  }
   0x2   :  { %v1011_v1 = vld [vmem:[%s1340_s0 + $0x40] sm:$0xff]   ;;  %v678_v3 = vunpack.c.l.bf16 %v677_v0  ;;  %v679_v4 = vunpack.c.h.bf16 %v677_v0  ;;  %v1012_v25 = vld [vmem:[%s1340_s0 + $0x48] sm:$0xff]   ;;  %v682_v34 = vunpack.c.l.bf16 %v1004_v20  ;;  %v683_v35 = vunpack.c.h.bf16 %v1004_v20 }
   0x3   :  { %v1019_v2 = vld [vmem:[%s1340_s0 + $0x80] sm:$0xff]   ;;  %v710_v5 = vunpack.c.l.bf16 %v1011_v1  ;;  %v711_v6 = vunpack.c.h.bf16 %v1011_v1  ;;  %v1020_v30 = vld [vmem:[%s1340_s0 + $0x88] sm:$0xff]   ;;  %v714_v38 = vunpack.c.l.bf16 %v1012_v25  ;;  %v715_v39 = vunpack.c.h.bf16 %v1012_v25  ;;  %v1037_v25 = vld [vmem:[%s1340_s0 + $0x110] sm:$0xff]  }
   0x4   :  { %v1027_v7 = vld [vmem:[%s1340_s0 + $0xc0] sm:$0xff]   ;;  %v742_v10 = vunpack.c.l.bf16 %v1019_v2  ;;  %v743_v11 = vunpack.c.h.bf16 %v1019_v2  ;;  %v1028_v31 = vld [vmem:[%s1340_s0 + $0xc8] sm:$0xff]   ;;  %v746_v42 = vunpack.c.l.bf16 %v1020_v30  ;;  %v747_v43 = vunpack.c.h.bf16 %v1020_v30  ;;  %v1045_v30 = vld [vmem:[%s1340_s0 + $0x150] sm:$0xff]  }
   0x5   :  { %v1035_v8 = vld [vmem:[%s1340_s0 + $0x100] sm:$0xff]   ;;  %v774_v12 = vunpack.c.l.bf16 %v1027_v7  ;;  %v73_v15 = vmax.f32 %v678_v3, %v710_v5  ;;  %v74_v16 = vmax.f32 %v679_v4, %v711_v6  ;;  %v775_v17 = vunpack.c.h.bf16 %v1027_v7  ;;  %v1036_v40 = vld [vmem:[%s1340_s0 + $0x108] sm:$0xff]   ;;  %v1013_v6 = vld [vmem:[%s1340_s0 + $0x50] sm:$0xff]  }
   0x6   :  { %v1043_v9 = vld [vmem:[%s1340_s0 + $0x140] sm:$0xff]   ;;  %v806_v18 = vunpack.c.l.bf16 %v1035_v8  ;;  %v807_v21 = vunpack.c.h.bf16 %v1035_v8  ;;  %v1044_v41 = vld [vmem:[%s1340_s0 + $0x148] sm:$0xff]   ;;  %v778_v44 = vunpack.c.l.bf16 %v1028_v31  ;;  %v779_v45 = vunpack.c.h.bf16 %v1028_v31  ;;  %v1021_v7 = vld [vmem:[%s1340_s0 + $0x90] sm:$0xff]  }
   0x7   :  { %v1051_v13 = vld [vmem:[%s1340_s0 + $0x180] sm:$0xff]   ;;  %v838_v22 = vunpack.c.l.bf16 %v1043_v9  ;;  %v839_v23 = vunpack.c.h.bf16 %v1043_v9  ;;  %v122_v26 = vmax.f32 %v73_v15, %v742_v10  ;;  %v123_v27 = vmax.f32 %v74_v16, %v743_v11  ;;  %v1052_v50 = vld [vmem:[%s1340_s0 + $0x188] sm:$0xff]   ;;  %v1029_v16 = vld [vmem:[%s1340_s0 + $0xd0] sm:$0xff]  }
   0x8   :  { %v1116_v14 = vld [vmem:[%s1340_s0 + $0x1c0] sm:$0xff]   ;;  %v870_v24 = vunpack.c.l.bf16 %v1051_v13  ;;  %v871_v28 = vunpack.c.h.bf16 %v1051_v13  ;;  %v75_v48 = vmax.f32 %v682_v34, %v714_v38  ;;  %v76_v49 = vmax.f32 %v683_v35, %v715_v39  ;;  %v1060_v51 = vld [vmem:[%s1340_s0 + $0x1c8] sm:$0xff]  }
   0x9   :  { %v1121_v19 = vld [vmem:[%s1340_s0 + $0x200] sm:$0xff]   ;;  %v902_v29 = vunpack.c.l.bf16 %v1116_v14  ;;  %v903_v32 = vunpack.c.h.bf16 %v1116_v14  ;;  %v171_v36 = vmax.f32 %v122_v26, %v774_v12  ;;  %v172_v37 = vmax.f32 %v123_v27, %v775_v17  ;;  %v1068_v60 = vld [vmem:[%s1340_s0 + $0x208] sm:$0xff]  }
   0xa   :  { %v934_v33 = vunpack.c.l.bf16 %v1121_v19  ;;  %v935_v52 = vunpack.c.h.bf16 %v1121_v19  ;;  %v810_v53 = vunpack.c.l.bf16 %v1036_v40  ;;  %v811_v54 = vunpack.c.h.bf16 %v1036_v40  ;;  %v1061_v40 = vld [vmem:[%s1340_s0 + $0x1d0] sm:$0xff]  }
   0xb   :  { %v220_v46 = vmax.f32 %v171_v36, %v806_v18  ;;  %v221_v47 = vmax.f32 %v172_v37, %v807_v21  ;;  %v842_v55 = vunpack.c.l.bf16 %v1044_v41  ;;  %v124_v58 = vmax.f32 %v75_v48, %v746_v42 }
   0xc   :  { %v125_v59 = vmax.f32 %v76_v49, %v747_v43  ;;  %v843_v62 = vunpack.c.h.bf16 %v1044_v41  ;;  %v874_v63 = vunpack.c.l.bf16 %v1052_v50  ;;  %v875_v0 = vunpack.c.h.bf16 %v1052_v50 }
   0xd   :  { %v269_v56 = vmax.f32 %v220_v46, %v838_v22  ;;  %v270_v57 = vmax.f32 %v221_v47, %v839_v23  ;;  %v906_v1 = vunpack.c.l.bf16 %v1060_v51  ;;  %v173_v4 = vmax.f32 %v124_v58, %v778_v44  ;;  %v1006_v46 = vld [vmem:[%s1340_s0 + $0x18] sm:$0xff]  }
   0xe   :  { %v174_v5 = vmax.f32 %v125_v59, %v779_v45  ;;  %v907_v8 = vunpack.c.h.bf16 %v1060_v51  ;;  %v938_v9 = vunpack.c.l.bf16 %v1068_v60  ;;  %v686_v10 = vunpack.c.l.bf16 %v1005_v61  ;;  %v1069_v45 = vld [vmem:[%s1340_s0 + $0x210] sm:$0xff]   ;;  %v1014_v51 = vld [vmem:[%s1340_s0 + $0x58] sm:$0xff]  }
   0xf   :  { %v318_v2 = vmax.f32 %v269_v56, %v870_v24  ;;  %v319_v3 = vmax.f32 %v270_v57, %v871_v28  ;;  %v687_v11 = vunpack.c.h.bf16 %v1005_v61  ;;  %v222_v14 = vmax.f32 %v173_v4, %v810_v53  ;;  %v1022_v56 = vld [vmem:[%s1340_s0 + $0x98] sm:$0xff]  }
  0x10   :  { %v223_v15 = vmax.f32 %v174_v5, %v811_v54  ;;  %v718_v17 = vunpack.c.l.bf16 %v1013_v6  ;;  %v719_v18 = vunpack.c.h.bf16 %v1013_v6  ;;  %v750_v19 = vunpack.c.l.bf16 %v1021_v7  ;;  %v1030_v61 = vld [vmem:[%s1340_s0 + $0xd8] sm:$0xff]  }
  0x11   :  { %v367_v12 = vmax.f32 %v318_v2, %v902_v29  ;;  %v368_v13 = vmax.f32 %v319_v3, %v903_v32  ;;  %v751_v20 = vunpack.c.h.bf16 %v1021_v7  ;;  %v271_v23 = vmax.f32 %v222_v14, %v842_v55  ;;  %v1038_v2 = vld [vmem:[%s1340_s0 + $0x118] sm:$0xff]  }
  0x12   :  { %v272_v24 = vmax.f32 %v223_v15, %v843_v62  ;;  %v77_v26 = vmax.f32 %v686_v10, %v718_v17  ;;  %v78_v27 = vmax.f32 %v687_v11, %v719_v18  ;;  %v782_v28 = vunpack.c.l.bf16 %v1029_v16  ;;  %v1046_v7 = vld [vmem:[%s1340_s0 + $0x158] sm:$0xff]  }
  0x13   :  { %v416_v21 = vmax.f32 %v367_v12, %v934_v33  ;;  %v417_v22 = vmax.f32 %v368_v13, %v935_v52  ;;  %v783_v29 = vunpack.c.h.bf16 %v1029_v16  ;;  %v320_v32 = vmax.f32 %v271_v23, %v874_v63  ;;  %v1053_v33 = vld [vmem:[%s1340_s0 + $0x190] sm:$0xff]   ;;  %v1054_v12 = vld [vmem:[%s1340_s0 + $0x198] sm:$0xff]  }
  0x14   :  { %v321_v34 = vmax.f32 %v272_v24, %v875_v0  ;;  %v939_v35 = vunpack.c.h.bf16 %v1068_v60  ;;  %v126_v36 = vmax.f32 %v77_v26, %v750_v19  ;;  %v127_v37 = vmax.f32 %v78_v27, %v751_v20  ;;  %v1062_v17 = vld [vmem:[%s1340_s0 + $0x1d8] sm:$0xff]   ;;  %v1007_v27 = vld [vmem:[%s1340_s0 + $0x20] sm:$0xff]  }
  0x15   :  { %v967_v31 = vpack.c.bf16 %v417_v22, %v416_v21  ;;  %v814_v38 = vunpack.c.l.bf16 %v1037_v25  ;;  %v815_v39 = vunpack.c.h.bf16 %v1037_v25  ;;  %v369_v41 = vmax.f32 %v320_v32, %v906_v1  ;;  %v1070_v22 = vld [vmem:[%s1340_s0 + $0x218] sm:$0xff]   ;;  %v1015_v32 = vld [vmem:[%s1340_s0 + $0x60] sm:$0xff]  }
  0x16   :  { %v370_v42 = vmax.f32 %v321_v34, %v907_v8  ;;  %v846_v43 = vunpack.c.l.bf16 %v1045_v30  ;;  %v847_v44 = vunpack.c.h.bf16 %v1045_v30  ;;  %v175_v47 = vmax.f32 %v126_v36, %v782_v28  ;;  %v1023_v34 = vld [vmem:[%s1340_s0 + $0xa0] sm:$0xff]  }
  0x17   :  { %968 = vst [vmem:[%s1341_s1] sm:$0xff] %v967_v31   ;;  %v176_v48 = vmax.f32 %v127_v37, %v783_v29  ;;  %v878_v49 = vunpack.c.l.bf16 %v1053_v33  ;;  %v879_v50 = vunpack.c.h.bf16 %v1053_v33  ;;  %v418_v52 = vmax.f32 %v369_v41, %v938_v9 }
  0x18   :  { %v419_v53 = vmax.f32 %v370_v42, %v939_v35  ;;  %v910_v54 = vunpack.c.l.bf16 %v1061_v40  ;;  %v911_v55 = vunpack.c.h.bf16 %v1061_v40  ;;  %v224_v57 = vmax.f32 %v175_v47, %v814_v38  ;;  %v1031_v42 = vld [vmem:[%s1340_s0 + $0xe0] sm:$0xff]  }
  0x19   :  { %v225_v58 = vmax.f32 %v176_v48, %v815_v39  ;;  %v942_v59 = vunpack.c.l.bf16 %v1069_v45  ;;  %v690_v60 = vunpack.c.l.bf16 %v1006_v46  ;;  %v691_v63 = vunpack.c.h.bf16 %v1006_v46  ;;  %v1039_v47 = vld [vmem:[%s1340_s0 + $0x120] sm:$0xff]  }
  0x1a   :  { %v972_v62 = vpack.c.bf16 %v419_v53, %v418_v52  ;;  %v722_v0 = vunpack.c.l.bf16 %v1014_v51  ;;  %v723_v1 = vunpack.c.h.bf16 %v1014_v51  ;;  %v273_v3 = vmax.f32 %v224_v57, %v846_v43  ;;  %v1047_v52 = vld [vmem:[%s1340_s0 + $0x160] sm:$0xff]  }
  0x1b   :  { %v274_v4 = vmax.f32 %v225_v58, %v847_v44  ;;  %v754_v5 = vunpack.c.l.bf16 %v1022_v56  ;;  %v755_v6 = vunpack.c.h.bf16 %v1022_v56  ;;  %v786_v10 = vunpack.c.l.bf16 %v1030_v61  ;;  %v1055_v57 = vld [vmem:[%s1340_s0 + $0x1a0] sm:$0xff]  }
  0x1c   :  { %1075 = vst [vmem:[%s1341_s1 + $0x8] sm:$0xff] %v972_v62   ;;  %v79_v8 = vmax.f32 %v690_v60, %v722_v0  ;;  %v80_v9 = vmax.f32 %v691_v63, %v723_v1  ;;  %v787_v11 = vunpack.c.h.bf16 %v1030_v61  ;;  %v322_v13 = vmax.f32 %v273_v3, %v878_v49  ;;  %v1063_v62 = vld [vmem:[%s1340_s0 + $0x1e0] sm:$0xff]  }
  0x1d   :  { %v323_v14 = vmax.f32 %v274_v4, %v879_v50  ;;  %v943_v15 = vunpack.c.h.bf16 %v1069_v45  ;;  %v818_v16 = vunpack.c.l.bf16 %v1038_v2  ;;  %v819_v20 = vunpack.c.h.bf16 %v1038_v2  ;;  %v1071_v3 = vld [vmem:[%s1340_s0 + $0x220] sm:$0xff]   ;;  %v1008_v4 = vld [vmem:[%s1340_s0 + $0x28] sm:$0xff]  }
  0x1e   :  { %v128_v18 = vmax.f32 %v79_v8, %v754_v5  ;;  %v129_v19 = vmax.f32 %v80_v9, %v755_v6  ;;  %v850_v21 = vunpack.c.l.bf16 %v1046_v7  ;;  %v371_v23 = vmax.f32 %v322_v13, %v910_v54  ;;  %v1016_v9 = vld [vmem:[%s1340_s0 + $0x68] sm:$0xff]  }
  0x1f   :  { %v372_v24 = vmax.f32 %v323_v14, %v911_v55  ;;  %v851_v25 = vunpack.c.h.bf16 %v1046_v7  ;;  %v882_v26 = vunpack.c.l.bf16 %v1054_v12  ;;  %v883_v30 = vunpack.c.h.bf16 %v1054_v12  ;;  %v1024_v14 = vld [vmem:[%s1340_s0 + $0xa8] sm:$0xff]  }
  0x20   :  { %v177_v28 = vmax.f32 %v128_v18, %v786_v10  ;;  %v178_v29 = vmax.f32 %v129_v19, %v787_v11  ;;  %v914_v31 = vunpack.c.l.bf16 %v1062_v17  ;;  %v420_v35 = vmax.f32 %v371_v23, %v942_v59  ;;  %v1032_v19 = vld [vmem:[%s1340_s0 + $0xe8] sm:$0xff]  }
  0x21   :  { %v421_v33 = vmax.f32 %v372_v24, %v943_v15  ;;  %v915_v36 = vunpack.c.h.bf16 %v1062_v17  ;;  %v946_v37 = vunpack.c.l.bf16 %v1070_v22  ;;  %v694_v40 = vunpack.c.l.bf16 %v1007_v27  ;;  %v1040_v24 = vld [vmem:[%s1340_s0 + $0x128] sm:$0xff]  }
  0x22   :  { %v226_v38 = vmax.f32 %v177_v28, %v818_v16  ;;  %v227_v39 = vmax.f32 %v178_v29, %v819_v20  ;;  %v695_v41 = vunpack.c.h.bf16 %v1007_v27  ;;  %v726_v44 = vunpack.c.l.bf16 %v1015_v32 }
  0x23   :  { %v977_v43 = vpack.c.bf16 %v421_v33, %v420_v35  ;;  %v727_v45 = vunpack.c.h.bf16 %v1015_v32  ;;  %v758_v46 = vunpack.c.l.bf16 %v1023_v34  ;;  %v947_v50 = vunpack.c.h.bf16 %v1070_v22  ;;  %v1056_v35 = vld [vmem:[%s1340_s0 + $0x1a8] sm:$0xff]  }
  0x24   :  { %v275_v48 = vmax.f32 %v226_v38, %v850_v21  ;;  %v276_v49 = vmax.f32 %v227_v39, %v851_v25  ;;  %v759_v51 = vunpack.c.h.bf16 %v1023_v34  ;;  %v81_v53 = vmax.f32 %v694_v40, %v726_v44  ;;  %v1048_v34 = vld [vmem:[%s1340_s0 + $0x168] sm:$0xff]  }
  0x25   :  { %1076 = vst [vmem:[%s1341_s1 + $0x10] sm:$0xff] %v977_v43   ;;  %v82_v54 = vmax.f32 %v695_v41, %v727_v45  ;;  %v790_v55 = vunpack.c.l.bf16 %v1031_v42  ;;  %v791_v56 = vunpack.c.h.bf16 %v1031_v42  ;;  %v822_v60 = vunpack.c.l.bf16 %v1039_v47  ;;  %v1064_v43 = vld [vmem:[%s1340_s0 + $0x1e8] sm:$0xff]  }
  0x26   :  { %v324_v58 = vmax.f32 %v275_v48, %v882_v26  ;;  %v325_v59 = vmax.f32 %v276_v49, %v883_v30  ;;  %v823_v61 = vunpack.c.h.bf16 %v1039_v47  ;;  %v130_v63 = vmax.f32 %v81_v53, %v758_v46  ;;  %v1072_v44 = vld [vmem:[%s1340_s0 + $0x228] sm:$0xff]   ;;  %v1009_v49 = vld [vmem:[%s1340_s0 + $0x30] sm:$0xff]  }
  0x27   :  { %v131_v0 = vmax.f32 %v82_v54, %v759_v51  ;;  %v854_v1 = vunpack.c.l.bf16 %v1047_v52  ;;  %v855_v2 = vunpack.c.h.bf16 %v1047_v52  ;;  %v886_v7 = vunpack.c.l.bf16 %v1055_v57  ;;  %v1017_v54 = vld [vmem:[%s1340_s0 + $0x70] sm:$0xff]  }
  0x28   :  { %v373_v5 = vmax.f32 %v324_v58, %v914_v31  ;;  %v374_v6 = vmax.f32 %v325_v59, %v915_v36  ;;  %v887_v8 = vunpack.c.h.bf16 %v1055_v57  ;;  %v179_v10 = vmax.f32 %v130_v63, %v790_v55  ;;  %v1025_v59 = vld [vmem:[%s1340_s0 + $0xb0] sm:$0xff]  }
  0x29   :  { %v180_v11 = vmax.f32 %v131_v0, %v791_v56  ;;  %v918_v12 = vunpack.c.l.bf16 %v1063_v62  ;;  %v919_v13 = vunpack.c.h.bf16 %v1063_v62  ;;  %v950_v17 = vunpack.c.l.bf16 %v1071_v3  ;;  %v1033_v0 = vld [vmem:[%s1340_s0 + $0xf0] sm:$0xff]  }
  0x2a   :  { %v422_v15 = vmax.f32 %v373_v5, %v946_v37  ;;  %v423_v16 = vmax.f32 %v374_v6, %v947_v50  ;;  %v698_v18 = vunpack.c.l.bf16 %v1008_v4  ;;  %v228_v20 = vmax.f32 %v179_v10, %v822_v60  ;;  %v1041_v5 = vld [vmem:[%s1340_s0 + $0x130] sm:$0xff]  }
  0x2b   :  { %v229_v21 = vmax.f32 %v180_v11, %v823_v61  ;;  %v699_v22 = vunpack.c.h.bf16 %v1008_v4  ;;  %v730_v23 = vunpack.c.l.bf16 %v1016_v9  ;;  %v731_v26 = vunpack.c.h.bf16 %v1016_v9 }
  0x2c   :  { %v982_v25 = vpack.c.bf16 %v423_v16, %v422_v15  ;;  %v762_v27 = vunpack.c.l.bf16 %v1024_v14  ;;  %v763_v28 = vunpack.c.h.bf16 %v1024_v14  ;;  %v277_v29 = vmax.f32 %v228_v20, %v854_v1  ;;  %v1049_v14 = vld [vmem:[%s1340_s0 + $0x170] sm:$0xff]  }
  0x2d   :  { %v278_v30 = vmax.f32 %v229_v21, %v855_v2  ;;  %v83_v31 = vmax.f32 %v698_v18, %v730_v23  ;;  %v794_v32 = vunpack.c.l.bf16 %v1032_v19  ;;  %v951_v33 = vunpack.c.h.bf16 %v1071_v3 }
  0x2e   :  { %1077 = vst [vmem:[%s1341_s1 + $0x18] sm:$0xff] %v982_v25   ;;  %v84_v36 = vmax.f32 %v699_v22, %v731_v26  ;;  %v795_v37 = vunpack.c.h.bf16 %v1032_v19  ;;  %v826_v38 = vunpack.c.l.bf16 %v1040_v24  ;;  %v326_v39 = vmax.f32 %v277_v29, %v886_v7  ;;  %v1057_v19 = vld [vmem:[%s1340_s0 + $0x1b0] sm:$0xff]  }
  0x2f   :  { %v327_v40 = vmax.f32 %v278_v30, %v887_v8  ;;  %v132_v41 = vmax.f32 %v83_v31, %v762_v27  ;;  %v827_v42 = vunpack.c.h.bf16 %v1040_v24  ;;  %v858_v46 = vunpack.c.l.bf16 %v1048_v34  ;;  %v1065_v24 = vld [vmem:[%s1340_s0 + $0x1f0] sm:$0xff]  }
  0x30   :  { %v133_v45 = vmax.f32 %v84_v36, %v763_v28  ;;  %v859_v47 = vunpack.c.h.bf16 %v1048_v34  ;;  %v890_v48 = vunpack.c.l.bf16 %v1056_v35  ;;  %v375_v50 = vmax.f32 %v326_v39, %v918_v12  ;;  %v1010_v28 = vld [vmem:[%s1340_s0 + $0x38] sm:$0xff]  }
  0x31   :  { %v376_v51 = vmax.f32 %v327_v40, %v919_v13  ;;  %v181_v52 = vmax.f32 %v132_v41, %v794_v32  ;;  %v891_v53 = vunpack.c.h.bf16 %v1056_v35  ;;  %v922_v56 = vunpack.c.l.bf16 %v1064_v43  ;;  %v1018_v34 = vld [vmem:[%s1340_s0 + $0x78] sm:$0xff]  }
  0x32   :  { %v182_v55 = vmax.f32 %v133_v45, %v795_v37  ;;  %v923_v57 = vunpack.c.h.bf16 %v1064_v43  ;;  %v954_v58 = vunpack.c.l.bf16 %v1072_v44  ;;  %v424_v60 = vmax.f32 %v375_v50, %v950_v17  ;;  %v1026_v35 = vld [vmem:[%s1340_s0 + $0xb8] sm:$0xff]  }
  0x33   :  { %v425_v61 = vmax.f32 %v376_v51, %v951_v33  ;;  %v230_v62 = vmax.f32 %v181_v52, %v826_v38  ;;  %v702_v63 = vunpack.c.l.bf16 %v1009_v49  ;;  %v703_v2 = vunpack.c.h.bf16 %v1009_v49  ;;  %v1034_v43 = vld [vmem:[%s1340_s0 + $0xf8] sm:$0xff]  }
  0x34   :  { %v231_v1 = vmax.f32 %v182_v55, %v827_v42  ;;  %v734_v3 = vunpack.c.l.bf16 %v1017_v54  ;;  %v735_v4 = vunpack.c.h.bf16 %v1017_v54  ;;  %v766_v8 = vunpack.c.l.bf16 %v1025_v59 }
  0x35   :  { %v987_v6 = vpack.c.bf16 %v425_v61, %v424_v60  ;;  %v279_v7 = vmax.f32 %v230_v62, %v858_v46  ;;  %v767_v9 = vunpack.c.h.bf16 %v1025_v59  ;;  %v798_v13 = vunpack.c.l.bf16 %v1033_v0  ;;  %v1050_v62 = vld [vmem:[%s1340_s0 + $0x178] sm:$0xff]  }
  0x36   :  { %v280_v10 = vmax.f32 %v231_v1, %v859_v47  ;;  %v85_v11 = vmax.f32 %v702_v63, %v734_v3  ;;  %v86_v12 = vmax.f32 %v703_v2, %v735_v4  ;;  %v955_v16 = vunpack.c.h.bf16 %v1072_v44  ;;  %v1073_v44 = vld [vmem:[%s1340_s0 + $0x230] sm:$0xff]  }
  0x37   :  { %1078 = vst [vmem:[%s1341_s1 + $0x20] sm:$0xff] %v987_v6   ;;  %v328_v15 = vmax.f32 %v279_v7, %v890_v48  ;;  %v799_v17 = vunpack.c.h.bf16 %v1033_v0  ;;  %v830_v18 = vunpack.c.l.bf16 %v1041_v5  ;;  %v831_v23 = vunpack.c.h.bf16 %v1041_v5  ;;  %v1058_v5 = vld [vmem:[%s1340_s0 + $0x1b8] sm:$0xff]  }
  0x38   :  { %v329_v20 = vmax.f32 %v280_v10, %v891_v53  ;;  %v134_v21 = vmax.f32 %v85_v11, %v766_v8  ;;  %v135_v22 = vmax.f32 %v86_v12, %v767_v9  ;;  %v862_v26 = vunpack.c.l.bf16 %v1049_v14  ;;  %v1042_v53 = vld [vmem:[%s1340_s0 + $0x138] sm:$0xff]  }
  0x39   :  { %v377_v25 = vmax.f32 %v328_v15, %v922_v56  ;;  %v863_v27 = vunpack.c.h.bf16 %v1049_v14  ;;  %v894_v32 = vunpack.c.l.bf16 %v1057_v19  ;;  %v895_v36 = vunpack.c.h.bf16 %v1057_v19  ;;  %v1066_v12 = vld [vmem:[%s1340_s0 + $0x1f8] sm:$0xff]  }
  0x3a   :  { %v378_v29 = vmax.f32 %v329_v20, %v923_v57  ;;  %v183_v30 = vmax.f32 %v134_v21, %v798_v13  ;;  %v184_v31 = vmax.f32 %v135_v22, %v799_v17  ;;  %v926_v37 = vunpack.c.l.bf16 %v1065_v24 }
  0x3b   :  { %v426_v33 = vmax.f32 %v377_v25, %v954_v58  ;;  %v927_v38 = vunpack.c.h.bf16 %v1065_v24  ;;  %v706_v42 = vunpack.c.l.bf16 %v1010_v28  ;;  %v707_v45 = vunpack.c.h.bf16 %v1010_v28 }
  0x3c   :  { %v427_v39 = vmax.f32 %v378_v29, %v955_v16  ;;  %v232_v40 = vmax.f32 %v183_v30, %v830_v18  ;;  %v233_v41 = vmax.f32 %v184_v31, %v831_v23  ;;  %v738_v46 = vunpack.c.l.bf16 %v1018_v34  ;;  %v1074_v18 = vld [vmem:[%s1340_s0 + $0x238] sm:$0xff]  }
  0x3d   :  { %v739_v47 = vunpack.c.h.bf16 %v1018_v34  ;;  %v770_v48 = vunpack.c.l.bf16 %v1026_v35  ;;  %v771_v52 = vunpack.c.h.bf16 %v1026_v35  ;;  %v802_v56 = vunpack.c.l.bf16 %v1034_v43 }
  0x3e   :  { %v992_v49 = vpack.c.bf16 %v427_v39, %v426_v33  ;;  %v281_v50 = vmax.f32 %v232_v40, %v862_v26  ;;  %v282_v51 = vmax.f32 %v233_v41, %v863_v27  ;;  %v87_v54 = vmax.f32 %v706_v42, %v738_v46 }
  0x3f   :  { %v88_v55 = vmax.f32 %v707_v45, %v739_v47  ;;  %v803_v57 = vunpack.c.h.bf16 %v1034_v43  ;;  %v958_v60 = vunpack.c.l.bf16 %v1073_v44  ;;  %v959_v61 = vunpack.c.h.bf16 %v1073_v44 }
  0x40   :  { %1079 = vst [vmem:[%s1341_s1 + $0x28] sm:$0xff] %v992_v49   ;;  %v330_v58 = vmax.f32 %v281_v50, %v894_v32  ;;  %v331_v59 = vmax.f32 %v282_v51, %v895_v36  ;;  %v136_v63 = vmax.f32 %v87_v54, %v770_v48  ;;  %v834_v1 = vunpack.c.l.bf16 %v1042_v53 }
  0x41   :  { %v137_v0 = vmax.f32 %v88_v55, %v771_v52  ;;  %v835_v2 = vunpack.c.h.bf16 %v1042_v53  ;;  %v866_v8 = vunpack.c.l.bf16 %v1050_v62  ;;  %v867_v9 = vunpack.c.h.bf16 %v1050_v62 }
  0x42   :  { %v379_v3 = vmax.f32 %v330_v58, %v926_v37  ;;  %v380_v4 = vmax.f32 %v331_v59, %v927_v38  ;;  %v185_v6 = vmax.f32 %v136_v63, %v802_v56  ;;  %v898_v15 = vunpack.c.l.bf16 %v1058_v5 }
  0x43   :  { %v186_v7 = vmax.f32 %v137_v0, %v803_v57  ;;  %v899_v16 = vunpack.c.h.bf16 %v1058_v5  ;;  %v930_v21 = vunpack.c.l.bf16 %v1066_v12  ;;  %v931_v22 = vunpack.c.h.bf16 %v1066_v12 }
  0x44   :  { %v428_v10 = vmax.f32 %v379_v3, %v958_v60  ;;  %v429_v11 = vmax.f32 %v380_v4, %v959_v61  ;;  %v234_v13 = vmax.f32 %v185_v6, %v834_v1  ;;  %v962_v25 = vunpack.c.l.bf16 %v1074_v18 }
  0x45   :  { %v235_v14 = vmax.f32 %v186_v7, %v835_v2  ;;  %v963_v26 = vunpack.c.h.bf16 %v1074_v18 }
  0x46   :  { %v997_v17 = vpack.c.bf16 %v429_v11, %v428_v10  ;;  %v283_v19 = vmax.f32 %v234_v13, %v866_v8 }
  0x47   :  { %v284_v20 = vmax.f32 %v235_v14, %v867_v9 }
  0x48   :  { %1080 = vst [vmem:[%s1341_s1 + $0x30] sm:$0xff] %v997_v17   ;;  %v332_v23 = vmax.f32 %v283_v19, %v898_v15 }
  0x49   :  { %v333_v24 = vmax.f32 %v284_v20, %v899_v16 }
  0x4a   :  { %v381_v27 = vmax.f32 %v332_v23, %v930_v21 }
  0x4b   :  { %v382_v28 = vmax.f32 %v333_v24, %v931_v22 }
  0x4c   :  { %v430_v29 = vmax.f32 %v381_v27, %v962_v25 }
  0x4d   :  { %v431_v30 = vmax.f32 %v382_v28, %v963_v26 }
  0x4f   :  { %v1002_v31 = vpack.c.bf16 %v431_v30, %v430_v29 }
  0x51   :  { %1081 = vst [vmem:[%s1341_s1 + $0x38] sm:$0xff] %v1002_v31  }

// kernel: resnet_forward.24
= control target key start
LH: loop header
LB: loop body
LE: loop exit
PB: predicated region body
PF: predicated region fallthrough
CT: control target
= control target key end

     0   :  { %s3196_s1 = inlined_call_operand.vmem [shape: bf16[1152,128], index: 1, kind: input, shape index: {}]   ;;  %s3197_s0 = inlined_call_operand.vmem [shape: bf16[128,1152], index: 0, kind: input, shape index: {}]   ;;  %s3198_s2 = inlined_call_operand.vmem [shape: f32[1,128], index: 2, kind: input, shape index: {}]   ;;  %s3199_s3 = inlined_call_operand.vmem [shape: bf16[128,128], index: 3, kind: input, shape index: {}]   ;;  %s3200_s4 = inlined_call_operand.vmem [shape: bf16[128,128], index: 4, kind: output, shape index: {}]  }
   0x1   :  { %v2265_v0 = vld [vmem:[%s3196_s1 + $0x78] sm:$0xff]   ;;  %v2269_v4 = vld [vmem:[%s3196_s1 + $0x70] sm:$0xff]   ;;  %v2273_v8 = vld [vmem:[%s3196_s1 + $0x68] sm:$0xff]  }
   0x2   :  { %v2266_v1 = vld [vmem:[%s3196_s1 + $0xf8] sm:$0xff]   ;;  %1945 = vmatprep.subr.bf16.mxu0 %v2265_v0  ;;  %v2270_v5 = vld [vmem:[%s3196_s1 + $0xf0] sm:$0xff]   ;;  %v2274_v9 = vld [vmem:[%s3196_s1 + $0xe8] sm:$0xff]  }
   0x3   :  { %v2267_v2 = vld [vmem:[%s3196_s1 + $0x38] sm:$0xff]   ;;  %2009 = vmatprep.subr.bf16.mxu1 %v2266_v1  ;;  %v2271_v6 = vld [vmem:[%s3196_s1 + $0x30] sm:$0xff]   ;;  %v2275_v10 = vld [vmem:[%s3196_s1 + $0x28] sm:$0xff]  }
   0x4   :  { %v2268_v3 = vld [vmem:[%s3196_s1 + $0xb8] sm:$0xff]   ;;  %1946 = vmatpush3.bf16.msra.mxu0 %v2267_v2  ;;  %v2272_v7 = vld [vmem:[%s3196_s1 + $0xb0] sm:$0xff]   ;;  %v2276_v11 = vld [vmem:[%s3196_s1 + $0xa8] sm:$0xff]  }
   0x5   :  { %2010 = vmatpush3.bf16.msra.mxu1 %v2268_v3  ;;  %1947 = vmatprep.subr.bf16.mxu0 %v2269_v4  ;;  %v2277_v12 = vld [vmem:[%s3196_s1 + $0x60] sm:$0xff]   ;;  %v2281_v16 = vld [vmem:[%s3196_s1 + $0x58] sm:$0xff]   ;;  %v2285_v20 = vld [vmem:[%s3196_s1 + $0x50] sm:$0xff]  }
   0x6   :  { %2011 = vmatprep.subr.bf16.mxu1 %v2270_v5  ;;  %v2278_v13 = vld [vmem:[%s3196_s1 + $0xe0] sm:$0xff]   ;;  %v2282_v17 = vld [vmem:[%s3196_s1 + $0xd8] sm:$0xff]   ;;  %v2286_v21 = vld [vmem:[%s3196_s1 + $0xd0] sm:$0xff]  }
   0x7   :  { %v2279_v14 = vld [vmem:[%s3196_s1 + $0x20] sm:$0xff]   ;;  %v2283_v18 = vld [vmem:[%s3196_s1 + $0x18] sm:$0xff]   ;;  %v2287_v22 = vld [vmem:[%s3196_s1 + $0x10] sm:$0xff]  }
   0x8   :  { %1948 = vmatpush3.bf16.msra.mxu0 %v2271_v6  ;;  %v2280_v15 = vld [vmem:[%s3196_s1 + $0xa0] sm:$0xff]   ;;  %v2284_v19 = vld [vmem:[%s3196_s1 + $0x98] sm:$0xff]   ;;  %v2288_v23 = vld [vmem:[%s3196_s1 + $0x90] sm:$0xff]  }
   0x9   :  { %2012 = vmatpush3.bf16.msra.mxu1 %v2272_v7  ;;  %1949 = vmatprep.subr.bf16.mxu0 %v2273_v8  ;;  %v2289_v24 = vld [vmem:[%s3196_s1 + $0x48] sm:$0xff]   ;;  %v2293_v28 = vld [vmem:[%s3196_s1 + $0x40] sm:$0xff]   ;;  %v2303_v36 = vld [vmem:[%s3196_s1 + $0x178] sm:$0xff]  }
   0xa   :  { %2013 = vmatprep.subr.bf16.mxu1 %v2274_v9  ;;  %v2290_v25 = vld [vmem:[%s3196_s1 + $0xc8] sm:$0xff]   ;;  %v2294_v29 = vld [vmem:[%s3196_s1 + $0xc0] sm:$0xff]   ;;  %v2304_v37 = vld [vmem:[%s3196_s1 + $0x1f8] sm:$0xff]  }
   0xb   :  { %v2291_v26 = vld [vmem:[%s3196_s1 + $0x8] sm:$0xff]   ;;  %v2295_v30 = vld [vmem:[%s3196_s1] sm:$0xff]   ;;  %v2305_v38 = vld [vmem:[%s3196_s1 + $0x138] sm:$0xff]  }
   0xc   :  { %1950 = vmatpush3.bf16.msra.mxu0 %v2275_v10  ;;  %v2292_v27 = vld [vmem:[%s3196_s1 + $0x88] sm:$0xff]   ;;  %v2296_v31 = vld [vmem:[%s3196_s1 + $0x80] sm:$0xff]   ;;  %v2306_v39 = vld [vmem:[%s3196_s1 + $0x1b8] sm:$0xff]  }
   0xd   :  { %2014 = vmatpush3.bf16.msra.mxu1 %v2276_v11  ;;  %1951 = vmatprep.subr.bf16.mxu0 %v2277_v12  ;;  %v2297_v32 = vld [vmem:[%s3197_s0] ss:$36 sps:$4 sm:$0xff]   ;;  %v2300_v34 = vld [vmem:[%s3197_s0 + $0x8] ss:$36 sps:$4 sm:$0xff]   ;;  %v2309_v41 = vld [vmem:[%s3197_s0 + $0x54] ss:$36 sps:$4 sm:$0xff]  }
   0xe   :  { %2015 = vmatprep.subr.bf16.mxu1 %v2278_v13  ;;  %v2299_v33 = vld [vmem:[%s3197_s0 + $0x4] ss:$36 sps:$4 sm:$0xff]   ;;  %v2302_v35 = vld [vmem:[%s3197_s0 + $0xc] ss:$36 sps:$4 sm:$0xff]   ;;  %v2317_v48 = vld [vmem:[%s3197_s0 + $0x94] ss:$36 sps:$4 sm:$0xff]  }
   0xf   :  { %1081 = vmatprep.mubr.bf16.mxu0 %v2299_v33  ;;  %1178 = vmatprep.mubr.bf16.mxu1 %v2302_v35  ;;  %v2307_v40 = vld [vmem:[%s3197_s0 + $0x4c] ss:$36 sps:$4 sm:$0xff]   ;;  %v2319_v49 = vld [vmem:[%s3197_s0 + $0x9c] ss:$36 sps:$4 sm:$0xff]   ;;  %v2329_v57 = vld [vmem:[%s3197_s0 + $0xe4] ss:$36 sps:$4 sm:$0xff]  }
  0x10   :  { %1952 = vmatpush3.bf16.msra.mxu0 %v2279_v14  ;;  %v2311_v42 = vld [vmem:[%s3197_s0 + $0x48] ss:$36 sps:$4 sm:$0xff]   ;;  %v2312_v43 = vld [vmem:[%s3197_s0 + $0x50] ss:$36 sps:$4 sm:$0xff]   ;;  %v2322_v51 = vld [vmem:[%s3197_s0 + $0x98] ss:$36 sps:$4 sm:$0xff]  }
  0x11   :  { %2016 = vmatpush3.bf16.msra.mxu1 %v2280_v15  ;;  %1953 = vmatprep.subr.bf16.mxu0 %v2281_v16  ;;  %v2313_v44 = vld [vmem:[%s3196_s1 + $0x170] sm:$0xff]   ;;  %v2323_v52 = vld [vmem:[%s3196_s1 + $0x168] sm:$0xff]   ;;  %v2327_v56 = vld [vmem:[%s3197_s0 + $0xdc] ss:$36 sps:$4 sm:$0xff]  }
  0x12   :  { %2017 = vmatprep.subr.bf16.mxu1 %v2282_v17  ;;  %v2314_v45 = vld [vmem:[%s3196_s1 + $0x1f0] sm:$0xff]   ;;  %v2324_v53 = vld [vmem:[%s3196_s1 + $0x1e8] sm:$0xff]   ;;  %v2331_v58 = vld [vmem:[%s3197_s0 + $0xd8] ss:$36 sps:$4 sm:$0xff]  }
  0x13   :  { %v2315_v46 = vld [vmem:[%s3196_s1 + $0x130] sm:$0xff]   ;;  %v2325_v54 = vld [vmem:[%s3196_s1 + $0x128] sm:$0xff]   ;;  %v2332_v59 = vld [vmem:[%s3197_s0 + $0xe0] ss:$36 sps:$4 sm:$0xff]  }
  0x14   :  { %1954 = vmatpush3.bf16.msra.mxu0 %v2283_v18  ;;  %v2316_v47 = vld [vmem:[%s3196_s1 + $0x1b0] sm:$0xff]   ;;  %v2326_v55 = vld [vmem:[%s3196_s1 + $0x1a8] sm:$0xff]   ;;  %v2333_v60 = vld [vmem:[%s3196_s1 + $0x160] sm:$0xff]  }
  0x15   :  { %2018 = vmatpush3.bf16.msra.mxu1 %v2284_v19  ;;  %1955 = vmatprep.subr.bf16.mxu0 %v2285_v20  ;;  %v2321_v50 = vld [vmem:[%s3197_s0 + $0x90] ss:$36 sps:$4 sm:$0xff]   ;;  %v2334_v61 = vld [vmem:[%s3196_s1 + $0x1e0] sm:$0xff]   ;;  %v2343_v3 = vld [vmem:[%s3196_s1 + $0x158] sm:$0xff]  }
  0x16   :  { %2019 = vmatprep.subr.bf16.mxu1 %v2286_v21  ;;  %v2335_v62 = vld [vmem:[%s3196_s1 + $0x120] sm:$0xff]   ;;  %v2339_v1 = vld [vmem:[%s3197_s0 + $0x12c] ss:$36 sps:$4 sm:$0xff]   ;;  %v2344_v5 = vld [vmem:[%s3196_s1 + $0x1d8] sm:$0xff]  }
  0x17   :  { %v2336_v63 = vld [vmem:[%s3196_s1 + $0x1a0] sm:$0xff]   ;;  %v2342_v4 = vld [vmem:[%s3197_s0 + $0x128] ss:$36 sps:$4 sm:$0xff]   ;;  %v2345_v6 = vld [vmem:[%s3196_s1 + $0x118] sm:$0xff]  }
  0x18   :  { %1956 = vmatpush3.bf16.msra.mxu0 %v2287_v22  ;;  %v2337_v0 = vld [vmem:[%s3197_s0 + $0x124] ss:$36 sps:$4 sm:$0xff]   ;;  %v2346_v7 = vld [vmem:[%s3196_s1 + $0x198] sm:$0xff]   ;;  %v2347_v8 = vld [vmem:[%s3197_s0 + $0x16c] ss:$36 sps:$4 sm:$0xff]  }
  0x19   :  { %2020 = vmatpush3.bf16.msra.mxu1 %v2288_v23  ;;  %1957 = vmatprep.subr.bf16.mxu0 %v2289_v24  ;;  %v2341_v2 = vld [vmem:[%s3197_s0 + $0x120] ss:$36 sps:$4 sm:$0xff]   ;;  %v2349_v9 = vld [vmem:[%s3197_s0 + $0x174] ss:$36 sps:$4 sm:$0xff]   ;;  %v2351_v12 = vld [vmem:[%s3197_s0 + $0x168] ss:$36 sps:$4 sm:$0xff]  }
  0x1a   :  { %2021 = vmatprep.subr.bf16.mxu1 %v2290_v25  ;;  %v2353_v10 = vld [vmem:[%s3196_s1 + $0x150] sm:$0xff]   ;;  %v2359_v17 = vld [vmem:[%s3197_s0 + $0x1bc] ss:$36 sps:$4 sm:$0xff]   ;;  %v2363_v18 = vld [vmem:[%s3196_s1 + $0x148] sm:$0xff]  }
  0x1b   :  { %v2354_v11 = vld [vmem:[%s3196_s1 + $0x1d0] sm:$0xff]   ;;  %v2364_v19 = vld [vmem:[%s3196_s1 + $0x1c8] sm:$0xff]   ;;  %v2362_v23 = vld [vmem:[%s3197_s0 + $0x1b8] ss:$36 sps:$4 sm:$0xff]  }
  0x1c   :  { %1958 = vmatpush3.bf16.msra.mxu0 %v2291_v26  ;;  %v2355_v13 = vld [vmem:[%s3196_s1 + $0x110] sm:$0xff]   ;;  %v2365_v20 = vld [vmem:[%s3196_s1 + $0x108] sm:$0xff]   ;;  %v2367_v24 = vld [vmem:[%s3197_s0 + $0x1fc] ss:$36 sps:$4 sm:$0xff]  }
  0x1d   :  { %2022 = vmatpush3.bf16.msra.mxu1 %v2292_v27  ;;  %1959 = vmatprep.subr.bf16.mxu0 %v2293_v28  ;;  %v2356_v14 = vld [vmem:[%s3196_s1 + $0x190] sm:$0xff]   ;;  %v2366_v21 = vld [vmem:[%s3196_s1 + $0x188] sm:$0xff]   ;;  %v2373_v26 = vld [vmem:[%s3196_s1 + $0x140] sm:$0xff]  }
  0x1e   :  { %2023 = vmatprep.subr.bf16.mxu1 %v2294_v29  ;;  %v2352_v15 = vld [vmem:[%s3197_s0 + $0x170] ss:$36 sps:$4 sm:$0xff]   ;;  %v2369_v25 = vld [vmem:[%s3197_s0 + $0x204] ss:$36 sps:$4 sm:$0xff]  }
  0x1f   :  { %v2357_v16 = vld [vmem:[%s3197_s0 + $0x1b4] ss:$36 sps:$4 sm:$0xff]   ;;  %v2374_v27 = vld [vmem:[%s3196_s1 + $0x1c0] sm:$0xff]  }
  0x20   :  { %1960 = vmatpush3.bf16.msra.mxu0 %v2295_v30  ;;  %v2361_v22 = vld [vmem:[%s3197_s0 + $0x1b0] ss:$36 sps:$4 sm:$0xff]   ;;  %v2375_v28 = vld [vmem:[%s3196_s1 + $0x100] sm:$0xff]   ;;  %v2371_v30 = vld [vmem:[%s3197_s0 + $0x1f8] ss:$36 sps:$4 sm:$0xff]  }
  0x21   :  { %2024 = vmatpush3.bf16.msra.mxu1 %v2296_v31  ;;  %2073 = vmatprep.subr.bf16.mxu0 %v2303_v36  ;;  %v2376_v29 = vld [vmem:[%s3196_s1 + $0x180] sm:$0xff]   ;;  %v2379_v33 = vld [vmem:[%s3197_s0 + $0x14] ss:$36 sps:$4 sm:$0xff]  }
  0x22   :  { %2137 = vmatprep.subr.bf16.mxu1 %v2304_v37  ;;  %v2372_v31 = vld [vmem:[%s3197_s0 + $0x200] ss:$36 sps:$4 sm:$0xff]   ;;  %v2377_v35 = vld [vmem:[%s3197_s0 + $0x10] ss:$36 sps:$4 sm:$0xff]   ;;  %v2380_v36 = vld [vmem:[%s3197_s0 + $0x18] ss:$36 sps:$4 sm:$0xff]  }
  0x23   :  { %1082 = vmatmul.mubr.bf16.vlgmr.msra.gmra.mxu0 %v2297_v32  ;;  %v2383_v32 = vld [vmem:[%s3196_s1 + $0x238] sm:$0xff]  }
  0x24   :  { %1179 = vmatmul.mubr.bf16.vlgmr.msra.gmra.mxu1 %v2300_v34  ;;  %2074 = vmatpush3.bf16.msra.mxu0 %v2305_v38  ;;  %v2382_v34 = vld [vmem:[%s3197_s0 + $0x1c] ss:$36 sps:$4 sm:$0xff]   ;;  %v2386_v38 = vld [vmem:[%s3197_s0 + $0x64] ss:$36 sps:$4 sm:$0xff]  }
  0x25   :  { %2138 = vmatpush3.bf16.msra.mxu1 %v2306_v39  ;;  %1089 = vmatprep.mubr.bf16.mxu0 %v2307_v40  ;;  %v2384_v37 = vld [vmem:[%s3197_s0 + $0x5c] ss:$36 sps:$4 sm:$0xff]   ;;  %v2390_v39 = vld [vmem:[%s3196_s1 + $0x230] sm:$0xff]   ;;  %v2397_v40 = vld [vmem:[%s3196_s1 + $0x228] sm:$0xff]  }
  0x26   :  { %1186 = vmatprep.mubr.bf16.mxu1 %v2309_v41  ;;  %2075 = vmatprep.subr.bf16.mxu0 %v2313_v44  ;;  %v2388_v41 = vld [vmem:[%s3197_s0 + $0x58] ss:$36 sps:$4 sm:$0xff]   ;;  %v2393_v44 = vld [vmem:[%s3197_s0 + $0xac] ss:$36 sps:$4 sm:$0xff]  }
  0x27   :  { %2139 = vmatprep.subr.bf16.mxu1 %v2314_v45  ;;  %v2404_v45 = vld [vmem:[%s3196_s1 + $0x220] sm:$0xff]  }
  0x28   :  { %2076 = vmatpush3.bf16.msra.mxu0 %v2315_v46  ;;  %v2411_v46 = vld [vmem:[%s3196_s1 + $0x218] sm:$0xff]  }
  0x29   :  { %2140 = vmatpush3.bf16.msra.mxu1 %v2316_v47  ;;  %2077 = vmatprep.subr.bf16.mxu0 %v2323_v52  ;;  %v2395_v47 = vld [vmem:[%s3197_s0 + $0xa0] ss:$36 sps:$4 sm:$0xff]   ;;  %v2402_v52 = vld [vmem:[%s3197_s0 + $0xe8] ss:$36 sps:$4 sm:$0xff]  }
  0x2a   :  { %2141 = vmatprep.subr.bf16.mxu1 %v2324_v53  ;;  %v2425_v53 = vld [vmem:[%s3196_s1 + $0x208] sm:$0xff]  }
  0x2b   :  { %1090 = vmatmul.mubr.bf16.gmra.mxu0 %v2311_v42  ;;  %v2389_v42 = vld [vmem:[%s3197_s0 + $0x60] ss:$36 sps:$4 sm:$0xff]  }
  0x2c   :  { %1187 = vmatmul.mubr.bf16.gmra.mxu1 %v2312_v43  ;;  %1097 = vmatprep.mubr.bf16.mxu0 %v2317_v48  ;;  %v2391_v43 = vld [vmem:[%s3197_s0 + $0xa4] ss:$36 sps:$4 sm:$0xff]  }
  0x2d   :  { %1194 = vmatprep.mubr.bf16.mxu1 %v2319_v49  ;;  %2078 = vmatpush3.bf16.msra.mxu0 %v2325_v54  ;;  %v2396_v48 = vld [vmem:[%s3197_s0 + $0xa8] ss:$36 sps:$4 sm:$0xff]   ;;  %v2403_v54 = vld [vmem:[%s3197_s0 + $0xf0] ss:$36 sps:$4 sm:$0xff]  }
  0x2e   :  { %2142 = vmatpush3.bf16.msra.mxu1 %v2326_v55  ;;  %2079 = vmatprep.subr.bf16.mxu0 %v2333_v60  ;;  %v2398_v49 = vld [vmem:[%s3197_s0 + $0xec] ss:$36 sps:$4 sm:$0xff]   ;;  %v2405_v55 = vld [vmem:[%s3197_s0 + $0x134] ss:$36 sps:$4 sm:$0xff]   ;;  %v2412_v60 = vld [vmem:[%s3197_s0 + $0x17c] ss:$36 sps:$4 sm:$0xff]  }
  0x2f   :  { %2143 = vmatprep.subr.bf16.mxu1 %v2334_v61  ;;  %v2414_v61 = vld [vmem:[%s3197_s0 + $0x184] ss:$36 sps:$4 sm:$0xff]  }
  0x31   :  { %2080 = vmatpush3.bf16.msra.mxu0 %v2335_v62  ;;  %v2416_v62 = vld [vmem:[%s3197_s0 + $0x178] ss:$36 sps:$4 sm:$0xff]  }
  0x32   :  { %2144 = vmatpush3.bf16.msra.mxu1 %v2336_v63  ;;  %2081 = vmatprep.subr.bf16.mxu0 %v2343_v3  ;;  %v2417_v63 = vld [vmem:[%s3197_s0 + $0x180] ss:$36 sps:$4 sm:$0xff]   ;;  %v2424_v3 = vld [vmem:[%s3197_s0 + $0x1c8] ss:$36 sps:$4 sm:$0xff]  }
  0x33   :  { %1098 = vmatmul.mubr.bf16.gmra.mxu0 %v2321_v50  ;;  %2145 = vmatprep.subr.bf16.mxu1 %v2344_v5  ;;  %v2400_v50 = vld [vmem:[%s3197_s0 + $0xf4] ss:$36 sps:$4 sm:$0xff]  }
  0x34   :  { %1195 = vmatmul.mubr.bf16.gmra.mxu1 %v2322_v51  ;;  %1105 = vmatprep.mubr.bf16.mxu0 %v2327_v56  ;;  %v2418_v51 = vld [vmem:[%s3196_s1 + $0x210] sm:$0xff]   ;;  %v2407_v56 = vld [vmem:[%s3197_s0 + $0x13c] ss:$36 sps:$4 sm:$0xff]  }
  0x35   :  { %1202 = vmatprep.mubr.bf16.mxu1 %v2329_v57  ;;  %2082 = vmatpush3.bf16.msra.mxu0 %v2345_v6  ;;  %v2432_v57 = vld [vmem:[%s3196_s1 + $0x200] sm:$0xff]   ;;  %v2428_v5 = vld [vmem:[%s3197_s0 + $0x214] ss:$36 sps:$4 sm:$0xff]   ;;  %v2430_v6 = vld [vmem:[%s3197_s0 + $0x208] ss:$36 sps:$4 sm:$0xff]  }
  0x36   :  { %2146 = vmatpush3.bf16.msra.mxu1 %v2346_v7  ;;  %2083 = vmatprep.subr.bf16.mxu0 %v2353_v10  ;;  %v2431_v7 = vld [vmem:[%s3197_s0 + $0x210] ss:$36 sps:$4 sm:$0xff]   ;;  %v2435_v10 = vld [vmem:[%s3197_s0 + $0x68] ss:$36 sps:$4 sm:$0xff]  }
  0x37   :  { %2147 = vmatprep.subr.bf16.mxu1 %v2354_v11  ;;  %v2436_v11 = vld [vmem:[%s3197_s0 + $0x188] ss:$36 sps:$4 sm:$0xff]  }
  0x39   :  { %2084 = vmatpush3.bf16.msra.mxu0 %v2355_v13  ;;  %v2438_v13 = vld [vmem:[%s3197_s0 + $0x1d0] ss:$36 sps:$4 sm:$0xff]  }
  0x3a   :  { %2148 = vmatpush3.bf16.msra.mxu1 %v2356_v14  ;;  %2085 = vmatprep.subr.bf16.mxu0 %v2363_v18  ;;  %v2439_v14 = vld [vmem:[%s3197_s0 + $0xf8] ss:$36 sps:$4 sm:$0xff]   ;;  %v2901_v18 = vld [vmem:[%s3198_s2] ss:$0 sm:$0xff] }
  0x3b   :  { %1106 = vmatmul.mubr.bf16.gmra.mxu0 %v2331_v58  ;;  %2149 = vmatprep.subr.bf16.mxu1 %v2364_v19  ;;  %v2409_v58 = vld [vmem:[%s3197_s0 + $0x130] ss:$36 sps:$4 sm:$0xff]  }
  0x3c   :  { %1203 = vmatmul.mubr.bf16.gmra.mxu1 %v2332_v59  ;;  %1113 = vmatprep.mubr.bf16.mxu0 %v2337_v0  ;;  %v2410_v59 = vld [vmem:[%s3197_s0 + $0x138] ss:$36 sps:$4 sm:$0xff]   ;;  %v2419_v0 = vld [vmem:[%s3197_s0 + $0x1c4] ss:$36 sps:$4 sm:$0xff]  }
  0x3d   :  { %1210 = vmatprep.mubr.bf16.mxu1 %v2339_v1  ;;  %2086 = vmatpush3.bf16.msra.mxu0 %v2365_v20  ;;  %v2421_v1 = vld [vmem:[%s3197_s0 + $0x1cc] ss:$36 sps:$4 sm:$0xff]  }
  0x3e   :  { %2150 = vmatpush3.bf16.msra.mxu1 %v2366_v21  ;;  %2087 = vmatprep.subr.bf16.mxu0 %v2373_v26 }
  0x3f   :  { %2151 = vmatprep.subr.bf16.mxu1 %v2374_v27 }
  0x41   :  { %2088 = vmatpush3.bf16.msra.mxu0 %v2375_v28 }
  0x42   :  { %2152 = vmatpush3.bf16.msra.mxu1 %v2376_v29  ;;  %2217 = vmatprep.subr.bf16.mxu0 %v2383_v32 }
  0x43   :  { %1114 = vmatmul.mubr.bf16.gmra.mxu0 %v2341_v2  ;;  %2249 = vmatprep.subr.bf16.mxu1 %v2383_v32  ;;  %v2423_v2 = vld [vmem:[%s3197_s0 + $0x1c0] ss:$36 sps:$4 sm:$0xff]  }
  0x44   :  { %1211 = vmatmul.mubr.bf16.gmra.mxu1 %v2342_v4  ;;  %1121 = vmatprep.mubr.bf16.mxu0 %v2347_v8  ;;  %v2426_v4 = vld [vmem:[%s3197_s0 + $0x20c] ss:$36 sps:$4 sm:$0xff]   ;;  %v2433_v8 = vld [vmem:[%s3197_s0 + $0x20] ss:$36 sps:$4 sm:$0xff]  }
  0x45   :  { %1218 = vmatprep.mubr.bf16.mxu1 %v2349_v9  ;;  %v2434_v9 = vld [vmem:[%s3197_s0 + $0x140] ss:$36 sps:$4 sm:$0xff]  }
  0x4b   :  { %1122 = vmatmul.mubr.bf16.gmra.mxu0 %v2351_v12  ;;  %v2437_v12 = vld [vmem:[%s3197_s0 + $0xb0] ss:$36 sps:$4 sm:$0xff]  }
  0x4c   :  { %1219 = vmatmul.mubr.bf16.gmra.mxu1 %v2352_v15  ;;  %1129 = vmatprep.mubr.bf16.mxu0 %v2357_v16  ;;  %v2440_v15 = vld [vmem:[%s3197_s0 + $0x218] ss:$36 sps:$4 sm:$0xff]  }
  0x4d   :  { %1226 = vmatprep.mubr.bf16.mxu1 %v2359_v17 }
  0x53   :  { %1130 = vmatmul.mubr.bf16.gmra.mxu0 %v2361_v22 }
  0x54   :  { %1227 = vmatmul.mubr.bf16.gmra.mxu1 %v2362_v23  ;;  %1137 = vmatprep.mubr.bf16.mxu0 %v2367_v24 }
  0x55   :  { %1234 = vmatprep.mubr.bf16.mxu1 %v2369_v25 }
  0x5b   :  { %1138 = vmatmul.mubr.bf16.gmra.mxu0 %v2371_v30 }
  0x5c   :  { %1235 = vmatmul.mubr.bf16.gmra.mxu1 %v2372_v31  ;;  %1275 = vmatprep.mubr.bf16.mxu0 %v2379_v33 }
  0x5d   :  { %1372 = vmatprep.mubr.bf16.mxu1 %v2382_v34 }
  0x63   :  { %1276 = vmatmul.mubr.bf16.vlgmr.msra.gmra.mxu0 %v2377_v35 }
  0x64   :  { %1373 = vmatmul.mubr.bf16.vlgmr.msra.gmra.mxu1 %v2380_v36  ;;  %2218 = vmatpush3.bf16.msra.mxu0 %v2383_v32 }
  0x65   :  { %2257 = vmatpush3.bf16.msra.mxu1 %v2383_v32  ;;  %1283 = vmatprep.mubr.bf16.mxu0 %v2384_v37 }
  0x66   :  { %1380 = vmatprep.mubr.bf16.mxu1 %v2386_v38  ;;  %2219 = vmatprep.subr.bf16.mxu0 %v2390_v39 }
  0x67   :  { %2250 = vmatprep.subr.bf16.mxu1 %v2390_v39 }
  0x68   :  { %2220 = vmatpush3.bf16.msra.mxu0 %v2390_v39 }
  0x69   :  { %2258 = vmatpush3.bf16.msra.mxu1 %v2390_v39  ;;  %2221 = vmatprep.subr.bf16.mxu0 %v2397_v40 }
  0x6a   :  { %2251 = vmatprep.subr.bf16.mxu1 %v2397_v40 }
  0x6b   :  { %1284 = vmatmul.mubr.bf16.gmra.mxu0 %v2388_v41 }
  0x6c   :  { %1381 = vmatmul.mubr.bf16.gmra.mxu1 %v2389_v42  ;;  %1291 = vmatprep.mubr.bf16.mxu0 %v2391_v43 }
  0x6d   :  { %1388 = vmatprep.mubr.bf16.mxu1 %v2393_v44  ;;  %2222 = vmatpush3.bf16.msra.mxu0 %v2397_v40 }
  0x6e   :  { %2259 = vmatpush3.bf16.msra.mxu1 %v2397_v40  ;;  %2223 = vmatprep.subr.bf16.mxu0 %v2404_v45 }
  0x6f   :  { %2252 = vmatprep.subr.bf16.mxu1 %v2404_v45 }
  0x71   :  { %2224 = vmatpush3.bf16.msra.mxu0 %v2404_v45 }
  0x72   :  { %2260 = vmatpush3.bf16.msra.mxu1 %v2404_v45  ;;  %2225 = vmatprep.subr.bf16.mxu0 %v2411_v46 }
  0x73   :  { %1292 = vmatmul.mubr.bf16.gmra.mxu0 %v2395_v47  ;;  %2253 = vmatprep.subr.bf16.mxu1 %v2411_v46 }
  0x74   :  { %1389 = vmatmul.mubr.bf16.gmra.mxu1 %v2396_v48  ;;  %1299 = vmatprep.mubr.bf16.mxu0 %v2398_v49 }
  0x75   :  { %1396 = vmatprep.mubr.bf16.mxu1 %v2400_v50  ;;  %2226 = vmatpush3.bf16.msra.mxu0 %v2411_v46 }
  0x76   :  { %2261 = vmatpush3.bf16.msra.mxu1 %v2411_v46  ;;  %2227 = vmatprep.subr.bf16.mxu0 %v2418_v51 }
  0x77   :  { %2254 = vmatprep.subr.bf16.mxu1 %v2418_v51 }
  0x79   :  { %2228 = vmatpush3.bf16.msra.mxu0 %v2418_v51 }
  0x7a   :  { %2262 = vmatpush3.bf16.msra.mxu1 %v2418_v51  ;;  %2229 = vmatprep.subr.bf16.mxu0 %v2425_v53 }
  0x7b   :  { %1300 = vmatmul.mubr.bf16.gmra.mxu0 %v2402_v52  ;;  %2255 = vmatprep.subr.bf16.mxu1 %v2425_v53 }
  0x7c   :  { %1397 = vmatmul.mubr.bf16.gmra.mxu1 %v2403_v54  ;;  %1307 = vmatprep.mubr.bf16.mxu0 %v2405_v55 }
  0x7d   :  { %1404 = vmatprep.mubr.bf16.mxu1 %v2407_v56  ;;  %2230 = vmatpush3.bf16.msra.mxu0 %v2425_v53 }
  0x7e   :  { %2263 = vmatpush3.bf16.msra.mxu1 %v2425_v53  ;;  %2231 = vmatprep.subr.bf16.mxu0 %v2432_v57 }
  0x7f   :  { %2256 = vmatprep.subr.bf16.mxu1 %v2432_v57 }
  0x81   :  { %2232 = vmatpush3.bf16.msra.mxu0 %v2432_v57 }
  0x82   :  { %2264 = vmatpush3.bf16.msra.mxu1 %v2432_v57 }
  0x83   :  { %1308 = vmatmul.mubr.bf16.gmra.mxu0 %v2409_v58 }
  0x84   :  { %1405 = vmatmul.mubr.bf16.gmra.mxu1 %v2410_v59  ;;  %1315 = vmatprep.mubr.bf16.mxu0 %v2412_v60 }
  0x85   :  { %1412 = vmatprep.mubr.bf16.mxu1 %v2414_v61 }
  0x8b   :  { %1316 = vmatmul.mubr.bf16.gmra.mxu0 %v2416_v62 }
  0x8c   :  { %1413 = vmatmul.mubr.bf16.gmra.mxu1 %v2417_v63  ;;  %1323 = vmatprep.mubr.bf16.mxu0 %v2419_v0 }
  0x8d   :  { %1420 = vmatprep.mubr.bf16.mxu1 %v2421_v1 }
  0x93   :  { %1324 = vmatmul.mubr.bf16.gmra.mxu0 %v2423_v2 }
  0x94   :  { %1421 = vmatmul.mubr.bf16.gmra.mxu1 %v2424_v3  ;;  %1331 = vmatprep.mubr.bf16.mxu0 %v2426_v4 }
  0x95   :  { %1428 = vmatprep.mubr.bf16.mxu1 %v2428_v5 }
  0x9b   :  { %1332 = vmatmul.mubr.bf16.gmra.mxu0 %v2430_v6 }
  0x9c   :  { %1429 = vmatmul.mubr.bf16.gmra.mxu1 %v2431_v7  ;;  %2233 = vmatprep.mubr.bf16.mxu0 %v2433_v8 }
  0x9d   :  { %2241 = vmatprep.mubr.bf16.mxu1 %v2434_v9 }
  0xa3   :  { %2234 = vmatmul.mubr.bf16.vlgmr.msra.gmra.mxu0 %v2435_v10 }
  0xa4   :  { %2242 = vmatmul.mubr.bf16.vlgmr.msra.gmra.mxu1 %v2436_v11  ;;  %2237 = vmatprep.mubr.bf16.mxu0 %v2437_v12 }
  0xa5   :  { %2245 = vmatprep.mubr.bf16.mxu1 %v2438_v13 }
  0xab   :  { %2238 = vmatmul.mubr.bf16.gmra.mxu0 %v2439_v14 }
  0xac   :  { %2246 = vmatmul.mubr.bf16.gmra.mxu1 %v2440_v15 }
  0xe3   :  { %v1961_v16 = vpop.f32.mrf.mxu0 }
  0xe4   :  { %v2025_v17 = vpop.f32.mrf.mxu1 }
  0xe5   :  { %v1962_v19 = vpop.f32.mrf.mxu0 }
  0xe6   :  { %v1963_v20 = vadd.f32 %v1962_v19, %v1961_v16  ;;  %v2026_v21 = vpop.f32.mrf.mxu1 }
  0xe7   :  { %v2027_v22 = vadd.f32 %v2026_v21, %v2025_v17  ;;  %v1964_v23 = vpop.f32.mrf.mxu0 }
  0xe8   :  { %v1084_v24 = vadd.f32 %v1963_v20, %v2901_v18  ;;  %v2028_v25 = vpop.f32.mrf.mxu1 }
  0xe9   :  { %v1965_v26 = vpop.f32.mrf.mxu0 }
  0xea   :  { %v2904_v27 = vadd.f32 %v2027_v22, %v1084_v24  ;;  %v1966_v28 = vadd.f32 %v1965_v26, %v1964_v23  ;;  %v2029_v29 = vpop.f32.mrf.mxu1 }
  0xeb   :  { %v2030_v30 = vadd.f32 %v2029_v29, %v2028_v25  ;;  %v1967_v31 = vpop.f32.mrf.mxu0 }
  0xec   :  { %v1087_v32 = vadd.f32 %v1966_v28, %v2901_v18  ;;  %v2031_v33 = vpop.f32.mrf.mxu1 }
  0xed   :  { %v1968_v34 = vpop.f32.mrf.mxu0 }
  0xee   :  { %v2907_v35 = vadd.f32 %v2030_v30, %v1087_v32  ;;  %v1969_v36 = vadd.f32 %v1968_v34, %v1967_v31  ;;  %v2032_v37 = vpop.f32.mrf.mxu1 }
  0xef   :  { %v2033_v38 = vadd.f32 %v2032_v37, %v2031_v33  ;;  %v1970_v39 = vpop.f32.mrf.mxu0 }
  0xf0   :  { %v1092_v40 = vadd.f32 %v1969_v36, %v2901_v18  ;;  %v2034_v41 = vpop.f32.mrf.mxu1 }
  0xf1   :  { %v1971_v42 = vpop.f32.mrf.mxu0 }
  0xf2   :  { %v2910_v43 = vadd.f32 %v2033_v38, %v1092_v40  ;;  %v1972_v44 = vadd.f32 %v1971_v42, %v1970_v39  ;;  %v2035_v45 = vpop.f32.mrf.mxu1 }
  0xf3   :  { %v2036_v46 = vadd.f32 %v2035_v45, %v2034_v41  ;;  %v1973_v47 = vpop.f32.mrf.mxu0 }
  0xf4   :  { %v1095_v48 = vadd.f32 %v1972_v44, %v2901_v18  ;;  %v2037_v49 = vpop.f32.mrf.mxu1 }
  0xf5   :  { %v1974_v50 = vpop.f32.mrf.mxu0 }
  0xf6   :  { %v2913_v51 = vadd.f32 %v2036_v46, %v1095_v48  ;;  %v1975_v52 = vadd.f32 %v1974_v50, %v1973_v47  ;;  %v2038_v53 = vpop.f32.mrf.mxu1 }
  0xf7   :  { %v2039_v54 = vadd.f32 %v2038_v53, %v2037_v49  ;;  %v1976_v55 = vpop.f32.mrf.mxu0 }
  0xf8   :  { %v1100_v56 = vadd.f32 %v1975_v52, %v2901_v18  ;;  %v2040_v57 = vpop.f32.mrf.mxu1 }
  0xf9   :  { %v1977_v58 = vpop.f32.mrf.mxu0 }
  0xfa   :  { %v2916_v59 = vadd.f32 %v2039_v54, %v1100_v56  ;;  %v1978_v60 = vadd.f32 %v1977_v58, %v1976_v55  ;;  %v2041_v61 = vpop.f32.mrf.mxu1 }
  0xfb   :  { %v2042_v62 = vadd.f32 %v2041_v61, %v2040_v57  ;;  %v1979_v63 = vpop.f32.mrf.mxu0 }
  0xfc   :  { %v1103_v0 = vadd.f32 %v1978_v60, %v2901_v18  ;;  %v2043_v1 = vpop.f32.mrf.mxu1 }
  0xfd   :  { %v1980_v2 = vpop.f32.mrf.mxu0 }
  0xfe   :  { %v2919_v3 = vadd.f32 %v2042_v62, %v1103_v0  ;;  %v1981_v4 = vadd.f32 %v1980_v2, %v1979_v63  ;;  %v2044_v5 = vpop.f32.mrf.mxu1 }
  0xff   :  { %v2045_v6 = vadd.f32 %v2044_v5, %v2043_v1  ;;  %v1982_v7 = vpop.f32.mrf.mxu0 }
 0x100   :  { %v1108_v8 = vadd.f32 %v1981_v4, %v2901_v18  ;;  %v2046_v9 = vpop.f32.mrf.mxu1 }
 0x101   :  { %v1983_v10 = vpop.f32.mrf.mxu0 }
 0x102   :  { %v2922_v11 = vadd.f32 %v2045_v6, %v1108_v8  ;;  %v1984_v12 = vadd.f32 %v1983_v10, %v1982_v7  ;;  %v2047_v13 = vpop.f32.mrf.mxu1 }
 0x103   :  { %v2048_v14 = vadd.f32 %v2047_v13, %v2046_v9  ;;  %v1985_v15 = vpop.f32.mrf.mxu0 }
 0x104   :  { %v1111_v16 = vadd.f32 %v1984_v12, %v2901_v18  ;;  %v2049_v17 = vpop.f32.mrf.mxu1 }
 0x105   :  { %v1986_v19 = vpop.f32.mrf.mxu0 }
 0x106   :  { %v2925_v20 = vadd.f32 %v2048_v14, %v1111_v16  ;;  %v1987_v21 = vadd.f32 %v1986_v19, %v1985_v15  ;;  %v2050_v22 = vpop.f32.mrf.mxu1 }
 0x107   :  { %v2051_v23 = vadd.f32 %v2050_v22, %v2049_v17  ;;  %v1988_v24 = vpop.f32.mrf.mxu0 }
 0x108   :  { %v1116_v25 = vadd.f32 %v1987_v21, %v2901_v18  ;;  %v2052_v26 = vpop.f32.mrf.mxu1 }
 0x109   :  { %v1989_v28 = vpop.f32.mrf.mxu0 }
 0x10a   :  { %v2928_v29 = vadd.f32 %v2051_v23, %v1116_v25  ;;  %v1990_v30 = vadd.f32 %v1989_v28, %v1988_v24  ;;  %v2053_v31 = vpop.f32.mrf.mxu1 }
 0x10b   :  { %v2054_v32 = vadd.f32 %v2053_v31, %v2052_v26  ;;  %v1991_v33 = vpop.f32.mrf.mxu0 }
 0x10c   :  { %v1119_v34 = vadd.f32 %v1990_v30, %v2901_v18  ;;  %v2055_v36 = vpop.f32.mrf.mxu1 }
 0x10d   :  { %v1992_v37 = vpop.f32.mrf.mxu0 }
 0x10e   :  { %v2931_v38 = vadd.f32 %v2054_v32, %v1119_v34  ;;  %v1993_v39 = vadd.f32 %v1992_v37, %v1991_v33  ;;  %v2056_v40 = vpop.f32.mrf.mxu1 }
 0x10f   :  { %v2057_v41 = vadd.f32 %v2056_v40, %v2055_v36  ;;  %v1994_v42 = vpop.f32.mrf.mxu0 }
 0x110   :  { %3207 = vst [vmem:[#allocation2_spill] sm:$0xff] %v2931_v38  ;;  %v1124_v44 = vadd.f32 %v1993_v39, %v2901_v18  ;;  %v2058_v45 = vpop.f32.mrf.mxu1 }
 0x111   :  { %v1995_v46 = vpop.f32.mrf.mxu0 }
 0x112   :  { %v2934_v47 = vadd.f32 %v2057_v41, %v1124_v44  ;;  %v1996_v48 = vadd.f32 %v1995_v46, %v1994_v42  ;;  %v2059_v49 = vpop.f32.mrf.mxu1 }
 0x113   :  { %v2060_v50 = vadd.f32 %v2059_v49, %v2058_v45  ;;  %v1997_v52 = vpop.f32.mrf.mxu0 }
 0x114   :  { %v1127_v53 = vadd.f32 %v1996_v48, %v2901_v18  ;;  %v2061_v54 = vpop.f32.mrf.mxu1 }
 0x115   :  { %v1998_v55 = vpop.f32.mrf.mxu0 }
 0x116   :  { %v2937_v56 = vadd.f32 %v2060_v50, %v1127_v53  ;;  %v1999_v57 = vadd.f32 %v1998_v55, %v1997_v52  ;;  %v2062_v58 = vpop.f32.mrf.mxu1 }
 0x117   :  { %v2063_v60 = vadd.f32 %v2062_v58, %v2061_v54  ;;  %v2000_v61 = vpop.f32.mrf.mxu0 }
 0x118   :  { %3208 = vst [vmem:[#allocation3_spill] sm:$0xff] %v2937_v56  ;;  %v1132_v62 = vadd.f32 %v1999_v57, %v2901_v18  ;;  %v2064_v63 = vpop.f32.mrf.mxu1 }
 0x119   :  { %v2001_v0 = vpop.f32.mrf.mxu0 }
 0x11a   :  { %v2940_v1 = vadd.f32 %v2063_v60, %v1132_v62  ;;  %v2002_v2 = vadd.f32 %v2001_v0, %v2000_v61  ;;  %v2065_v4 = vpop.f32.mrf.mxu1 }
 0x11b   :  { %v2066_v5 = vadd.f32 %v2065_v4, %v2064_v63  ;;  %v2003_v6 = vpop.f32.mrf.mxu0 }
 0x11c   :  { %3209 = vst [vmem:[#allocation4_spill] sm:$0xff] %v2940_v1  ;;  %v1135_v7 = vadd.f32 %v2002_v2, %v2901_v18  ;;  %v2067_v8 = vpop.f32.mrf.mxu1 }
 0x11d   :  { %v2004_v9 = vpop.f32.mrf.mxu0 }
 0x11e   :  { %v2943_v10 = vadd.f32 %v2066_v5, %v1135_v7  ;;  %v2005_v12 = vadd.f32 %v2004_v9, %v2003_v6  ;;  %v2068_v13 = vpop.f32.mrf.mxu1 }
 0x11f   :  { %v2069_v14 = vadd.f32 %v2068_v13, %v2067_v8  ;;  %v2006_v15 = vpop.f32.mrf.mxu0 }
 0x120   :  { %3210 = vst [vmem:[#allocation5_spill] sm:$0xff] %v2943_v10  ;;  %v1140_v16 = vadd.f32 %v2005_v12, %v2901_v18  ;;  %v2070_v17 = vpop.f32.mrf.mxu1 }
 0x121   :  { %v2007_v19 = vpop.f32.mrf.mxu0 }
 0x122   :  { %v2946_v21 = vadd.f32 %v2069_v14, %v1140_v16  ;;  %v2008_v22 = vadd.f32 %v2007_v19, %v2006_v15  ;;  %v2071_v23 = vpop.f32.mrf.mxu1 }
 0x123   :  { %v2072_v24 = vadd.f32 %v2071_v23, %v2070_v17  ;;  %v2089_v25 = vpop.f32.mrf.mxu0 }
 0x124   :  { %3211 = vst [vmem:[#allocation6_spill] sm:$0xff] %v2946_v21  ;;  %v1143_v26 = vadd.f32 %v2008_v22, %v2901_v18  ;;  %v2153_v28 = vpop.f32.mrf.mxu1 }
 0x125   :  { %v2090_v30 = vpop.f32.mrf.mxu0 }
 0x126   :  { %v2949_v31 = vadd.f32 %v2072_v24, %v1143_v26  ;;  %v2091_v32 = vadd.f32 %v2090_v30, %v2089_v25  ;;  %v2154_v33 = vpop.f32.mrf.mxu1 }
 0x127   :  { %v2092_v34 = vpop.f32.mrf.mxu0  ;;  %v2155_v37 = vadd.f32 %v2154_v33, %v2153_v28  ;;  %v3015_v33 = vld [vmem:[%s3199_s3 + $0x8] sm:$0xff]  }
 0x128   :  { %3212 = vst [vmem:[#allocation7_spill] sm:$0xff] %v2949_v31  ;;  %v1278_v36 = vadd.f32 %v2091_v32, %v2904_v27  ;;  %v2952_v39 = vpop.f32.mrf.mxu1  ;;  %3221 = vst [vmem:[#allocation16_spill] sm:$0xff] %v3015_v33  ;;  %v3032_v31 = vld [vmem:[%s3199_s3 + $0x20] sm:$0xff]  }
 0x129   :  { %v2093_v40 = vpop.f32.mrf.mxu0 }
 0x12a   :  { %v2954_v41 = vpop.f32.mrf.mxu1  ;;  %v2956_v42 = vadd.f32 %v2155_v37, %v1278_v36  ;;  %v3020_v36 = vld [vmem:[%s3199_s3 + $0x28] sm:$0xff]   ;;  %v3025_v37 = vld [vmem:[%s3199_s3] sm:$0xff]  }
 0x12b   :  { %v2095_v44 = vpop.f32.mrf.mxu0  ;;  %3222 = vst [vmem:[#allocation17_spill] sm:$0xff] %v3020_v36  ;;  %3223 = vst [vmem:[#allocation18_spill] sm:$0xff] %v3025_v37 }
 0x12c   :  { %3213 = vst [vmem:[#allocation8_spill] sm:$0xff] %v2956_v42  ;;  %v2958_v45 = vpop.f32.mrf.mxu1  ;;  %v2094_v42 = vadd.f32 %v2093_v40, %v2092_v34 }
 0x12d   :  { %v2096_v18 = vpop.f32.mrf.mxu0 }
 0x12e   :  { %v2960_v46 = vpop.f32.mrf.mxu1  ;;  %v2097_v1 = vadd.f32 %v2096_v18, %v2095_v44 }
 0x12f   :  { %v2098_v48 = vpop.f32.mrf.mxu0 }
 0x130   :  { %v2962_v49 = vpop.f32.mrf.mxu1 }
 0x131   :  { %v2099_v50 = vpop.f32.mrf.mxu0 }
 0x132   :  { %v2964_v52 = vpop.f32.mrf.mxu1 }
 0x133   :  { %v2101_v27 = vpop.f32.mrf.mxu0 }
 0x134   :  { %v2966_v53 = vpop.f32.mrf.mxu1 }
 0x135   :  { %v2102_v54 = vpop.f32.mrf.mxu0 }
 0x136   :  { %v2968_v55 = vpop.f32.mrf.mxu1  ;;  %v2103_v56 = vadd.f32 %v2102_v54, %v2101_v27 }
 0x137   :  { %v2970_v57 = vpop.f32.mrf.mxu0 }
 0x138   :  { %v2972_v58 = vpop.f32.mrf.mxu1 }
 0x139   :  { %v2974_v60 = vpop.f32.mrf.mxu0 }
 0x13a   :  { %v2976_v61 = vpop.f32.mrf.mxu1 }
 0x13b   :  { %v2107_v62 = vpop.f32.mrf.mxu0 }
 0x13c   :  { %v2978_v63 = vpop.f32.mrf.mxu1 }
 0x13d   :  { %v2108_v0 = vpop.f32.mrf.mxu0 }
 0x13e   :  { %v2980_v2 = vpop.f32.mrf.mxu1 }
 0x13f   :  { %v2982_v4 = vpop.f32.mrf.mxu0 }
 0x140   :  { %v2984_v5 = vpop.f32.mrf.mxu1 }
 0x141   :  { %3214 = vst [vmem:[#allocation9_spill] sm:$0xff] %v2984_v5  ;;  %v2986_v6 = vpop.f32.mrf.mxu0  ;;  %v3063_v5 = vld [vmem:[%s3199_s3 + $0x30] sm:$0xff]  }
 0x142   :  { %v2988_v7 = vpop.f32.mrf.mxu1  ;;  %v1886_v54 = vunpack.c.h.bf16 %v3063_v5 }
 0x143   :  { %3215 = vst [vmem:[#allocation10_spill] sm:$0xff] %v2988_v7  ;;  %v2113_v8 = vpop.f32.mrf.mxu0  ;;  %v3042_v7 = vld [vmem:[%s3199_s3 + $0x18] sm:$0xff]  }
 0x144   :  { %v2990_v9 = vpop.f32.mrf.mxu1  ;;  %v1873_v36 = vunpack.c.l.bf16 %v3042_v7  ;;  %v1874_v18 = vunpack.c.h.bf16 %v3042_v7 }
 0x145   :  { %v2114_v12 = vpop.f32.mrf.mxu0 }
 0x146   :  { %v2992_v13 = vpop.f32.mrf.mxu1  ;;  %v2115_v44 = vadd.f32 %v2114_v12, %v2113_v8 }
 0x147   :  { %3216 = vst [vmem:[#allocation11_spill] sm:$0xff] %v2992_v13  ;;  %v2994_v14 = vpop.f32.mrf.mxu0  ;;  %v1294_v13 = vadd.f32 %v2103_v56, %v2916_v59  ;;  %v2112_v59 = vadd.f32 %v2986_v6, %v2982_v4  ;;  %v3111_v6 = vadd.f32 %v2976_v61, %v2972_v58 }
 0x148   :  { %v2996_v15 = vpop.f32.mrf.mxu1 }
 0x149   :  { %3217 = vst [vmem:[#allocation12_spill] sm:$0xff] %v2996_v15  ;;  %v2998_v16 = vpop.f32.mrf.mxu0  ;;  %v2109_v15 = vadd.f32 %v2108_v0, %v2107_v62  ;;  %v1286_v62 = vadd.f32 %v2097_v1, %v2910_v43  ;;  %v2164_v43 = vadd.f32 %v2964_v52, %v2962_v49  ;;  %v1310_v49 = vadd.f32 %v2115_v44, %v2928_v29 }
 0x14a   :  { %v3000_v17 = vpop.f32.mrf.mxu1  ;;  %v2118_v56 = vadd.f32 %v2998_v16, %v2994_v14  ;;  %v3228_v14 = vld [vmem:[#allocation2_spill] sm:$0xff] }
 0x14b   :  { %3218 = vst [vmem:[#allocation13_spill] sm:$0xff] %v3000_v17  ;;  %v2119_v19 = vpop.f32.mrf.mxu0  ;;  %v1281_v17 = vadd.f32 %v2094_v42, %v2907_v35 }
 0x14c   :  { %v3002_v22 = vpop.f32.mrf.mxu1 }
 0x14d   :  { %v2120_v23 = vpop.f32.mrf.mxu0 }
 0x14e   :  { %v3004_v24 = vpop.f32.mrf.mxu1  ;;  %v2121_v35 = vadd.f32 %v2120_v23, %v2119_v19  ;;  %v3227_v29 = vld [vmem:[#allocation11_spill] sm:$0xff] }
 0x14f   :  { %v3006_v25 = vpop.f32.mrf.mxu0  ;;  %v2179_v12 = vadd.f32 %v3227_v29, %v2990_v9 }
 0x150   :  { %v3008_v26 = vpop.f32.mrf.mxu1  ;;  %v3233_v44 = vld [vmem:[#allocation12_spill] sm:$0xff] }
 0x151   :  { %3219 = vst [vmem:[#allocation14_spill] sm:$0xff] %v3008_v26  ;;  %v2123_v28 = vpop.f32.mrf.mxu0  ;;  %v1878_v26 = vunpack.c.h.bf16 %v3032_v31  ;;  %v1407_v9 = vadd.f32 %v2179_v12, %v1310_v49 }
 0x152   :  { %v3010_v30 = vpop.f32.mrf.mxu1 }
 0x153   :  { %3220 = vst [vmem:[#allocation15_spill] sm:$0xff] %v3010_v30  ;;  %v2125_v32 = vpop.f32.mrf.mxu0 }
 0x154   :  { %v3027_v10 = vpop.f32.mrf.mxu1 }
 0x155   :  { %3224 = vst [vmem:[#allocation19_spill] sm:$0xff] %v3027_v10  ;;  %v2126_v21 = vpop.f32.mrf.mxu0  ;;  %v3047_v10 = vld [vmem:[%s3199_s3 + $0x38] sm:$0xff]  }
 0x156   :  { %v3034_v30 = vpop.f32.mrf.mxu1 }
 0x157   :  { %3225 = vst [vmem:[#allocation20_spill] sm:$0xff] %v3034_v30  ;;  %v3049_v34 = vpop.f32.mrf.mxu0  ;;  %v3058_v30 = vld [vmem:[%s3199_s3 + $0x10] sm:$0xff]  }
 0x158   :  { %3226 = vst [vmem:[#allocation21_spill] sm:$0xff] %v3049_v34  ;;  %v2100_v34 = vadd.f32 %v2099_v50, %v2098_v48  ;;  %v3065_v40 = vpop.f32.mrf.mxu1  ;;  %v2158_v50 = vadd.f32 %v2954_v41, %v2952_v39  ;;  %v1870_v27 = vunpack.c.h.bf16 %v3058_v30  ;;  %v2161_v48 = vadd.f32 %v2960_v46, %v2958_v45 }
 0x159   :  { %v2129_v37 = vpop.f32.mrf.mxu0  ;;  %v2106_v39 = vadd.f32 %v2974_v60, %v2970_v57  ;;  %v1302_v41 = vadd.f32 %v2109_v15, %v2922_v11  ;;  %v2173_v45 = vadd.f32 %v2980_v2, %v2978_v63  ;;  %v1318_v11 = vadd.f32 %v2121_v35, %v2934_v47 }
 0x15a   :  { %v3071_v38 = vpop.f32.mrf.mxu1  ;;  %v1289_v0 = vadd.f32 %v2100_v34, %v2913_v51  ;;  %v3089_v23 = vadd.f32 %v2158_v50, %v1281_v17  ;;  %v2167_v51 = vadd.f32 %v2968_v55, %v2966_v53  ;;  %v2124_v46 = vadd.f32 %v2123_v28, %v3006_v25  ;;  %v3230_v25 = vld [vmem:[#allocation4_spill] sm:$0xff]  ;;  %v3231_v34 = vld [vmem:[#allocation9_spill] sm:$0xff] }
 0x15b   :  { %v2131_v42 = vpop.f32.mrf.mxu0  ;;  %v2127_v57 = vadd.f32 %v2126_v21, %v2125_v32  ;;  %v1383_v53 = vadd.f32 %v2161_v48, %v1286_v62  ;;  %v3107_v4 = vadd.f32 %v2106_v39, %v2919_v3  ;;  %v2185_v47 = vadd.f32 %v3004_v24, %v3002_v22  ;;  %v3229_v3 = vld [vmem:[#allocation3_spill] sm:$0xff]  ;;  %v3232_v22 = vld [vmem:[#allocation10_spill] sm:$0xff]  ;;  %v3234_v48 = vld [vmem:[#allocation13_spill] sm:$0xff] }
 0x15c   :  { %v2195_v33 = vpop.f32.mrf.mxu1  ;;  %v1386_v55 = vadd.f32 %v2164_v43, %v1289_v0  ;;  %v3104_v8 = vadd.f32 %v2167_v51, %v1294_v13  ;;  %v1399_v21 = vadd.f32 %v2173_v45, %v1302_v41  ;;  %v1305_v2 = vadd.f32 %v2112_v59, %v2925_v20  ;;  %v3235_v62 = vld [vmem:[#allocation14_spill] sm:$0xff]  ;;  %v3236_v0 = vld [vmem:[#allocation15_spill] sm:$0xff] }
 0x15d   :  { %v2132_v19 = vpop.f32.mrf.mxu0  ;;  %v1313_v13 = vadd.f32 %v2118_v56, %v3228_v14  ;;  %v1321_v17 = vadd.f32 %v2124_v46, %v3229_v3  ;;  %v1326_v28 = vadd.f32 %v2127_v57, %v3230_v25  ;;  %v1415_v32 = vadd.f32 %v2185_v47, %v1318_v11  ;;  %v3237_v39 = vld [vmem:[#allocation19_spill] sm:$0xff]  ;;  %v3240_v45 = vld [vmem:[#allocation6_spill] sm:$0xff]  ;;  %v3241_v46 = vld [vmem:[#allocation8_spill] sm:$0xff] }
 0x15e   :  { %v2196_v1 = vpop.f32.mrf.mxu1  ;;  %v2133_v15 = vadd.f32 %v2132_v19, %v2131_v42  ;;  %v2176_v24 = vadd.f32 %v3232_v22, %v3231_v34  ;;  %v2182_v20 = vadd.f32 %v3234_v48, %v3233_v44  ;;  %v2188_v42 = vadd.f32 %v3236_v0, %v3235_v62  ;;  %v3238_v41 = vld [vmem:[#allocation20_spill] sm:$0xff]  ;;  %v3245_v44 = vld [vmem:[#allocation5_spill] sm:$0xff] }
 0x15f   :  { %v2134_v60 = vpop.f32.mrf.mxu0  ;;  %v2191_v19 = vadd.f32 %v3238_v41, %v3237_v39  ;;  %v3239_v43 = vld [vmem:[#allocation21_spill] sm:$0xff]  ;;  %v2194_v25 = vadd.f32 %v3071_v38, %v3065_v40 }
 0x160   :  { %v2198_v52 = vpop.f32.mrf.mxu1  ;;  %v2130_v51 = vadd.f32 %v2129_v37, %v3239_v43  ;;  %v1334_v11 = vadd.f32 %v2133_v15, %v3240_v45  ;;  %v1410_v47 = vadd.f32 %v2182_v20, %v1313_v13  ;;  %v1418_v14 = vadd.f32 %v2188_v42, %v1321_v17  ;;  %v3243_v37 = vld [vmem:[#allocation16_spill] sm:$0xff]  ;;  %v3246_v13 = vld [vmem:[#allocation17_spill] sm:$0xff] }
 0x161   :  { %v2135_v63 = vpop.f32.mrf.mxu0  ;;  %v1423_v3 = vadd.f32 %v2191_v19, %v1326_v28  ;;  %v3250_v62 = vunpack.c.h.bf16 %v3243_v37 }
 0x162   :  { %v2199_v16 = vpop.f32.mrf.mxu1  ;;  %v2136_v58 = vadd.f32 %v2135_v63, %v2134_v60  ;;  %v1402_v63 = vadd.f32 %v2176_v24, %v1305_v2  ;;  %v1329_v48 = vadd.f32 %v2130_v51, %v3245_v44  ;;  %v3247_v2 = vunpack.c.l.bf16 %v3246_v13 }
 0x163   :  { %v2235_v61 = vpop.f32.mrf.mxu0 }
 0x164   :  { %v1480_v50 = vadd.f32 %v2235_v61, %v1383_v53  ;;  %v2243_v35 = vpop.f32.mrf.mxu1  ;;  %v3242_v53 = vld [vmem:[#allocation7_spill] sm:$0xff]  ;;  %v2197_v61 = vadd.f32 %v2196_v1, %v2195_v33 }
 0x165   :  { %v1512_v59 = vadd.f32 %v2243_v35, %v1415_v32  ;;  %v1471_v56 = vpop.f32.mrf.mxu0  ;;  %v1337_v29 = vadd.f32 %v2136_v58, %v3242_v53  ;;  %v3244_v32 = vunpack.c.l.bf16 %v3243_v37  ;;  %v2200_v35 = vadd.f32 %v2199_v16, %v2198_v52 }
 0x166   :  { %v1472_v57 = vadd.f32 %v1471_v56, %v3241_v46  ;;  %v1503_v60 = vpop.f32.mrf.mxu1  ;;  %v1431_v1 = vadd.f32 %v2197_v61, %v1334_v11  ;;  %v3252_v52 = vunpack.c.h.bf16 %v3246_v13  ;;  %v1426_v13 = vadd.f32 %v2194_v25, %v1329_v48 }
 0x167   :  { %v1504_v49 = vadd.f32 %v1503_v60, %v1407_v9  ;;  %v2236_v12 = vpop.f32.mrf.mxu0  ;;  %v1568_v34 = vadd.f32 %v3244_v32, %v1480_v50  ;;  %v1576_v24 = vadd.f32 %v3247_v2, %v1512_v59  ;;  %v3248_v9 = vld [vmem:[#allocation18_spill] sm:$0xff]  ;;  %v1434_v39 = vadd.f32 %v2200_v35, %v1337_v29 }
 0x168   :  { %v1483_v22 = vadd.f32 %v2236_v12, %v1386_v55  ;;  %v2244_v15 = vpop.f32.mrf.mxu1  ;;  %v3249_v17 = vunpack.c.l.bf16 %v3248_v9  ;;  %v3251_v55 = vunpack.c.l.bf16 %v3032_v31  ;;  %v3253_v43 = vunpack.c.h.bf16 %v3248_v9 }
 0x169   :  { %v1515_v58 = vadd.f32 %v2244_v15, %v1418_v14  ;;  %v1474_v20 = vpop.f32.mrf.mxu0  ;;  %v1584_v41 = vmax.f32 %v1568_v34, 0.0  ;;  %v1592_v45 = vmax.f32 %v1576_v24, 0.0  ;;  %v3256_v24 = vunpack.c.l.bf16 %v3063_v5 }
 0x16a   :  { %v1566_v28 = vadd.f32 %v3249_v17, %v1472_v57  ;;  %v1569_v38 = vadd.f32 %v3250_v62, %v1483_v22  ;;  %v1475_v33 = vadd.f32 %v1474_v20, %v3089_v23  ;;  %v1506_v40 = vpop.f32.mrf.mxu1  ;;  %v1574_v50 = vadd.f32 %v3251_v55, %v1504_v49 }
 0x16b   :  { %v1577_v16 = vadd.f32 %v3252_v52, %v1515_v58  ;;  %v1507_v0 = vadd.f32 %v1506_v40, %v1410_v47  ;;  %v2239_v42 = vpop.f32.mrf.mxu0  ;;  %v1394_v22 = vadd.f32 %v3111_v6, %v3107_v4  ;;  %v3257_v25 = vunpack.c.h.bf16 %v3047_v10 }
 0x16c   :  { %v1585_v19 = vmax.f32 %v1569_v38, 0.0  ;;  %v1567_v51 = vadd.f32 %v3253_v43, %v1475_v33  ;;  %v1496_v59 = vadd.f32 %v2239_v42, %v1399_v21  ;;  %v2247_v56 = vpop.f32.mrf.mxu1  ;;  %v1582_v60 = vmax.f32 %v1566_v28, 0.0 }
 0x16d   :  { %v1593_v23 = vmax.f32 %v1577_v16, 0.0  ;;  %v1575_v11 = vadd.f32 %v1878_v26, %v1507_v0  ;;  %v1528_v46 = vadd.f32 %v2247_v56, %v1431_v1  ;;  %v1487_v57 = vpop.f32.mrf.mxu0  ;;  %v1590_v12 = vmax.f32 %v1574_v50, 0.0 }
 0x16e   :  { %v1899_v53 = vpack.c.bf16 %v1585_v19, %v1584_v41  ;;  %v1583_v49 = vmax.f32 %v1567_v51, 0.0  ;;  %v1488_v47 = vadd.f32 %v1487_v57, %v3104_v8  ;;  %v1519_v29 = vpop.f32.mrf.mxu1  ;;  %v1572_v31 = vadd.f32 %v1873_v36, %v1496_v59 }
 0x16f   :  { %v1919_v14 = vpack.c.bf16 %v1593_v23, %v1592_v45  ;;  %v1591_v61 = vmax.f32 %v1575_v11, 0.0  ;;  %v1520_v37 = vadd.f32 %v1519_v29, %v1423_v3  ;;  %v2240_v32 = vpop.f32.mrf.mxu0  ;;  %v3254_v3 = vunpack.c.l.bf16 %v3047_v10 }
 0x170   :  { %1938 = vst [vmem:[%s3200_s4 + $0x8] sm:$0xff] %v1899_v53   ;;  %v1894_v21 = vpack.c.bf16 %v1583_v49, %v1582_v60  ;;  %v1499_v26 = vadd.f32 %v2240_v32, %v1402_v63  ;;  %v2248_v34 = vpop.f32.mrf.mxu1  ;;  %v3255_v36 = vunpack.c.l.bf16 %v3058_v30  ;;  %v1588_v9 = vmax.f32 %v1572_v31, 0.0 }
 0x171   :  { %1942 = vst [vmem:[%s3200_s4 + $0x28] sm:$0xff] %v1919_v14   ;;  %v1914_v8 = vpack.c.bf16 %v1591_v61, %v1590_v12  ;;  %v1580_v15 = vadd.f32 %v3254_v3, %v1528_v46  ;;  %v1531_v44 = vadd.f32 %v2248_v34, %v1434_v39  ;;  %v1490_v35 = vpop.f32.mrf.mxu0  ;;  %v1578_v58 = vadd.f32 %v3256_v24, %v1520_v37 }
 0x172   :  { %1895 = vst [vmem:[%s3200_s4] sm:$0xff] %v1894_v21   ;;  %v1570_v63 = vadd.f32 %v3255_v36, %v1488_v47  ;;  %v1573_v4 = vadd.f32 %v1874_v18, %v1499_v26  ;;  %v1491_v6 = vadd.f32 %v1490_v35, %v1394_v22  ;;  %v1522_v2 = vpop.f32.mrf.mxu1 }
 0x173   :  { %1941 = vst [vmem:[%s3200_s4 + $0x20] sm:$0xff] %v1914_v8   ;;  %v1581_v48 = vadd.f32 %v3257_v25, %v1531_v44  ;;  %v1523_v20 = vadd.f32 %v1522_v2, %v1426_v13  ;;  %v1596_v7 = vmax.f32 %v1580_v15, 0.0  ;;  %v1594_v1 = vmax.f32 %v1578_v58, 0.0 }
 0x174   :  { %v1589_v17 = vmax.f32 %v1573_v4, 0.0  ;;  %v1571_v28 = vadd.f32 %v1870_v27, %v1491_v6  ;;  %v1586_v38 = vmax.f32 %v1570_v63, 0.0 }
 0x175   :  { %v1597_v18 = vmax.f32 %v1581_v48, 0.0  ;;  %v1579_v62 = vadd.f32 %v1886_v54, %v1523_v20 }
 0x176   :  { %v1909_v33 = vpack.c.bf16 %v1589_v17, %v1588_v9  ;;  %v1587_v40 = vmax.f32 %v1571_v28, 0.0 }
 0x177   :  { %v1929_v55 = vpack.c.bf16 %v1597_v18, %v1596_v7  ;;  %v1595_v50 = vmax.f32 %v1579_v62, 0.0 }
 0x178   :  { %1940 = vst [vmem:[%s3200_s4 + $0x18] sm:$0xff] %v1909_v33   ;;  %v1904_v10 = vpack.c.bf16 %v1587_v40, %v1586_v38 }
 0x179   :  { %1944 = vst [vmem:[%s3200_s4 + $0x38] sm:$0xff] %v1929_v55   ;;  %v1924_v30 = vpack.c.bf16 %v1595_v50, %v1594_v1 }
 0x17a   :  { %1939 = vst [vmem:[%s3200_s4 + $0x10] sm:$0xff] %v1904_v10  }
 0x17b   :  { %1943 = vst [vmem:[%s3200_s4 + $0x30] sm:$0xff] %v1924_v30  }

// kernel: resnet_forward.23
= control target key start
LH: loop header
LB: loop body
LE: loop exit
PB: predicated region body
PF: predicated region fallthrough
CT: control target
= control target key end

     0   :  { %s2950_s1 = inlined_call_operand.vmem [shape: bf16[1152,128], index: 1, kind: input, shape index: {}]   ;;  %s2951_s0 = inlined_call_operand.vmem [shape: bf16[128,1152], index: 0, kind: input, shape index: {}]   ;;  %s2952_s2 = inlined_call_operand.vmem [shape: f32[1,128], index: 2, kind: input, shape index: {}]   ;;  %s2953_s3 = inlined_call_operand.vmem [shape: bf16[128,128], index: 3, kind: output, shape index: {}]  }
   0x1   :  { %v2175_v0 = vld [vmem:[%s2950_s1 + $0x78] sm:$0xff]   ;;  %v2179_v4 = vld [vmem:[%s2950_s1 + $0x70] sm:$0xff]   ;;  %v2183_v8 = vld [vmem:[%s2950_s1 + $0x68] sm:$0xff]  }
   0x2   :  { %v2176_v1 = vld [vmem:[%s2950_s1 + $0xf8] sm:$0xff]   ;;  %1855 = vmatprep.subr.bf16.mxu0 %v2175_v0  ;;  %v2180_v5 = vld [vmem:[%s2950_s1 + $0xf0] sm:$0xff]   ;;  %v2184_v9 = vld [vmem:[%s2950_s1 + $0xe8] sm:$0xff]  }
   0x3   :  { %v2177_v2 = vld [vmem:[%s2950_s1 + $0x38] sm:$0xff]   ;;  %1919 = vmatprep.subr.bf16.mxu1 %v2176_v1  ;;  %v2181_v6 = vld [vmem:[%s2950_s1 + $0x30] sm:$0xff]   ;;  %v2185_v10 = vld [vmem:[%s2950_s1 + $0x28] sm:$0xff]  }
   0x4   :  { %v2178_v3 = vld [vmem:[%s2950_s1 + $0xb8] sm:$0xff]   ;;  %1856 = vmatpush3.bf16.msra.mxu0 %v2177_v2  ;;  %v2182_v7 = vld [vmem:[%s2950_s1 + $0xb0] sm:$0xff]   ;;  %v2186_v11 = vld [vmem:[%s2950_s1 + $0xa8] sm:$0xff]  }
   0x5   :  { %1920 = vmatpush3.bf16.msra.mxu1 %v2178_v3  ;;  %1857 = vmatprep.subr.bf16.mxu0 %v2179_v4  ;;  %v2187_v12 = vld [vmem:[%s2950_s1 + $0x60] sm:$0xff]   ;;  %v2191_v16 = vld [vmem:[%s2950_s1 + $0x58] sm:$0xff]   ;;  %v2195_v20 = vld [vmem:[%s2950_s1 + $0x50] sm:$0xff]  }
   0x6   :  { %1921 = vmatprep.subr.bf16.mxu1 %v2180_v5  ;;  %v2188_v13 = vld [vmem:[%s2950_s1 + $0xe0] sm:$0xff]   ;;  %v2192_v17 = vld [vmem:[%s2950_s1 + $0xd8] sm:$0xff]   ;;  %v2196_v21 = vld [vmem:[%s2950_s1 + $0xd0] sm:$0xff]  }
   0x7   :  { %v2189_v14 = vld [vmem:[%s2950_s1 + $0x20] sm:$0xff]   ;;  %v2193_v18 = vld [vmem:[%s2950_s1 + $0x18] sm:$0xff]   ;;  %v2197_v22 = vld [vmem:[%s2950_s1 + $0x10] sm:$0xff]  }
   0x8   :  { %1858 = vmatpush3.bf16.msra.mxu0 %v2181_v6  ;;  %v2190_v15 = vld [vmem:[%s2950_s1 + $0xa0] sm:$0xff]   ;;  %v2194_v19 = vld [vmem:[%s2950_s1 + $0x98] sm:$0xff]   ;;  %v2198_v23 = vld [vmem:[%s2950_s1 + $0x90] sm:$0xff]  }
   0x9   :  { %1922 = vmatpush3.bf16.msra.mxu1 %v2182_v7  ;;  %1859 = vmatprep.subr.bf16.mxu0 %v2183_v8  ;;  %v2199_v24 = vld [vmem:[%s2950_s1 + $0x48] sm:$0xff]   ;;  %v2203_v28 = vld [vmem:[%s2950_s1 + $0x40] sm:$0xff]   ;;  %v2213_v36 = vld [vmem:[%s2950_s1 + $0x178] sm:$0xff]  }
   0xa   :  { %1923 = vmatprep.subr.bf16.mxu1 %v2184_v9  ;;  %v2200_v25 = vld [vmem:[%s2950_s1 + $0xc8] sm:$0xff]   ;;  %v2204_v29 = vld [vmem:[%s2950_s1 + $0xc0] sm:$0xff]   ;;  %v2214_v37 = vld [vmem:[%s2950_s1 + $0x1f8] sm:$0xff]  }
   0xb   :  { %v2201_v26 = vld [vmem:[%s2950_s1 + $0x8] sm:$0xff]   ;;  %v2205_v30 = vld [vmem:[%s2950_s1] sm:$0xff]   ;;  %v2215_v38 = vld [vmem:[%s2950_s1 + $0x138] sm:$0xff]  }
   0xc   :  { %1860 = vmatpush3.bf16.msra.mxu0 %v2185_v10  ;;  %v2202_v27 = vld [vmem:[%s2950_s1 + $0x88] sm:$0xff]   ;;  %v2206_v31 = vld [vmem:[%s2950_s1 + $0x80] sm:$0xff]   ;;  %v2216_v39 = vld [vmem:[%s2950_s1 + $0x1b8] sm:$0xff]  }
   0xd   :  { %1924 = vmatpush3.bf16.msra.mxu1 %v2186_v11  ;;  %1861 = vmatprep.subr.bf16.mxu0 %v2187_v12  ;;  %v2207_v32 = vld [vmem:[%s2951_s0] ss:$36 sps:$4 sm:$0xff]   ;;  %v2210_v34 = vld [vmem:[%s2951_s0 + $0x8] ss:$36 sps:$4 sm:$0xff]   ;;  %v2219_v41 = vld [vmem:[%s2951_s0 + $0x54] ss:$36 sps:$4 sm:$0xff]  }
   0xe   :  { %1925 = vmatprep.subr.bf16.mxu1 %v2188_v13  ;;  %v2209_v33 = vld [vmem:[%s2951_s0 + $0x4] ss:$36 sps:$4 sm:$0xff]   ;;  %v2212_v35 = vld [vmem:[%s2951_s0 + $0xc] ss:$36 sps:$4 sm:$0xff]   ;;  %v2227_v48 = vld [vmem:[%s2951_s0 + $0x94] ss:$36 sps:$4 sm:$0xff]  }
   0xf   :  { %1078 = vmatprep.mubr.bf16.mxu0 %v2209_v33  ;;  %1175 = vmatprep.mubr.bf16.mxu1 %v2212_v35  ;;  %v2217_v40 = vld [vmem:[%s2951_s0 + $0x4c] ss:$36 sps:$4 sm:$0xff]   ;;  %v2229_v49 = vld [vmem:[%s2951_s0 + $0x9c] ss:$36 sps:$4 sm:$0xff]   ;;  %v2239_v57 = vld [vmem:[%s2951_s0 + $0xe4] ss:$36 sps:$4 sm:$0xff]  }
  0x10   :  { %1862 = vmatpush3.bf16.msra.mxu0 %v2189_v14  ;;  %v2221_v42 = vld [vmem:[%s2951_s0 + $0x48] ss:$36 sps:$4 sm:$0xff]   ;;  %v2222_v43 = vld [vmem:[%s2951_s0 + $0x50] ss:$36 sps:$4 sm:$0xff]   ;;  %v2232_v51 = vld [vmem:[%s2951_s0 + $0x98] ss:$36 sps:$4 sm:$0xff]  }
  0x11   :  { %1926 = vmatpush3.bf16.msra.mxu1 %v2190_v15  ;;  %1863 = vmatprep.subr.bf16.mxu0 %v2191_v16  ;;  %v2223_v44 = vld [vmem:[%s2950_s1 + $0x170] sm:$0xff]   ;;  %v2233_v52 = vld [vmem:[%s2950_s1 + $0x168] sm:$0xff]   ;;  %v2237_v56 = vld [vmem:[%s2951_s0 + $0xdc] ss:$36 sps:$4 sm:$0xff]  }
  0x12   :  { %1927 = vmatprep.subr.bf16.mxu1 %v2192_v17  ;;  %v2224_v45 = vld [vmem:[%s2950_s1 + $0x1f0] sm:$0xff]   ;;  %v2234_v53 = vld [vmem:[%s2950_s1 + $0x1e8] sm:$0xff]   ;;  %v2241_v58 = vld [vmem:[%s2951_s0 + $0xd8] ss:$36 sps:$4 sm:$0xff]  }
  0x13   :  { %v2225_v46 = vld [vmem:[%s2950_s1 + $0x130] sm:$0xff]   ;;  %v2235_v54 = vld [vmem:[%s2950_s1 + $0x128] sm:$0xff]   ;;  %v2242_v59 = vld [vmem:[%s2951_s0 + $0xe0] ss:$36 sps:$4 sm:$0xff]  }
  0x14   :  { %1864 = vmatpush3.bf16.msra.mxu0 %v2193_v18  ;;  %v2226_v47 = vld [vmem:[%s2950_s1 + $0x1b0] sm:$0xff]   ;;  %v2236_v55 = vld [vmem:[%s2950_s1 + $0x1a8] sm:$0xff]   ;;  %v2243_v60 = vld [vmem:[%s2950_s1 + $0x160] sm:$0xff]  }
  0x15   :  { %1928 = vmatpush3.bf16.msra.mxu1 %v2194_v19  ;;  %1865 = vmatprep.subr.bf16.mxu0 %v2195_v20  ;;  %v2231_v50 = vld [vmem:[%s2951_s0 + $0x90] ss:$36 sps:$4 sm:$0xff]   ;;  %v2244_v61 = vld [vmem:[%s2950_s1 + $0x1e0] sm:$0xff]   ;;  %v2253_v3 = vld [vmem:[%s2950_s1 + $0x158] sm:$0xff]  }
  0x16   :  { %1929 = vmatprep.subr.bf16.mxu1 %v2196_v21  ;;  %v2245_v62 = vld [vmem:[%s2950_s1 + $0x120] sm:$0xff]   ;;  %v2249_v1 = vld [vmem:[%s2951_s0 + $0x12c] ss:$36 sps:$4 sm:$0xff]   ;;  %v2254_v5 = vld [vmem:[%s2950_s1 + $0x1d8] sm:$0xff]  }
  0x17   :  { %v2246_v63 = vld [vmem:[%s2950_s1 + $0x1a0] sm:$0xff]   ;;  %v2252_v4 = vld [vmem:[%s2951_s0 + $0x128] ss:$36 sps:$4 sm:$0xff]   ;;  %v2255_v6 = vld [vmem:[%s2950_s1 + $0x118] sm:$0xff]  }
  0x18   :  { %1866 = vmatpush3.bf16.msra.mxu0 %v2197_v22  ;;  %v2247_v0 = vld [vmem:[%s2951_s0 + $0x124] ss:$36 sps:$4 sm:$0xff]   ;;  %v2256_v7 = vld [vmem:[%s2950_s1 + $0x198] sm:$0xff]   ;;  %v2257_v8 = vld [vmem:[%s2951_s0 + $0x16c] ss:$36 sps:$4 sm:$0xff]  }
  0x19   :  { %1930 = vmatpush3.bf16.msra.mxu1 %v2198_v23  ;;  %1867 = vmatprep.subr.bf16.mxu0 %v2199_v24  ;;  %v2251_v2 = vld [vmem:[%s2951_s0 + $0x120] ss:$36 sps:$4 sm:$0xff]   ;;  %v2259_v9 = vld [vmem:[%s2951_s0 + $0x174] ss:$36 sps:$4 sm:$0xff]   ;;  %v2261_v12 = vld [vmem:[%s2951_s0 + $0x168] ss:$36 sps:$4 sm:$0xff]  }
  0x1a   :  { %1931 = vmatprep.subr.bf16.mxu1 %v2200_v25  ;;  %v2263_v10 = vld [vmem:[%s2950_s1 + $0x150] sm:$0xff]   ;;  %v2269_v17 = vld [vmem:[%s2951_s0 + $0x1bc] ss:$36 sps:$4 sm:$0xff]   ;;  %v2273_v18 = vld [vmem:[%s2950_s1 + $0x148] sm:$0xff]  }
  0x1b   :  { %v2264_v11 = vld [vmem:[%s2950_s1 + $0x1d0] sm:$0xff]   ;;  %v2274_v19 = vld [vmem:[%s2950_s1 + $0x1c8] sm:$0xff]   ;;  %v2272_v23 = vld [vmem:[%s2951_s0 + $0x1b8] ss:$36 sps:$4 sm:$0xff]  }
  0x1c   :  { %1868 = vmatpush3.bf16.msra.mxu0 %v2201_v26  ;;  %v2265_v13 = vld [vmem:[%s2950_s1 + $0x110] sm:$0xff]   ;;  %v2275_v20 = vld [vmem:[%s2950_s1 + $0x108] sm:$0xff]   ;;  %v2277_v24 = vld [vmem:[%s2951_s0 + $0x1fc] ss:$36 sps:$4 sm:$0xff]  }
  0x1d   :  { %1932 = vmatpush3.bf16.msra.mxu1 %v2202_v27  ;;  %1869 = vmatprep.subr.bf16.mxu0 %v2203_v28  ;;  %v2266_v14 = vld [vmem:[%s2950_s1 + $0x190] sm:$0xff]   ;;  %v2276_v21 = vld [vmem:[%s2950_s1 + $0x188] sm:$0xff]   ;;  %v2283_v26 = vld [vmem:[%s2950_s1 + $0x140] sm:$0xff]  }
  0x1e   :  { %1933 = vmatprep.subr.bf16.mxu1 %v2204_v29  ;;  %v2262_v15 = vld [vmem:[%s2951_s0 + $0x170] ss:$36 sps:$4 sm:$0xff]   ;;  %v2279_v25 = vld [vmem:[%s2951_s0 + $0x204] ss:$36 sps:$4 sm:$0xff]  }
  0x1f   :  { %v2267_v16 = vld [vmem:[%s2951_s0 + $0x1b4] ss:$36 sps:$4 sm:$0xff]   ;;  %v2284_v27 = vld [vmem:[%s2950_s1 + $0x1c0] sm:$0xff]  }
  0x20   :  { %1870 = vmatpush3.bf16.msra.mxu0 %v2205_v30  ;;  %v2271_v22 = vld [vmem:[%s2951_s0 + $0x1b0] ss:$36 sps:$4 sm:$0xff]   ;;  %v2285_v28 = vld [vmem:[%s2950_s1 + $0x100] sm:$0xff]   ;;  %v2281_v30 = vld [vmem:[%s2951_s0 + $0x1f8] ss:$36 sps:$4 sm:$0xff]  }
  0x21   :  { %1934 = vmatpush3.bf16.msra.mxu1 %v2206_v31  ;;  %1983 = vmatprep.subr.bf16.mxu0 %v2213_v36  ;;  %v2286_v29 = vld [vmem:[%s2950_s1 + $0x180] sm:$0xff]   ;;  %v2289_v33 = vld [vmem:[%s2951_s0 + $0x14] ss:$36 sps:$4 sm:$0xff]  }
  0x22   :  { %2047 = vmatprep.subr.bf16.mxu1 %v2214_v37  ;;  %v2282_v31 = vld [vmem:[%s2951_s0 + $0x200] ss:$36 sps:$4 sm:$0xff]   ;;  %v2287_v35 = vld [vmem:[%s2951_s0 + $0x10] ss:$36 sps:$4 sm:$0xff]   ;;  %v2290_v36 = vld [vmem:[%s2951_s0 + $0x18] ss:$36 sps:$4 sm:$0xff]  }
  0x23   :  { %1079 = vmatmul.mubr.bf16.vlgmr.msra.gmra.mxu0 %v2207_v32  ;;  %v2293_v32 = vld [vmem:[%s2950_s1 + $0x238] sm:$0xff]  }
  0x24   :  { %1176 = vmatmul.mubr.bf16.vlgmr.msra.gmra.mxu1 %v2210_v34  ;;  %1984 = vmatpush3.bf16.msra.mxu0 %v2215_v38  ;;  %v2292_v34 = vld [vmem:[%s2951_s0 + $0x1c] ss:$36 sps:$4 sm:$0xff]   ;;  %v2296_v38 = vld [vmem:[%s2951_s0 + $0x64] ss:$36 sps:$4 sm:$0xff]  }
  0x25   :  { %2048 = vmatpush3.bf16.msra.mxu1 %v2216_v39  ;;  %1086 = vmatprep.mubr.bf16.mxu0 %v2217_v40  ;;  %v2294_v37 = vld [vmem:[%s2951_s0 + $0x5c] ss:$36 sps:$4 sm:$0xff]   ;;  %v2300_v39 = vld [vmem:[%s2950_s1 + $0x230] sm:$0xff]   ;;  %v2307_v40 = vld [vmem:[%s2950_s1 + $0x228] sm:$0xff]  }
  0x26   :  { %1183 = vmatprep.mubr.bf16.mxu1 %v2219_v41  ;;  %1985 = vmatprep.subr.bf16.mxu0 %v2223_v44  ;;  %v2298_v41 = vld [vmem:[%s2951_s0 + $0x58] ss:$36 sps:$4 sm:$0xff]   ;;  %v2303_v44 = vld [vmem:[%s2951_s0 + $0xac] ss:$36 sps:$4 sm:$0xff]  }
  0x27   :  { %2049 = vmatprep.subr.bf16.mxu1 %v2224_v45  ;;  %v2314_v45 = vld [vmem:[%s2950_s1 + $0x220] sm:$0xff]  }
  0x28   :  { %1986 = vmatpush3.bf16.msra.mxu0 %v2225_v46  ;;  %v2321_v46 = vld [vmem:[%s2950_s1 + $0x218] sm:$0xff]  }
  0x29   :  { %2050 = vmatpush3.bf16.msra.mxu1 %v2226_v47  ;;  %1987 = vmatprep.subr.bf16.mxu0 %v2233_v52  ;;  %v2305_v47 = vld [vmem:[%s2951_s0 + $0xa0] ss:$36 sps:$4 sm:$0xff]   ;;  %v2312_v52 = vld [vmem:[%s2951_s0 + $0xe8] ss:$36 sps:$4 sm:$0xff]  }
  0x2a   :  { %2051 = vmatprep.subr.bf16.mxu1 %v2234_v53  ;;  %v2335_v53 = vld [vmem:[%s2950_s1 + $0x208] sm:$0xff]  }
  0x2b   :  { %1087 = vmatmul.mubr.bf16.gmra.mxu0 %v2221_v42  ;;  %v2299_v42 = vld [vmem:[%s2951_s0 + $0x60] ss:$36 sps:$4 sm:$0xff]  }
  0x2c   :  { %1184 = vmatmul.mubr.bf16.gmra.mxu1 %v2222_v43  ;;  %1094 = vmatprep.mubr.bf16.mxu0 %v2227_v48  ;;  %v2301_v43 = vld [vmem:[%s2951_s0 + $0xa4] ss:$36 sps:$4 sm:$0xff]  }
  0x2d   :  { %1191 = vmatprep.mubr.bf16.mxu1 %v2229_v49  ;;  %1988 = vmatpush3.bf16.msra.mxu0 %v2235_v54  ;;  %v2306_v48 = vld [vmem:[%s2951_s0 + $0xa8] ss:$36 sps:$4 sm:$0xff]   ;;  %v2313_v54 = vld [vmem:[%s2951_s0 + $0xf0] ss:$36 sps:$4 sm:$0xff]  }
  0x2e   :  { %2052 = vmatpush3.bf16.msra.mxu1 %v2236_v55  ;;  %1989 = vmatprep.subr.bf16.mxu0 %v2243_v60  ;;  %v2308_v49 = vld [vmem:[%s2951_s0 + $0xec] ss:$36 sps:$4 sm:$0xff]   ;;  %v2315_v55 = vld [vmem:[%s2951_s0 + $0x134] ss:$36 sps:$4 sm:$0xff]   ;;  %v2322_v60 = vld [vmem:[%s2951_s0 + $0x17c] ss:$36 sps:$4 sm:$0xff]  }
  0x2f   :  { %2053 = vmatprep.subr.bf16.mxu1 %v2244_v61  ;;  %v2324_v61 = vld [vmem:[%s2951_s0 + $0x184] ss:$36 sps:$4 sm:$0xff]  }
  0x31   :  { %1990 = vmatpush3.bf16.msra.mxu0 %v2245_v62  ;;  %v2326_v62 = vld [vmem:[%s2951_s0 + $0x178] ss:$36 sps:$4 sm:$0xff]  }
  0x32   :  { %2054 = vmatpush3.bf16.msra.mxu1 %v2246_v63  ;;  %1991 = vmatprep.subr.bf16.mxu0 %v2253_v3  ;;  %v2327_v63 = vld [vmem:[%s2951_s0 + $0x180] ss:$36 sps:$4 sm:$0xff]   ;;  %v2334_v3 = vld [vmem:[%s2951_s0 + $0x1c8] ss:$36 sps:$4 sm:$0xff]  }
  0x33   :  { %1095 = vmatmul.mubr.bf16.gmra.mxu0 %v2231_v50  ;;  %2055 = vmatprep.subr.bf16.mxu1 %v2254_v5  ;;  %v2310_v50 = vld [vmem:[%s2951_s0 + $0xf4] ss:$36 sps:$4 sm:$0xff]  }
  0x34   :  { %1192 = vmatmul.mubr.bf16.gmra.mxu1 %v2232_v51  ;;  %1102 = vmatprep.mubr.bf16.mxu0 %v2237_v56  ;;  %v2328_v51 = vld [vmem:[%s2950_s1 + $0x210] sm:$0xff]   ;;  %v2317_v56 = vld [vmem:[%s2951_s0 + $0x13c] ss:$36 sps:$4 sm:$0xff]  }
  0x35   :  { %1199 = vmatprep.mubr.bf16.mxu1 %v2239_v57  ;;  %1992 = vmatpush3.bf16.msra.mxu0 %v2255_v6  ;;  %v2342_v57 = vld [vmem:[%s2950_s1 + $0x200] sm:$0xff]   ;;  %v2338_v5 = vld [vmem:[%s2951_s0 + $0x214] ss:$36 sps:$4 sm:$0xff]   ;;  %v2340_v6 = vld [vmem:[%s2951_s0 + $0x208] ss:$36 sps:$4 sm:$0xff]  }
  0x36   :  { %2056 = vmatpush3.bf16.msra.mxu1 %v2256_v7  ;;  %1993 = vmatprep.subr.bf16.mxu0 %v2263_v10  ;;  %v2341_v7 = vld [vmem:[%s2951_s0 + $0x210] ss:$36 sps:$4 sm:$0xff]   ;;  %v2345_v10 = vld [vmem:[%s2951_s0 + $0x68] ss:$36 sps:$4 sm:$0xff]  }
  0x37   :  { %2057 = vmatprep.subr.bf16.mxu1 %v2264_v11  ;;  %v2346_v11 = vld [vmem:[%s2951_s0 + $0x188] ss:$36 sps:$4 sm:$0xff]  }
  0x39   :  { %1994 = vmatpush3.bf16.msra.mxu0 %v2265_v13  ;;  %v2348_v13 = vld [vmem:[%s2951_s0 + $0x1d0] ss:$36 sps:$4 sm:$0xff]  }
  0x3a   :  { %2058 = vmatpush3.bf16.msra.mxu1 %v2266_v14  ;;  %1995 = vmatprep.subr.bf16.mxu0 %v2273_v18  ;;  %v2349_v14 = vld [vmem:[%s2951_s0 + $0xf8] ss:$36 sps:$4 sm:$0xff]   ;;  %v2806_v18 = vld [vmem:[%s2952_s2] ss:$0 sm:$0xff] }
  0x3b   :  { %1103 = vmatmul.mubr.bf16.gmra.mxu0 %v2241_v58  ;;  %2059 = vmatprep.subr.bf16.mxu1 %v2274_v19  ;;  %v2319_v58 = vld [vmem:[%s2951_s0 + $0x130] ss:$36 sps:$4 sm:$0xff]  }
  0x3c   :  { %1200 = vmatmul.mubr.bf16.gmra.mxu1 %v2242_v59  ;;  %1110 = vmatprep.mubr.bf16.mxu0 %v2247_v0  ;;  %v2320_v59 = vld [vmem:[%s2951_s0 + $0x138] ss:$36 sps:$4 sm:$0xff]   ;;  %v2329_v0 = vld [vmem:[%s2951_s0 + $0x1c4] ss:$36 sps:$4 sm:$0xff]  }
  0x3d   :  { %1207 = vmatprep.mubr.bf16.mxu1 %v2249_v1  ;;  %1996 = vmatpush3.bf16.msra.mxu0 %v2275_v20  ;;  %v2331_v1 = vld [vmem:[%s2951_s0 + $0x1cc] ss:$36 sps:$4 sm:$0xff]  }
  0x3e   :  { %2060 = vmatpush3.bf16.msra.mxu1 %v2276_v21  ;;  %1997 = vmatprep.subr.bf16.mxu0 %v2283_v26 }
  0x3f   :  { %2061 = vmatprep.subr.bf16.mxu1 %v2284_v27 }
  0x41   :  { %1998 = vmatpush3.bf16.msra.mxu0 %v2285_v28 }
  0x42   :  { %2062 = vmatpush3.bf16.msra.mxu1 %v2286_v29  ;;  %2127 = vmatprep.subr.bf16.mxu0 %v2293_v32 }
  0x43   :  { %1111 = vmatmul.mubr.bf16.gmra.mxu0 %v2251_v2  ;;  %2159 = vmatprep.subr.bf16.mxu1 %v2293_v32  ;;  %v2333_v2 = vld [vmem:[%s2951_s0 + $0x1c0] ss:$36 sps:$4 sm:$0xff]  }
  0x44   :  { %1208 = vmatmul.mubr.bf16.gmra.mxu1 %v2252_v4  ;;  %1118 = vmatprep.mubr.bf16.mxu0 %v2257_v8  ;;  %v2336_v4 = vld [vmem:[%s2951_s0 + $0x20c] ss:$36 sps:$4 sm:$0xff]   ;;  %v2343_v8 = vld [vmem:[%s2951_s0 + $0x20] ss:$36 sps:$4 sm:$0xff]  }
  0x45   :  { %1215 = vmatprep.mubr.bf16.mxu1 %v2259_v9  ;;  %v2344_v9 = vld [vmem:[%s2951_s0 + $0x140] ss:$36 sps:$4 sm:$0xff]  }
  0x4b   :  { %1119 = vmatmul.mubr.bf16.gmra.mxu0 %v2261_v12  ;;  %v2347_v12 = vld [vmem:[%s2951_s0 + $0xb0] ss:$36 sps:$4 sm:$0xff]  }
  0x4c   :  { %1216 = vmatmul.mubr.bf16.gmra.mxu1 %v2262_v15  ;;  %1126 = vmatprep.mubr.bf16.mxu0 %v2267_v16  ;;  %v2350_v15 = vld [vmem:[%s2951_s0 + $0x218] ss:$36 sps:$4 sm:$0xff]  }
  0x4d   :  { %1223 = vmatprep.mubr.bf16.mxu1 %v2269_v17 }
  0x53   :  { %1127 = vmatmul.mubr.bf16.gmra.mxu0 %v2271_v22 }
  0x54   :  { %1224 = vmatmul.mubr.bf16.gmra.mxu1 %v2272_v23  ;;  %1134 = vmatprep.mubr.bf16.mxu0 %v2277_v24 }
  0x55   :  { %1231 = vmatprep.mubr.bf16.mxu1 %v2279_v25 }
  0x5b   :  { %1135 = vmatmul.mubr.bf16.gmra.mxu0 %v2281_v30 }
  0x5c   :  { %1232 = vmatmul.mubr.bf16.gmra.mxu1 %v2282_v31  ;;  %1272 = vmatprep.mubr.bf16.mxu0 %v2289_v33 }
  0x5d   :  { %1369 = vmatprep.mubr.bf16.mxu1 %v2292_v34 }
  0x63   :  { %1273 = vmatmul.mubr.bf16.vlgmr.msra.gmra.mxu0 %v2287_v35 }
  0x64   :  { %1370 = vmatmul.mubr.bf16.vlgmr.msra.gmra.mxu1 %v2290_v36  ;;  %2128 = vmatpush3.bf16.msra.mxu0 %v2293_v32 }
  0x65   :  { %2167 = vmatpush3.bf16.msra.mxu1 %v2293_v32  ;;  %1280 = vmatprep.mubr.bf16.mxu0 %v2294_v37 }
  0x66   :  { %1377 = vmatprep.mubr.bf16.mxu1 %v2296_v38  ;;  %2129 = vmatprep.subr.bf16.mxu0 %v2300_v39 }
  0x67   :  { %2160 = vmatprep.subr.bf16.mxu1 %v2300_v39 }
  0x68   :  { %2130 = vmatpush3.bf16.msra.mxu0 %v2300_v39 }
  0x69   :  { %2168 = vmatpush3.bf16.msra.mxu1 %v2300_v39  ;;  %2131 = vmatprep.subr.bf16.mxu0 %v2307_v40 }
  0x6a   :  { %2161 = vmatprep.subr.bf16.mxu1 %v2307_v40 }
  0x6b   :  { %1281 = vmatmul.mubr.bf16.gmra.mxu0 %v2298_v41 }
  0x6c   :  { %1378 = vmatmul.mubr.bf16.gmra.mxu1 %v2299_v42  ;;  %1288 = vmatprep.mubr.bf16.mxu0 %v2301_v43 }
  0x6d   :  { %1385 = vmatprep.mubr.bf16.mxu1 %v2303_v44  ;;  %2132 = vmatpush3.bf16.msra.mxu0 %v2307_v40 }
  0x6e   :  { %2169 = vmatpush3.bf16.msra.mxu1 %v2307_v40  ;;  %2133 = vmatprep.subr.bf16.mxu0 %v2314_v45 }
  0x6f   :  { %2162 = vmatprep.subr.bf16.mxu1 %v2314_v45 }
  0x71   :  { %2134 = vmatpush3.bf16.msra.mxu0 %v2314_v45 }
  0x72   :  { %2170 = vmatpush3.bf16.msra.mxu1 %v2314_v45  ;;  %2135 = vmatprep.subr.bf16.mxu0 %v2321_v46 }
  0x73   :  { %1289 = vmatmul.mubr.bf16.gmra.mxu0 %v2305_v47  ;;  %2163 = vmatprep.subr.bf16.mxu1 %v2321_v46 }
  0x74   :  { %1386 = vmatmul.mubr.bf16.gmra.mxu1 %v2306_v48  ;;  %1296 = vmatprep.mubr.bf16.mxu0 %v2308_v49 }
  0x75   :  { %1393 = vmatprep.mubr.bf16.mxu1 %v2310_v50  ;;  %2136 = vmatpush3.bf16.msra.mxu0 %v2321_v46 }
  0x76   :  { %2171 = vmatpush3.bf16.msra.mxu1 %v2321_v46  ;;  %2137 = vmatprep.subr.bf16.mxu0 %v2328_v51 }
  0x77   :  { %2164 = vmatprep.subr.bf16.mxu1 %v2328_v51 }
  0x79   :  { %2138 = vmatpush3.bf16.msra.mxu0 %v2328_v51 }
  0x7a   :  { %2172 = vmatpush3.bf16.msra.mxu1 %v2328_v51  ;;  %2139 = vmatprep.subr.bf16.mxu0 %v2335_v53 }
  0x7b   :  { %1297 = vmatmul.mubr.bf16.gmra.mxu0 %v2312_v52  ;;  %2165 = vmatprep.subr.bf16.mxu1 %v2335_v53 }
  0x7c   :  { %1394 = vmatmul.mubr.bf16.gmra.mxu1 %v2313_v54  ;;  %1304 = vmatprep.mubr.bf16.mxu0 %v2315_v55 }
  0x7d   :  { %1401 = vmatprep.mubr.bf16.mxu1 %v2317_v56  ;;  %2140 = vmatpush3.bf16.msra.mxu0 %v2335_v53 }
  0x7e   :  { %2173 = vmatpush3.bf16.msra.mxu1 %v2335_v53  ;;  %2141 = vmatprep.subr.bf16.mxu0 %v2342_v57 }
  0x7f   :  { %2166 = vmatprep.subr.bf16.mxu1 %v2342_v57 }
  0x81   :  { %2142 = vmatpush3.bf16.msra.mxu0 %v2342_v57 }
  0x82   :  { %2174 = vmatpush3.bf16.msra.mxu1 %v2342_v57 }
  0x83   :  { %1305 = vmatmul.mubr.bf16.gmra.mxu0 %v2319_v58 }
  0x84   :  { %1402 = vmatmul.mubr.bf16.gmra.mxu1 %v2320_v59  ;;  %1312 = vmatprep.mubr.bf16.mxu0 %v2322_v60 }
  0x85   :  { %1409 = vmatprep.mubr.bf16.mxu1 %v2324_v61 }
  0x8b   :  { %1313 = vmatmul.mubr.bf16.gmra.mxu0 %v2326_v62 }
  0x8c   :  { %1410 = vmatmul.mubr.bf16.gmra.mxu1 %v2327_v63  ;;  %1320 = vmatprep.mubr.bf16.mxu0 %v2329_v0 }
  0x8d   :  { %1417 = vmatprep.mubr.bf16.mxu1 %v2331_v1 }
  0x93   :  { %1321 = vmatmul.mubr.bf16.gmra.mxu0 %v2333_v2 }
  0x94   :  { %1418 = vmatmul.mubr.bf16.gmra.mxu1 %v2334_v3  ;;  %1328 = vmatprep.mubr.bf16.mxu0 %v2336_v4 }
  0x95   :  { %1425 = vmatprep.mubr.bf16.mxu1 %v2338_v5 }
  0x9b   :  { %1329 = vmatmul.mubr.bf16.gmra.mxu0 %v2340_v6 }
  0x9c   :  { %1426 = vmatmul.mubr.bf16.gmra.mxu1 %v2341_v7  ;;  %2143 = vmatprep.mubr.bf16.mxu0 %v2343_v8 }
  0x9d   :  { %2151 = vmatprep.mubr.bf16.mxu1 %v2344_v9 }
  0xa3   :  { %2144 = vmatmul.mubr.bf16.vlgmr.msra.gmra.mxu0 %v2345_v10 }
  0xa4   :  { %2152 = vmatmul.mubr.bf16.vlgmr.msra.gmra.mxu1 %v2346_v11  ;;  %2147 = vmatprep.mubr.bf16.mxu0 %v2347_v12 }
  0xa5   :  { %2155 = vmatprep.mubr.bf16.mxu1 %v2348_v13 }
  0xab   :  { %2148 = vmatmul.mubr.bf16.gmra.mxu0 %v2349_v14 }
  0xac   :  { %2156 = vmatmul.mubr.bf16.gmra.mxu1 %v2350_v15 }
  0xe3   :  { %v1871_v16 = vpop.f32.mrf.mxu0 }
  0xe4   :  { %v1935_v17 = vpop.f32.mrf.mxu1 }
  0xe5   :  { %v1872_v19 = vpop.f32.mrf.mxu0 }
  0xe6   :  { %v1873_v20 = vadd.f32 %v1872_v19, %v1871_v16  ;;  %v1936_v21 = vpop.f32.mrf.mxu1 }
  0xe7   :  { %v1937_v22 = vadd.f32 %v1936_v21, %v1935_v17  ;;  %v1874_v23 = vpop.f32.mrf.mxu0 }
  0xe8   :  { %v1081_v24 = vadd.f32 %v1873_v20, %v2806_v18  ;;  %v1938_v25 = vpop.f32.mrf.mxu1 }
  0xe9   :  { %v1875_v26 = vpop.f32.mrf.mxu0 }
  0xea   :  { %v2809_v27 = vadd.f32 %v1937_v22, %v1081_v24  ;;  %v1876_v28 = vadd.f32 %v1875_v26, %v1874_v23  ;;  %v1939_v29 = vpop.f32.mrf.mxu1 }
  0xeb   :  { %v1940_v30 = vadd.f32 %v1939_v29, %v1938_v25  ;;  %v1877_v31 = vpop.f32.mrf.mxu0 }
  0xec   :  { %v1084_v32 = vadd.f32 %v1876_v28, %v2806_v18  ;;  %v1941_v33 = vpop.f32.mrf.mxu1 }
  0xed   :  { %v1878_v34 = vpop.f32.mrf.mxu0 }
  0xee   :  { %v2812_v35 = vadd.f32 %v1940_v30, %v1084_v32  ;;  %v1879_v36 = vadd.f32 %v1878_v34, %v1877_v31  ;;  %v1942_v37 = vpop.f32.mrf.mxu1 }
  0xef   :  { %v1943_v38 = vadd.f32 %v1942_v37, %v1941_v33  ;;  %v1880_v39 = vpop.f32.mrf.mxu0 }
  0xf0   :  { %v1089_v40 = vadd.f32 %v1879_v36, %v2806_v18  ;;  %v1944_v41 = vpop.f32.mrf.mxu1 }
  0xf1   :  { %v1881_v42 = vpop.f32.mrf.mxu0 }
  0xf2   :  { %v2815_v43 = vadd.f32 %v1943_v38, %v1089_v40  ;;  %v1882_v44 = vadd.f32 %v1881_v42, %v1880_v39  ;;  %v1945_v45 = vpop.f32.mrf.mxu1 }
  0xf3   :  { %v1946_v46 = vadd.f32 %v1945_v45, %v1944_v41  ;;  %v1883_v47 = vpop.f32.mrf.mxu0 }
  0xf4   :  { %v1092_v48 = vadd.f32 %v1882_v44, %v2806_v18  ;;  %v1947_v49 = vpop.f32.mrf.mxu1 }
  0xf5   :  { %v1884_v50 = vpop.f32.mrf.mxu0 }
  0xf6   :  { %v2818_v51 = vadd.f32 %v1946_v46, %v1092_v48  ;;  %v1885_v52 = vadd.f32 %v1884_v50, %v1883_v47  ;;  %v1948_v53 = vpop.f32.mrf.mxu1 }
  0xf7   :  { %v1949_v54 = vadd.f32 %v1948_v53, %v1947_v49  ;;  %v1886_v55 = vpop.f32.mrf.mxu0 }
  0xf8   :  { %v1097_v56 = vadd.f32 %v1885_v52, %v2806_v18  ;;  %v1950_v57 = vpop.f32.mrf.mxu1 }
  0xf9   :  { %v1887_v58 = vpop.f32.mrf.mxu0 }
  0xfa   :  { %v2821_v59 = vadd.f32 %v1949_v54, %v1097_v56  ;;  %v1888_v60 = vadd.f32 %v1887_v58, %v1886_v55  ;;  %v1951_v61 = vpop.f32.mrf.mxu1 }
  0xfb   :  { %v1952_v62 = vadd.f32 %v1951_v61, %v1950_v57  ;;  %v1889_v63 = vpop.f32.mrf.mxu0 }
  0xfc   :  { %v1100_v0 = vadd.f32 %v1888_v60, %v2806_v18  ;;  %v1953_v1 = vpop.f32.mrf.mxu1 }
  0xfd   :  { %v1890_v2 = vpop.f32.mrf.mxu0 }
  0xfe   :  { %v2824_v3 = vadd.f32 %v1952_v62, %v1100_v0  ;;  %v1891_v4 = vadd.f32 %v1890_v2, %v1889_v63  ;;  %v1954_v5 = vpop.f32.mrf.mxu1 }
  0xff   :  { %v1955_v6 = vadd.f32 %v1954_v5, %v1953_v1  ;;  %v1892_v7 = vpop.f32.mrf.mxu0 }
 0x100   :  { %2954 = vst [vmem:[#allocation2_spill] sm:$0xff] %v2824_v3  ;;  %v1105_v8 = vadd.f32 %v1891_v4, %v2806_v18  ;;  %v1956_v9 = vpop.f32.mrf.mxu1 }
 0x101   :  { %v1893_v10 = vpop.f32.mrf.mxu0 }
 0x102   :  { %v2827_v11 = vadd.f32 %v1955_v6, %v1105_v8  ;;  %v1894_v12 = vadd.f32 %v1893_v10, %v1892_v7  ;;  %v1957_v13 = vpop.f32.mrf.mxu1 }
 0x103   :  { %v1958_v14 = vadd.f32 %v1957_v13, %v1956_v9  ;;  %v1895_v15 = vpop.f32.mrf.mxu0 }
 0x104   :  { %v1108_v16 = vadd.f32 %v1894_v12, %v2806_v18  ;;  %v1959_v17 = vpop.f32.mrf.mxu1 }
 0x105   :  { %v1896_v19 = vpop.f32.mrf.mxu0 }
 0x106   :  { %v2830_v20 = vadd.f32 %v1958_v14, %v1108_v16  ;;  %v1897_v21 = vadd.f32 %v1896_v19, %v1895_v15  ;;  %v1960_v22 = vpop.f32.mrf.mxu1 }
 0x107   :  { %v1961_v23 = vadd.f32 %v1960_v22, %v1959_v17  ;;  %v1898_v24 = vpop.f32.mrf.mxu0 }
 0x108   :  { %2955 = vst [vmem:[#allocation3_spill] sm:$0xff] %v2830_v20  ;;  %v1113_v25 = vadd.f32 %v1897_v21, %v2806_v18  ;;  %v1962_v26 = vpop.f32.mrf.mxu1 }
 0x109   :  { %v1899_v28 = vpop.f32.mrf.mxu0 }
 0x10a   :  { %v2833_v29 = vadd.f32 %v1961_v23, %v1113_v25  ;;  %v1900_v30 = vadd.f32 %v1899_v28, %v1898_v24  ;;  %v1963_v31 = vpop.f32.mrf.mxu1 }
 0x10b   :  { %v1964_v32 = vadd.f32 %v1963_v31, %v1962_v26  ;;  %v1901_v33 = vpop.f32.mrf.mxu0 }
 0x10c   :  { %v1116_v34 = vadd.f32 %v1900_v30, %v2806_v18  ;;  %v1965_v36 = vpop.f32.mrf.mxu1 }
 0x10d   :  { %v1902_v37 = vpop.f32.mrf.mxu0 }
 0x10e   :  { %v2836_v38 = vadd.f32 %v1964_v32, %v1116_v34  ;;  %v1903_v39 = vadd.f32 %v1902_v37, %v1901_v33  ;;  %v1966_v40 = vpop.f32.mrf.mxu1 }
 0x10f   :  { %v1967_v41 = vadd.f32 %v1966_v40, %v1965_v36  ;;  %v1904_v42 = vpop.f32.mrf.mxu0 }
 0x110   :  { %2956 = vst [vmem:[#allocation4_spill] sm:$0xff] %v2836_v38  ;;  %v1121_v44 = vadd.f32 %v1903_v39, %v2806_v18  ;;  %v1968_v45 = vpop.f32.mrf.mxu1 }
 0x111   :  { %v1905_v46 = vpop.f32.mrf.mxu0 }
 0x112   :  { %v2839_v47 = vadd.f32 %v1967_v41, %v1121_v44  ;;  %v1906_v48 = vadd.f32 %v1905_v46, %v1904_v42  ;;  %v1969_v49 = vpop.f32.mrf.mxu1 }
 0x113   :  { %v1970_v50 = vadd.f32 %v1969_v49, %v1968_v45  ;;  %v1907_v52 = vpop.f32.mrf.mxu0 }
 0x114   :  { %v1124_v53 = vadd.f32 %v1906_v48, %v2806_v18  ;;  %v1971_v54 = vpop.f32.mrf.mxu1 }
 0x115   :  { %v1908_v55 = vpop.f32.mrf.mxu0 }
 0x116   :  { %v2842_v56 = vadd.f32 %v1970_v50, %v1124_v53  ;;  %v1909_v57 = vadd.f32 %v1908_v55, %v1907_v52  ;;  %v1972_v58 = vpop.f32.mrf.mxu1 }
 0x117   :  { %v1973_v60 = vadd.f32 %v1972_v58, %v1971_v54  ;;  %v1910_v61 = vpop.f32.mrf.mxu0 }
 0x118   :  { %2957 = vst [vmem:[#allocation5_spill] sm:$0xff] %v2842_v56  ;;  %v1129_v62 = vadd.f32 %v1909_v57, %v2806_v18  ;;  %v1974_v63 = vpop.f32.mrf.mxu1 }
 0x119   :  { %v1911_v0 = vpop.f32.mrf.mxu0 }
 0x11a   :  { %v2845_v1 = vadd.f32 %v1973_v60, %v1129_v62  ;;  %v1912_v2 = vadd.f32 %v1911_v0, %v1910_v61  ;;  %v1975_v4 = vpop.f32.mrf.mxu1 }
 0x11b   :  { %v1976_v5 = vadd.f32 %v1975_v4, %v1974_v63  ;;  %v1913_v6 = vpop.f32.mrf.mxu0 }
 0x11c   :  { %2958 = vst [vmem:[#allocation6_spill] sm:$0xff] %v2845_v1  ;;  %v1132_v7 = vadd.f32 %v1912_v2, %v2806_v18  ;;  %v1977_v8 = vpop.f32.mrf.mxu1 }
 0x11d   :  { %v1914_v9 = vpop.f32.mrf.mxu0 }
 0x11e   :  { %v2848_v10 = vadd.f32 %v1976_v5, %v1132_v7  ;;  %v1915_v12 = vadd.f32 %v1914_v9, %v1913_v6  ;;  %v1978_v13 = vpop.f32.mrf.mxu1 }
 0x11f   :  { %v1979_v14 = vadd.f32 %v1978_v13, %v1977_v8  ;;  %v1916_v15 = vpop.f32.mrf.mxu0 }
 0x120   :  { %2959 = vst [vmem:[#allocation7_spill] sm:$0xff] %v2848_v10  ;;  %v1137_v16 = vadd.f32 %v1915_v12, %v2806_v18  ;;  %v1980_v17 = vpop.f32.mrf.mxu1 }
 0x121   :  { %v1917_v19 = vpop.f32.mrf.mxu0 }
 0x122   :  { %v2851_v21 = vadd.f32 %v1979_v14, %v1137_v16  ;;  %v1918_v22 = vadd.f32 %v1917_v19, %v1916_v15  ;;  %v1981_v23 = vpop.f32.mrf.mxu1 }
 0x123   :  { %v1982_v24 = vadd.f32 %v1981_v23, %v1980_v17  ;;  %v1999_v25 = vpop.f32.mrf.mxu0 }
 0x124   :  { %2960 = vst [vmem:[#allocation8_spill] sm:$0xff] %v2851_v21  ;;  %v1140_v26 = vadd.f32 %v1918_v22, %v2806_v18  ;;  %v2063_v28 = vpop.f32.mrf.mxu1 }
 0x125   :  { %v2000_v30 = vpop.f32.mrf.mxu0 }
 0x126   :  { %v2854_v31 = vadd.f32 %v1982_v24, %v1140_v26  ;;  %v2001_v32 = vadd.f32 %v2000_v30, %v1999_v25  ;;  %v2064_v33 = vpop.f32.mrf.mxu1 }
 0x127   :  { %v2002_v34 = vpop.f32.mrf.mxu0  ;;  %v2065_v37 = vadd.f32 %v2064_v33, %v2063_v28 }
 0x128   :  { %2961 = vst [vmem:[#allocation9_spill] sm:$0xff] %v2854_v31  ;;  %v1275_v36 = vadd.f32 %v2001_v32, %v2809_v27  ;;  %v2857_v39 = vpop.f32.mrf.mxu1 }
 0x129   :  { %v2003_v40 = vpop.f32.mrf.mxu0 }
 0x12a   :  { %v2859_v41 = vpop.f32.mrf.mxu1  ;;  %v2861_v42 = vadd.f32 %v2065_v37, %v1275_v36  ;;  %v2004_v10 = vadd.f32 %v2003_v40, %v2002_v34 }
 0x12b   :  { %v2005_v44 = vpop.f32.mrf.mxu0 }
 0x12c   :  { %2962 = vst [vmem:[#allocation10_spill] sm:$0xff] %v2861_v42  ;;  %v2069_v45 = vpop.f32.mrf.mxu1  ;;  %v1278_v56 = vadd.f32 %v2004_v10, %v2812_v35 }
 0x12d   :  { %v2006_v18 = vpop.f32.mrf.mxu0 }
 0x12e   :  { %v2070_v46 = vpop.f32.mrf.mxu1  ;;  %v2007_v42 = vadd.f32 %v2006_v18, %v2005_v44  ;;  %v2068_v44 = vadd.f32 %v2859_v41, %v2857_v39 }
 0x12f   :  { %v2008_v48 = vpop.f32.mrf.mxu0  ;;  %v2071_v18 = vadd.f32 %v2070_v46, %v2069_v45 }
 0x130   :  { %v2072_v49 = vpop.f32.mrf.mxu1 }
 0x131   :  { %v2009_v50 = vpop.f32.mrf.mxu0 }
 0x132   :  { %v2073_v52 = vpop.f32.mrf.mxu1  ;;  %v2010_v21 = vadd.f32 %v2009_v50, %v2008_v48 }
 0x133   :  { %v2011_v53 = vpop.f32.mrf.mxu0  ;;  %v2074_v48 = vadd.f32 %v2073_v52, %v2072_v49 }
 0x134   :  { %v2075_v54 = vpop.f32.mrf.mxu1 }
 0x135   :  { %v2012_v55 = vpop.f32.mrf.mxu0 }
 0x136   :  { %v2076_v27 = vpop.f32.mrf.mxu1 }
 0x137   :  { %v2014_v57 = vpop.f32.mrf.mxu0 }
 0x138   :  { %v2863_v58 = vpop.f32.mrf.mxu1 }
 0x139   :  { %v2015_v60 = vpop.f32.mrf.mxu0 }
 0x13a   :  { %v2865_v61 = vpop.f32.mrf.mxu1  ;;  %v2016_v35 = vadd.f32 %v2015_v60, %v2014_v57 }
 0x13b   :  { %v2017_v62 = vpop.f32.mrf.mxu0  ;;  %v2899_v41 = vadd.f32 %v2865_v61, %v2863_v58 }
 0x13c   :  { %v2867_v63 = vpop.f32.mrf.mxu1 }
 0x13d   :  { %v2018_v0 = vpop.f32.mrf.mxu0 }
 0x13e   :  { %v2082_v2 = vpop.f32.mrf.mxu1  ;;  %v2019_v38 = vadd.f32 %v2018_v0, %v2017_v62 }
 0x13f   :  { %v2020_v4 = vpop.f32.mrf.mxu0  ;;  %v2083_v45 = vadd.f32 %v2082_v2, %v2867_v63 }
 0x140   :  { %v2869_v5 = vpop.f32.mrf.mxu1 }
 0x141   :  { %2963 = vst [vmem:[#allocation11_spill] sm:$0xff] %v2869_v5  ;;  %v2021_v6 = vpop.f32.mrf.mxu0 }
 0x142   :  { %v2871_v7 = vpop.f32.mrf.mxu1  ;;  %v2022_v46 = vadd.f32 %v2021_v6, %v2020_v4 }
 0x143   :  { %2964 = vst [vmem:[#allocation12_spill] sm:$0xff] %v2871_v7  ;;  %v2023_v8 = vpop.f32.mrf.mxu0  ;;  %v2013_v7 = vadd.f32 %v2012_v55, %v2011_v53  ;;  %v2077_v55 = vadd.f32 %v2076_v27, %v2075_v54  ;;  %v2971_v27 = vld [vmem:[#allocation5_spill] sm:$0xff] }
 0x144   :  { %v2873_v9 = vpop.f32.mrf.mxu1 }
 0x145   :  { %2965 = vst [vmem:[#allocation13_spill] sm:$0xff] %v2873_v9  ;;  %v2024_v12 = vpop.f32.mrf.mxu0  ;;  %v1291_v34 = vadd.f32 %v2013_v7, %v2821_v59 }
 0x146   :  { %v2088_v13 = vpop.f32.mrf.mxu1  ;;  %v2025_v50 = vadd.f32 %v2024_v12, %v2023_v8 }
 0x147   :  { %v2026_v14 = vpop.f32.mrf.mxu0  ;;  %v2895_v39 = vadd.f32 %v2077_v55, %v1291_v34  ;;  %v2981_v55 = vld [vmem:[#allocation7_spill] sm:$0xff] }
 0x148   :  { %v2090_v15 = vpop.f32.mrf.mxu1  ;;  %v1307_v49 = vadd.f32 %v2025_v50, %v2833_v29 }
 0x149   :  { %v2027_v16 = vpop.f32.mrf.mxu0 }
 0x14a   :  { %v2091_v17 = vpop.f32.mrf.mxu1  ;;  %v2028_v10 = vadd.f32 %v2027_v16, %v2026_v14 }
 0x14b   :  { %v2029_v19 = vpop.f32.mrf.mxu0  ;;  %v2092_v14 = vadd.f32 %v2091_v17, %v2090_v15 }
 0x14c   :  { %v2093_v22 = vpop.f32.mrf.mxu1  ;;  %v2972_v8 = vld [vmem:[#allocation13_spill] sm:$0xff] }
 0x14d   :  { %v2030_v23 = vpop.f32.mrf.mxu0  ;;  %v2089_v12 = vadd.f32 %v2088_v13, %v2972_v8 }
 0x14e   :  { %v2094_v24 = vpop.f32.mrf.mxu1  ;;  %v2031_v40 = vadd.f32 %v2030_v23, %v2029_v19  ;;  %v2973_v23 = vld [vmem:[#allocation3_spill] sm:$0xff] }
 0x14f   :  { %v2032_v25 = vpop.f32.mrf.mxu0  ;;  %v2095_v54 = vadd.f32 %v2094_v24, %v2093_v22  ;;  %v1404_v24 = vadd.f32 %v2089_v12, %v1307_v49 }
 0x150   :  { %v2096_v26 = vpop.f32.mrf.mxu1  ;;  %v1315_v59 = vadd.f32 %v2031_v40, %v2839_v47 }
 0x151   :  { %v2033_v28 = vpop.f32.mrf.mxu0 }
 0x152   :  { %v2097_v30 = vpop.f32.mrf.mxu1  ;;  %v2034_v62 = vadd.f32 %v2033_v28, %v2032_v25  ;;  %v1412_v29 = vadd.f32 %v2095_v54, %v1315_v59  ;;  %v1302_v25 = vadd.f32 %v2022_v46, %v2973_v23  ;;  %v2974_v28 = vld [vmem:[#allocation11_spill] sm:$0xff]  ;;  %v2982_v46 = vld [vmem:[#allocation9_spill] sm:$0xff] }
 0x153   :  { %v2035_v32 = vpop.f32.mrf.mxu0  ;;  %v2098_v63 = vadd.f32 %v2097_v30, %v2096_v26  ;;  %v2978_v30 = vld [vmem:[#allocation8_spill] sm:$0xff] }
 0x154   :  { %v2875_v33 = vpop.f32.mrf.mxu1  ;;  %v1318_v57 = vadd.f32 %v2034_v62, %v2971_v27 }
 0x155   :  { %2966 = vst [vmem:[#allocation14_spill] sm:$0xff] %v2875_v33  ;;  %v2036_v36 = vpop.f32.mrf.mxu0  ;;  %v1283_v33 = vadd.f32 %v2007_v42, %v2815_v43  ;;  %v1299_v43 = vadd.f32 %v2019_v38, %v2827_v11  ;;  %v2969_v38 = vld [vmem:[#allocation2_spill] sm:$0xff] }
 0x156   :  { %v2877_v37 = vpop.f32.mrf.mxu1  ;;  %v2904_v52 = vadd.f32 %v2016_v35, %v2969_v38  ;;  %v2037_v2 = vadd.f32 %v2036_v36, %v2035_v32  ;;  %v1415_v15 = vadd.f32 %v2098_v63, %v1318_v57 }
 0x157   :  { %2967 = vst [vmem:[#allocation15_spill] sm:$0xff] %v2877_v37  ;;  %v2038_v31 = vpop.f32.mrf.mxu0  ;;  %v1286_v37 = vadd.f32 %v2010_v21, %v2818_v51  ;;  %v1375_v51 = vadd.f32 %v2068_v44, %v1278_v56  ;;  %v1380_v7 = vadd.f32 %v2071_v18, %v1283_v33  ;;  %v2970_v56 = vld [vmem:[#allocation4_spill] sm:$0xff]  ;;  %v1396_v16 = vadd.f32 %v2083_v45, %v1299_v43 }
 0x158   :  { %v2879_v1 = vpop.f32.mrf.mxu1  ;;  %v1310_v47 = vadd.f32 %v2028_v10, %v2970_v56  ;;  %v2975_v33 = vld [vmem:[#allocation12_spill] sm:$0xff] }
 0x159   :  { %2968 = vst [vmem:[#allocation16_spill] sm:$0xff] %v2879_v1  ;;  %v2039_v5 = vpop.f32.mrf.mxu0  ;;  %v1383_v19 = vadd.f32 %v2074_v48, %v1286_v37  ;;  %v2086_v37 = vadd.f32 %v2975_v33, %v2974_v28  ;;  %v2980_v48 = vld [vmem:[#allocation6_spill] sm:$0xff] }
 0x15a   :  { %v2881_v20 = vpop.f32.mrf.mxu1  ;;  %v2040_v4 = vadd.f32 %v2039_v5, %v2038_v31  ;;  %v2979_v5 = vld [vmem:[#allocation10_spill] sm:$0xff]  ;;  %v1323_v50 = vadd.f32 %v2037_v2, %v2980_v48 }
 0x15b   :  { %v2041_v9 = vpop.f32.mrf.mxu0 }
 0x15c   :  { %v2884_v3 = vpop.f32.mrf.mxu1  ;;  %v1326_v35 = vadd.f32 %v2040_v4, %v2981_v55  ;;  %v1399_v4 = vadd.f32 %v2086_v37, %v1302_v25  ;;  %v1391_v25 = vadd.f32 %v2899_v41, %v2904_v52 }
 0x15d   :  { %v2042_v1 = vpop.f32.mrf.mxu0 }
 0x15e   :  { %v2106_v53 = vpop.f32.mrf.mxu1  ;;  %v2043_v58 = vadd.f32 %v2042_v1, %v2041_v9  ;;  %v1407_v1 = vadd.f32 %v2092_v14, %v1310_v47  ;;  %v2976_v9 = vld [vmem:[#allocation14_spill] sm:$0xff]  ;;  %v2977_v17 = vld [vmem:[#allocation15_spill] sm:$0xff] }
 0x15f   :  { %v2044_v0 = vpop.f32.mrf.mxu0  ;;  %v2101_v26 = vadd.f32 %v2977_v17, %v2976_v9  ;;  %v2107_v43 = vadd.f32 %v2106_v53, %v2884_v3 }
 0x160   :  { %v2892_v42 = vpop.f32.mrf.mxu1  ;;  %v1331_v31 = vadd.f32 %v2043_v58, %v2978_v30 }
 0x161   :  { %v2045_v21 = vpop.f32.mrf.mxu0  ;;  %v1420_v63 = vadd.f32 %v2101_v26, %v1323_v50 }
 0x162   :  { %v2109_v11 = vpop.f32.mrf.mxu1  ;;  %v2046_v40 = vadd.f32 %v2045_v21, %v2044_v0 }
 0x163   :  { %v2145_v60 = vpop.f32.mrf.mxu0  ;;  %v2110_v12 = vadd.f32 %v2109_v11, %v2892_v42 }
 0x164   :  { %v2153_v61 = vpop.f32.mrf.mxu1  ;;  %v1477_v22 = vadd.f32 %v2145_v60, %v1380_v7  ;;  %v1334_v49 = vadd.f32 %v2046_v40, %v2982_v46  ;;  %v1428_v60 = vadd.f32 %v2107_v43, %v1331_v31 }
 0x165   :  { %v1468_v6 = vpop.f32.mrf.mxu0  ;;  %v1509_v44 = vadd.f32 %v2153_v61, %v1412_v29  ;;  %v2983_v29 = vld [vmem:[#allocation16_spill] sm:$0xff] }
 0x166   :  { %v1500_v34 = vpop.f32.mrf.mxu1  ;;  %v1469_v32 = vadd.f32 %v1468_v6, %v2979_v5  ;;  %v1533_v59 = vmax.f32 %v1477_v22, 0.0  ;;  %v2104_v6 = vadd.f32 %v2881_v20, %v2983_v29  ;;  %v1431_v28 = vadd.f32 %v2110_v12, %v1334_v49 }
 0x167   :  { %v2146_v13 = vpop.f32.mrf.mxu0  ;;  %v1501_v10 = vadd.f32 %v1500_v34, %v1404_v24  ;;  %v1541_v38 = vmax.f32 %v1509_v44, 0.0 }
 0x168   :  { %v1480_v36 = vadd.f32 %v2146_v13, %v1383_v19  ;;  %v2154_v18 = vpop.f32.mrf.mxu1  ;;  %v1531_v54 = vmax.f32 %v1469_v32, 0.0  ;;  %v1423_v34 = vadd.f32 %v2104_v6, %v1326_v35 }
 0x169   :  { %v1512_v62 = vadd.f32 %v2154_v18, %v1415_v15  ;;  %v1471_v0 = vpop.f32.mrf.mxu0  ;;  %v1539_v14 = vmax.f32 %v1501_v10, 0.0 }
 0x16a   :  { %v1534_v21 = vmax.f32 %v1480_v36, 0.0  ;;  %v1472_v7 = vadd.f32 %v1471_v0, %v1375_v51  ;;  %v1503_v45 = vpop.f32.mrf.mxu1 }
 0x16b   :  { %v1542_v56 = vmax.f32 %v1512_v62, 0.0  ;;  %v1504_v47 = vadd.f32 %v1503_v45, %v1407_v1  ;;  %v2149_v19 = vpop.f32.mrf.mxu0 }
 0x16c   :  { %v1816_v27 = vpack.c.bf16 %v1534_v21, %v1533_v59  ;;  %v1532_v57 = vmax.f32 %v1472_v7, 0.0  ;;  %v2157_v8 = vpop.f32.mrf.mxu1  ;;  %v1493_v61 = vadd.f32 %v2149_v19, %v1396_v16 }
 0x16d   :  { %v1836_v58 = vpack.c.bf16 %v1542_v56, %v1541_v38  ;;  %v1540_v3 = vmax.f32 %v1504_v47, 0.0  ;;  %v1484_v53 = vpop.f32.mrf.mxu0  ;;  %v1525_v11 = vadd.f32 %v2157_v8, %v1428_v60 }
 0x16e   :  { %1848 = vst [vmem:[%s2953_s3 + $0x8] sm:$0xff] %v1816_v27   ;;  %v1811_v51 = vpack.c.bf16 %v1532_v57, %v1531_v54  ;;  %v1516_v2 = vpop.f32.mrf.mxu1  ;;  %v1485_v16 = vadd.f32 %v1484_v53, %v2895_v39  ;;  %v1537_v40 = vmax.f32 %v1493_v61, 0.0 }
 0x16f   :  { %1852 = vst [vmem:[%s2953_s3 + $0x28] sm:$0xff] %v1836_v58   ;;  %v1831_v42 = vpack.c.bf16 %v1540_v3, %v1539_v14  ;;  %v2150_v23 = vpop.f32.mrf.mxu0  ;;  %v1517_v20 = vadd.f32 %v1516_v2, %v1420_v63  ;;  %v1545_v1 = vmax.f32 %v1525_v11, 0.0 }
 0x170   :  { %1812 = vst [vmem:[%s2953_s3] sm:$0xff] %v1811_v51   ;;  %v1496_v33 = vadd.f32 %v2150_v23, %v1399_v4  ;;  %v2158_v22 = vpop.f32.mrf.mxu1  ;;  %v1535_v17 = vmax.f32 %v1485_v16, 0.0 }
 0x171   :  { %1851 = vst [vmem:[%s2953_s3 + $0x20] sm:$0xff] %v1831_v42   ;;  %v1528_v37 = vadd.f32 %v2158_v22, %v1431_v28  ;;  %v1487_v24 = vpop.f32.mrf.mxu0  ;;  %v1543_v31 = vmax.f32 %v1517_v20, 0.0 }
 0x172   :  { %v1538_v44 = vmax.f32 %v1496_v33, 0.0  ;;  %v1488_v13 = vadd.f32 %v1487_v24, %v1391_v25  ;;  %v1519_v15 = vpop.f32.mrf.mxu1 }
 0x173   :  { %v1546_v9 = vmax.f32 %v1528_v37, 0.0  ;;  %v1520_v39 = vadd.f32 %v1519_v15, %v1423_v34 }
 0x174   :  { %v1826_v26 = vpack.c.bf16 %v1538_v44, %v1537_v40  ;;  %v1536_v30 = vmax.f32 %v1488_v13, 0.0 }
 0x175   :  { %v1846_v41 = vpack.c.bf16 %v1546_v9, %v1545_v1  ;;  %v1544_v52 = vmax.f32 %v1520_v39, 0.0 }
 0x176   :  { %1850 = vst [vmem:[%s2953_s3 + $0x18] sm:$0xff] %v1826_v26   ;;  %v1821_v5 = vpack.c.bf16 %v1536_v30, %v1535_v17 }
 0x177   :  { %1854 = vst [vmem:[%s2953_s3 + $0x38] sm:$0xff] %v1846_v41   ;;  %v1841_v32 = vpack.c.bf16 %v1544_v52, %v1543_v31 }
 0x178   :  { %1849 = vst [vmem:[%s2953_s3 + $0x10] sm:$0xff] %v1821_v5  }
 0x179   :  { %1853 = vst [vmem:[%s2953_s3 + $0x30] sm:$0xff] %v1841_v32  }

// kernel: resnet_forward.27
= control target key start
LH: loop header
LB: loop body
LE: loop exit
PB: predicated region body
PF: predicated region fallthrough
CT: control target
= control target key end

     0   :  { %s1632_s1 = inlined_call_operand.vmem [shape: bf16[1152,128], index: 1, kind: input, shape index: {}]   ;;  %s1633_s0 = inlined_call_operand.vmem [shape: bf16[32,1152], index: 0, kind: input, shape index: {}]   ;;  %s1634_s2 = inlined_call_operand.vmem [shape: f32[1,128], index: 2, kind: input, shape index: {}]   ;;  %s1635_s3 = inlined_call_operand.vmem [shape: bf16[32,128], index: 3, kind: output, shape index: {}]  }
   0x1   :  { %v1235_v0 = vld [vmem:[%s1632_s1 + $0x78] sm:$0xff]   ;;  %v1239_v4 = vld [vmem:[%s1632_s1 + $0x70] sm:$0xff]   ;;  %v1243_v8 = vld [vmem:[%s1632_s1 + $0x68] sm:$0xff]  }
   0x2   :  { %v1236_v1 = vld [vmem:[%s1632_s1 + $0x38] sm:$0xff]   ;;  %1093 = vmatprep.subr.bf16.mxu0 %v1235_v0  ;;  %v1240_v5 = vld [vmem:[%s1632_s1 + $0x30] sm:$0xff]   ;;  %v1244_v9 = vld [vmem:[%s1632_s1 + $0x28] sm:$0xff]  }
   0x3   :  { %v1237_v2 = vld [vmem:[%s1632_s1 + $0xf8] sm:$0xff]   ;;  %1094 = vmatpush3.bf16.msra.mxu0 %v1236_v1  ;;  %v1241_v6 = vld [vmem:[%s1632_s1 + $0xf0] sm:$0xff]   ;;  %v1245_v10 = vld [vmem:[%s1632_s1 + $0xe8] sm:$0xff]  }
   0x4   :  { %v1238_v3 = vld [vmem:[%s1632_s1 + $0xb8] sm:$0xff]   ;;  %1121 = vmatprep.subr.bf16.mxu1 %v1237_v2  ;;  %1095 = vmatprep.subr.bf16.mxu0 %v1239_v4  ;;  %v1242_v7 = vld [vmem:[%s1632_s1 + $0xb0] sm:$0xff]   ;;  %v1246_v11 = vld [vmem:[%s1632_s1 + $0xa8] sm:$0xff]  }
   0x5   :  { %1122 = vmatpush3.bf16.msra.mxu1 %v1238_v3  ;;  %v1247_v12 = vld [vmem:[%s1632_s1 + $0x60] sm:$0xff]   ;;  %v1251_v16 = vld [vmem:[%s1632_s1 + $0x58] sm:$0xff]   ;;  %v1255_v20 = vld [vmem:[%s1632_s1 + $0x50] sm:$0xff]  }
   0x6   :  { %1123 = vmatprep.subr.bf16.mxu1 %v1241_v6  ;;  %v1248_v13 = vld [vmem:[%s1632_s1 + $0x20] sm:$0xff]   ;;  %v1252_v17 = vld [vmem:[%s1632_s1 + $0x18] sm:$0xff]   ;;  %v1256_v21 = vld [vmem:[%s1632_s1 + $0x10] sm:$0xff]  }
   0x7   :  { %1096 = vmatpush3.bf16.msra.mxu0 %v1240_v5  ;;  %v1249_v14 = vld [vmem:[%s1632_s1 + $0xe0] sm:$0xff]   ;;  %v1253_v18 = vld [vmem:[%s1632_s1 + $0xd8] sm:$0xff]   ;;  %v1257_v22 = vld [vmem:[%s1632_s1 + $0xd0] sm:$0xff]  }
   0x8   :  { %1097 = vmatprep.subr.bf16.mxu0 %v1243_v8  ;;  %v1250_v15 = vld [vmem:[%s1632_s1 + $0xa0] sm:$0xff]   ;;  %v1254_v19 = vld [vmem:[%s1632_s1 + $0x98] sm:$0xff]   ;;  %v1258_v23 = vld [vmem:[%s1632_s1 + $0x90] sm:$0xff]  }
   0x9   :  { %1124 = vmatpush3.bf16.msra.mxu1 %v1242_v7  ;;  %v1259_v24 = vld [vmem:[%s1632_s1 + $0x48] sm:$0xff]   ;;  %v1263_v28 = vld [vmem:[%s1632_s1 + $0x40] sm:$0xff]   ;;  %v1270_v34 = vld [vmem:[%s1632_s1 + $0x178] sm:$0xff]  }
   0xa   :  { %1125 = vmatprep.subr.bf16.mxu1 %v1245_v10  ;;  %v1260_v25 = vld [vmem:[%s1632_s1 + $0x8] sm:$0xff]   ;;  %v1264_v29 = vld [vmem:[%s1632_s1] sm:$0xff]   ;;  %v1274_v37 = vld [vmem:[%s1632_s1 + $0x138] sm:$0xff]  }
   0xb   :  { %1098 = vmatpush3.bf16.msra.mxu0 %v1244_v9  ;;  %v1261_v26 = vld [vmem:[%s1632_s1 + $0xc8] sm:$0xff]   ;;  %v1265_v30 = vld [vmem:[%s1632_s1 + $0xc0] sm:$0xff]   ;;  %v1275_v38 = vld [vmem:[%s1632_s1 + $0x1f8] sm:$0xff]  }
   0xc   :  { %1099 = vmatprep.subr.bf16.mxu0 %v1247_v12  ;;  %v1262_v27 = vld [vmem:[%s1632_s1 + $0x88] sm:$0xff]   ;;  %v1266_v31 = vld [vmem:[%s1633_s0] ss:$36 sps:$4 sm:$0xff]   ;;  %v1276_v39 = vld [vmem:[%s1632_s1 + $0x1b8] sm:$0xff]  }
   0xd   :  { %1126 = vmatpush3.bf16.msra.mxu1 %v1246_v11  ;;  %v1268_v32 = vld [vmem:[%s1633_s0 + $0x4] ss:$36 sps:$4 sm:$0xff]   ;;  %v1273_v36 = vld [vmem:[%s1633_s0 + $0xc] ss:$36 sps:$4 sm:$0xff]   ;;  %v1289_v52 = vld [vmem:[%s1632_s1 + $0x158] sm:$0xff]  }
   0xe   :  { %1127 = vmatprep.subr.bf16.mxu1 %v1249_v14  ;;  %v1269_v33 = vld [vmem:[%s1632_s1 + $0x80] sm:$0xff]   ;;  %742 = vmatprep.mubr.bf16.mxu0 %v1268_v32  ;;  %v1271_v35 = vld [vmem:[%s1633_s0 + $0x8] ss:$36 sps:$4 sm:$0xff]   ;;  %v1277_v40 = vld [vmem:[%s1632_s1 + $0x170] sm:$0xff]  }
   0xf   :  { %1100 = vmatpush3.bf16.msra.mxu0 %v1248_v13  ;;  %791 = vmatprep.mubr.bf16.mxu1 %v1273_v36  ;;  %v1278_v41 = vld [vmem:[%s1632_s1 + $0x130] sm:$0xff]   ;;  %v1281_v44 = vld [vmem:[%s1632_s1 + $0x168] sm:$0xff]   ;;  %v1285_v48 = vld [vmem:[%s1632_s1 + $0x160] sm:$0xff]  }
  0x10   :  { %1101 = vmatprep.subr.bf16.mxu0 %v1251_v16  ;;  %v1279_v42 = vld [vmem:[%s1632_s1 + $0x1f0] sm:$0xff]   ;;  %v1282_v45 = vld [vmem:[%s1632_s1 + $0x128] sm:$0xff]   ;;  %v1286_v49 = vld [vmem:[%s1632_s1 + $0x120] sm:$0xff]  }
  0x11   :  { %1128 = vmatpush3.bf16.msra.mxu1 %v1250_v15  ;;  %v1280_v43 = vld [vmem:[%s1632_s1 + $0x1b0] sm:$0xff]   ;;  %v1283_v46 = vld [vmem:[%s1632_s1 + $0x1e8] sm:$0xff]   ;;  %v1287_v50 = vld [vmem:[%s1632_s1 + $0x1e0] sm:$0xff]  }
  0x12   :  { %1129 = vmatprep.subr.bf16.mxu1 %v1253_v18  ;;  %v1284_v47 = vld [vmem:[%s1632_s1 + $0x1a8] sm:$0xff]   ;;  %v1288_v51 = vld [vmem:[%s1632_s1 + $0x1a0] sm:$0xff]   ;;  %v1290_v53 = vld [vmem:[%s1632_s1 + $0x118] sm:$0xff]  }
  0x13   :  { %1102 = vmatpush3.bf16.msra.mxu0 %v1252_v17  ;;  %v1291_v54 = vld [vmem:[%s1633_s0 + $0x4c] ss:$36 sps:$4 sm:$0xff]   ;;  %v1293_v55 = vld [vmem:[%s1632_s1 + $0x1d8] sm:$0xff]   ;;  %v1307_v4 = vld [vmem:[%s1632_s1 + $0x140] sm:$0xff]  }
  0x14   :  { %1103 = vmatprep.subr.bf16.mxu0 %v1255_v20  ;;  %v1294_v56 = vld [vmem:[%s1633_s0 + $0x48] ss:$36 sps:$4 sm:$0xff]   ;;  %v1295_v57 = vld [vmem:[%s1632_s1 + $0x198] sm:$0xff]   ;;  %v1298_v59 = vld [vmem:[%s1632_s1 + $0x150] sm:$0xff]  }
  0x15   :  { %1130 = vmatpush3.bf16.msra.mxu1 %v1254_v19  ;;  %v1296_v58 = vld [vmem:[%s1633_s0 + $0x54] ss:$36 sps:$4 sm:$0xff]   ;;  %v1303_v0 = vld [vmem:[%s1632_s1 + $0x148] sm:$0xff]   ;;  %v1308_v5 = vld [vmem:[%s1632_s1 + $0x100] sm:$0xff]  }
  0x16   :  { %1131 = vmatprep.subr.bf16.mxu1 %v1257_v22  ;;  %v1299_v60 = vld [vmem:[%s1633_s0 + $0x50] ss:$36 sps:$4 sm:$0xff]   ;;  %v1304_v1 = vld [vmem:[%s1632_s1 + $0x108] sm:$0xff]   ;;  %v1309_v6 = vld [vmem:[%s1632_s1 + $0x1c0] sm:$0xff]  }
  0x17   :  { %1104 = vmatpush3.bf16.msra.mxu0 %v1256_v21  ;;  %v1300_v61 = vld [vmem:[%s1632_s1 + $0x110] sm:$0xff]   ;;  %v1305_v2 = vld [vmem:[%s1632_s1 + $0x1c8] sm:$0xff]   ;;  %v1313_v9 = vld [vmem:[%s1632_s1 + $0x180] sm:$0xff]  }
  0x18   :  { %1105 = vmatprep.subr.bf16.mxu0 %v1259_v24  ;;  %v1301_v62 = vld [vmem:[%s1632_s1 + $0x1d0] sm:$0xff]   ;;  %v1306_v3 = vld [vmem:[%s1632_s1 + $0x188] sm:$0xff]   ;;  %v1314_v10 = vld [vmem:[%s1632_s1 + $0x238] sm:$0xff]  }
  0x19   :  { %1132 = vmatpush3.bf16.msra.mxu1 %v1258_v23  ;;  %v1302_v63 = vld [vmem:[%s1632_s1 + $0x190] sm:$0xff]   ;;  %v1315_v11 = vld [vmem:[%s1633_s0 + $0x18] ss:$36 sps:$4 sm:$0xff]   ;;  %v1322_v16 = vld [vmem:[%s1632_s1 + $0x228] sm:$0xff]  }
  0x1a   :  { %1133 = vmatprep.subr.bf16.mxu1 %v1261_v26  ;;  %v1310_v7 = vld [vmem:[%s1633_s0 + $0x10] ss:$36 sps:$4 sm:$0xff]   ;;  %v1317_v12 = vld [vmem:[%s1633_s0 + $0x1c] ss:$36 sps:$4 sm:$0xff]   ;;  %v1323_v17 = vld [vmem:[%s1633_s0 + $0x64] ss:$36 sps:$4 sm:$0xff]  }
  0x1b   :  { %1106 = vmatpush3.bf16.msra.mxu0 %v1260_v25  ;;  %v1312_v8 = vld [vmem:[%s1633_s0 + $0x14] ss:$36 sps:$4 sm:$0xff]   ;;  %v1319_v14 = vld [vmem:[%s1633_s0 + $0x5c] ss:$36 sps:$4 sm:$0xff]   ;;  %v1329_v23 = vld [vmem:[%s1632_s1 + $0x208] sm:$0xff]  }
  0x1c   :  { %1107 = vmatprep.subr.bf16.mxu0 %v1263_v28  ;;  %v1318_v13 = vld [vmem:[%s1632_s1 + $0x230] sm:$0xff]   ;;  %v1321_v15 = vld [vmem:[%s1633_s0 + $0x58] ss:$36 sps:$4 sm:$0xff]   ;;  %v1325_v18 = vld [vmem:[%s1633_s0 + $0x60] ss:$36 sps:$4 sm:$0xff]  }
  0x1d   :  { %1134 = vmatpush3.bf16.msra.mxu1 %v1262_v27  ;;  %v1326_v19 = vld [vmem:[%s1632_s1 + $0x220] sm:$0xff]   ;;  %v1327_v20 = vld [vmem:[%s1632_s1 + $0x218] sm:$0xff]   ;;  %v1328_v22 = vld [vmem:[%s1632_s1 + $0x210] sm:$0xff]  }
  0x1e   :  { %1135 = vmatprep.subr.bf16.mxu1 %v1265_v30  ;;  %v1331_v21 = vld [vmem:[%s1633_s0 + $0x20] ss:$36 sps:$4 sm:$0xff]   ;;  %v1332_v25 = vld [vmem:[%s1633_s0 + $0x68] ss:$36 sps:$4 sm:$0xff]  }
  0x1f   :  { %1108 = vmatpush3.bf16.msra.mxu0 %v1264_v29  ;;  %v1330_v24 = vld [vmem:[%s1632_s1 + $0x200] sm:$0xff]  }
  0x20   :  { %1149 = vmatprep.subr.bf16.mxu0 %v1270_v34 }
  0x21   :  { %1136 = vmatpush3.bf16.msra.mxu1 %v1269_v33 }
  0x22   :  { %743 = vmatmul.mubr.bf16.vlgmr.msra.gmra.mxu0 %v1266_v31  ;;  %1177 = vmatprep.subr.bf16.mxu1 %v1275_v38 }
  0x23   :  { %1150 = vmatpush3.bf16.msra.mxu0 %v1274_v37  ;;  %750 = vmatprep.mubr.bf16.mxu0 %v1291_v54 }
  0x24   :  { %792 = vmatmul.mubr.bf16.vlgmr.msra.gmra.mxu1 %v1271_v35  ;;  %1151 = vmatprep.subr.bf16.mxu0 %v1277_v40 }
  0x25   :  { %1178 = vmatpush3.bf16.msra.mxu1 %v1276_v39  ;;  %799 = vmatprep.mubr.bf16.mxu1 %v1296_v58 }
  0x26   :  { %1179 = vmatprep.subr.bf16.mxu1 %v1279_v42 }
  0x27   :  { %1152 = vmatpush3.bf16.msra.mxu0 %v1278_v41 }
  0x28   :  { %1153 = vmatprep.subr.bf16.mxu0 %v1281_v44 }
  0x29   :  { %1180 = vmatpush3.bf16.msra.mxu1 %v1280_v43 }
  0x2a   :  { %1181 = vmatprep.subr.bf16.mxu1 %v1283_v46  ;;  %751 = vmatmul.mubr.bf16.gmra.mxu0 %v1294_v56 }
  0x2b   :  { %1154 = vmatpush3.bf16.msra.mxu0 %v1282_v45  ;;  %840 = vmatprep.mubr.bf16.mxu0 %v1312_v8 }
  0x2c   :  { %1155 = vmatprep.subr.bf16.mxu0 %v1285_v48  ;;  %800 = vmatmul.mubr.bf16.gmra.mxu1 %v1299_v60 }
  0x2d   :  { %1182 = vmatpush3.bf16.msra.mxu1 %v1284_v47  ;;  %889 = vmatprep.mubr.bf16.mxu1 %v1317_v12 }
  0x2e   :  { %1183 = vmatprep.subr.bf16.mxu1 %v1287_v50 }
  0x2f   :  { %1156 = vmatpush3.bf16.msra.mxu0 %v1286_v49 }
  0x30   :  { %1157 = vmatprep.subr.bf16.mxu0 %v1289_v52 }
  0x31   :  { %1184 = vmatpush3.bf16.msra.mxu1 %v1288_v51 }
  0x32   :  { %1185 = vmatprep.subr.bf16.mxu1 %v1293_v55 }
  0x33   :  { %1158 = vmatpush3.bf16.msra.mxu0 %v1290_v53 }
  0x34   :  { %1159 = vmatprep.subr.bf16.mxu0 %v1298_v59 }
  0x35   :  { %1186 = vmatpush3.bf16.msra.mxu1 %v1295_v57  ;;  %v983_v57 = vld [vmem:[%s1634_s2] ss:$0 sm:$0xff] }
  0x36   :  { %1187 = vmatprep.subr.bf16.mxu1 %v1301_v62 }
  0x37   :  { %1160 = vmatpush3.bf16.msra.mxu0 %v1300_v61 }
  0x38   :  { %1161 = vmatprep.subr.bf16.mxu0 %v1303_v0 }
  0x39   :  { %1188 = vmatpush3.bf16.msra.mxu1 %v1302_v63 }
  0x3a   :  { %1189 = vmatprep.subr.bf16.mxu1 %v1305_v2 }
  0x3b   :  { %1162 = vmatpush3.bf16.msra.mxu0 %v1304_v1 }
  0x3c   :  { %1163 = vmatprep.subr.bf16.mxu0 %v1307_v4 }
  0x3d   :  { %1190 = vmatpush3.bf16.msra.mxu1 %v1306_v3 }
  0x3e   :  { %1191 = vmatprep.subr.bf16.mxu1 %v1309_v6 }
  0x3f   :  { %1164 = vmatpush3.bf16.msra.mxu0 %v1308_v5 }
  0x40   :  { %1215 = vmatprep.subr.bf16.mxu0 %v1314_v10 }
  0x41   :  { %1192 = vmatpush3.bf16.msra.mxu1 %v1313_v9 }
  0x42   :  { %841 = vmatmul.mubr.bf16.vlgmr.msra.gmra.mxu0 %v1310_v7 }
  0x43   :  { %1216 = vmatpush3.bf16.msra.mxu0 %v1314_v10  ;;  %848 = vmatprep.mubr.bf16.mxu0 %v1319_v14 }
  0x44   :  { %890 = vmatmul.mubr.bf16.vlgmr.msra.gmra.mxu1 %v1315_v11  ;;  %1217 = vmatprep.subr.bf16.mxu0 %v1318_v13 }
  0x45   :  { %897 = vmatprep.mubr.bf16.mxu1 %v1323_v17 }
  0x47   :  { %1218 = vmatpush3.bf16.msra.mxu0 %v1318_v13 }
  0x48   :  { %1219 = vmatprep.subr.bf16.mxu0 %v1322_v16 }
  0x4a   :  { %849 = vmatmul.mubr.bf16.gmra.mxu0 %v1321_v15 }
  0x4b   :  { %1220 = vmatpush3.bf16.msra.mxu0 %v1322_v16  ;;  %1231 = vmatprep.mubr.bf16.mxu0 %v1331_v21 }
  0x4c   :  { %898 = vmatmul.mubr.bf16.gmra.mxu1 %v1325_v18  ;;  %1221 = vmatprep.subr.bf16.mxu0 %v1326_v19 }
  0x4f   :  { %1222 = vmatpush3.bf16.msra.mxu0 %v1326_v19 }
  0x50   :  { %1223 = vmatprep.subr.bf16.mxu0 %v1327_v20 }
  0x53   :  { %1224 = vmatpush3.bf16.msra.mxu0 %v1327_v20 }
  0x54   :  { %1225 = vmatprep.subr.bf16.mxu0 %v1328_v22 }
  0x57   :  { %1226 = vmatpush3.bf16.msra.mxu0 %v1328_v22 }
  0x58   :  { %1227 = vmatprep.subr.bf16.mxu0 %v1329_v23 }
  0x5b   :  { %1228 = vmatpush3.bf16.msra.mxu0 %v1329_v23 }
  0x5c   :  { %1229 = vmatprep.subr.bf16.mxu0 %v1330_v24 }
  0x5f   :  { %1230 = vmatpush3.bf16.msra.mxu0 %v1330_v24 }
  0x62   :  { %1232 = vmatmul.mubr.bf16.vlgmr.msra.gmra.mxu0 %v1332_v25 }
  0xe2   :  { %v1109_v26 = vpop.f32.mrf.mxu0 }
  0xe4   :  { %v1137_v27 = vpop.f32.mrf.mxu1  ;;  %v1110_v28 = vpop.f32.mrf.mxu0 }
  0xe5   :  { %v1111_v54 = vadd.f32 %v1110_v28, %v1109_v26 }
  0xe6   :  { %v1138_v29 = vpop.f32.mrf.mxu1  ;;  %v1112_v30 = vpop.f32.mrf.mxu0 }
  0xe7   :  { %v745_v62 = vadd.f32 %v1111_v54, %v983_v57  ;;  %v1139_v63 = vadd.f32 %v1138_v29, %v1137_v27 }
  0xe8   :  { %v1140_v31 = vpop.f32.mrf.mxu1  ;;  %v1113_v32 = vpop.f32.mrf.mxu0 }
  0xe9   :  { %v1114_v59 = vadd.f32 %v1113_v32, %v1112_v30  ;;  %v794_v10 = vadd.f32 %v1139_v63, %v745_v62 }
  0xea   :  { %v1115_v33 = vpop.f32.mrf.mxu0  ;;  %v1141_v34 = vpop.f32.mrf.mxu1 }
  0xeb   :  { %v748_v5 = vadd.f32 %v1114_v59, %v983_v57  ;;  %v1142_v6 = vadd.f32 %v1141_v34, %v1140_v31 }
  0xec   :  { %v1143_v35 = vpop.f32.mrf.mxu1  ;;  %v1116_v36 = vpop.f32.mrf.mxu0 }
  0xed   :  { %v1117_v53 = vadd.f32 %v1116_v36, %v1115_v33  ;;  %v797_v16 = vadd.f32 %v1142_v6, %v748_v5 }
  0xee   :  { %v1144_v37 = vpop.f32.mrf.mxu1  ;;  %v1118_v38 = vpop.f32.mrf.mxu0 }
  0xef   :  { %v753_v60 = vadd.f32 %v1117_v53, %v983_v57  ;;  %v1145_v61 = vadd.f32 %v1144_v37, %v1143_v35 }
  0xf0   :  { %v1146_v39 = vpop.f32.mrf.mxu1  ;;  %v1119_v40 = vpop.f32.mrf.mxu0 }
  0xf1   :  { %v1120_v58 = vadd.f32 %v1119_v40, %v1118_v38  ;;  %v802_v7 = vadd.f32 %v1145_v61, %v753_v60 }
  0xf2   :  { %v1147_v42 = vpop.f32.mrf.mxu1 }
  0xf3   :  { %v756_v2 = vadd.f32 %v1120_v58, %v983_v57  ;;  %v1148_v3 = vadd.f32 %v1147_v42, %v1146_v39 }
  0xf5   :  { %v805_v12 = vadd.f32 %v1148_v3, %v756_v2 }
 0x102   :  { %v1165_v41 = vpop.f32.mrf.mxu0 }
 0x104   :  { %v1166_v43 = vpop.f32.mrf.mxu0  ;;  %v1193_v44 = vpop.f32.mrf.mxu1 }
 0x105   :  { %v1167_v8 = vadd.f32 %v1166_v43, %v1165_v41 }
 0x106   :  { %v1168_v45 = vpop.f32.mrf.mxu0  ;;  %v1194_v46 = vpop.f32.mrf.mxu1 }
 0x107   :  { %v843_v17 = vadd.f32 %v1167_v8, %v794_v10  ;;  %v1195_v18 = vadd.f32 %v1194_v46, %v1193_v44 }
 0x108   :  { %v1169_v47 = vpop.f32.mrf.mxu0  ;;  %v1196_v48 = vpop.f32.mrf.mxu1 }
 0x109   :  { %v1170_v13 = vadd.f32 %v1169_v47, %v1168_v45  ;;  %v892_v27 = vadd.f32 %v1195_v18, %v843_v17 }
 0x10a   :  { %v1171_v49 = vpop.f32.mrf.mxu0  ;;  %v1197_v50 = vpop.f32.mrf.mxu1 }
 0x10b   :  { %v846_v22 = vadd.f32 %v1170_v13, %v797_v16  ;;  %v1198_v23 = vadd.f32 %v1197_v50, %v1196_v48 }
 0x10c   :  { %v1172_v51 = vpop.f32.mrf.mxu0  ;;  %v1199_v52 = vpop.f32.mrf.mxu1 }
 0x10d   :  { %v1173_v4 = vadd.f32 %v1172_v51, %v1171_v49  ;;  %v895_v32 = vadd.f32 %v1198_v23, %v846_v22 }
 0x10e   :  { %v1174_v55 = vpop.f32.mrf.mxu0  ;;  %v1200_v56 = vpop.f32.mrf.mxu1 }
 0x10f   :  { %v851_v14 = vadd.f32 %v1173_v4, %v802_v7  ;;  %v1201_v15 = vadd.f32 %v1200_v56, %v1199_v52 }
 0x110   :  { %v1175_v0 = vpop.f32.mrf.mxu0  ;;  %v1202_v1 = vpop.f32.mrf.mxu1 }
 0x111   :  { %v1176_v9 = vadd.f32 %v1175_v0, %v1174_v55  ;;  %v900_v24 = vadd.f32 %v1201_v15, %v851_v14 }
 0x112   :  { %v1203_v11 = vpop.f32.mrf.mxu1 }
 0x113   :  { %v854_v19 = vadd.f32 %v1176_v9, %v805_v12  ;;  %v1204_v20 = vadd.f32 %v1203_v11, %v1202_v1 }
 0x115   :  { %v903_v28 = vadd.f32 %v1204_v20, %v854_v19 }
 0x122   :  { %v1233_v21 = vpop.f32.mrf.mxu0 }
 0x123   :  { %v949_v26 = vadd.f32 %v1233_v21, %v900_v24 }
 0x124   :  { %v940_v25 = vpop.f32.mrf.mxu0 }
 0x125   :  { %v941_v30 = vadd.f32 %v940_v25, %v892_v27  ;;  %v957_v34 = vmax.f32 %v949_v26, 0.0 }
 0x126   :  { %v1234_v29 = vpop.f32.mrf.mxu0 }
 0x127   :  { %v952_v31 = vadd.f32 %v1234_v29, %v903_v28  ;;  %v955_v37 = vmax.f32 %v941_v30, 0.0 }
 0x128   :  { %v943_v33 = vpop.f32.mrf.mxu0 }
 0x129   :  { %v958_v35 = vmax.f32 %v952_v31, 0.0  ;;  %v944_v36 = vadd.f32 %v943_v33, %v895_v32 }
 0x12b   :  { %v1090_v38 = vpack.c.bf16 %v958_v35, %v957_v34  ;;  %v956_v39 = vmax.f32 %v944_v36, 0.0 }
 0x12d   :  { %1092 = vst [vmem:[%s1635_s3 + $0x8] sm:$0xff] %v1090_v38   ;;  %v1085_v40 = vpack.c.bf16 %v956_v39, %v955_v37 }
 0x12f   :  { %1086 = vst [vmem:[%s1635_s3] sm:$0xff] %v1085_v40  }

// kernel: resnet_forward.28
= control target key start
LH: loop header
LB: loop body
LE: loop exit
PB: predicated region body
PF: predicated region fallthrough
CT: control target
= control target key end

     0   :  { %s304_s1 = inlined_call_operand.vmem [shape: bf16[128,128], index: 1, kind: input, shape index: {}]   ;;  %s305_s0 = inlined_call_operand.vmem [shape: bf16[32,128], index: 0, kind: input, shape index: {}]   ;;  %s306_s2 = inlined_call_operand.vmem [shape: f32[1,128], index: 2, kind: input, shape index: {}]   ;;  %s307_s3 = inlined_call_operand.vmem [shape: bf16[32,128], index: 3, kind: output, shape index: {}]  }
   0x1   :  { %v235_v0 = vld [vmem:[%s304_s1 + $0x38] sm:$0xff]   ;;  %v236_v1 = vld [vmem:[%s304_s1 + $0x30] sm:$0xff]   ;;  %v237_v2 = vld [vmem:[%s304_s1 + $0x28] sm:$0xff]  }
   0x2   :  { %215 = vmatprep.subr.bf16.mxu0 %v235_v0  ;;  %v238_v3 = vld [vmem:[%s304_s1 + $0x20] sm:$0xff]   ;;  %v239_v5 = vld [vmem:[%s304_s1 + $0x18] sm:$0xff]   ;;  %v240_v6 = vld [vmem:[%s304_s1 + $0x10] sm:$0xff]  }
   0x3   :  { %216 = vmatpush3.bf16.msra.mxu0 %v235_v0  ;;  %v243_v4 = vld [vmem:[%s305_s0] sm:$0xff]   ;;  %v241_v7 = vld [vmem:[%s304_s1 + $0x8] sm:$0xff]  }
   0x4   :  { %217 = vmatprep.subr.bf16.mxu0 %v236_v1  ;;  %231 = vmatprep.mubr.bf16.mxu0 %v243_v4  ;;  %v242_v8 = vld [vmem:[%s304_s1] sm:$0xff]   ;;  %v244_v9 = vld [vmem:[%s305_s0 + $0x8] sm:$0xff]  }
   0x5   :  { %v175_v11 = vld [vmem:[%s306_s2] ss:$0 sm:$0xff] }
   0x7   :  { %218 = vmatpush3.bf16.msra.mxu0 %v236_v1 }
   0x8   :  { %219 = vmatprep.subr.bf16.mxu0 %v237_v2 }
   0xb   :  { %220 = vmatpush3.bf16.msra.mxu0 %v237_v2 }
   0xc   :  { %221 = vmatprep.subr.bf16.mxu0 %v238_v3 }
   0xf   :  { %222 = vmatpush3.bf16.msra.mxu0 %v238_v3 }
  0x10   :  { %223 = vmatprep.subr.bf16.mxu0 %v239_v5 }
  0x13   :  { %224 = vmatpush3.bf16.msra.mxu0 %v239_v5 }
  0x14   :  { %225 = vmatprep.subr.bf16.mxu0 %v240_v6 }
  0x17   :  { %226 = vmatpush3.bf16.msra.mxu0 %v240_v6 }
  0x18   :  { %227 = vmatprep.subr.bf16.mxu0 %v241_v7 }
  0x1b   :  { %228 = vmatpush3.bf16.msra.mxu0 %v241_v7 }
  0x1c   :  { %229 = vmatprep.subr.bf16.mxu0 %v242_v8 }
  0x1f   :  { %230 = vmatpush3.bf16.msra.mxu0 %v242_v8 }
  0x22   :  { %232 = vmatmul.mubr.bf16.vlgmr.msra.gmra.mxu0 %v244_v9 }
  0xe2   :  { %v233_v10 = vpop.f32.mrf.mxu0 }
  0xe3   :  { %v145_v14 = vadd.f32 %v233_v10, %v175_v11 }
  0xe4   :  { %v136_v12 = vpop.f32.mrf.mxu0 }
  0xe5   :  { %v137_v17 = vadd.f32 %v175_v11, %v136_v12 }
  0xe6   :  { %v234_v13 = vpop.f32.mrf.mxu0 }
  0xe7   :  { %v148_v15 = vadd.f32 %v234_v13, %v175_v11 }
  0xe8   :  { %v139_v16 = vpop.f32.mrf.mxu0 }
  0xe9   :  { %v202_v18 = vpack.c.bf16 %v148_v15, %v145_v14  ;;  %v140_v19 = vadd.f32 %v175_v11, %v139_v16 }
  0xeb   :  { %204 = vst [vmem:[%s307_s3 + $0x8] sm:$0xff] %v202_v18   ;;  %v197_v20 = vpack.c.bf16 %v140_v19, %v137_v17 }
  0xed   :  { %198 = vst [vmem:[%s307_s3] sm:$0xff] %v197_v20  }

// kernel: resnet_forward.29
= control target key start
LH: loop header
LB: loop body
LE: loop exit
PB: predicated region body
PF: predicated region fallthrough
CT: control target
= control target key end

     0   :  { %s1667_s1 = inlined_call_operand.vmem [shape: bf16[1152,128], index: 1, kind: input, shape index: {}]   ;;  %s1668_s0 = inlined_call_operand.vmem [shape: bf16[32,1152], index: 0, kind: input, shape index: {}]   ;;  %s1669_s2 = inlined_call_operand.vmem [shape: f32[1,128], index: 2, kind: input, shape index: {}]   ;;  %s1670_s3 = inlined_call_operand.vmem [shape: bf16[32,128], index: 3, kind: input, shape index: {}]   ;;  %s1671_s4 = inlined_call_operand.vmem [shape: bf16[32,128], index: 4, kind: output, shape index: {}]  }
   0x1   :  { %v1259_v0 = vld [vmem:[%s1667_s1 + $0x78] sm:$0xff]   ;;  %v1263_v4 = vld [vmem:[%s1667_s1 + $0x70] sm:$0xff]   ;;  %v1267_v8 = vld [vmem:[%s1667_s1 + $0x68] sm:$0xff]  }
   0x2   :  { %v1260_v1 = vld [vmem:[%s1667_s1 + $0x38] sm:$0xff]   ;;  %1117 = vmatprep.subr.bf16.mxu0 %v1259_v0  ;;  %v1264_v5 = vld [vmem:[%s1667_s1 + $0x30] sm:$0xff]   ;;  %v1268_v9 = vld [vmem:[%s1667_s1 + $0x28] sm:$0xff]  }
   0x3   :  { %v1261_v2 = vld [vmem:[%s1667_s1 + $0xf8] sm:$0xff]   ;;  %1118 = vmatpush3.bf16.msra.mxu0 %v1260_v1  ;;  %v1265_v6 = vld [vmem:[%s1667_s1 + $0xf0] sm:$0xff]   ;;  %v1269_v10 = vld [vmem:[%s1667_s1 + $0xe8] sm:$0xff]  }
   0x4   :  { %v1262_v3 = vld [vmem:[%s1667_s1 + $0xb8] sm:$0xff]   ;;  %1145 = vmatprep.subr.bf16.mxu1 %v1261_v2  ;;  %1119 = vmatprep.subr.bf16.mxu0 %v1263_v4  ;;  %v1266_v7 = vld [vmem:[%s1667_s1 + $0xb0] sm:$0xff]   ;;  %v1270_v11 = vld [vmem:[%s1667_s1 + $0xa8] sm:$0xff]  }
   0x5   :  { %1146 = vmatpush3.bf16.msra.mxu1 %v1262_v3  ;;  %v1271_v12 = vld [vmem:[%s1667_s1 + $0x60] sm:$0xff]   ;;  %v1275_v16 = vld [vmem:[%s1667_s1 + $0x58] sm:$0xff]   ;;  %v1279_v20 = vld [vmem:[%s1667_s1 + $0x50] sm:$0xff]  }
   0x6   :  { %1147 = vmatprep.subr.bf16.mxu1 %v1265_v6  ;;  %v1272_v13 = vld [vmem:[%s1667_s1 + $0x20] sm:$0xff]   ;;  %v1276_v17 = vld [vmem:[%s1667_s1 + $0x18] sm:$0xff]   ;;  %v1280_v21 = vld [vmem:[%s1667_s1 + $0x10] sm:$0xff]  }
   0x7   :  { %1120 = vmatpush3.bf16.msra.mxu0 %v1264_v5  ;;  %v1273_v14 = vld [vmem:[%s1667_s1 + $0xe0] sm:$0xff]   ;;  %v1277_v18 = vld [vmem:[%s1667_s1 + $0xd8] sm:$0xff]   ;;  %v1281_v22 = vld [vmem:[%s1667_s1 + $0xd0] sm:$0xff]  }
   0x8   :  { %1121 = vmatprep.subr.bf16.mxu0 %v1267_v8  ;;  %v1274_v15 = vld [vmem:[%s1667_s1 + $0xa0] sm:$0xff]   ;;  %v1278_v19 = vld [vmem:[%s1667_s1 + $0x98] sm:$0xff]   ;;  %v1282_v23 = vld [vmem:[%s1667_s1 + $0x90] sm:$0xff]  }
   0x9   :  { %1148 = vmatpush3.bf16.msra.mxu1 %v1266_v7  ;;  %v1283_v24 = vld [vmem:[%s1667_s1 + $0x48] sm:$0xff]   ;;  %v1287_v28 = vld [vmem:[%s1667_s1 + $0x40] sm:$0xff]   ;;  %v1294_v34 = vld [vmem:[%s1667_s1 + $0x178] sm:$0xff]  }
   0xa   :  { %1149 = vmatprep.subr.bf16.mxu1 %v1269_v10  ;;  %v1284_v25 = vld [vmem:[%s1667_s1 + $0x8] sm:$0xff]   ;;  %v1288_v29 = vld [vmem:[%s1667_s1] sm:$0xff]   ;;  %v1298_v37 = vld [vmem:[%s1667_s1 + $0x138] sm:$0xff]  }
   0xb   :  { %1122 = vmatpush3.bf16.msra.mxu0 %v1268_v9  ;;  %v1285_v26 = vld [vmem:[%s1667_s1 + $0xc8] sm:$0xff]   ;;  %v1289_v30 = vld [vmem:[%s1667_s1 + $0xc0] sm:$0xff]   ;;  %v1299_v38 = vld [vmem:[%s1667_s1 + $0x1f8] sm:$0xff]  }
   0xc   :  { %1123 = vmatprep.subr.bf16.mxu0 %v1271_v12  ;;  %v1286_v27 = vld [vmem:[%s1667_s1 + $0x88] sm:$0xff]   ;;  %v1290_v31 = vld [vmem:[%s1668_s0] ss:$36 sps:$4 sm:$0xff]   ;;  %v1300_v39 = vld [vmem:[%s1667_s1 + $0x1b8] sm:$0xff]  }
   0xd   :  { %1150 = vmatpush3.bf16.msra.mxu1 %v1270_v11  ;;  %v1292_v32 = vld [vmem:[%s1668_s0 + $0x4] ss:$36 sps:$4 sm:$0xff]   ;;  %v1297_v36 = vld [vmem:[%s1668_s0 + $0xc] ss:$36 sps:$4 sm:$0xff]   ;;  %v1313_v52 = vld [vmem:[%s1667_s1 + $0x158] sm:$0xff]  }
   0xe   :  { %1151 = vmatprep.subr.bf16.mxu1 %v1273_v14  ;;  %v1293_v33 = vld [vmem:[%s1667_s1 + $0x80] sm:$0xff]   ;;  %745 = vmatprep.mubr.bf16.mxu0 %v1292_v32  ;;  %v1295_v35 = vld [vmem:[%s1668_s0 + $0x8] ss:$36 sps:$4 sm:$0xff]   ;;  %v1301_v40 = vld [vmem:[%s1667_s1 + $0x170] sm:$0xff]  }
   0xf   :  { %1124 = vmatpush3.bf16.msra.mxu0 %v1272_v13  ;;  %794 = vmatprep.mubr.bf16.mxu1 %v1297_v36  ;;  %v1302_v41 = vld [vmem:[%s1667_s1 + $0x130] sm:$0xff]   ;;  %v1305_v44 = vld [vmem:[%s1667_s1 + $0x168] sm:$0xff]   ;;  %v1309_v48 = vld [vmem:[%s1667_s1 + $0x160] sm:$0xff]  }
  0x10   :  { %1125 = vmatprep.subr.bf16.mxu0 %v1275_v16  ;;  %v1303_v42 = vld [vmem:[%s1667_s1 + $0x1f0] sm:$0xff]   ;;  %v1306_v45 = vld [vmem:[%s1667_s1 + $0x128] sm:$0xff]   ;;  %v1310_v49 = vld [vmem:[%s1667_s1 + $0x120] sm:$0xff]  }
  0x11   :  { %1152 = vmatpush3.bf16.msra.mxu1 %v1274_v15  ;;  %v1304_v43 = vld [vmem:[%s1667_s1 + $0x1b0] sm:$0xff]   ;;  %v1307_v46 = vld [vmem:[%s1667_s1 + $0x1e8] sm:$0xff]   ;;  %v1311_v50 = vld [vmem:[%s1667_s1 + $0x1e0] sm:$0xff]  }
  0x12   :  { %1153 = vmatprep.subr.bf16.mxu1 %v1277_v18  ;;  %v1308_v47 = vld [vmem:[%s1667_s1 + $0x1a8] sm:$0xff]   ;;  %v1312_v51 = vld [vmem:[%s1667_s1 + $0x1a0] sm:$0xff]   ;;  %v1314_v53 = vld [vmem:[%s1667_s1 + $0x118] sm:$0xff]  }
  0x13   :  { %1126 = vmatpush3.bf16.msra.mxu0 %v1276_v17  ;;  %v1315_v54 = vld [vmem:[%s1668_s0 + $0x4c] ss:$36 sps:$4 sm:$0xff]   ;;  %v1317_v55 = vld [vmem:[%s1667_s1 + $0x1d8] sm:$0xff]   ;;  %v1331_v4 = vld [vmem:[%s1667_s1 + $0x140] sm:$0xff]  }
  0x14   :  { %1127 = vmatprep.subr.bf16.mxu0 %v1279_v20  ;;  %v1318_v56 = vld [vmem:[%s1668_s0 + $0x48] ss:$36 sps:$4 sm:$0xff]   ;;  %v1319_v57 = vld [vmem:[%s1667_s1 + $0x198] sm:$0xff]   ;;  %v1322_v59 = vld [vmem:[%s1667_s1 + $0x150] sm:$0xff]  }
  0x15   :  { %1154 = vmatpush3.bf16.msra.mxu1 %v1278_v19  ;;  %v1320_v58 = vld [vmem:[%s1668_s0 + $0x54] ss:$36 sps:$4 sm:$0xff]   ;;  %v1327_v0 = vld [vmem:[%s1667_s1 + $0x148] sm:$0xff]   ;;  %v1332_v5 = vld [vmem:[%s1667_s1 + $0x100] sm:$0xff]  }
  0x16   :  { %1155 = vmatprep.subr.bf16.mxu1 %v1281_v22  ;;  %v1323_v60 = vld [vmem:[%s1668_s0 + $0x50] ss:$36 sps:$4 sm:$0xff]   ;;  %v1328_v1 = vld [vmem:[%s1667_s1 + $0x108] sm:$0xff]   ;;  %v1333_v6 = vld [vmem:[%s1667_s1 + $0x1c0] sm:$0xff]  }
  0x17   :  { %1128 = vmatpush3.bf16.msra.mxu0 %v1280_v21  ;;  %v1324_v61 = vld [vmem:[%s1667_s1 + $0x110] sm:$0xff]   ;;  %v1329_v2 = vld [vmem:[%s1667_s1 + $0x1c8] sm:$0xff]   ;;  %v1337_v9 = vld [vmem:[%s1667_s1 + $0x180] sm:$0xff]  }
  0x18   :  { %1129 = vmatprep.subr.bf16.mxu0 %v1283_v24  ;;  %v1325_v62 = vld [vmem:[%s1667_s1 + $0x1d0] sm:$0xff]   ;;  %v1330_v3 = vld [vmem:[%s1667_s1 + $0x188] sm:$0xff]   ;;  %v1338_v10 = vld [vmem:[%s1667_s1 + $0x238] sm:$0xff]  }
  0x19   :  { %1156 = vmatpush3.bf16.msra.mxu1 %v1282_v23  ;;  %v1326_v63 = vld [vmem:[%s1667_s1 + $0x190] sm:$0xff]   ;;  %v1339_v11 = vld [vmem:[%s1668_s0 + $0x18] ss:$36 sps:$4 sm:$0xff]   ;;  %v1346_v16 = vld [vmem:[%s1667_s1 + $0x228] sm:$0xff]  }
  0x1a   :  { %1157 = vmatprep.subr.bf16.mxu1 %v1285_v26  ;;  %v1334_v7 = vld [vmem:[%s1668_s0 + $0x10] ss:$36 sps:$4 sm:$0xff]   ;;  %v1341_v12 = vld [vmem:[%s1668_s0 + $0x1c] ss:$36 sps:$4 sm:$0xff]   ;;  %v1347_v17 = vld [vmem:[%s1668_s0 + $0x64] ss:$36 sps:$4 sm:$0xff]  }
  0x1b   :  { %1130 = vmatpush3.bf16.msra.mxu0 %v1284_v25  ;;  %v1336_v8 = vld [vmem:[%s1668_s0 + $0x14] ss:$36 sps:$4 sm:$0xff]   ;;  %v1343_v14 = vld [vmem:[%s1668_s0 + $0x5c] ss:$36 sps:$4 sm:$0xff]   ;;  %v1353_v23 = vld [vmem:[%s1667_s1 + $0x208] sm:$0xff]  }
  0x1c   :  { %1131 = vmatprep.subr.bf16.mxu0 %v1287_v28  ;;  %v1342_v13 = vld [vmem:[%s1667_s1 + $0x230] sm:$0xff]   ;;  %v1345_v15 = vld [vmem:[%s1668_s0 + $0x58] ss:$36 sps:$4 sm:$0xff]   ;;  %v1349_v18 = vld [vmem:[%s1668_s0 + $0x60] ss:$36 sps:$4 sm:$0xff]  }
  0x1d   :  { %1158 = vmatpush3.bf16.msra.mxu1 %v1286_v27  ;;  %v1350_v19 = vld [vmem:[%s1667_s1 + $0x220] sm:$0xff]   ;;  %v1351_v20 = vld [vmem:[%s1667_s1 + $0x218] sm:$0xff]   ;;  %v1352_v22 = vld [vmem:[%s1667_s1 + $0x210] sm:$0xff]  }
  0x1e   :  { %1159 = vmatprep.subr.bf16.mxu1 %v1289_v30  ;;  %v1355_v21 = vld [vmem:[%s1668_s0 + $0x20] ss:$36 sps:$4 sm:$0xff]   ;;  %v1356_v25 = vld [vmem:[%s1668_s0 + $0x68] ss:$36 sps:$4 sm:$0xff]  }
  0x1f   :  { %1132 = vmatpush3.bf16.msra.mxu0 %v1288_v29  ;;  %v1354_v24 = vld [vmem:[%s1667_s1 + $0x200] sm:$0xff]  }
  0x20   :  { %1173 = vmatprep.subr.bf16.mxu0 %v1294_v34 }
  0x21   :  { %1160 = vmatpush3.bf16.msra.mxu1 %v1293_v33 }
  0x22   :  { %746 = vmatmul.mubr.bf16.vlgmr.msra.gmra.mxu0 %v1290_v31  ;;  %1201 = vmatprep.subr.bf16.mxu1 %v1299_v38 }
  0x23   :  { %1174 = vmatpush3.bf16.msra.mxu0 %v1298_v37  ;;  %753 = vmatprep.mubr.bf16.mxu0 %v1315_v54 }
  0x24   :  { %795 = vmatmul.mubr.bf16.vlgmr.msra.gmra.mxu1 %v1295_v35  ;;  %1175 = vmatprep.subr.bf16.mxu0 %v1301_v40 }
  0x25   :  { %1202 = vmatpush3.bf16.msra.mxu1 %v1300_v39  ;;  %802 = vmatprep.mubr.bf16.mxu1 %v1320_v58 }
  0x26   :  { %1203 = vmatprep.subr.bf16.mxu1 %v1303_v42 }
  0x27   :  { %1176 = vmatpush3.bf16.msra.mxu0 %v1302_v41 }
  0x28   :  { %1177 = vmatprep.subr.bf16.mxu0 %v1305_v44 }
  0x29   :  { %1204 = vmatpush3.bf16.msra.mxu1 %v1304_v43 }
  0x2a   :  { %1205 = vmatprep.subr.bf16.mxu1 %v1307_v46  ;;  %754 = vmatmul.mubr.bf16.gmra.mxu0 %v1318_v56 }
  0x2b   :  { %1178 = vmatpush3.bf16.msra.mxu0 %v1306_v45  ;;  %843 = vmatprep.mubr.bf16.mxu0 %v1336_v8 }
  0x2c   :  { %1179 = vmatprep.subr.bf16.mxu0 %v1309_v48  ;;  %803 = vmatmul.mubr.bf16.gmra.mxu1 %v1323_v60 }
  0x2d   :  { %1206 = vmatpush3.bf16.msra.mxu1 %v1308_v47  ;;  %892 = vmatprep.mubr.bf16.mxu1 %v1341_v12 }
  0x2e   :  { %1207 = vmatprep.subr.bf16.mxu1 %v1311_v50 }
  0x2f   :  { %1180 = vmatpush3.bf16.msra.mxu0 %v1310_v49 }
  0x30   :  { %1181 = vmatprep.subr.bf16.mxu0 %v1313_v52 }
  0x31   :  { %1208 = vmatpush3.bf16.msra.mxu1 %v1312_v51 }
  0x32   :  { %1209 = vmatprep.subr.bf16.mxu1 %v1317_v55  ;;  %v998_v55 = vld [vmem:[%s1669_s2] ss:$0 sm:$0xff] }
  0x33   :  { %1182 = vmatpush3.bf16.msra.mxu0 %v1314_v53 }
  0x34   :  { %1183 = vmatprep.subr.bf16.mxu0 %v1322_v59 }
  0x35   :  { %1210 = vmatpush3.bf16.msra.mxu1 %v1319_v57 }
  0x36   :  { %1211 = vmatprep.subr.bf16.mxu1 %v1325_v62 }
  0x37   :  { %1184 = vmatpush3.bf16.msra.mxu0 %v1324_v61 }
  0x38   :  { %1185 = vmatprep.subr.bf16.mxu0 %v1327_v0 }
  0x39   :  { %1212 = vmatpush3.bf16.msra.mxu1 %v1326_v63 }
  0x3a   :  { %1213 = vmatprep.subr.bf16.mxu1 %v1329_v2 }
  0x3b   :  { %1186 = vmatpush3.bf16.msra.mxu0 %v1328_v1 }
  0x3c   :  { %1187 = vmatprep.subr.bf16.mxu0 %v1331_v4 }
  0x3d   :  { %1214 = vmatpush3.bf16.msra.mxu1 %v1330_v3 }
  0x3e   :  { %1215 = vmatprep.subr.bf16.mxu1 %v1333_v6 }
  0x3f   :  { %1188 = vmatpush3.bf16.msra.mxu0 %v1332_v5 }
  0x40   :  { %1239 = vmatprep.subr.bf16.mxu0 %v1338_v10 }
  0x41   :  { %1216 = vmatpush3.bf16.msra.mxu1 %v1337_v9 }
  0x42   :  { %844 = vmatmul.mubr.bf16.vlgmr.msra.gmra.mxu0 %v1334_v7 }
  0x43   :  { %1240 = vmatpush3.bf16.msra.mxu0 %v1338_v10  ;;  %851 = vmatprep.mubr.bf16.mxu0 %v1343_v14 }
  0x44   :  { %893 = vmatmul.mubr.bf16.vlgmr.msra.gmra.mxu1 %v1339_v11  ;;  %1241 = vmatprep.subr.bf16.mxu0 %v1342_v13 }
  0x45   :  { %900 = vmatprep.mubr.bf16.mxu1 %v1347_v17 }
  0x47   :  { %1242 = vmatpush3.bf16.msra.mxu0 %v1342_v13 }
  0x48   :  { %1243 = vmatprep.subr.bf16.mxu0 %v1346_v16 }
  0x4a   :  { %852 = vmatmul.mubr.bf16.gmra.mxu0 %v1345_v15 }
  0x4b   :  { %1244 = vmatpush3.bf16.msra.mxu0 %v1346_v16  ;;  %1255 = vmatprep.mubr.bf16.mxu0 %v1355_v21 }
  0x4c   :  { %901 = vmatmul.mubr.bf16.gmra.mxu1 %v1349_v18  ;;  %1245 = vmatprep.subr.bf16.mxu0 %v1350_v19  ;;  %v1115_v18 = vld [vmem:[%s1670_s3 + $0x8] sm:$0xff]  }
  0x4f   :  { %1246 = vmatpush3.bf16.msra.mxu0 %v1350_v19 }
  0x50   :  { %1247 = vmatprep.subr.bf16.mxu0 %v1351_v20 }
  0x53   :  { %1248 = vmatpush3.bf16.msra.mxu0 %v1351_v20 }
  0x54   :  { %1249 = vmatprep.subr.bf16.mxu0 %v1352_v22 }
  0x57   :  { %1250 = vmatpush3.bf16.msra.mxu0 %v1352_v22 }
  0x58   :  { %1251 = vmatprep.subr.bf16.mxu0 %v1353_v23 }
  0x5b   :  { %1252 = vmatpush3.bf16.msra.mxu0 %v1353_v23 }
  0x5c   :  { %1253 = vmatprep.subr.bf16.mxu0 %v1354_v24 }
  0x5f   :  { %1254 = vmatpush3.bf16.msra.mxu0 %v1354_v24  ;;  %v1103_v24 = vunpack.c.l.bf16 %v1115_v18 }
  0x62   :  { %1256 = vmatmul.mubr.bf16.vlgmr.msra.gmra.mxu0 %v1356_v25  ;;  %v1098_v25 = vld [vmem:[%s1670_s3] sm:$0xff]  }
  0xe2   :  { %v1133_v26 = vpop.f32.mrf.mxu0 }
  0xe4   :  { %v1161_v27 = vpop.f32.mrf.mxu1  ;;  %v1134_v28 = vpop.f32.mrf.mxu0 }
  0xe5   :  { %v1135_v54 = vadd.f32 %v1134_v28, %v1133_v26 }
  0xe6   :  { %v1162_v29 = vpop.f32.mrf.mxu1  ;;  %v1136_v30 = vpop.f32.mrf.mxu0 }
  0xe7   :  { %v748_v61 = vadd.f32 %v1135_v54, %v998_v55  ;;  %v1163_v62 = vadd.f32 %v1162_v29, %v1161_v27 }
  0xe8   :  { %v1164_v31 = vpop.f32.mrf.mxu1  ;;  %v1137_v32 = vpop.f32.mrf.mxu0 }
  0xe9   :  { %v1138_v63 = vadd.f32 %v1137_v32, %v1136_v30  ;;  %v797_v7 = vadd.f32 %v1163_v62, %v748_v61  ;;  %v1099_v32 = vunpack.c.l.bf16 %v1098_v25 }
  0xea   :  { %v1139_v33 = vpop.f32.mrf.mxu0  ;;  %v1165_v34 = vpop.f32.mrf.mxu1 }
  0xeb   :  { %v751_v8 = vadd.f32 %v1138_v63, %v998_v55  ;;  %v1166_v9 = vadd.f32 %v1165_v34, %v1164_v31  ;;  %v1104_v34 = vunpack.c.h.bf16 %v1115_v18 }
  0xec   :  { %v1167_v35 = vpop.f32.mrf.mxu1  ;;  %v1140_v36 = vpop.f32.mrf.mxu0 }
  0xed   :  { %v1141_v53 = vadd.f32 %v1140_v36, %v1139_v33  ;;  %v800_v19 = vadd.f32 %v1166_v9, %v751_v8 }
  0xee   :  { %v1168_v37 = vpop.f32.mrf.mxu1  ;;  %v1142_v38 = vpop.f32.mrf.mxu0 }
  0xef   :  { %v756_v58 = vadd.f32 %v1141_v53, %v998_v55  ;;  %v1169_v59 = vadd.f32 %v1168_v37, %v1167_v35 }
  0xf0   :  { %v1170_v39 = vpop.f32.mrf.mxu1  ;;  %v1143_v40 = vpop.f32.mrf.mxu0 }
  0xf1   :  { %v1144_v60 = vadd.f32 %v1143_v40, %v1142_v38  ;;  %v805_v3 = vadd.f32 %v1169_v59, %v756_v58 }
  0xf2   :  { %v1171_v42 = vpop.f32.mrf.mxu1 }
  0xf3   :  { %v759_v4 = vadd.f32 %v1144_v60, %v998_v55  ;;  %v1172_v5 = vadd.f32 %v1171_v42, %v1170_v39  ;;  %v1100_v39 = vunpack.c.h.bf16 %v1098_v25 }
  0xf5   :  { %v808_v14 = vadd.f32 %v1172_v5, %v759_v4 }
 0x102   :  { %v1189_v41 = vpop.f32.mrf.mxu0 }
 0x104   :  { %v1190_v43 = vpop.f32.mrf.mxu0  ;;  %v1217_v44 = vpop.f32.mrf.mxu1 }
 0x105   :  { %v1191_v6 = vadd.f32 %v1190_v43, %v1189_v41 }
 0x106   :  { %v1192_v45 = vpop.f32.mrf.mxu0  ;;  %v1218_v46 = vpop.f32.mrf.mxu1 }
 0x107   :  { %v846_v15 = vadd.f32 %v1191_v6, %v797_v7  ;;  %v1219_v16 = vadd.f32 %v1218_v46, %v1217_v44 }
 0x108   :  { %v1193_v47 = vpop.f32.mrf.mxu0  ;;  %v1220_v48 = vpop.f32.mrf.mxu1 }
 0x109   :  { %v1194_v17 = vadd.f32 %v1193_v47, %v1192_v45  ;;  %v895_v29 = vadd.f32 %v1219_v16, %v846_v15 }
 0x10a   :  { %v1195_v49 = vpop.f32.mrf.mxu0  ;;  %v1221_v50 = vpop.f32.mrf.mxu1 }
 0x10b   :  { %v849_v26 = vadd.f32 %v1194_v17, %v800_v19  ;;  %v1222_v27 = vadd.f32 %v1221_v50, %v1220_v48 }
 0x10c   :  { %v1196_v51 = vpop.f32.mrf.mxu0  ;;  %v1223_v52 = vpop.f32.mrf.mxu1 }
 0x10d   :  { %v1197_v0 = vadd.f32 %v1196_v51, %v1195_v49  ;;  %v898_v38 = vadd.f32 %v1222_v27, %v849_v26 }
 0x10e   :  { %v1198_v56 = vpop.f32.mrf.mxu0  ;;  %v1224_v57 = vpop.f32.mrf.mxu1 }
 0x10f   :  { %v854_v10 = vadd.f32 %v1197_v0, %v805_v3  ;;  %v1225_v11 = vadd.f32 %v1224_v57, %v1223_v52 }
 0x110   :  { %v1199_v1 = vpop.f32.mrf.mxu0  ;;  %v1226_v2 = vpop.f32.mrf.mxu1 }
 0x111   :  { %v1200_v12 = vadd.f32 %v1199_v1, %v1198_v56  ;;  %v903_v22 = vadd.f32 %v1225_v11, %v854_v10 }
 0x112   :  { %v1227_v13 = vpop.f32.mrf.mxu1 }
 0x113   :  { %v857_v20 = vadd.f32 %v1200_v12, %v808_v14  ;;  %v1228_v21 = vadd.f32 %v1227_v13, %v1226_v2 }
 0x115   :  { %v906_v33 = vadd.f32 %v1228_v21, %v857_v20 }
 0x122   :  { %v1257_v23 = vpop.f32.mrf.mxu0 }
 0x123   :  { %v952_v28 = vadd.f32 %v1257_v23, %v903_v22 }
 0x124   :  { %v943_v30 = vpop.f32.mrf.mxu0 }
 0x125   :  { %v944_v31 = vadd.f32 %v943_v30, %v895_v29  ;;  %v968_v36 = vadd.f32 %v1103_v24, %v952_v28 }
 0x126   :  { %v1258_v35 = vpop.f32.mrf.mxu0 }
 0x127   :  { %v955_v37 = vadd.f32 %v1258_v35, %v906_v33  ;;  %v966_v41 = vadd.f32 %v1099_v32, %v944_v31  ;;  %v972_v44 = vmax.f32 %v968_v36, 0.0 }
 0x128   :  { %v946_v40 = vpop.f32.mrf.mxu0 }
 0x129   :  { %v969_v42 = vadd.f32 %v1104_v34, %v955_v37  ;;  %v947_v43 = vadd.f32 %v946_v40, %v898_v38  ;;  %v970_v47 = vmax.f32 %v966_v41, 0.0 }
 0x12b   :  { %v973_v45 = vmax.f32 %v969_v42, 0.0  ;;  %v967_v46 = vadd.f32 %v1100_v39, %v947_v43 }
 0x12d   :  { %v1113_v48 = vpack.c.bf16 %v973_v45, %v972_v44  ;;  %v971_v49 = vmax.f32 %v967_v46, 0.0 }
 0x12f   :  { %1116 = vst [vmem:[%s1671_s4 + $0x8] sm:$0xff] %v1113_v48   ;;  %v1108_v50 = vpack.c.bf16 %v971_v49, %v970_v47 }
 0x131   :  { %1109 = vst [vmem:[%s1671_s4] sm:$0xff] %v1108_v50  }

// kernel: resnet_forward.33
= control target key start
LH: loop header
LB: loop body
LE: loop exit
PB: predicated region body
PF: predicated region fallthrough
CT: control target
= control target key end

     0   :  { %v181_v0 = vmov 0.0   ;;  %vm182_vm0 = vmmov 0   ;;  %s236_s1 = inlined_call_operand.vmem [shape: bf16[128,128], index: 1, kind: input, shape index: {}]   ;;  %s237_s0 = inlined_call_operand.vmem [shape: bf16[8,128], index: 0, kind: input, shape index: {}]   ;;  %s238_s2 = inlined_call_operand.vmem [shape: f32[1,128], index: 2, kind: input, shape index: {}]   ;;  %s239_s3 = inlined_call_operand.vmem [shape: bf16[8,128], index: 3, kind: output, shape index: {}]  }
   0x1   :  { %151 = vmatprep.subr.bf16.mxu0 %v181_v0  ;;  %v173_v1 = vld [vmem:[%s236_s1 + $0x38] sm:$0xff]   ;;  %167 = vmatprep.mubr.msk.bf16.mxu0 %vm182_vm0, %v181_v0  ;;  %v174_v2 = vld [vmem:[%s236_s1 + $0x30] sm:$0xff]   ;;  %v175_v3 = vld [vmem:[%s236_s1 + $0x28] sm:$0xff]  }
   0x2   :  { %152 = vmatpush3.bf16.msra.mxu0 %v173_v1  ;;  %v176_v4 = vld [vmem:[%s236_s1 + $0x20] sm:$0xff]   ;;  %v177_v5 = vld [vmem:[%s236_s1 + $0x18] sm:$0xff]   ;;  %v178_v6 = vld [vmem:[%s236_s1 + $0x10] sm:$0xff]  }
   0x3   :  { %153 = vmatprep.subr.bf16.mxu0 %v181_v0  ;;  %v179_v7 = vld [vmem:[%s236_s1 + $0x8] sm:$0xff]   ;;  %v180_v8 = vld [vmem:[%s236_s1] sm:$0xff]  }
   0x4   :  { %v15_v9 = vld [vmem:[%s237_s0] sm:$0xf] }
   0x5   :  { %v133_v10 = vld [vmem:[%s238_s2] ss:$0 sm:$0xff] }
   0x6   :  { %154 = vmatpush3.bf16.msra.mxu0 %v174_v2 }
   0x7   :  { %155 = vmatprep.subr.bf16.mxu0 %v181_v0 }
   0xa   :  { %156 = vmatpush3.bf16.msra.mxu0 %v175_v3 }
   0xb   :  { %157 = vmatprep.subr.bf16.mxu0 %v181_v0 }
   0xe   :  { %158 = vmatpush3.bf16.msra.mxu0 %v176_v4 }
   0xf   :  { %159 = vmatprep.subr.bf16.mxu0 %v181_v0 }
  0x12   :  { %160 = vmatpush3.bf16.msra.mxu0 %v177_v5 }
  0x13   :  { %161 = vmatprep.subr.bf16.mxu0 %v181_v0 }
  0x16   :  { %162 = vmatpush3.bf16.msra.mxu0 %v178_v6 }
  0x17   :  { %163 = vmatprep.subr.bf16.mxu0 %v181_v0 }
  0x1a   :  { %164 = vmatpush3.bf16.msra.mxu0 %v179_v7 }
  0x1b   :  { %165 = vmatprep.subr.bf16.mxu0 %v181_v0 }
  0x1e   :  { %166 = vmatpush3.bf16.msra.mxu0 %v180_v8 }
  0x21   :  { %168 = vmatmul.mubr.bf16.vlgmr.msra.gmra.mxu0 %v15_v9 }
  0xe1   :  { %v121_v11 = vpop.f32.mrf.mxu0 }
  0xe2   :  { %v122_v12 = vadd.f32 %v133_v10, %v121_v11 }
  0xe3   :  { %v169_v13 = vpop.f32.mrf.mxu0 }
  0xe4   :  { %v127_v14 = vpack.c.bf16 %v122_v12, %v122_v12 }
  0xe5   :  { %v124_v15 = vpop.f32.mrf.mxu0 }
  0xe6   :  { %128 = vst [vmem:[%s239_s3] sm:$0xf] %v127_v14 }
  0xe7   :  { %v170_v16 = vpop.f32.mrf.mxu0 }

// kernel: resnet_forward.32
= control target key start
LH: loop header
LB: loop body
LE: loop exit
PB: predicated region body
PF: predicated region fallthrough
CT: control target
= control target key end

     0   :  { %vm1125_vm0 = vmmov 0   ;;  %s1383_s1 = inlined_call_operand.vmem [shape: bf16[1152,128], index: 1, kind: input, shape index: {}]   ;;  %s1384_s0 = inlined_call_operand.vmem [shape: bf16[8,1152], index: 0, kind: input, shape index: {}]   ;;  %s1385_s2 = inlined_call_operand.vmem [shape: f32[1,128], index: 2, kind: input, shape index: {}]   ;;  %s1386_s3 = inlined_call_operand.vmem [shape: bf16[8,128], index: 3, kind: output, shape index: {}]  }
   0x1   :  { %v1043_v0 = vld [vmem:[%s1383_s1 + $0x78] sm:$0xff]   ;;  %v1047_v4 = vld [vmem:[%s1383_s1 + $0x70] sm:$0xff]   ;;  %v1051_v8 = vld [vmem:[%s1383_s1 + $0x68] sm:$0xff]  }
   0x2   :  { %v1044_v1 = vld [vmem:[%s1383_s1 + $0x38] sm:$0xff]   ;;  %924 = vmatprep.subr.bf16.mxu0 %v1043_v0  ;;  %v1048_v5 = vld [vmem:[%s1383_s1 + $0x30] sm:$0xff]   ;;  %v1052_v9 = vld [vmem:[%s1383_s1 + $0x28] sm:$0xff]  }
   0x3   :  { %v1045_v2 = vld [vmem:[%s1383_s1 + $0xf8] sm:$0xff]   ;;  %925 = vmatpush3.bf16.msra.mxu0 %v1044_v1  ;;  %v1049_v6 = vld [vmem:[%s1383_s1 + $0xf0] sm:$0xff]   ;;  %v1053_v10 = vld [vmem:[%s1383_s1 + $0xe8] sm:$0xff]  }
   0x4   :  { %v1046_v3 = vld [vmem:[%s1383_s1 + $0xb8] sm:$0xff]   ;;  %946 = vmatprep.subr.bf16.mxu1 %v1045_v2  ;;  %926 = vmatprep.subr.bf16.mxu0 %v1047_v4  ;;  %v1050_v7 = vld [vmem:[%s1383_s1 + $0xb0] sm:$0xff]   ;;  %v1054_v11 = vld [vmem:[%s1383_s1 + $0xa8] sm:$0xff]  }
   0x5   :  { %947 = vmatpush3.bf16.msra.mxu1 %v1046_v3  ;;  %v1055_v12 = vld [vmem:[%s1383_s1 + $0x60] sm:$0xff]   ;;  %v1059_v16 = vld [vmem:[%s1383_s1 + $0x58] sm:$0xff]   ;;  %v1063_v20 = vld [vmem:[%s1383_s1 + $0x50] sm:$0xff]  }
   0x6   :  { %948 = vmatprep.subr.bf16.mxu1 %v1049_v6  ;;  %v1056_v13 = vld [vmem:[%s1383_s1 + $0x20] sm:$0xff]   ;;  %v1060_v17 = vld [vmem:[%s1383_s1 + $0x18] sm:$0xff]   ;;  %v1064_v21 = vld [vmem:[%s1383_s1 + $0x10] sm:$0xff]  }
   0x7   :  { %927 = vmatpush3.bf16.msra.mxu0 %v1048_v5  ;;  %v1057_v14 = vld [vmem:[%s1383_s1 + $0xe0] sm:$0xff]   ;;  %v1061_v18 = vld [vmem:[%s1383_s1 + $0xd8] sm:$0xff]   ;;  %v1065_v22 = vld [vmem:[%s1383_s1 + $0xd0] sm:$0xff]  }
   0x8   :  { %928 = vmatprep.subr.bf16.mxu0 %v1051_v8  ;;  %v1058_v15 = vld [vmem:[%s1383_s1 + $0xa0] sm:$0xff]   ;;  %v1062_v19 = vld [vmem:[%s1383_s1 + $0x98] sm:$0xff]   ;;  %v1066_v23 = vld [vmem:[%s1383_s1 + $0x90] sm:$0xff]  }
   0x9   :  { %949 = vmatpush3.bf16.msra.mxu1 %v1050_v7  ;;  %v1067_v24 = vld [vmem:[%s1383_s1 + $0x48] sm:$0xff]   ;;  %v1071_v28 = vld [vmem:[%s1383_s1 + $0x40] sm:$0xff]   ;;  %v1077_v35 = vld [vmem:[%s1383_s1 + $0x178] sm:$0xff]  }
   0xa   :  { %950 = vmatprep.subr.bf16.mxu1 %v1053_v10  ;;  %v1068_v25 = vld [vmem:[%s1383_s1 + $0x8] sm:$0xff]   ;;  %v1072_v29 = vld [vmem:[%s1383_s1] sm:$0xff]   ;;  %v1080_v39 = vld [vmem:[%s1383_s1 + $0x138] sm:$0xff]  }
   0xb   :  { %929 = vmatpush3.bf16.msra.mxu0 %v1052_v9  ;;  %v1069_v26 = vld [vmem:[%s1383_s1 + $0xc8] sm:$0xff]   ;;  %v1073_v30 = vld [vmem:[%s1383_s1 + $0xc0] sm:$0xff]   ;;  %v1081_v40 = vld [vmem:[%s1383_s1 + $0x1f8] sm:$0xff]   ;;  %v1124_v9 = vmov 0.0  }
   0xc   :  { %930 = vmatprep.subr.bf16.mxu0 %v1055_v12  ;;  %v1070_v27 = vld [vmem:[%s1383_s1 + $0x88] sm:$0xff]   ;;  %v15_v31 = vld [vmem:[%s1384_s0] sm:$0xff]  ;;  %v1082_v41 = vld [vmem:[%s1383_s1 + $0x1b8] sm:$0xff]  }
   0xd   :  { %951 = vmatpush3.bf16.msra.mxu1 %v1054_v11  ;;  %v843_v32 = vcombine.low %v15_v31, %v15_v31  ;;  %v844_v33 = vcombine.high %v15_v31, %v15_v31  ;;  %v1076_v34 = vld [vmem:[%s1383_s1 + $0x80] sm:$0xff]   ;;  %v16_v36 = vld [vmem:[%s1384_s0 + $0x8] sm:$0xff]  ;;  %v1083_v42 = vld [vmem:[%s1383_s1 + $0x170] sm:$0xff]  }
   0xe   :  { %952 = vmatprep.subr.bf16.mxu1 %v1057_v14  ;;  %v845_v37 = vcombine.low %v16_v36, %v16_v36  ;;  %v846_v38 = vcombine.high %v16_v36, %v16_v36  ;;  %v1084_v43 = vld [vmem:[%s1383_s1 + $0x130] sm:$0xff]   ;;  %v1087_v46 = vld [vmem:[%s1383_s1 + $0x168] sm:$0xff]   ;;  %v1091_v50 = vld [vmem:[%s1383_s1 + $0x160] sm:$0xff]  }
   0xf   :  { %931 = vmatpush3.bf16.msra.mxu0 %v1056_v13  ;;  %667 = vmatprep.mubr.bf16.mxu0 %v844_v33  ;;  %v1085_v44 = vld [vmem:[%s1383_s1 + $0x1f0] sm:$0xff]   ;;  %v1088_v47 = vld [vmem:[%s1383_s1 + $0x128] sm:$0xff]   ;;  %v1092_v51 = vld [vmem:[%s1383_s1 + $0x120] sm:$0xff]  }
  0x10   :  { %932 = vmatprep.subr.bf16.mxu0 %v1059_v16  ;;  %707 = vmatprep.mubr.bf16.mxu1 %v846_v38  ;;  %v1086_v45 = vld [vmem:[%s1383_s1 + $0x1b0] sm:$0xff]   ;;  %v1089_v48 = vld [vmem:[%s1383_s1 + $0x1e8] sm:$0xff]   ;;  %v1093_v52 = vld [vmem:[%s1383_s1 + $0x1e0] sm:$0xff]  }
  0x11   :  { %953 = vmatpush3.bf16.msra.mxu1 %v1058_v15  ;;  %v1090_v49 = vld [vmem:[%s1383_s1 + $0x1a8] sm:$0xff]   ;;  %v1094_v53 = vld [vmem:[%s1383_s1 + $0x1a0] sm:$0xff]   ;;  %v1095_v54 = vld [vmem:[%s1383_s1 + $0x158] sm:$0xff]  }
  0x12   :  { %954 = vmatprep.subr.bf16.mxu1 %v1061_v18  ;;  %v1096_v55 = vld [vmem:[%s1383_s1 + $0x118] sm:$0xff]   ;;  %v1099_v58 = vld [vmem:[%s1383_s1 + $0x150] sm:$0xff]   ;;  %v1103_v62 = vld [vmem:[%s1383_s1 + $0x148] sm:$0xff]  }
  0x13   :  { %933 = vmatpush3.bf16.msra.mxu0 %v1060_v17  ;;  %v1097_v56 = vld [vmem:[%s1383_s1 + $0x1d8] sm:$0xff]   ;;  %v1100_v59 = vld [vmem:[%s1383_s1 + $0x110] sm:$0xff]   ;;  %v1104_v63 = vld [vmem:[%s1383_s1 + $0x108] sm:$0xff]  }
  0x14   :  { %934 = vmatprep.subr.bf16.mxu0 %v1063_v20  ;;  %v1098_v57 = vld [vmem:[%s1383_s1 + $0x198] sm:$0xff]   ;;  %v1101_v60 = vld [vmem:[%s1383_s1 + $0x1d0] sm:$0xff]   ;;  %v1105_v0 = vld [vmem:[%s1383_s1 + $0x1c8] sm:$0xff]  }
  0x15   :  { %955 = vmatpush3.bf16.msra.mxu1 %v1062_v19  ;;  %v1102_v61 = vld [vmem:[%s1383_s1 + $0x190] sm:$0xff]   ;;  %v1106_v1 = vld [vmem:[%s1383_s1 + $0x188] sm:$0xff]   ;;  %v1107_v2 = vld [vmem:[%s1383_s1 + $0x140] sm:$0xff]  }
  0x16   :  { %956 = vmatprep.subr.bf16.mxu1 %v1065_v22  ;;  %v1108_v3 = vld [vmem:[%s1383_s1 + $0x100] sm:$0xff]   ;;  %v17_v5 = vld [vmem:[%s1384_s0 + $0x10] sm:$0xff]  ;;  %v18_v10 = vld [vmem:[%s1384_s0 + $0x18] sm:$0xff] }
  0x17   :  { %935 = vmatpush3.bf16.msra.mxu0 %v1064_v21  ;;  %v1109_v4 = vld [vmem:[%s1383_s1 + $0x1c0] sm:$0xff]   ;;  %v847_v6 = vcombine.low %v17_v5, %v17_v5  ;;  %v848_v7 = vcombine.high %v17_v5, %v17_v5  ;;  %v849_v11 = vcombine.low %v18_v10, %v18_v10  ;;  %v850_v12 = vcombine.high %v18_v10, %v18_v10  ;;  %v1115_v13 = vld [vmem:[%s1383_s1 + $0x238] sm:$0xff]   ;;  %v1116_v14 = vld [vmem:[%s1383_s1 + $0x230] sm:$0xff]  }
  0x18   :  { %936 = vmatprep.subr.bf16.mxu0 %v1067_v24  ;;  %v1112_v8 = vld [vmem:[%s1383_s1 + $0x180] sm:$0xff]   ;;  %v1117_v15 = vld [vmem:[%s1383_s1 + $0x228] sm:$0xff]   ;;  %v1119_v17 = vld [vmem:[%s1383_s1 + $0x218] sm:$0xff]  }
  0x19   :  { %957 = vmatpush3.bf16.msra.mxu1 %v1066_v23  ;;  %v1118_v16 = vld [vmem:[%s1383_s1 + $0x220] sm:$0xff]   ;;  %v1120_v18 = vld [vmem:[%s1383_s1 + $0x210] sm:$0xff]   ;;  %v1121_v19 = vld [vmem:[%s1383_s1 + $0x208] sm:$0xff]  }
  0x1a   :  { %958 = vmatprep.subr.bf16.mxu1 %v1069_v26  ;;  %v1122_v20 = vld [vmem:[%s1383_s1 + $0x200] sm:$0xff]  }
  0x1b   :  { %937 = vmatpush3.bf16.msra.mxu0 %v1068_v25  ;;  %v1123_v21 = vld [vmem:[%s1384_s0 + $0x20] ss:$0 sps:$4 sm:$0xff]  }
  0x1c   :  { %938 = vmatprep.subr.bf16.mxu0 %v1071_v28 }
  0x1d   :  { %959 = vmatpush3.bf16.msra.mxu1 %v1070_v27 }
  0x1e   :  { %960 = vmatprep.subr.bf16.mxu1 %v1073_v30 }
  0x1f   :  { %939 = vmatpush3.bf16.msra.mxu0 %v1072_v29 }
  0x20   :  { %968 = vmatprep.subr.bf16.mxu0 %v1077_v35 }
  0x21   :  { %961 = vmatpush3.bf16.msra.mxu1 %v1076_v34 }
  0x22   :  { %668 = vmatmul.mubr.bf16.vlgmr.msra.gmra.mxu0 %v843_v32  ;;  %990 = vmatprep.subr.bf16.mxu1 %v1081_v40 }
  0x23   :  { %969 = vmatpush3.bf16.msra.mxu0 %v1080_v39  ;;  %747 = vmatprep.mubr.bf16.mxu0 %v848_v7  ;;  %v842_v39 = vld [vmem:[%s1385_s2] ss:$0 sm:$0xff] }
  0x24   :  { %708 = vmatmul.mubr.bf16.vlgmr.msra.gmra.mxu1 %v845_v37  ;;  %970 = vmatprep.subr.bf16.mxu0 %v1083_v42 }
  0x25   :  { %991 = vmatpush3.bf16.msra.mxu1 %v1082_v41  ;;  %787 = vmatprep.mubr.bf16.mxu1 %v850_v12 }
  0x26   :  { %992 = vmatprep.subr.bf16.mxu1 %v1085_v44 }
  0x27   :  { %971 = vmatpush3.bf16.msra.mxu0 %v1084_v43 }
  0x28   :  { %972 = vmatprep.subr.bf16.mxu0 %v1087_v46 }
  0x29   :  { %993 = vmatpush3.bf16.msra.mxu1 %v1086_v45 }
  0x2a   :  { %994 = vmatprep.subr.bf16.mxu1 %v1089_v48 }
  0x2b   :  { %973 = vmatpush3.bf16.msra.mxu0 %v1088_v47 }
  0x2c   :  { %974 = vmatprep.subr.bf16.mxu0 %v1091_v50 }
  0x2d   :  { %995 = vmatpush3.bf16.msra.mxu1 %v1090_v49 }
  0x2e   :  { %996 = vmatprep.subr.bf16.mxu1 %v1093_v52 }
  0x2f   :  { %975 = vmatpush3.bf16.msra.mxu0 %v1092_v51 }
  0x30   :  { %976 = vmatprep.subr.bf16.mxu0 %v1095_v54 }
  0x31   :  { %997 = vmatpush3.bf16.msra.mxu1 %v1094_v53 }
  0x32   :  { %998 = vmatprep.subr.bf16.mxu1 %v1097_v56 }
  0x33   :  { %977 = vmatpush3.bf16.msra.mxu0 %v1096_v55 }
  0x34   :  { %978 = vmatprep.subr.bf16.mxu0 %v1099_v58 }
  0x35   :  { %999 = vmatpush3.bf16.msra.mxu1 %v1098_v57 }
  0x36   :  { %1000 = vmatprep.subr.bf16.mxu1 %v1101_v60 }
  0x37   :  { %979 = vmatpush3.bf16.msra.mxu0 %v1100_v59 }
  0x38   :  { %980 = vmatprep.subr.bf16.mxu0 %v1103_v62 }
  0x39   :  { %1001 = vmatpush3.bf16.msra.mxu1 %v1102_v61 }
  0x3a   :  { %1002 = vmatprep.subr.bf16.mxu1 %v1105_v0 }
  0x3b   :  { %981 = vmatpush3.bf16.msra.mxu0 %v1104_v63 }
  0x3c   :  { %982 = vmatprep.subr.bf16.mxu0 %v1107_v2 }
  0x3d   :  { %1003 = vmatpush3.bf16.msra.mxu1 %v1106_v1 }
  0x3e   :  { %1004 = vmatprep.subr.bf16.mxu1 %v1109_v4 }
  0x3f   :  { %983 = vmatpush3.bf16.msra.mxu0 %v1108_v3 }
  0x40   :  { %1021 = vmatprep.subr.bf16.mxu0 %v1124_v9 }
  0x41   :  { %1005 = vmatpush3.bf16.msra.mxu1 %v1112_v8 }
  0x42   :  { %748 = vmatmul.mubr.bf16.vlgmr.msra.gmra.mxu0 %v847_v6 }
  0x43   :  { %1022 = vmatpush3.bf16.msra.mxu0 %v1115_v13  ;;  %1037 = vmatprep.mubr.msk.bf16.mxu0 %vm1125_vm0, %v1124_v9 }
  0x44   :  { %788 = vmatmul.mubr.bf16.vlgmr.msra.gmra.mxu1 %v849_v11  ;;  %1023 = vmatprep.subr.bf16.mxu0 %v1124_v9 }
  0x47   :  { %1024 = vmatpush3.bf16.msra.mxu0 %v1116_v14 }
  0x48   :  { %1025 = vmatprep.subr.bf16.mxu0 %v1124_v9 }
  0x4b   :  { %1026 = vmatpush3.bf16.msra.mxu0 %v1117_v15 }
  0x4c   :  { %1027 = vmatprep.subr.bf16.mxu0 %v1124_v9 }
  0x4f   :  { %1028 = vmatpush3.bf16.msra.mxu0 %v1118_v16 }
  0x50   :  { %1029 = vmatprep.subr.bf16.mxu0 %v1124_v9 }
  0x53   :  { %1030 = vmatpush3.bf16.msra.mxu0 %v1119_v17 }
  0x54   :  { %1031 = vmatprep.subr.bf16.mxu0 %v1124_v9 }
  0x57   :  { %1032 = vmatpush3.bf16.msra.mxu0 %v1120_v18 }
  0x58   :  { %1033 = vmatprep.subr.bf16.mxu0 %v1124_v9 }
  0x5b   :  { %1034 = vmatpush3.bf16.msra.mxu0 %v1121_v19 }
  0x5c   :  { %1035 = vmatprep.subr.bf16.mxu0 %v1124_v9 }
  0x5f   :  { %1036 = vmatpush3.bf16.msra.mxu0 %v1122_v20 }
  0x62   :  { %1038 = vmatmul.mubr.bf16.vlgmr.msra.gmra.mxu0 %v1123_v21 }
  0xe2   :  { %v940_v22 = vpop.f32.mrf.mxu0 }
  0xe4   :  { %v941_v23 = vpop.f32.mrf.mxu0  ;;  %v962_v24 = vpop.f32.mrf.mxu1 }
  0xe5   :  { %v942_v38 = vadd.f32 %v941_v23, %v940_v22 }
  0xe6   :  { %v943_v25 = vpop.f32.mrf.mxu0  ;;  %v963_v26 = vpop.f32.mrf.mxu1 }
  0xe7   :  { %v670_v40 = vadd.f32 %v942_v38, %v842_v39  ;;  %v964_v41 = vadd.f32 %v963_v26, %v962_v24 }
  0xe8   :  { %v944_v27 = vpop.f32.mrf.mxu0  ;;  %v965_v28 = vpop.f32.mrf.mxu1 }
  0xe9   :  { %v710_v43 = vadd.f32 %v964_v41, %v670_v40 }
  0xea   :  { %v966_v29 = vpop.f32.mrf.mxu1 }
 0x102   :  { %v984_v30 = vpop.f32.mrf.mxu0 }
 0x104   :  { %v985_v31 = vpop.f32.mrf.mxu0  ;;  %v1006_v32 = vpop.f32.mrf.mxu1 }
 0x105   :  { %v986_v42 = vadd.f32 %v985_v31, %v984_v30 }
 0x106   :  { %v987_v33 = vpop.f32.mrf.mxu0  ;;  %v1007_v34 = vpop.f32.mrf.mxu1 }
 0x107   :  { %v750_v44 = vadd.f32 %v986_v42, %v710_v43  ;;  %v1008_v45 = vadd.f32 %v1007_v34, %v1006_v32 }
 0x108   :  { %v988_v35 = vpop.f32.mrf.mxu0  ;;  %v1009_v36 = vpop.f32.mrf.mxu1 }
 0x109   :  { %v790_v46 = vadd.f32 %v1008_v45, %v750_v44 }
 0x10a   :  { %v1010_v37 = vpop.f32.mrf.mxu1 }
 0x122   :  { %v829_v47 = vpop.f32.mrf.mxu0 }
 0x123   :  { %v830_v48 = vadd.f32 %v829_v47, %v790_v46 }
 0x124   :  { %v1039_v49 = vpop.f32.mrf.mxu0 }
 0x125   :  { %v835_v50 = vmax.f32 %v830_v48, 0.0 }
 0x126   :  { %v832_v51 = vpop.f32.mrf.mxu0 }
 0x127   :  { %v836_v52 = vpack.c.bf16 %v835_v50, %v835_v50 }
 0x128   :  { %v1040_v53 = vpop.f32.mrf.mxu0 }
 0x129   :  { %837 = vst [vmem:[%s1386_s3] sm:$0xf] %v836_v52 }

// kernel: resnet_forward.34
= control target key start
LH: loop header
LB: loop body
LE: loop exit
PB: predicated region body
PF: predicated region fallthrough
CT: control target
= control target key end

     0   :  { %vm1131_vm0 = vmmov 0   ;;  %s1397_s1 = inlined_call_operand.vmem [shape: bf16[1152,128], index: 1, kind: input, shape index: {}]   ;;  %s1398_s0 = inlined_call_operand.vmem [shape: bf16[8,1152], index: 0, kind: input, shape index: {}]   ;;  %s1399_s2 = inlined_call_operand.vmem [shape: f32[1,128], index: 2, kind: input, shape index: {}]   ;;  %s1400_s3 = inlined_call_operand.vmem [shape: bf16[8,128], index: 3, kind: input, shape index: {}]   ;;  %s1401_s4 = inlined_call_operand.vmem [shape: bf16[8,128], index: 4, kind: output, shape index: {}]  }
   0x1   :  { %v1049_v0 = vld [vmem:[%s1397_s1 + $0x78] sm:$0xff]   ;;  %v1053_v4 = vld [vmem:[%s1397_s1 + $0x70] sm:$0xff]   ;;  %v1057_v8 = vld [vmem:[%s1397_s1 + $0x68] sm:$0xff]  }
   0x2   :  { %v1050_v1 = vld [vmem:[%s1397_s1 + $0x38] sm:$0xff]   ;;  %930 = vmatprep.subr.bf16.mxu0 %v1049_v0  ;;  %v1054_v5 = vld [vmem:[%s1397_s1 + $0x30] sm:$0xff]   ;;  %v1058_v9 = vld [vmem:[%s1397_s1 + $0x28] sm:$0xff]  }
   0x3   :  { %v1051_v2 = vld [vmem:[%s1397_s1 + $0xf8] sm:$0xff]   ;;  %931 = vmatpush3.bf16.msra.mxu0 %v1050_v1  ;;  %v1055_v6 = vld [vmem:[%s1397_s1 + $0xf0] sm:$0xff]   ;;  %v1059_v10 = vld [vmem:[%s1397_s1 + $0xe8] sm:$0xff]  }
   0x4   :  { %v1052_v3 = vld [vmem:[%s1397_s1 + $0xb8] sm:$0xff]   ;;  %952 = vmatprep.subr.bf16.mxu1 %v1051_v2  ;;  %932 = vmatprep.subr.bf16.mxu0 %v1053_v4  ;;  %v1056_v7 = vld [vmem:[%s1397_s1 + $0xb0] sm:$0xff]   ;;  %v1060_v11 = vld [vmem:[%s1397_s1 + $0xa8] sm:$0xff]  }
   0x5   :  { %953 = vmatpush3.bf16.msra.mxu1 %v1052_v3  ;;  %v1061_v12 = vld [vmem:[%s1397_s1 + $0x60] sm:$0xff]   ;;  %v1065_v16 = vld [vmem:[%s1397_s1 + $0x58] sm:$0xff]   ;;  %v1069_v20 = vld [vmem:[%s1397_s1 + $0x50] sm:$0xff]  }
   0x6   :  { %954 = vmatprep.subr.bf16.mxu1 %v1055_v6  ;;  %v1062_v13 = vld [vmem:[%s1397_s1 + $0x20] sm:$0xff]   ;;  %v1066_v17 = vld [vmem:[%s1397_s1 + $0x18] sm:$0xff]   ;;  %v1070_v21 = vld [vmem:[%s1397_s1 + $0x10] sm:$0xff]  }
   0x7   :  { %933 = vmatpush3.bf16.msra.mxu0 %v1054_v5  ;;  %v1063_v14 = vld [vmem:[%s1397_s1 + $0xe0] sm:$0xff]   ;;  %v1067_v18 = vld [vmem:[%s1397_s1 + $0xd8] sm:$0xff]   ;;  %v1071_v22 = vld [vmem:[%s1397_s1 + $0xd0] sm:$0xff]  }
   0x8   :  { %934 = vmatprep.subr.bf16.mxu0 %v1057_v8  ;;  %v1064_v15 = vld [vmem:[%s1397_s1 + $0xa0] sm:$0xff]   ;;  %v1068_v19 = vld [vmem:[%s1397_s1 + $0x98] sm:$0xff]   ;;  %v1072_v23 = vld [vmem:[%s1397_s1 + $0x90] sm:$0xff]  }
   0x9   :  { %955 = vmatpush3.bf16.msra.mxu1 %v1056_v7  ;;  %v1073_v24 = vld [vmem:[%s1397_s1 + $0x48] sm:$0xff]   ;;  %v1077_v28 = vld [vmem:[%s1397_s1 + $0x40] sm:$0xff]   ;;  %v1083_v35 = vld [vmem:[%s1397_s1 + $0x178] sm:$0xff]  }
   0xa   :  { %956 = vmatprep.subr.bf16.mxu1 %v1059_v10  ;;  %v1074_v25 = vld [vmem:[%s1397_s1 + $0x8] sm:$0xff]   ;;  %v1078_v29 = vld [vmem:[%s1397_s1] sm:$0xff]   ;;  %v1086_v39 = vld [vmem:[%s1397_s1 + $0x138] sm:$0xff]  }
   0xb   :  { %935 = vmatpush3.bf16.msra.mxu0 %v1058_v9  ;;  %v1075_v26 = vld [vmem:[%s1397_s1 + $0xc8] sm:$0xff]   ;;  %v1079_v30 = vld [vmem:[%s1397_s1 + $0xc0] sm:$0xff]   ;;  %v1087_v40 = vld [vmem:[%s1397_s1 + $0x1f8] sm:$0xff]   ;;  %v1130_v9 = vmov 0.0  }
   0xc   :  { %936 = vmatprep.subr.bf16.mxu0 %v1061_v12  ;;  %v1076_v27 = vld [vmem:[%s1397_s1 + $0x88] sm:$0xff]   ;;  %v18_v31 = vld [vmem:[%s1398_s0] sm:$0xff]  ;;  %v1088_v41 = vld [vmem:[%s1397_s1 + $0x1b8] sm:$0xff]  }
   0xd   :  { %957 = vmatpush3.bf16.msra.mxu1 %v1060_v11  ;;  %v849_v32 = vcombine.low %v18_v31, %v18_v31  ;;  %v850_v33 = vcombine.high %v18_v31, %v18_v31  ;;  %v1082_v34 = vld [vmem:[%s1397_s1 + $0x80] sm:$0xff]   ;;  %v19_v36 = vld [vmem:[%s1398_s0 + $0x8] sm:$0xff]  ;;  %v1089_v42 = vld [vmem:[%s1397_s1 + $0x170] sm:$0xff]  }
   0xe   :  { %958 = vmatprep.subr.bf16.mxu1 %v1063_v14  ;;  %v851_v37 = vcombine.low %v19_v36, %v19_v36  ;;  %v852_v38 = vcombine.high %v19_v36, %v19_v36  ;;  %v1090_v43 = vld [vmem:[%s1397_s1 + $0x130] sm:$0xff]   ;;  %v1093_v46 = vld [vmem:[%s1397_s1 + $0x168] sm:$0xff]   ;;  %v1097_v50 = vld [vmem:[%s1397_s1 + $0x160] sm:$0xff]  }
   0xf   :  { %937 = vmatpush3.bf16.msra.mxu0 %v1062_v13  ;;  %670 = vmatprep.mubr.bf16.mxu0 %v850_v33  ;;  %v1091_v44 = vld [vmem:[%s1397_s1 + $0x1f0] sm:$0xff]   ;;  %v1094_v47 = vld [vmem:[%s1397_s1 + $0x128] sm:$0xff]   ;;  %v1098_v51 = vld [vmem:[%s1397_s1 + $0x120] sm:$0xff]  }
  0x10   :  { %938 = vmatprep.subr.bf16.mxu0 %v1065_v16  ;;  %710 = vmatprep.mubr.bf16.mxu1 %v852_v38  ;;  %v1092_v45 = vld [vmem:[%s1397_s1 + $0x1b0] sm:$0xff]   ;;  %v1095_v48 = vld [vmem:[%s1397_s1 + $0x1e8] sm:$0xff]   ;;  %v1099_v52 = vld [vmem:[%s1397_s1 + $0x1e0] sm:$0xff]  }
  0x11   :  { %959 = vmatpush3.bf16.msra.mxu1 %v1064_v15  ;;  %v1096_v49 = vld [vmem:[%s1397_s1 + $0x1a8] sm:$0xff]   ;;  %v1100_v53 = vld [vmem:[%s1397_s1 + $0x1a0] sm:$0xff]   ;;  %v1101_v54 = vld [vmem:[%s1397_s1 + $0x158] sm:$0xff]  }
  0x12   :  { %960 = vmatprep.subr.bf16.mxu1 %v1067_v18  ;;  %v1102_v55 = vld [vmem:[%s1397_s1 + $0x118] sm:$0xff]   ;;  %v1105_v58 = vld [vmem:[%s1397_s1 + $0x150] sm:$0xff]   ;;  %v1109_v62 = vld [vmem:[%s1397_s1 + $0x148] sm:$0xff]  }
  0x13   :  { %939 = vmatpush3.bf16.msra.mxu0 %v1066_v17  ;;  %v1103_v56 = vld [vmem:[%s1397_s1 + $0x1d8] sm:$0xff]   ;;  %v1106_v59 = vld [vmem:[%s1397_s1 + $0x110] sm:$0xff]   ;;  %v1110_v63 = vld [vmem:[%s1397_s1 + $0x108] sm:$0xff]  }
  0x14   :  { %940 = vmatprep.subr.bf16.mxu0 %v1069_v20  ;;  %v1104_v57 = vld [vmem:[%s1397_s1 + $0x198] sm:$0xff]   ;;  %v1107_v60 = vld [vmem:[%s1397_s1 + $0x1d0] sm:$0xff]   ;;  %v1111_v0 = vld [vmem:[%s1397_s1 + $0x1c8] sm:$0xff]  }
  0x15   :  { %961 = vmatpush3.bf16.msra.mxu1 %v1068_v19  ;;  %v1108_v61 = vld [vmem:[%s1397_s1 + $0x190] sm:$0xff]   ;;  %v1112_v1 = vld [vmem:[%s1397_s1 + $0x188] sm:$0xff]   ;;  %v1113_v2 = vld [vmem:[%s1397_s1 + $0x140] sm:$0xff]  }
  0x16   :  { %962 = vmatprep.subr.bf16.mxu1 %v1071_v22  ;;  %v1114_v3 = vld [vmem:[%s1397_s1 + $0x100] sm:$0xff]   ;;  %v20_v5 = vld [vmem:[%s1398_s0 + $0x10] sm:$0xff]  ;;  %v21_v10 = vld [vmem:[%s1398_s0 + $0x18] sm:$0xff] }
  0x17   :  { %941 = vmatpush3.bf16.msra.mxu0 %v1070_v21  ;;  %v1115_v4 = vld [vmem:[%s1397_s1 + $0x1c0] sm:$0xff]   ;;  %v853_v6 = vcombine.low %v20_v5, %v20_v5  ;;  %v854_v7 = vcombine.high %v20_v5, %v20_v5  ;;  %v855_v11 = vcombine.low %v21_v10, %v21_v10  ;;  %v856_v12 = vcombine.high %v21_v10, %v21_v10  ;;  %v1121_v13 = vld [vmem:[%s1397_s1 + $0x238] sm:$0xff]   ;;  %v1122_v14 = vld [vmem:[%s1397_s1 + $0x230] sm:$0xff]  }
  0x18   :  { %942 = vmatprep.subr.bf16.mxu0 %v1073_v24  ;;  %v1118_v8 = vld [vmem:[%s1397_s1 + $0x180] sm:$0xff]   ;;  %v1123_v15 = vld [vmem:[%s1397_s1 + $0x228] sm:$0xff]   ;;  %v1125_v17 = vld [vmem:[%s1397_s1 + $0x218] sm:$0xff]  }
  0x19   :  { %963 = vmatpush3.bf16.msra.mxu1 %v1072_v23  ;;  %v1124_v16 = vld [vmem:[%s1397_s1 + $0x220] sm:$0xff]   ;;  %v1126_v18 = vld [vmem:[%s1397_s1 + $0x210] sm:$0xff]   ;;  %v1127_v19 = vld [vmem:[%s1397_s1 + $0x208] sm:$0xff]  }
  0x1a   :  { %964 = vmatprep.subr.bf16.mxu1 %v1075_v26  ;;  %v1128_v20 = vld [vmem:[%s1397_s1 + $0x200] sm:$0xff]  }
  0x1b   :  { %943 = vmatpush3.bf16.msra.mxu0 %v1074_v25  ;;  %v1129_v21 = vld [vmem:[%s1398_s0 + $0x20] ss:$0 sps:$4 sm:$0xff]  }
  0x1c   :  { %944 = vmatprep.subr.bf16.mxu0 %v1077_v28 }
  0x1d   :  { %965 = vmatpush3.bf16.msra.mxu1 %v1076_v27 }
  0x1e   :  { %966 = vmatprep.subr.bf16.mxu1 %v1079_v30 }
  0x1f   :  { %945 = vmatpush3.bf16.msra.mxu0 %v1078_v29 }
  0x20   :  { %974 = vmatprep.subr.bf16.mxu0 %v1083_v35 }
  0x21   :  { %967 = vmatpush3.bf16.msra.mxu1 %v1082_v34 }
  0x22   :  { %671 = vmatmul.mubr.bf16.vlgmr.msra.gmra.mxu0 %v849_v32  ;;  %996 = vmatprep.subr.bf16.mxu1 %v1087_v40 }
  0x23   :  { %975 = vmatpush3.bf16.msra.mxu0 %v1086_v39  ;;  %750 = vmatprep.mubr.bf16.mxu0 %v854_v7  ;;  %v848_v39 = vld [vmem:[%s1399_s2] ss:$0 sm:$0xff] }
  0x24   :  { %711 = vmatmul.mubr.bf16.vlgmr.msra.gmra.mxu1 %v851_v37  ;;  %976 = vmatprep.subr.bf16.mxu0 %v1089_v42 }
  0x25   :  { %997 = vmatpush3.bf16.msra.mxu1 %v1088_v41  ;;  %790 = vmatprep.mubr.bf16.mxu1 %v856_v12 }
  0x26   :  { %998 = vmatprep.subr.bf16.mxu1 %v1091_v44 }
  0x27   :  { %977 = vmatpush3.bf16.msra.mxu0 %v1090_v43 }
  0x28   :  { %978 = vmatprep.subr.bf16.mxu0 %v1093_v46  ;;  %v838_v46 = vld [vmem:[%s1400_s3] sm:$0xf] }
  0x29   :  { %999 = vmatpush3.bf16.msra.mxu1 %v1092_v45 }
  0x2a   :  { %1000 = vmatprep.subr.bf16.mxu1 %v1095_v48  ;;  %v839_v48 = vunpack.c.l.bf16 %v838_v46 }
  0x2b   :  { %979 = vmatpush3.bf16.msra.mxu0 %v1094_v47 }
  0x2c   :  { %980 = vmatprep.subr.bf16.mxu0 %v1097_v50 }
  0x2d   :  { %1001 = vmatpush3.bf16.msra.mxu1 %v1096_v49 }
  0x2e   :  { %1002 = vmatprep.subr.bf16.mxu1 %v1099_v52 }
  0x2f   :  { %981 = vmatpush3.bf16.msra.mxu0 %v1098_v51 }
  0x30   :  { %982 = vmatprep.subr.bf16.mxu0 %v1101_v54 }
  0x31   :  { %1003 = vmatpush3.bf16.msra.mxu1 %v1100_v53 }
  0x32   :  { %1004 = vmatprep.subr.bf16.mxu1 %v1103_v56 }
  0x33   :  { %983 = vmatpush3.bf16.msra.mxu0 %v1102_v55 }
  0x34   :  { %984 = vmatprep.subr.bf16.mxu0 %v1105_v58 }
  0x35   :  { %1005 = vmatpush3.bf16.msra.mxu1 %v1104_v57 }
  0x36   :  { %1006 = vmatprep.subr.bf16.mxu1 %v1107_v60 }
  0x37   :  { %985 = vmatpush3.bf16.msra.mxu0 %v1106_v59 }
  0x38   :  { %986 = vmatprep.subr.bf16.mxu0 %v1109_v62 }
  0x39   :  { %1007 = vmatpush3.bf16.msra.mxu1 %v1108_v61 }
  0x3a   :  { %1008 = vmatprep.subr.bf16.mxu1 %v1111_v0 }
  0x3b   :  { %987 = vmatpush3.bf16.msra.mxu0 %v1110_v63 }
  0x3c   :  { %988 = vmatprep.subr.bf16.mxu0 %v1113_v2 }
  0x3d   :  { %1009 = vmatpush3.bf16.msra.mxu1 %v1112_v1 }
  0x3e   :  { %1010 = vmatprep.subr.bf16.mxu1 %v1115_v4 }
  0x3f   :  { %989 = vmatpush3.bf16.msra.mxu0 %v1114_v3 }
  0x40   :  { %1027 = vmatprep.subr.bf16.mxu0 %v1130_v9 }
  0x41   :  { %1011 = vmatpush3.bf16.msra.mxu1 %v1118_v8 }
  0x42   :  { %751 = vmatmul.mubr.bf16.vlgmr.msra.gmra.mxu0 %v853_v6 }
  0x43   :  { %1028 = vmatpush3.bf16.msra.mxu0 %v1121_v13  ;;  %1043 = vmatprep.mubr.msk.bf16.mxu0 %vm1131_vm0, %v1130_v9 }
  0x44   :  { %791 = vmatmul.mubr.bf16.vlgmr.msra.gmra.mxu1 %v855_v11  ;;  %1029 = vmatprep.subr.bf16.mxu0 %v1130_v9 }
  0x47   :  { %1030 = vmatpush3.bf16.msra.mxu0 %v1122_v14 }
  0x48   :  { %1031 = vmatprep.subr.bf16.mxu0 %v1130_v9 }
  0x4b   :  { %1032 = vmatpush3.bf16.msra.mxu0 %v1123_v15 }
  0x4c   :  { %1033 = vmatprep.subr.bf16.mxu0 %v1130_v9 }
  0x4f   :  { %1034 = vmatpush3.bf16.msra.mxu0 %v1124_v16 }
  0x50   :  { %1035 = vmatprep.subr.bf16.mxu0 %v1130_v9 }
  0x53   :  { %1036 = vmatpush3.bf16.msra.mxu0 %v1125_v17 }
  0x54   :  { %1037 = vmatprep.subr.bf16.mxu0 %v1130_v9 }
  0x57   :  { %1038 = vmatpush3.bf16.msra.mxu0 %v1126_v18 }
  0x58   :  { %1039 = vmatprep.subr.bf16.mxu0 %v1130_v9 }
  0x5b   :  { %1040 = vmatpush3.bf16.msra.mxu0 %v1127_v19 }
  0x5c   :  { %1041 = vmatprep.subr.bf16.mxu0 %v1130_v9 }
  0x5f   :  { %1042 = vmatpush3.bf16.msra.mxu0 %v1128_v20 }
  0x62   :  { %1044 = vmatmul.mubr.bf16.vlgmr.msra.gmra.mxu0 %v1129_v21 }
  0xe2   :  { %v946_v22 = vpop.f32.mrf.mxu0 }
  0xe4   :  { %v947_v23 = vpop.f32.mrf.mxu0  ;;  %v968_v24 = vpop.f32.mrf.mxu1 }
  0xe5   :  { %v948_v38 = vadd.f32 %v947_v23, %v946_v22 }
  0xe6   :  { %v949_v25 = vpop.f32.mrf.mxu0  ;;  %v969_v26 = vpop.f32.mrf.mxu1 }
  0xe7   :  { %v673_v40 = vadd.f32 %v948_v38, %v848_v39  ;;  %v970_v41 = vadd.f32 %v969_v26, %v968_v24 }
  0xe8   :  { %v950_v27 = vpop.f32.mrf.mxu0  ;;  %v971_v28 = vpop.f32.mrf.mxu1 }
  0xe9   :  { %v713_v43 = vadd.f32 %v970_v41, %v673_v40 }
  0xea   :  { %v972_v29 = vpop.f32.mrf.mxu1 }
 0x102   :  { %v990_v30 = vpop.f32.mrf.mxu0 }
 0x104   :  { %v991_v31 = vpop.f32.mrf.mxu0  ;;  %v1012_v32 = vpop.f32.mrf.mxu1 }
 0x105   :  { %v992_v42 = vadd.f32 %v991_v31, %v990_v30 }
 0x106   :  { %v993_v33 = vpop.f32.mrf.mxu0  ;;  %v1013_v34 = vpop.f32.mrf.mxu1 }
 0x107   :  { %v753_v44 = vadd.f32 %v992_v42, %v713_v43  ;;  %v1014_v45 = vadd.f32 %v1013_v34, %v1012_v32 }
 0x108   :  { %v994_v35 = vpop.f32.mrf.mxu0  ;;  %v1015_v36 = vpop.f32.mrf.mxu1 }
 0x109   :  { %v793_v47 = vadd.f32 %v1014_v45, %v753_v44 }
 0x10a   :  { %v1016_v37 = vpop.f32.mrf.mxu1 }
 0x122   :  { %v832_v49 = vpop.f32.mrf.mxu0 }
 0x123   :  { %v833_v50 = vadd.f32 %v832_v49, %v793_v47 }
 0x124   :  { %v1045_v51 = vpop.f32.mrf.mxu0 }
 0x125   :  { %v840_v52 = vadd.f32 %v839_v48, %v833_v50 }
 0x126   :  { %v835_v53 = vpop.f32.mrf.mxu0 }
 0x127   :  { %v841_v54 = vmax.f32 %v840_v52, 0.0 }
 0x128   :  { %v1046_v55 = vpop.f32.mrf.mxu0 }
 0x129   :  { %v842_v56 = vpack.c.bf16 %v841_v54, %v841_v54 }
 0x12b   :  { %843 = vst [vmem:[%s1401_s4] sm:$0xf] %v842_v56 }

// kernel: resnet_forward.38
= control target key start
LH: loop header
LB: loop body
LE: loop exit
PB: predicated region body
PF: predicated region fallthrough
CT: control target
= control target key end

     0   :  { %v181_v0 = vmov 0.0   ;;  %vm182_vm0 = vmmov 0   ;;  %s236_s1 = inlined_call_operand.vmem [shape: bf16[128,128], index: 1, kind: input, shape index: {}]   ;;  %s237_s0 = inlined_call_operand.vmem [shape: bf16[2,128], index: 0, kind: input, shape index: {}]   ;;  %s238_s2 = inlined_call_operand.vmem [shape: f32[1,128], index: 2, kind: input, shape index: {}]   ;;  %s239_s3 = inlined_call_operand.vmem [shape: bf16[2,128], index: 3, kind: output, shape index: {}]  }
   0x1   :  { %151 = vmatprep.subr.bf16.mxu0 %v181_v0  ;;  %v173_v1 = vld [vmem:[%s236_s1 + $0x38] sm:$0xff]   ;;  %167 = vmatprep.mubr.msk.bf16.mxu0 %vm182_vm0, %v181_v0  ;;  %v174_v2 = vld [vmem:[%s236_s1 + $0x30] sm:$0xff]   ;;  %v175_v3 = vld [vmem:[%s236_s1 + $0x28] sm:$0xff]  }
   0x2   :  { %152 = vmatpush3.bf16.msra.mxu0 %v173_v1  ;;  %v176_v4 = vld [vmem:[%s236_s1 + $0x20] sm:$0xff]   ;;  %v177_v5 = vld [vmem:[%s236_s1 + $0x18] sm:$0xff]   ;;  %v178_v6 = vld [vmem:[%s236_s1 + $0x10] sm:$0xff]  }
   0x3   :  { %153 = vmatprep.subr.bf16.mxu0 %v181_v0  ;;  %v179_v7 = vld [vmem:[%s236_s1 + $0x8] sm:$0xff]   ;;  %v180_v8 = vld [vmem:[%s236_s1] sm:$0xff]  }
   0x4   :  { %v15_v9 = vld [vmem:[%s237_s0] sm:$0x1] }
   0x5   :  { %v133_v10 = vld [vmem:[%s238_s2] ss:$0 sm:$0xff] }
   0x6   :  { %154 = vmatpush3.bf16.msra.mxu0 %v174_v2 }
   0x7   :  { %155 = vmatprep.subr.bf16.mxu0 %v181_v0 }
   0xa   :  { %156 = vmatpush3.bf16.msra.mxu0 %v175_v3 }
   0xb   :  { %157 = vmatprep.subr.bf16.mxu0 %v181_v0 }
   0xe   :  { %158 = vmatpush3.bf16.msra.mxu0 %v176_v4 }
   0xf   :  { %159 = vmatprep.subr.bf16.mxu0 %v181_v0 }
  0x12   :  { %160 = vmatpush3.bf16.msra.mxu0 %v177_v5 }
  0x13   :  { %161 = vmatprep.subr.bf16.mxu0 %v181_v0 }
  0x16   :  { %162 = vmatpush3.bf16.msra.mxu0 %v178_v6 }
  0x17   :  { %163 = vmatprep.subr.bf16.mxu0 %v181_v0 }
  0x1a   :  { %164 = vmatpush3.bf16.msra.mxu0 %v179_v7 }
  0x1b   :  { %165 = vmatprep.subr.bf16.mxu0 %v181_v0 }
  0x1e   :  { %166 = vmatpush3.bf16.msra.mxu0 %v180_v8 }
  0x21   :  { %168 = vmatmul.mubr.bf16.vlgmr.msra.gmra.mxu0 %v15_v9 }
  0xe1   :  { %v121_v11 = vpop.f32.mrf.mxu0 }
  0xe2   :  { %v122_v12 = vadd.f32 %v133_v10, %v121_v11 }
  0xe3   :  { %v169_v13 = vpop.f32.mrf.mxu0 }
  0xe4   :  { %v127_v14 = vpack.c.bf16 %v122_v12, %v122_v12 }
  0xe5   :  { %v124_v15 = vpop.f32.mrf.mxu0 }
  0xe6   :  { %128 = vst [vmem:[%s239_s3] sm:$0x1] %v127_v14 }
  0xe7   :  { %v170_v16 = vpop.f32.mrf.mxu0 }

// kernel: resnet_forward.37
= control target key start
LH: loop header
LB: loop body
LE: loop exit
PB: predicated region body
PF: predicated region fallthrough
CT: control target
= control target key end

     0   :  { %v1148_v21 = vmov 1966171168   ;;  %v174_v23 = vlaneseq  ;;  %vm1150_vm0 = vmmov 0   ;;  %s1413_s1 = inlined_call_operand.vmem [shape: bf16[1152,128], index: 1, kind: input, shape index: {}]   ;;  %s1414_s0 = inlined_call_operand.vmem [shape: bf16[2,1152], index: 0, kind: input, shape index: {}]   ;;  %s1415_s2 = inlined_call_operand.vmem [shape: f32[1,128], index: 2, kind: input, shape index: {}]   ;;  %s1416_s3 = inlined_call_operand.vmem [shape: bf16[2,128], index: 3, kind: output, shape index: {}]  }
   0x1   :  { %v1075_v0 = vld [vmem:[%s1413_s1 + $0x78] sm:$0xff]   ;;  %v1079_v4 = vld [vmem:[%s1413_s1 + $0x70] sm:$0xff]   ;;  %v1083_v8 = vld [vmem:[%s1413_s1 + $0x68] sm:$0xff]   ;;  %v172_v22 = vunpack.c.l.s4 %v1148_v21 }
   0x2   :  { %v1076_v1 = vld [vmem:[%s1413_s1 + $0x38] sm:$0xff]   ;;  %955 = vmatprep.subr.bf16.mxu0 %v1075_v0  ;;  %v1080_v5 = vld [vmem:[%s1413_s1 + $0x30] sm:$0xff]   ;;  %v1084_v9 = vld [vmem:[%s1413_s1 + $0x28] sm:$0xff]   ;;  %v175_v29 = vshrl.u32 %v174_v23, 7 }
   0x3   :  { %v1077_v2 = vld [vmem:[%s1413_s1 + $0xf8] sm:$0xff]   ;;  %956 = vmatpush3.bf16.msra.mxu0 %v1076_v1  ;;  %v1081_v6 = vld [vmem:[%s1413_s1 + $0xf0] sm:$0xff]   ;;  %v1085_v10 = vld [vmem:[%s1413_s1 + $0xe8] sm:$0xff]   ;;  %v173_v28 = vunpack.c.0.s8 %v172_v22 }
   0x4   :  { %v1078_v3 = vld [vmem:[%s1413_s1 + $0xb8] sm:$0xff]   ;;  %977 = vmatprep.subr.bf16.mxu1 %v1077_v2  ;;  %957 = vmatprep.subr.bf16.mxu0 %v1079_v4  ;;  %v1082_v7 = vld [vmem:[%s1413_s1 + $0xb0] sm:$0xff]   ;;  %v1086_v11 = vld [vmem:[%s1413_s1 + $0xa8] sm:$0xff]  }
   0x5   :  { %978 = vmatpush3.bf16.msra.mxu1 %v1078_v3  ;;  %v1087_v12 = vld [vmem:[%s1413_s1 + $0x60] sm:$0xff]   ;;  %v1091_v16 = vld [vmem:[%s1413_s1 + $0x58] sm:$0xff]   ;;  %v1095_v20 = vld [vmem:[%s1413_s1 + $0x50] sm:$0xff]   ;;  %v1258_v34 = vsub.s32 %v173_v28, %v175_v29 }
   0x6   :  { %979 = vmatprep.subr.bf16.mxu1 %v1081_v6  ;;  %v1088_v13 = vld [vmem:[%s1413_s1 + $0x20] sm:$0xff]   ;;  %v1092_v17 = vld [vmem:[%s1413_s1 + $0x18] sm:$0xff]   ;;  %v1096_v24 = vld [vmem:[%s1413_s1 + $0x10] sm:$0xff]  }
   0x7   :  { %958 = vmatpush3.bf16.msra.mxu0 %v1080_v5  ;;  %v1089_v14 = vld [vmem:[%s1413_s1 + $0xe0] sm:$0xff]   ;;  %v1093_v18 = vld [vmem:[%s1413_s1 + $0xd8] sm:$0xff]   ;;  %v1097_v25 = vld [vmem:[%s1413_s1 + $0xd0] sm:$0xff]  }
   0x8   :  { %959 = vmatprep.subr.bf16.mxu0 %v1083_v8  ;;  %v1090_v15 = vld [vmem:[%s1413_s1 + $0xa0] sm:$0xff]   ;;  %v1094_v19 = vld [vmem:[%s1413_s1 + $0x98] sm:$0xff]   ;;  %v1098_v26 = vld [vmem:[%s1413_s1 + $0x90] sm:$0xff]  }
   0x9   :  { %980 = vmatpush3.bf16.msra.mxu1 %v1082_v7  ;;  %v1099_v27 = vld [vmem:[%s1413_s1 + $0x48] sm:$0xff]   ;;  %v1103_v33 = vld [vmem:[%s1413_s1 + $0x40] sm:$0xff]   ;;  %v1108_v41 = vld [vmem:[%s1413_s1 + $0x178] sm:$0xff]  }
   0xa   :  { %981 = vmatprep.subr.bf16.mxu1 %v1085_v10  ;;  %v1100_v30 = vld [vmem:[%s1413_s1 + $0x8] sm:$0xff]   ;;  %v1104_v35 = vld [vmem:[%s1413_s1] sm:$0xff]   ;;  %v1110_v45 = vld [vmem:[%s1413_s1 + $0x1f8] sm:$0xff]  }
   0xb   :  { %960 = vmatpush3.bf16.msra.mxu0 %v1084_v9  ;;  %v1101_v31 = vld [vmem:[%s1413_s1 + $0xc8] sm:$0xff]   ;;  %v1105_v36 = vld [vmem:[%s1413_s1 + $0xc0] sm:$0xff]   ;;  %v1109_v47 = vld [vmem:[%s1413_s1 + $0x138] sm:$0xff]  }
   0xc   :  { %961 = vmatprep.subr.bf16.mxu0 %v1087_v12  ;;  %v1102_v32 = vld [vmem:[%s1413_s1 + $0x88] sm:$0xff]   ;;  %v15_v37 = vld [vmem:[%s1414_s0] sm:$0xff]  ;;  %v1112_v50 = vld [vmem:[%s1413_s1 + $0x170] sm:$0xff]  }
   0xd   :  { %982 = vmatpush3.bf16.msra.mxu1 %v1086_v11  ;;  %v170_v38 = vcombine.high %v15_v37, %v15_v37  ;;  %v177_v39 = vrot.slane %v15_v37, %v1258_v34  ;;  %v1107_v40 = vld [vmem:[%s1413_s1 + $0x80] sm:$0xff]   ;;  %v1111_v52 = vld [vmem:[%s1413_s1 + $0x1b8] sm:$0xff]   ;;  %v1114_v54 = vld [vmem:[%s1413_s1 + $0x1f0] sm:$0xff]  }
   0xe   :  { %983 = vmatprep.subr.bf16.mxu1 %v1089_v14  ;;  %v1113_v55 = vld [vmem:[%s1413_s1 + $0x130] sm:$0xff]   ;;  %v1116_v57 = vld [vmem:[%s1413_s1 + $0x168] sm:$0xff]   ;;  %v1120_v61 = vld [vmem:[%s1413_s1 + $0x160] sm:$0xff]  }
   0xf   :  { %962 = vmatpush3.bf16.msra.mxu0 %v1088_v13  ;;  %v185_v42 = vcombine.high %v177_v39, %v177_v39  ;;  %v193_v43 = vrot.slane %v177_v39, %v1258_v34  ;;  %v1278_v44 = vrot.slane %v170_v38, %v1258_v34  ;;  %v1115_v58 = vld [vmem:[%s1413_s1 + $0x1b0] sm:$0xff]   ;;  %v1118_v59 = vld [vmem:[%s1413_s1 + $0x1e8] sm:$0xff]   ;;  %v1122_v63 = vld [vmem:[%s1413_s1 + $0x1e0] sm:$0xff]  }
  0x10   :  { %963 = vmatprep.subr.bf16.mxu0 %v1091_v16  ;;  %v1117_v60 = vld [vmem:[%s1413_s1 + $0x128] sm:$0xff]   ;;  %v1121_v0 = vld [vmem:[%s1413_s1 + $0x120] sm:$0xff]   ;;  %v1124_v1 = vld [vmem:[%s1413_s1 + $0x158] sm:$0xff]  }
  0x11   :  { %984 = vmatpush3.bf16.msra.mxu1 %v1090_v15  ;;  %v207_v46 = vrot.slane %v185_v42, %v1258_v34  ;;  %v186_v48 = vcombine.high %v1278_v44, %v1278_v44  ;;  %v215_v49 = vcombine.high %v193_v43, %v193_v43  ;;  %v1119_v62 = vld [vmem:[%s1413_s1 + $0x1a8] sm:$0xff]   ;;  %v1123_v2 = vld [vmem:[%s1413_s1 + $0x1a0] sm:$0xff]   ;;  %v1126_v3 = vld [vmem:[%s1413_s1 + $0x1d8] sm:$0xff]  }
  0x12   :  { %985 = vmatprep.subr.bf16.mxu1 %v1093_v18  ;;  %v1125_v4 = vld [vmem:[%s1413_s1 + $0x118] sm:$0xff]   ;;  %v1128_v5 = vld [vmem:[%s1413_s1 + $0x150] sm:$0xff]   ;;  %v1132_v9 = vld [vmem:[%s1413_s1 + $0x148] sm:$0xff]  }
  0x13   :  { %964 = vmatpush3.bf16.msra.mxu0 %v1092_v17  ;;  %706 = vmatprep.mubr.bf16.mxu0 %v207_v46  ;;  %v217_v51 = vcombine.high %v207_v46, %v207_v46  ;;  %v214_v53 = vrot.slane %v186_v48, %v1258_v34  ;;  %v1127_v6 = vld [vmem:[%s1413_s1 + $0x198] sm:$0xff]   ;;  %v1130_v7 = vld [vmem:[%s1413_s1 + $0x1d0] sm:$0xff]   ;;  %v1134_v11 = vld [vmem:[%s1413_s1 + $0x1c8] sm:$0xff]   ;;  %v200_v17 = vrot.slane %v1278_v44, %v1258_v34 }
  0x14   :  { %965 = vmatprep.subr.bf16.mxu0 %v1095_v20  ;;  %v1129_v8 = vld [vmem:[%s1413_s1 + $0x110] sm:$0xff]   ;;  %v1133_v12 = vld [vmem:[%s1413_s1 + $0x108] sm:$0xff]   ;;  %v1136_v13 = vld [vmem:[%s1413_s1 + $0x140] sm:$0xff]   ;;  %v1149_v20 = vmov 0.0  }
  0x15   :  { %986 = vmatpush3.bf16.msra.mxu1 %v1094_v19  ;;  %746 = vmatprep.mubr.bf16.mxu1 %v217_v51  ;;  %v218_v56 = vcombine.high %v214_v53, %v214_v53  ;;  %v1131_v10 = vld [vmem:[%s1413_s1 + $0x190] sm:$0xff]   ;;  %v1135_v14 = vld [vmem:[%s1413_s1 + $0x188] sm:$0xff]   ;;  %v1138_v15 = vld [vmem:[%s1413_s1 + $0x1c0] sm:$0xff]   ;;  %v216_v21 = vcombine.high %v200_v17, %v200_v17 }
  0x16   :  { %987 = vmatprep.subr.bf16.mxu1 %v1097_v25  ;;  %v1137_v16 = vld [vmem:[%s1413_s1 + $0x100] sm:$0xff]   ;;  %v1140_v19 = vld [vmem:[%s1413_s1 + $0x238] sm:$0xff]   ;;  %v1141_v22 = vld [vmem:[%s1413_s1 + $0x230] sm:$0xff]  }
  0x17   :  { %966 = vmatpush3.bf16.msra.mxu0 %v1096_v24  ;;  %v1139_v18 = vld [vmem:[%s1413_s1 + $0x180] sm:$0xff]   ;;  %v882_v23 = vld.sshfl [vmem:[%s1414_s0 + $0x8] sm:$0x1 pattern:$0x75316420]  ;;  %v1145_v28 = vld [vmem:[%s1413_s1 + $0x210] sm:$0xff]  }
  0x18   :  { %967 = vmatprep.subr.bf16.mxu0 %v1099_v27  ;;  %v232_v24 = vrot.slane %v882_v23, %v1258_v34  ;;  %v1142_v25 = vld [vmem:[%s1413_s1 + $0x228] sm:$0xff]   ;;  %v1144_v27 = vld [vmem:[%s1413_s1 + $0x218] sm:$0xff]   ;;  %v881_v48 = vld [vmem:[%s1415_s2] ss:$0 sm:$0xff] }
  0x19   :  { %988 = vmatpush3.bf16.msra.mxu1 %v1098_v26  ;;  %v1143_v26 = vld [vmem:[%s1413_s1 + $0x220] sm:$0xff]   ;;  %v1146_v29 = vld [vmem:[%s1413_s1 + $0x208] sm:$0xff]  }
  0x1a   :  { %989 = vmatprep.subr.bf16.mxu1 %v1101_v31 }
  0x1b   :  { %968 = vmatpush3.bf16.msra.mxu0 %v1100_v30  ;;  %v1147_v30 = vld [vmem:[%s1413_s1 + $0x200] sm:$0xff]  }
  0x1c   :  { %969 = vmatprep.subr.bf16.mxu0 %v1103_v33 }
  0x1d   :  { %990 = vmatpush3.bf16.msra.mxu1 %v1102_v32 }
  0x1e   :  { %991 = vmatprep.subr.bf16.mxu1 %v1105_v36 }
  0x1f   :  { %970 = vmatpush3.bf16.msra.mxu0 %v1104_v35 }
  0x20   :  { %999 = vmatprep.subr.bf16.mxu0 %v1108_v41 }
  0x21   :  { %992 = vmatpush3.bf16.msra.mxu1 %v1107_v40 }
  0x22   :  { %1021 = vmatprep.subr.bf16.mxu1 %v1110_v45  ;;  %707 = vmatmul.mubr.bf16.vlgmr.msra.gmra.mxu0 %v193_v43 }
  0x23   :  { %1000 = vmatpush3.bf16.msra.mxu0 %v1109_v47  ;;  %786 = vmatprep.mubr.bf16.mxu0 %v214_v53 }
  0x24   :  { %747 = vmatmul.mubr.bf16.vlgmr.msra.gmra.mxu1 %v215_v49  ;;  %1001 = vmatprep.subr.bf16.mxu0 %v1112_v50 }
  0x25   :  { %1022 = vmatpush3.bf16.msra.mxu1 %v1111_v52  ;;  %826 = vmatprep.mubr.bf16.mxu1 %v218_v56 }
  0x26   :  { %1023 = vmatprep.subr.bf16.mxu1 %v1114_v54 }
  0x27   :  { %1002 = vmatpush3.bf16.msra.mxu0 %v1113_v55 }
  0x28   :  { %1003 = vmatprep.subr.bf16.mxu0 %v1116_v57 }
  0x29   :  { %1024 = vmatpush3.bf16.msra.mxu1 %v1115_v58 }
  0x2a   :  { %1025 = vmatprep.subr.bf16.mxu1 %v1118_v59 }
  0x2b   :  { %1004 = vmatpush3.bf16.msra.mxu0 %v1117_v60 }
  0x2c   :  { %1005 = vmatprep.subr.bf16.mxu0 %v1120_v61 }
  0x2d   :  { %1026 = vmatpush3.bf16.msra.mxu1 %v1119_v62 }
  0x2e   :  { %1027 = vmatprep.subr.bf16.mxu1 %v1122_v63 }
  0x2f   :  { %1006 = vmatpush3.bf16.msra.mxu0 %v1121_v0 }
  0x30   :  { %1007 = vmatprep.subr.bf16.mxu0 %v1124_v1 }
  0x31   :  { %1028 = vmatpush3.bf16.msra.mxu1 %v1123_v2 }
  0x32   :  { %1029 = vmatprep.subr.bf16.mxu1 %v1126_v3 }
  0x33   :  { %1008 = vmatpush3.bf16.msra.mxu0 %v1125_v4 }
  0x34   :  { %1009 = vmatprep.subr.bf16.mxu0 %v1128_v5 }
  0x35   :  { %1030 = vmatpush3.bf16.msra.mxu1 %v1127_v6 }
  0x36   :  { %1031 = vmatprep.subr.bf16.mxu1 %v1130_v7 }
  0x37   :  { %1010 = vmatpush3.bf16.msra.mxu0 %v1129_v8 }
  0x38   :  { %1011 = vmatprep.subr.bf16.mxu0 %v1132_v9 }
  0x39   :  { %1032 = vmatpush3.bf16.msra.mxu1 %v1131_v10 }
  0x3a   :  { %1033 = vmatprep.subr.bf16.mxu1 %v1134_v11 }
  0x3b   :  { %1012 = vmatpush3.bf16.msra.mxu0 %v1133_v12 }
  0x3c   :  { %1013 = vmatprep.subr.bf16.mxu0 %v1136_v13 }
  0x3d   :  { %1034 = vmatpush3.bf16.msra.mxu1 %v1135_v14 }
  0x3e   :  { %1035 = vmatprep.subr.bf16.mxu1 %v1138_v15 }
  0x3f   :  { %1014 = vmatpush3.bf16.msra.mxu0 %v1137_v16 }
  0x40   :  { %1052 = vmatprep.subr.bf16.mxu0 %v1149_v20 }
  0x41   :  { %1036 = vmatpush3.bf16.msra.mxu1 %v1139_v18 }
  0x42   :  { %787 = vmatmul.mubr.bf16.vlgmr.msra.gmra.mxu0 %v200_v17 }
  0x43   :  { %1053 = vmatpush3.bf16.msra.mxu0 %v1140_v19  ;;  %1068 = vmatprep.mubr.msk.bf16.mxu0 %vm1150_vm0, %v1149_v20 }
  0x44   :  { %827 = vmatmul.mubr.bf16.vlgmr.msra.gmra.mxu1 %v216_v21  ;;  %1054 = vmatprep.subr.bf16.mxu0 %v1149_v20 }
  0x47   :  { %1055 = vmatpush3.bf16.msra.mxu0 %v1141_v22 }
  0x48   :  { %1056 = vmatprep.subr.bf16.mxu0 %v1149_v20 }
  0x4b   :  { %1057 = vmatpush3.bf16.msra.mxu0 %v1142_v25 }
  0x4c   :  { %1058 = vmatprep.subr.bf16.mxu0 %v1149_v20 }
  0x4f   :  { %1059 = vmatpush3.bf16.msra.mxu0 %v1143_v26 }
  0x50   :  { %1060 = vmatprep.subr.bf16.mxu0 %v1149_v20 }
  0x53   :  { %1061 = vmatpush3.bf16.msra.mxu0 %v1144_v27 }
  0x54   :  { %1062 = vmatprep.subr.bf16.mxu0 %v1149_v20 }
  0x57   :  { %1063 = vmatpush3.bf16.msra.mxu0 %v1145_v28 }
  0x58   :  { %1064 = vmatprep.subr.bf16.mxu0 %v1149_v20 }
  0x5b   :  { %1065 = vmatpush3.bf16.msra.mxu0 %v1146_v29 }
  0x5c   :  { %1066 = vmatprep.subr.bf16.mxu0 %v1149_v20 }
  0x5f   :  { %1067 = vmatpush3.bf16.msra.mxu0 %v1147_v30 }
  0x62   :  { %1069 = vmatmul.mubr.bf16.vlgmr.msra.gmra.mxu0 %v232_v24 }
  0xe2   :  { %v971_v31 = vpop.f32.mrf.mxu0 }
  0xe4   :  { %v972_v32 = vpop.f32.mrf.mxu0  ;;  %v993_v33 = vpop.f32.mrf.mxu1 }
  0xe5   :  { %v973_v47 = vadd.f32 %v972_v32, %v971_v31 }
  0xe6   :  { %v974_v34 = vpop.f32.mrf.mxu0  ;;  %v994_v35 = vpop.f32.mrf.mxu1 }
  0xe7   :  { %v709_v49 = vadd.f32 %v973_v47, %v881_v48  ;;  %v995_v50 = vadd.f32 %v994_v35, %v993_v33 }
  0xe8   :  { %v975_v36 = vpop.f32.mrf.mxu0  ;;  %v996_v37 = vpop.f32.mrf.mxu1 }
  0xe9   :  { %v749_v52 = vadd.f32 %v995_v50, %v709_v49 }
  0xea   :  { %v997_v38 = vpop.f32.mrf.mxu1 }
 0x102   :  { %v1015_v39 = vpop.f32.mrf.mxu0 }
 0x104   :  { %v1016_v40 = vpop.f32.mrf.mxu0  ;;  %v1037_v41 = vpop.f32.mrf.mxu1 }
 0x105   :  { %v1017_v51 = vadd.f32 %v1016_v40, %v1015_v39 }
 0x106   :  { %v1018_v42 = vpop.f32.mrf.mxu0  ;;  %v1038_v43 = vpop.f32.mrf.mxu1 }
 0x107   :  { %v789_v53 = vadd.f32 %v1017_v51, %v749_v52  ;;  %v1039_v54 = vadd.f32 %v1038_v43, %v1037_v41 }
 0x108   :  { %v1019_v44 = vpop.f32.mrf.mxu0  ;;  %v1040_v45 = vpop.f32.mrf.mxu1 }
 0x109   :  { %v829_v55 = vadd.f32 %v1039_v54, %v789_v53 }
 0x10a   :  { %v1041_v46 = vpop.f32.mrf.mxu1 }
 0x122   :  { %v868_v56 = vpop.f32.mrf.mxu0 }
 0x123   :  { %v869_v57 = vadd.f32 %v868_v56, %v829_v55 }
 0x124   :  { %v1070_v58 = vpop.f32.mrf.mxu0 }
 0x125   :  { %v874_v59 = vmax.f32 %v869_v57, 0.0 }
 0x126   :  { %v871_v60 = vpop.f32.mrf.mxu0 }
 0x127   :  { %v875_v61 = vpack.c.bf16 %v874_v59, %v874_v59 }
 0x128   :  { %v1071_v62 = vpop.f32.mrf.mxu0 }
 0x129   :  { %876 = vst [vmem:[%s1416_s3] sm:$0x1] %v875_v61 }

// kernel: resnet_forward.39
= control target key start
LH: loop header
LB: loop body
LE: loop exit
PB: predicated region body
PF: predicated region fallthrough
CT: control target
= control target key end

     0   :  { %v1154_v21 = vmov 1966171168   ;;  %v177_v23 = vlaneseq  ;;  %vm1156_vm0 = vmmov 0   ;;  %s1427_s1 = inlined_call_operand.vmem [shape: bf16[1152,128], index: 1, kind: input, shape index: {}]   ;;  %s1428_s0 = inlined_call_operand.vmem [shape: bf16[2,1152], index: 0, kind: input, shape index: {}]   ;;  %s1429_s2 = inlined_call_operand.vmem [shape: f32[1,128], index: 2, kind: input, shape index: {}]   ;;  %s1430_s3 = inlined_call_operand.vmem [shape: bf16[2,128], index: 3, kind: input, shape index: {}]   ;;  %s1431_s4 = inlined_call_operand.vmem [shape: bf16[2,128], index: 4, kind: output, shape index: {}]  }
   0x1   :  { %v1081_v0 = vld [vmem:[%s1427_s1 + $0x78] sm:$0xff]   ;;  %v1085_v4 = vld [vmem:[%s1427_s1 + $0x70] sm:$0xff]   ;;  %v1089_v8 = vld [vmem:[%s1427_s1 + $0x68] sm:$0xff]   ;;  %v175_v22 = vunpack.c.l.s4 %v1154_v21 }
   0x2   :  { %v1082_v1 = vld [vmem:[%s1427_s1 + $0x38] sm:$0xff]   ;;  %961 = vmatprep.subr.bf16.mxu0 %v1081_v0  ;;  %v1086_v5 = vld [vmem:[%s1427_s1 + $0x30] sm:$0xff]   ;;  %v1090_v9 = vld [vmem:[%s1427_s1 + $0x28] sm:$0xff]   ;;  %v178_v29 = vshrl.u32 %v177_v23, 7 }
   0x3   :  { %v1083_v2 = vld [vmem:[%s1427_s1 + $0xf8] sm:$0xff]   ;;  %962 = vmatpush3.bf16.msra.mxu0 %v1082_v1  ;;  %v1087_v6 = vld [vmem:[%s1427_s1 + $0xf0] sm:$0xff]   ;;  %v1091_v10 = vld [vmem:[%s1427_s1 + $0xe8] sm:$0xff]   ;;  %v176_v28 = vunpack.c.0.s8 %v175_v22 }
   0x4   :  { %v1084_v3 = vld [vmem:[%s1427_s1 + $0xb8] sm:$0xff]   ;;  %983 = vmatprep.subr.bf16.mxu1 %v1083_v2  ;;  %963 = vmatprep.subr.bf16.mxu0 %v1085_v4  ;;  %v1088_v7 = vld [vmem:[%s1427_s1 + $0xb0] sm:$0xff]   ;;  %v1092_v11 = vld [vmem:[%s1427_s1 + $0xa8] sm:$0xff]  }
   0x5   :  { %984 = vmatpush3.bf16.msra.mxu1 %v1084_v3  ;;  %v1093_v12 = vld [vmem:[%s1427_s1 + $0x60] sm:$0xff]   ;;  %v1097_v16 = vld [vmem:[%s1427_s1 + $0x58] sm:$0xff]   ;;  %v1101_v20 = vld [vmem:[%s1427_s1 + $0x50] sm:$0xff]   ;;  %v1269_v34 = vsub.s32 %v176_v28, %v178_v29 }
   0x6   :  { %985 = vmatprep.subr.bf16.mxu1 %v1087_v6  ;;  %v1094_v13 = vld [vmem:[%s1427_s1 + $0x20] sm:$0xff]   ;;  %v1098_v17 = vld [vmem:[%s1427_s1 + $0x18] sm:$0xff]   ;;  %v1102_v24 = vld [vmem:[%s1427_s1 + $0x10] sm:$0xff]  }
   0x7   :  { %964 = vmatpush3.bf16.msra.mxu0 %v1086_v5  ;;  %v1095_v14 = vld [vmem:[%s1427_s1 + $0xe0] sm:$0xff]   ;;  %v1099_v18 = vld [vmem:[%s1427_s1 + $0xd8] sm:$0xff]   ;;  %v1103_v25 = vld [vmem:[%s1427_s1 + $0xd0] sm:$0xff]  }
   0x8   :  { %965 = vmatprep.subr.bf16.mxu0 %v1089_v8  ;;  %v1096_v15 = vld [vmem:[%s1427_s1 + $0xa0] sm:$0xff]   ;;  %v1100_v19 = vld [vmem:[%s1427_s1 + $0x98] sm:$0xff]   ;;  %v1104_v26 = vld [vmem:[%s1427_s1 + $0x90] sm:$0xff]  }
   0x9   :  { %986 = vmatpush3.bf16.msra.mxu1 %v1088_v7  ;;  %v1105_v27 = vld [vmem:[%s1427_s1 + $0x48] sm:$0xff]   ;;  %v1109_v33 = vld [vmem:[%s1427_s1 + $0x40] sm:$0xff]   ;;  %v1114_v41 = vld [vmem:[%s1427_s1 + $0x178] sm:$0xff]  }
   0xa   :  { %987 = vmatprep.subr.bf16.mxu1 %v1091_v10  ;;  %v1106_v30 = vld [vmem:[%s1427_s1 + $0x8] sm:$0xff]   ;;  %v1110_v35 = vld [vmem:[%s1427_s1] sm:$0xff]   ;;  %v1116_v45 = vld [vmem:[%s1427_s1 + $0x1f8] sm:$0xff]  }
   0xb   :  { %966 = vmatpush3.bf16.msra.mxu0 %v1090_v9  ;;  %v1107_v31 = vld [vmem:[%s1427_s1 + $0xc8] sm:$0xff]   ;;  %v1111_v36 = vld [vmem:[%s1427_s1 + $0xc0] sm:$0xff]   ;;  %v1115_v47 = vld [vmem:[%s1427_s1 + $0x138] sm:$0xff]  }
   0xc   :  { %967 = vmatprep.subr.bf16.mxu0 %v1093_v12  ;;  %v1108_v32 = vld [vmem:[%s1427_s1 + $0x88] sm:$0xff]   ;;  %v18_v37 = vld [vmem:[%s1428_s0] sm:$0xff]  ;;  %v1118_v50 = vld [vmem:[%s1427_s1 + $0x170] sm:$0xff]  }
   0xd   :  { %988 = vmatpush3.bf16.msra.mxu1 %v1092_v11  ;;  %v173_v38 = vcombine.high %v18_v37, %v18_v37  ;;  %v180_v39 = vrot.slane %v18_v37, %v1269_v34  ;;  %v1113_v40 = vld [vmem:[%s1427_s1 + $0x80] sm:$0xff]   ;;  %v1117_v52 = vld [vmem:[%s1427_s1 + $0x1b8] sm:$0xff]   ;;  %v1120_v54 = vld [vmem:[%s1427_s1 + $0x1f0] sm:$0xff]  }
   0xe   :  { %989 = vmatprep.subr.bf16.mxu1 %v1095_v14  ;;  %v1119_v55 = vld [vmem:[%s1427_s1 + $0x130] sm:$0xff]   ;;  %v1122_v57 = vld [vmem:[%s1427_s1 + $0x168] sm:$0xff]   ;;  %v1126_v61 = vld [vmem:[%s1427_s1 + $0x160] sm:$0xff]  }
   0xf   :  { %968 = vmatpush3.bf16.msra.mxu0 %v1094_v13  ;;  %v188_v42 = vcombine.high %v180_v39, %v180_v39  ;;  %v196_v43 = vrot.slane %v180_v39, %v1269_v34  ;;  %v1289_v44 = vrot.slane %v173_v38, %v1269_v34  ;;  %v1121_v58 = vld [vmem:[%s1427_s1 + $0x1b0] sm:$0xff]   ;;  %v1124_v59 = vld [vmem:[%s1427_s1 + $0x1e8] sm:$0xff]   ;;  %v1128_v63 = vld [vmem:[%s1427_s1 + $0x1e0] sm:$0xff]  }
  0x10   :  { %969 = vmatprep.subr.bf16.mxu0 %v1097_v16  ;;  %v1123_v60 = vld [vmem:[%s1427_s1 + $0x128] sm:$0xff]   ;;  %v1127_v0 = vld [vmem:[%s1427_s1 + $0x120] sm:$0xff]   ;;  %v1130_v1 = vld [vmem:[%s1427_s1 + $0x158] sm:$0xff]  }
  0x11   :  { %990 = vmatpush3.bf16.msra.mxu1 %v1096_v15  ;;  %v210_v46 = vrot.slane %v188_v42, %v1269_v34  ;;  %v189_v48 = vcombine.high %v1289_v44, %v1289_v44  ;;  %v218_v49 = vcombine.high %v196_v43, %v196_v43  ;;  %v1125_v62 = vld [vmem:[%s1427_s1 + $0x1a8] sm:$0xff]   ;;  %v1129_v2 = vld [vmem:[%s1427_s1 + $0x1a0] sm:$0xff]   ;;  %v1132_v3 = vld [vmem:[%s1427_s1 + $0x1d8] sm:$0xff]  }
  0x12   :  { %991 = vmatprep.subr.bf16.mxu1 %v1099_v18  ;;  %v1131_v4 = vld [vmem:[%s1427_s1 + $0x118] sm:$0xff]   ;;  %v1134_v5 = vld [vmem:[%s1427_s1 + $0x150] sm:$0xff]   ;;  %v1138_v9 = vld [vmem:[%s1427_s1 + $0x148] sm:$0xff]  }
  0x13   :  { %970 = vmatpush3.bf16.msra.mxu0 %v1098_v17  ;;  %709 = vmatprep.mubr.bf16.mxu0 %v210_v46  ;;  %v220_v51 = vcombine.high %v210_v46, %v210_v46  ;;  %v217_v53 = vrot.slane %v189_v48, %v1269_v34  ;;  %v1133_v6 = vld [vmem:[%s1427_s1 + $0x198] sm:$0xff]   ;;  %v1136_v7 = vld [vmem:[%s1427_s1 + $0x1d0] sm:$0xff]   ;;  %v1140_v11 = vld [vmem:[%s1427_s1 + $0x1c8] sm:$0xff]   ;;  %v203_v17 = vrot.slane %v1289_v44, %v1269_v34 }
  0x14   :  { %971 = vmatprep.subr.bf16.mxu0 %v1101_v20  ;;  %v1135_v8 = vld [vmem:[%s1427_s1 + $0x110] sm:$0xff]   ;;  %v1139_v12 = vld [vmem:[%s1427_s1 + $0x108] sm:$0xff]   ;;  %v1142_v13 = vld [vmem:[%s1427_s1 + $0x140] sm:$0xff]   ;;  %v1155_v20 = vmov 0.0  }
  0x15   :  { %992 = vmatpush3.bf16.msra.mxu1 %v1100_v19  ;;  %749 = vmatprep.mubr.bf16.mxu1 %v220_v51  ;;  %v221_v56 = vcombine.high %v217_v53, %v217_v53  ;;  %v1137_v10 = vld [vmem:[%s1427_s1 + $0x190] sm:$0xff]   ;;  %v1141_v14 = vld [vmem:[%s1427_s1 + $0x188] sm:$0xff]   ;;  %v1144_v15 = vld [vmem:[%s1427_s1 + $0x1c0] sm:$0xff]   ;;  %v219_v21 = vcombine.high %v203_v17, %v203_v17 }
  0x16   :  { %993 = vmatprep.subr.bf16.mxu1 %v1103_v25  ;;  %v1143_v16 = vld [vmem:[%s1427_s1 + $0x100] sm:$0xff]   ;;  %v1146_v19 = vld [vmem:[%s1427_s1 + $0x238] sm:$0xff]   ;;  %v1147_v22 = vld [vmem:[%s1427_s1 + $0x230] sm:$0xff]  }
  0x17   :  { %972 = vmatpush3.bf16.msra.mxu0 %v1102_v24  ;;  %v1145_v18 = vld [vmem:[%s1427_s1 + $0x180] sm:$0xff]   ;;  %v888_v23 = vld.sshfl [vmem:[%s1428_s0 + $0x8] sm:$0x1 pattern:$0x75316420]  ;;  %v1151_v28 = vld [vmem:[%s1427_s1 + $0x210] sm:$0xff]  }
  0x18   :  { %973 = vmatprep.subr.bf16.mxu0 %v1105_v27  ;;  %v235_v24 = vrot.slane %v888_v23, %v1269_v34  ;;  %v1148_v25 = vld [vmem:[%s1427_s1 + $0x228] sm:$0xff]   ;;  %v1150_v27 = vld [vmem:[%s1427_s1 + $0x218] sm:$0xff]   ;;  %v887_v48 = vld [vmem:[%s1429_s2] ss:$0 sm:$0xff] }
  0x19   :  { %994 = vmatpush3.bf16.msra.mxu1 %v1104_v26  ;;  %v1149_v26 = vld [vmem:[%s1427_s1 + $0x220] sm:$0xff]   ;;  %v1152_v29 = vld [vmem:[%s1427_s1 + $0x208] sm:$0xff]  }
  0x1a   :  { %995 = vmatprep.subr.bf16.mxu1 %v1107_v31 }
  0x1b   :  { %974 = vmatpush3.bf16.msra.mxu0 %v1106_v30  ;;  %v1153_v30 = vld [vmem:[%s1427_s1 + $0x200] sm:$0xff]  }
  0x1c   :  { %975 = vmatprep.subr.bf16.mxu0 %v1109_v33 }
  0x1d   :  { %996 = vmatpush3.bf16.msra.mxu1 %v1108_v32 }
  0x1e   :  { %997 = vmatprep.subr.bf16.mxu1 %v1111_v36 }
  0x1f   :  { %976 = vmatpush3.bf16.msra.mxu0 %v1110_v35 }
  0x20   :  { %1005 = vmatprep.subr.bf16.mxu0 %v1114_v41 }
  0x21   :  { %998 = vmatpush3.bf16.msra.mxu1 %v1113_v40 }
  0x22   :  { %1027 = vmatprep.subr.bf16.mxu1 %v1116_v45  ;;  %710 = vmatmul.mubr.bf16.vlgmr.msra.gmra.mxu0 %v196_v43 }
  0x23   :  { %1006 = vmatpush3.bf16.msra.mxu0 %v1115_v47  ;;  %789 = vmatprep.mubr.bf16.mxu0 %v217_v53 }
  0x24   :  { %750 = vmatmul.mubr.bf16.vlgmr.msra.gmra.mxu1 %v218_v49  ;;  %1007 = vmatprep.subr.bf16.mxu0 %v1118_v50 }
  0x25   :  { %1028 = vmatpush3.bf16.msra.mxu1 %v1117_v52  ;;  %829 = vmatprep.mubr.bf16.mxu1 %v221_v56 }
  0x26   :  { %1029 = vmatprep.subr.bf16.mxu1 %v1120_v54 }
  0x27   :  { %1008 = vmatpush3.bf16.msra.mxu0 %v1119_v55  ;;  %v877_v55 = vld [vmem:[%s1430_s3] sm:$0x1] }
  0x28   :  { %1009 = vmatprep.subr.bf16.mxu0 %v1122_v57  ;;  %v878_v57 = vunpack.c.l.bf16 %v877_v55 }
  0x29   :  { %1030 = vmatpush3.bf16.msra.mxu1 %v1121_v58 }
  0x2a   :  { %1031 = vmatprep.subr.bf16.mxu1 %v1124_v59 }
  0x2b   :  { %1010 = vmatpush3.bf16.msra.mxu0 %v1123_v60 }
  0x2c   :  { %1011 = vmatprep.subr.bf16.mxu0 %v1126_v61 }
  0x2d   :  { %1032 = vmatpush3.bf16.msra.mxu1 %v1125_v62 }
  0x2e   :  { %1033 = vmatprep.subr.bf16.mxu1 %v1128_v63 }
  0x2f   :  { %1012 = vmatpush3.bf16.msra.mxu0 %v1127_v0 }
  0x30   :  { %1013 = vmatprep.subr.bf16.mxu0 %v1130_v1 }
  0x31   :  { %1034 = vmatpush3.bf16.msra.mxu1 %v1129_v2 }
  0x32   :  { %1035 = vmatprep.subr.bf16.mxu1 %v1132_v3 }
  0x33   :  { %1014 = vmatpush3.bf16.msra.mxu0 %v1131_v4 }
  0x34   :  { %1015 = vmatprep.subr.bf16.mxu0 %v1134_v5 }
  0x35   :  { %1036 = vmatpush3.bf16.msra.mxu1 %v1133_v6 }
  0x36   :  { %1037 = vmatprep.subr.bf16.mxu1 %v1136_v7 }
  0x37   :  { %1016 = vmatpush3.bf16.msra.mxu0 %v1135_v8 }
  0x38   :  { %1017 = vmatprep.subr.bf16.mxu0 %v1138_v9 }
  0x39   :  { %1038 = vmatpush3.bf16.msra.mxu1 %v1137_v10 }
  0x3a   :  { %1039 = vmatprep.subr.bf16.mxu1 %v1140_v11 }
  0x3b   :  { %1018 = vmatpush3.bf16.msra.mxu0 %v1139_v12 }
  0x3c   :  { %1019 = vmatprep.subr.bf16.mxu0 %v1142_v13 }
  0x3d   :  { %1040 = vmatpush3.bf16.msra.mxu1 %v1141_v14 }
  0x3e   :  { %1041 = vmatprep.subr.bf16.mxu1 %v1144_v15 }
  0x3f   :  { %1020 = vmatpush3.bf16.msra.mxu0 %v1143_v16 }
  0x40   :  { %1058 = vmatprep.subr.bf16.mxu0 %v1155_v20 }
  0x41   :  { %1042 = vmatpush3.bf16.msra.mxu1 %v1145_v18 }
  0x42   :  { %790 = vmatmul.mubr.bf16.vlgmr.msra.gmra.mxu0 %v203_v17 }
  0x43   :  { %1059 = vmatpush3.bf16.msra.mxu0 %v1146_v19  ;;  %1074 = vmatprep.mubr.msk.bf16.mxu0 %vm1156_vm0, %v1155_v20 }
  0x44   :  { %830 = vmatmul.mubr.bf16.vlgmr.msra.gmra.mxu1 %v219_v21  ;;  %1060 = vmatprep.subr.bf16.mxu0 %v1155_v20 }
  0x47   :  { %1061 = vmatpush3.bf16.msra.mxu0 %v1147_v22 }
  0x48   :  { %1062 = vmatprep.subr.bf16.mxu0 %v1155_v20 }
  0x4b   :  { %1063 = vmatpush3.bf16.msra.mxu0 %v1148_v25 }
  0x4c   :  { %1064 = vmatprep.subr.bf16.mxu0 %v1155_v20 }
  0x4f   :  { %1065 = vmatpush3.bf16.msra.mxu0 %v1149_v26 }
  0x50   :  { %1066 = vmatprep.subr.bf16.mxu0 %v1155_v20 }
  0x53   :  { %1067 = vmatpush3.bf16.msra.mxu0 %v1150_v27 }
  0x54   :  { %1068 = vmatprep.subr.bf16.mxu0 %v1155_v20 }
  0x57   :  { %1069 = vmatpush3.bf16.msra.mxu0 %v1151_v28 }
  0x58   :  { %1070 = vmatprep.subr.bf16.mxu0 %v1155_v20 }
  0x5b   :  { %1071 = vmatpush3.bf16.msra.mxu0 %v1152_v29 }
  0x5c   :  { %1072 = vmatprep.subr.bf16.mxu0 %v1155_v20 }
  0x5f   :  { %1073 = vmatpush3.bf16.msra.mxu0 %v1153_v30 }
  0x62   :  { %1075 = vmatmul.mubr.bf16.vlgmr.msra.gmra.mxu0 %v235_v24 }
  0xe2   :  { %v977_v31 = vpop.f32.mrf.mxu0 }
  0xe4   :  { %v978_v32 = vpop.f32.mrf.mxu0  ;;  %v999_v33 = vpop.f32.mrf.mxu1 }
  0xe5   :  { %v979_v47 = vadd.f32 %v978_v32, %v977_v31 }
  0xe6   :  { %v980_v34 = vpop.f32.mrf.mxu0  ;;  %v1000_v35 = vpop.f32.mrf.mxu1 }
  0xe7   :  { %v712_v49 = vadd.f32 %v979_v47, %v887_v48  ;;  %v1001_v50 = vadd.f32 %v1000_v35, %v999_v33 }
  0xe8   :  { %v981_v36 = vpop.f32.mrf.mxu0  ;;  %v1002_v37 = vpop.f32.mrf.mxu1 }
  0xe9   :  { %v752_v52 = vadd.f32 %v1001_v50, %v712_v49 }
  0xea   :  { %v1003_v38 = vpop.f32.mrf.mxu1 }
 0x102   :  { %v1021_v39 = vpop.f32.mrf.mxu0 }
 0x104   :  { %v1022_v40 = vpop.f32.mrf.mxu0  ;;  %v1043_v41 = vpop.f32.mrf.mxu1 }
 0x105   :  { %v1023_v51 = vadd.f32 %v1022_v40, %v1021_v39 }
 0x106   :  { %v1024_v42 = vpop.f32.mrf.mxu0  ;;  %v1044_v43 = vpop.f32.mrf.mxu1 }
 0x107   :  { %v792_v53 = vadd.f32 %v1023_v51, %v752_v52  ;;  %v1045_v54 = vadd.f32 %v1044_v43, %v1043_v41 }
 0x108   :  { %v1025_v44 = vpop.f32.mrf.mxu0  ;;  %v1046_v45 = vpop.f32.mrf.mxu1 }
 0x109   :  { %v832_v56 = vadd.f32 %v1045_v54, %v792_v53 }
 0x10a   :  { %v1047_v46 = vpop.f32.mrf.mxu1 }
 0x122   :  { %v871_v58 = vpop.f32.mrf.mxu0 }
 0x123   :  { %v872_v59 = vadd.f32 %v871_v58, %v832_v56 }
 0x124   :  { %v1076_v60 = vpop.f32.mrf.mxu0 }
 0x125   :  { %v879_v61 = vadd.f32 %v878_v57, %v872_v59 }
 0x126   :  { %v874_v62 = vpop.f32.mrf.mxu0 }
 0x127   :  { %v880_v63 = vmax.f32 %v879_v61, 0.0 }
 0x128   :  { %v1077_v0 = vpop.f32.mrf.mxu0 }
 0x129   :  { %v881_v1 = vpack.c.bf16 %v880_v63, %v880_v63 }
 0x12b   :  { %882 = vst [vmem:[%s1431_s4] sm:$0x1] %v881_v1 }

</bundles_post_ra>
